<compile_context>
chip_gen: v7x
topology: tpu7x:2x2x1
jax: 0.10.0
libtpu: 0.0.40
codegen_flags: <defaults>
</compile_context>

<pallas_src>
import functools

import jax
import jax.numpy as jnp
from jax.experimental import pallas as pl
from jax.experimental.pallas import tpu as pltpu


# ----------------------------- math helpers ----------------------------------

def _sigmoid(x):
    return 1.0 / (1.0 + jnp.exp(-x))


def _log_sigmoid(x):
    # stable: -softplus(-x) = min(x, 0) - log(1 + exp(-|x|))
    return jnp.minimum(x, 0.0) - jnp.log(1.0 + jnp.exp(-jnp.abs(x)))


def _round_up(x, m):
    return ((x + m - 1) // m) * m


# ----------------------------- Pallas kernel ---------------------------------

def _routing_kernel(a_ref, mu_ref, w_ref, b_ref, bu_ref, bi_ref,
                    a_out_ref, mu_out_ref, sig2_out_ref,
                    *, n_inp, n_out, d_cov, d_out, n_iters, eps, p_model):
    """One batch block per grid step.

    Block shapes:
      a_ref:        (n_inp, B_BLK, 1)
      mu_ref:       (n_inp, B_BLK, d_cov*d_inp)
      w_ref:        (n_inp, d_cov*d_inp, n_out*d_cov*d_out)   [block-diag over c]
      b_ref:        (n_inp, 1, n_out*d_cov*d_out)
      bu_ref/bi_ref:(n_inp, n_out, 1, 1)
      a_out_ref:    (B_BLK, n_out)
      mu_out_ref:   (B_BLK, n_out*d_cov*d_out)
      sig2_out_ref: (B_BLK, n_out*d_cov*d_out)
    """
    f32 = jnp.float32
    dch = d_cov * d_out
    bblk = mu_ref.shape[1]

    # ---- Votes: one MXU matmul per input capsule, batched over B_BLK rows ----
    v_rows = []
    for i in range(n_inp):
        vi = jnp.dot(mu_ref[i], w_ref[i], preferred_element_type=f32) + b_ref[i]
        v_rows.append(vi)                                # (B_BLK, n_out*dch)

    # V[i, j]: (B_BLK, d_cov*d_out) — rows = batch, lanes = (c, h)
    V = jnp.stack(
        [jnp.stack([vi[:, j * dch:(j + 1) * dch] for j in range(n_out)], axis=0)
         for vi in v_rows], axis=0)                      # (n_inp, n_out, B_BLK, dch)

    f_a = _sigmoid(a_ref[...])[:, None, :, :]            # (n_inp, 1, B_BLK, 1)
    bu = bu_ref[...]                                     # (n_inp, n_out, 1, 1)
    bi = bi_ref[...]

    a_out = mu_out = sig2 = None
    for it in range(n_iters):
        # ------------------------------ E-step --------------------------------
        if it == 0:
            R = jnp.full((n_inp, n_out, bblk, 1), 1.0 / n_out, f32)
        else:
            # Recompute (V - mu_out)^2 instead of carrying the full tensor.
            diff2 = (V - mu_out[None]) ** 2              # (n_inp, n_out, B_BLK, dch)
            log_fa_out = _log_sigmoid(a_out)[None]       # (1, n_out, B_BLK, 1)
            if p_model == 'gaussian':
                maha = jnp.sum(diff2 * (0.5 / sig2)[None], axis=-1, keepdims=True)
                half_logdet = 0.5 * jnp.sum(jnp.log(sig2), axis=-1, keepdims=True)
                logits = log_fa_out - maha - half_logdet[None]
            else:  # 'skm': log_softmax over j of -||V - mu||^2
                neg_d2 = -jnp.sum(diff2, axis=-1, keepdims=True)
                m = jnp.max(neg_d2, axis=1, keepdims=True)
                lse = jnp.log(jnp.sum(jnp.exp(neg_d2 - m), axis=1, keepdims=True)) + m
                logits = log_fa_out + (neg_d2 - lse)
            # softmax over j (axis 1): leading-axis reductions, pure VALU.
            m = jnp.max(logits, axis=1, keepdims=True)
            e = jnp.exp(logits - m)
            R = e / jnp.sum(e, axis=1, keepdims=True)    # (n_inp, n_out, B_BLK, 1)

        # ------------------------------ M-step --------------------------------
        D_use = f_a * R                                  # (n_inp, n_out, B_BLK, 1)
        D_ign = f_a - D_use
        a_out = jnp.sum(bu * D_use - bi * D_ign, axis=0)               # (n_out, B_BLK, 1)
        nD = D_use / (jnp.sum(D_use, axis=0, keepdims=True) + eps)
        mu_out = jnp.sum(nD * V, axis=0)                               # (n_out, B_BLK, dch)
        Vlm2 = (V - mu_out[None]) ** 2
        sig2 = jnp.sum(nD * Vlm2, axis=0) + eps                        # (n_out, B_BLK, dch)

    # ---- lane-dense output slabs ---------------------------------------------
    a_out_ref[...] = jnp.concatenate([a_out[j] for j in range(n_out)], axis=-1)
    mu_out_ref[...] = jnp.concatenate([mu_out[j] for j in range(n_out)], axis=-1)
    sig2_out_ref[...] = jnp.concatenate([sig2[j] for j in range(n_out)], axis=-1)


# ----------------------------- wrapper ---------------------------------------

def generative_matrix_routing(a_inp, mu_inp, W, Bp, beta_use, beta_ign,
                              *, n_iters=3, eps=1e-5, p_model='gaussian',
                              block_batch=128):
    """a_inp: [B, n_inp]; mu_inp: [B, n_inp, d_cov, d_inp];
       W: [n_inp, n_out, d_inp, d_out]; Bp: [n_inp, n_out, d_cov, d_out];
       beta_*: [n_inp, n_out]."""
    f32 = jnp.float32
    Bt, n_inp = a_inp.shape
    _, _, d_cov, d_inp = mu_inp.shape
    _, n_out, _, d_out = W.shape
    dch = d_cov * d_out
    L = n_out * dch                 # lane-dense output width
    Kd = d_cov * d_inp              # matmul contraction width

    # Batch block: multiple of 8 sublanes; pad batch to a multiple of it.
    b_blk = _round_up(max(8, min(block_batch, _round_up(Bt, 8))), 8)
    B_pad = _round_up(Bt, b_blk)
    pad = B_pad - Bt

    a_p = jnp.pad(a_inp.astype(f32), ((0, pad), (0, 0)))
    mu_p = jnp.pad(mu_inp.astype(f32), ((0, pad), (0, 0), (0, 0), (0, 0)))

    # Capsule-major inputs: rows = batch, lanes = flattened capsule dims.
    a_t = jnp.transpose(a_p, (1, 0))[:, :, None]                         # (n_inp, B_pad, 1)
    mu_t = jnp.transpose(mu_p, (1, 0, 2, 3)).reshape(n_inp, B_pad, Kd)   # (n_inp, B_pad, d_cov*d_inp)

    # Block-diagonal (over d_cov) per-i weights with lane order (j, c, h):
    #   Wbd[i, c*d_inp + d, (j*d_cov + c)*d_out + h] = W[i, j, d, h]
    eye_c = jnp.eye(d_cov, dtype=f32)
    Wbd = jnp.einsum('cC,ijdh->icdjCh', eye_c, W.astype(f32)).reshape(n_inp, Kd, L)
    bias_f = Bp.astype(f32).reshape(n_inp, 1, L)
    bu4 = beta_use.astype(f32).reshape(n_inp, n_out, 1, 1)
    bi4 = beta_ign.astype(f32).reshape(n_inp, n_out, 1, 1)

    kernel = functools.partial(_routing_kernel, n_inp=n_inp, n_out=n_out,
                               d_cov=d_cov, d_out=d_out, n_iters=n_iters,
                               eps=eps, p_model=p_model)

    out_shapes = (
        jax.ShapeDtypeStruct((B_pad, n_out), f32),
        jax.ShapeDtypeStruct((B_pad, L), f32),
        jax.ShapeDtypeStruct((B_pad, L), f32),
    )

    grid_spec = pltpu.PrefetchScalarGridSpec(
        num_scalar_prefetch=0,
        grid=(B_pad // b_blk,),
        in_specs=[
            pl.BlockSpec((n_inp, b_blk, 1), lambda b: (0, b, 0)),
            pl.BlockSpec((n_inp, b_blk, Kd), lambda b: (0, b, 0)),
            # Parameters: constant block index -> kept resident across steps.
            pl.BlockSpec((n_inp, Kd, L), lambda b: (0, 0, 0)),
            pl.BlockSpec((n_inp, 1, L), lambda b: (0, 0, 0)),
            pl.BlockSpec((n_inp, n_out, 1, 1), lambda b: (0, 0, 0, 0)),
            pl.BlockSpec((n_inp, n_out, 1, 1), lambda b: (0, 0, 0, 0)),
        ],
        out_specs=[
            pl.BlockSpec((b_blk, n_out), lambda b: (b, 0)),
            pl.BlockSpec((b_blk, L), lambda b: (b, 0)),
            pl.BlockSpec((b_blk, L), lambda b: (b, 0)),
        ],
    )

    a_o, mu_o, s_o = pl.pallas_call(
        kernel,
        out_shape=out_shapes,
        grid_spec=grid_spec,
        compiler_params=pltpu.CompilerParams(
            dimension_semantics=("parallel",),          # batch blocks are independent
            vmem_limit_bytes=48 * 1024 * 1024),
    )(a_t, mu_t, Wbd, bias_f, bu4, bi4)

    a_out = a_o[:Bt]
    mu_out = mu_o[:Bt].reshape(Bt, n_out, d_cov, d_out)
    sig2_out = s_o[:Bt].reshape(Bt, n_out, d_cov, d_out)
    return a_out, mu_out, sig2_out


# ----------------------------- plain-JAX reference (for validation) ----------

def _reference(a_inp, mu_inp, W, Bp, beta_use, beta_ign,
               *, n_out, n_iters, eps, p_model='gaussian'):
    V = jnp.einsum('bicd,ijdh->bijch', mu_inp, W,
                   precision=jax.lax.Precision.HIGHEST) + Bp
    f_a = jax.nn.sigmoid(a_inp)[..., None]                   # (B, n_inp, 1)
    a_out = mu_out = sig2 = Vlm2 = None
    for it in range(n_iters):
        if it == 0:
            R = jnp.full(V.shape[:3], 1.0 / n_out, V.dtype)
        else:
            if p_model == 'gaussian':
                log_p = (-jnp.sum(Vlm2 * (0.5 / sig2)[:, None], axis=(-2, -1))
                         - jnp.sum(0.5 * jnp.log(sig2), axis=(-2, -1))[:, None, :])
            else:
                log_p = jax.nn.log_softmax(-jnp.sum(Vlm2, axis=(-2, -1)), axis=-1)
            R = jax.nn.softmax(jax.nn.log_sigmoid(a_out)[:, None, :] + log_p, axis=-1)
        D_use = f_a * R
        D_ign = f_a - D_use
        a_out = jnp.sum(beta_use * D_use, axis=-2) - jnp.sum(beta_ign * D_ign, axis=-2)
        nD = D_use / (jnp.sum(D_use, axis=-2, keepdims=True) + eps)
        mu_out = jnp.sum(nD[..., None, None] * V, axis=1)
        Vlm2 = (V - mu_out[:, None]) ** 2
        sig2 = jnp.sum(nD[..., None, None] * Vlm2, axis=1) + eps
    return a_out, mu_out, sig2


# ----------------------------- main -------------------------------------------

if __name__ == "__main__":
    Bt, n_inp, n_out = 20, 8, 4
    d_cov, d_inp, d_out = 4, 6, 8
    n_iters, eps = 3, 1e-5

    key = jax.random.PRNGKey(0)
    k1, k2, k3, k4, k5, k6 = jax.random.split(key, 6)

    a_inp = jax.random.normal(k1, (Bt, n_inp), dtype=jnp.float32)
    mu_inp = jax.random.normal(k2, (Bt, n_inp, d_cov, d_inp), dtype=jnp.float32)

    # Parameters (shapes as in the PyTorch module's __init__):
    W = jax.random.normal(k3, (n_inp, n_out, d_inp, d_out), dtype=jnp.float32) / d_inp
    Bp = 0.05 * jax.random.normal(k4, (n_inp, n_out, d_cov, d_out), dtype=jnp.float32)
    beta_use = 0.1 * jax.random.normal(k5, (n_inp, n_out), dtype=jnp.float32)
    beta_ign = 0.1 * jax.random.normal(k6, (n_inp, n_out), dtype=jnp.float32)

    for pm in ('gaussian', 'skm'):
        a_out, mu_out, sig2_out = generative_matrix_routing(
            a_inp, mu_inp, W, Bp, beta_use, beta_ign,
            n_iters=n_iters, eps=eps, p_model=pm,
            block_batch=8)  # small block so the demo exercises a multi-step grid + padding
        jax.block_until_ready((a_out, mu_out, sig2_out))

        ra, rm, rs = _reference(a_inp, mu_inp, W, Bp, beta_use, beta_ign,
                                n_out=n_out, n_iters=n_iters, eps=eps, p_model=pm)
        assert a_out.shape == (Bt, n_out)
        assert mu_out.shape == (Bt, n_out, d_cov, d_out)
        assert sig2_out.shape == (Bt, n_out, d_cov, d_out)
        assert jnp.allclose(a_out, ra, rtol=2e-3, atol=2e-3), pm
        assert jnp.allclose(mu_out, rm, rtol=2e-3, atol=2e-3), pm
        assert jnp.allclose(sig2_out, rs, rtol=2e-3, atol=2e-3), pm

    print("KERNEL_OK")
</pallas_src>

<mosaic_0001>
module attributes {stable_mosaic.version = 11 : i64} {
  func.func @_routing_kernel(%arg0: i32, %arg1: memref<8x8x1xf32, #tpu.memory_space<vmem>>, %arg2: memref<8x8x24xf32, #tpu.memory_space<vmem>>, %arg3: memref<8x24x128xf32, #tpu.memory_space<vmem>>, %arg4: memref<8x1x128xf32, #tpu.memory_space<vmem>>, %arg5: memref<8x4x1x1xf32, #tpu.memory_space<vmem>>, %arg6: memref<8x4x1x1xf32, #tpu.memory_space<vmem>>, %arg7: memref<8x4xf32, #tpu.memory_space<vmem>>, %arg8: memref<8x128xf32, #tpu.memory_space<vmem>>, %arg9: memref<8x128xf32, #tpu.memory_space<vmem>>) attributes {dimension_semantics = [#tpu.dimension_semantics<parallel>], iteration_bounds = array<i64: 3>, scalar_prefetch = 0 : i64, scratch_operands = 0 : i64, tpu.core_type = #tpu.core_type<tc>, window_params = [{transform_indices = @transform_0, window_bounds = array<i64: 8, 8, 1>}, {transform_indices = @transform_1, window_bounds = array<i64: 8, 8, 24>}, {pipeline_mode = #tpu.pipeline_mode<synchronous>, transform_indices = @transform_2, window_bounds = array<i64: 8, 24, 128>}, {pipeline_mode = #tpu.pipeline_mode<synchronous>, transform_indices = @transform_3, window_bounds = array<i64: 8, 1, 128>}, {pipeline_mode = #tpu.pipeline_mode<synchronous>, transform_indices = @transform_4, window_bounds = array<i64: 8, 4, 1, 1>}, {pipeline_mode = #tpu.pipeline_mode<synchronous>, transform_indices = @transform_5, window_bounds = array<i64: 8, 4, 1, 1>}, {transform_indices = @transform_6, window_bounds = array<i64: 8, 4>}, {transform_indices = @transform_7, window_bounds = array<i64: 8, 128>}, {transform_indices = @transform_8, window_bounds = array<i64: 8, 128>}]} {
    %c0 = arith.constant 0 : index
    %c0_0 = arith.constant 0 : index
    %c0_1 = arith.constant 0 : index
    %0 = vector.load %arg2[%c0, %c0_0, %c0_1] : memref<8x8x24xf32, #tpu.memory_space<vmem>>, vector<1x8x24xf32>
    %1 = vector.shape_cast %0 : vector<1x8x24xf32> to vector<8x24xf32>
    %c0_2 = arith.constant 0 : index
    %c0_3 = arith.constant 0 : index
    %c0_4 = arith.constant 0 : index
    %2 = vector.load %arg3[%c0_2, %c0_3, %c0_4] : memref<8x24x128xf32, #tpu.memory_space<vmem>>, vector<1x24x128xf32>
    %3 = vector.shape_cast %2 : vector<1x24x128xf32> to vector<24x128xf32>
    %cst = arith.constant dense<0.000000e+00> : vector<8x128xf32>
    %4 = tpu.matmul %1, %3, %cst {dimension_numbers = #tpu.dot_dimension_numbers<[1], [0], [0], [1], [0, 0, 1, 1], [], []>} : vector<8x24xf32>, vector<24x128xf32>, vector<8x128xf32> -> vector<8x128xf32>
    %c0_5 = arith.constant 0 : index
    %c0_6 = arith.constant 0 : index
    %c0_7 = arith.constant 0 : index
    %5 = vector.load %arg4[%c0_5, %c0_6, %c0_7] : memref<8x1x128xf32, #tpu.memory_space<vmem>>, vector<1x1x128xf32>
    %6 = vector.shape_cast %5 : vector<1x1x128xf32> to vector<1x128xf32>
    %7 = vector.broadcast %6 : vector<1x128xf32> to vector<8x128xf32>
    %8 = arith.addf %4, %7 : vector<8x128xf32>
    %c1 = arith.constant 1 : index
    %c0_8 = arith.constant 0 : index
    %c0_9 = arith.constant 0 : index
    %9 = vector.load %arg2[%c1, %c0_8, %c0_9] : memref<8x8x24xf32, #tpu.memory_space<vmem>>, vector<1x8x24xf32>
    %10 = vector.shape_cast %9 : vector<1x8x24xf32> to vector<8x24xf32>
    %c1_10 = arith.constant 1 : index
    %c0_11 = arith.constant 0 : index
    %c0_12 = arith.constant 0 : index
    %11 = vector.load %arg3[%c1_10, %c0_11, %c0_12] : memref<8x24x128xf32, #tpu.memory_space<vmem>>, vector<1x24x128xf32>
    %12 = vector.shape_cast %11 : vector<1x24x128xf32> to vector<24x128xf32>
    %cst_13 = arith.constant dense<0.000000e+00> : vector<8x128xf32>
    %13 = tpu.matmul %10, %12, %cst_13 {dimension_numbers = #tpu.dot_dimension_numbers<[1], [0], [0], [1], [0, 0, 1, 1], [], []>} : vector<8x24xf32>, vector<24x128xf32>, vector<8x128xf32> -> vector<8x128xf32>
    %c1_14 = arith.constant 1 : index
    %c0_15 = arith.constant 0 : index
    %c0_16 = arith.constant 0 : index
    %14 = vector.load %arg4[%c1_14, %c0_15, %c0_16] : memref<8x1x128xf32, #tpu.memory_space<vmem>>, vector<1x1x128xf32>
    %15 = vector.shape_cast %14 : vector<1x1x128xf32> to vector<1x128xf32>
    %16 = vector.broadcast %15 : vector<1x128xf32> to vector<8x128xf32>
    %17 = arith.addf %13, %16 : vector<8x128xf32>
    %c2 = arith.constant 2 : index
    %c0_17 = arith.constant 0 : index
    %c0_18 = arith.constant 0 : index
    %18 = vector.load %arg2[%c2, %c0_17, %c0_18] : memref<8x8x24xf32, #tpu.memory_space<vmem>>, vector<1x8x24xf32>
    %19 = vector.shape_cast %18 : vector<1x8x24xf32> to vector<8x24xf32>
    %c2_19 = arith.constant 2 : index
    %c0_20 = arith.constant 0 : index
    %c0_21 = arith.constant 0 : index
    %20 = vector.load %arg3[%c2_19, %c0_20, %c0_21] : memref<8x24x128xf32, #tpu.memory_space<vmem>>, vector<1x24x128xf32>
    %21 = vector.shape_cast %20 : vector<1x24x128xf32> to vector<24x128xf32>
    %cst_22 = arith.constant dense<0.000000e+00> : vector<8x128xf32>
    %22 = tpu.matmul %19, %21, %cst_22 {dimension_numbers = #tpu.dot_dimension_numbers<[1], [0], [0], [1], [0, 0, 1, 1], [], []>} : vector<8x24xf32>, vector<24x128xf32>, vector<8x128xf32> -> vector<8x128xf32>
    %c2_23 = arith.constant 2 : index
    %c0_24 = arith.constant 0 : index
    %c0_25 = arith.constant 0 : index
    %23 = vector.load %arg4[%c2_23, %c0_24, %c0_25] : memref<8x1x128xf32, #tpu.memory_space<vmem>>, vector<1x1x128xf32>
    %24 = vector.shape_cast %23 : vector<1x1x128xf32> to vector<1x128xf32>
    %25 = vector.broadcast %24 : vector<1x128xf32> to vector<8x128xf32>
    %26 = arith.addf %22, %25 : vector<8x128xf32>
    %c3 = arith.constant 3 : index
    %c0_26 = arith.constant 0 : index
    %c0_27 = arith.constant 0 : index
    %27 = vector.load %arg2[%c3, %c0_26, %c0_27] : memref<8x8x24xf32, #tpu.memory_space<vmem>>, vector<1x8x24xf32>
    %28 = vector.shape_cast %27 : vector<1x8x24xf32> to vector<8x24xf32>
    %c3_28 = arith.constant 3 : index
    %c0_29 = arith.constant 0 : index
    %c0_30 = arith.constant 0 : index
    %29 = vector.load %arg3[%c3_28, %c0_29, %c0_30] : memref<8x24x128xf32, #tpu.memory_space<vmem>>, vector<1x24x128xf32>
    %30 = vector.shape_cast %29 : vector<1x24x128xf32> to vector<24x128xf32>
    %cst_31 = arith.constant dense<0.000000e+00> : vector<8x128xf32>
    %31 = tpu.matmul %28, %30, %cst_31 {dimension_numbers = #tpu.dot_dimension_numbers<[1], [0], [0], [1], [0, 0, 1, 1], [], []>} : vector<8x24xf32>, vector<24x128xf32>, vector<8x128xf32> -> vector<8x128xf32>
    %c3_32 = arith.constant 3 : index
    %c0_33 = arith.constant 0 : index
    %c0_34 = arith.constant 0 : index
    %32 = vector.load %arg4[%c3_32, %c0_33, %c0_34] : memref<8x1x128xf32, #tpu.memory_space<vmem>>, vector<1x1x128xf32>
    %33 = vector.shape_cast %32 : vector<1x1x128xf32> to vector<1x128xf32>
    %34 = vector.broadcast %33 : vector<1x128xf32> to vector<8x128xf32>
    %35 = arith.addf %31, %34 : vector<8x128xf32>
    %c4 = arith.constant 4 : index
    %c0_35 = arith.constant 0 : index
    %c0_36 = arith.constant 0 : index
    %36 = vector.load %arg2[%c4, %c0_35, %c0_36] : memref<8x8x24xf32, #tpu.memory_space<vmem>>, vector<1x8x24xf32>
    %37 = vector.shape_cast %36 : vector<1x8x24xf32> to vector<8x24xf32>
    %c4_37 = arith.constant 4 : index
    %c0_38 = arith.constant 0 : index
    %c0_39 = arith.constant 0 : index
    %38 = vector.load %arg3[%c4_37, %c0_38, %c0_39] : memref<8x24x128xf32, #tpu.memory_space<vmem>>, vector<1x24x128xf32>
    %39 = vector.shape_cast %38 : vector<1x24x128xf32> to vector<24x128xf32>
    %cst_40 = arith.constant dense<0.000000e+00> : vector<8x128xf32>
    %40 = tpu.matmul %37, %39, %cst_40 {dimension_numbers = #tpu.dot_dimension_numbers<[1], [0], [0], [1], [0, 0, 1, 1], [], []>} : vector<8x24xf32>, vector<24x128xf32>, vector<8x128xf32> -> vector<8x128xf32>
    %c4_41 = arith.constant 4 : index
    %c0_42 = arith.constant 0 : index
    %c0_43 = arith.constant 0 : index
    %41 = vector.load %arg4[%c4_41, %c0_42, %c0_43] : memref<8x1x128xf32, #tpu.memory_space<vmem>>, vector<1x1x128xf32>
    %42 = vector.shape_cast %41 : vector<1x1x128xf32> to vector<1x128xf32>
    %43 = vector.broadcast %42 : vector<1x128xf32> to vector<8x128xf32>
    %44 = arith.addf %40, %43 : vector<8x128xf32>
    %c5 = arith.constant 5 : index
    %c0_44 = arith.constant 0 : index
    %c0_45 = arith.constant 0 : index
    %45 = vector.load %arg2[%c5, %c0_44, %c0_45] : memref<8x8x24xf32, #tpu.memory_space<vmem>>, vector<1x8x24xf32>
    %46 = vector.shape_cast %45 : vector<1x8x24xf32> to vector<8x24xf32>
    %c5_46 = arith.constant 5 : index
    %c0_47 = arith.constant 0 : index
    %c0_48 = arith.constant 0 : index
    %47 = vector.load %arg3[%c5_46, %c0_47, %c0_48] : memref<8x24x128xf32, #tpu.memory_space<vmem>>, vector<1x24x128xf32>
    %48 = vector.shape_cast %47 : vector<1x24x128xf32> to vector<24x128xf32>
    %cst_49 = arith.constant dense<0.000000e+00> : vector<8x128xf32>
    %49 = tpu.matmul %46, %48, %cst_49 {dimension_numbers = #tpu.dot_dimension_numbers<[1], [0], [0], [1], [0, 0, 1, 1], [], []>} : vector<8x24xf32>, vector<24x128xf32>, vector<8x128xf32> -> vector<8x128xf32>
    %c5_50 = arith.constant 5 : index
    %c0_51 = arith.constant 0 : index
    %c0_52 = arith.constant 0 : index
    %50 = vector.load %arg4[%c5_50, %c0_51, %c0_52] : memref<8x1x128xf32, #tpu.memory_space<vmem>>, vector<1x1x128xf32>
    %51 = vector.shape_cast %50 : vector<1x1x128xf32> to vector<1x128xf32>
    %52 = vector.broadcast %51 : vector<1x128xf32> to vector<8x128xf32>
    %53 = arith.addf %49, %52 : vector<8x128xf32>
    %c6 = arith.constant 6 : index
    %c0_53 = arith.constant 0 : index
    %c0_54 = arith.constant 0 : index
    %54 = vector.load %arg2[%c6, %c0_53, %c0_54] : memref<8x8x24xf32, #tpu.memory_space<vmem>>, vector<1x8x24xf32>
    %55 = vector.shape_cast %54 : vector<1x8x24xf32> to vector<8x24xf32>
    %c6_55 = arith.constant 6 : index
    %c0_56 = arith.constant 0 : index
    %c0_57 = arith.constant 0 : index
    %56 = vector.load %arg3[%c6_55, %c0_56, %c0_57] : memref<8x24x128xf32, #tpu.memory_space<vmem>>, vector<1x24x128xf32>
    %57 = vector.shape_cast %56 : vector<1x24x128xf32> to vector<24x128xf32>
    %cst_58 = arith.constant dense<0.000000e+00> : vector<8x128xf32>
    %58 = tpu.matmul %55, %57, %cst_58 {dimension_numbers = #tpu.dot_dimension_numbers<[1], [0], [0], [1], [0, 0, 1, 1], [], []>} : vector<8x24xf32>, vector<24x128xf32>, vector<8x128xf32> -> vector<8x128xf32>
    %c6_59 = arith.constant 6 : index
    %c0_60 = arith.constant 0 : index
    %c0_61 = arith.constant 0 : index
    %59 = vector.load %arg4[%c6_59, %c0_60, %c0_61] : memref<8x1x128xf32, #tpu.memory_space<vmem>>, vector<1x1x128xf32>
    %60 = vector.shape_cast %59 : vector<1x1x128xf32> to vector<1x128xf32>
    %61 = vector.broadcast %60 : vector<1x128xf32> to vector<8x128xf32>
    %62 = arith.addf %58, %61 : vector<8x128xf32>
    %c7 = arith.constant 7 : index
    %c0_62 = arith.constant 0 : index
    %c0_63 = arith.constant 0 : index
    %63 = vector.load %arg2[%c7, %c0_62, %c0_63] : memref<8x8x24xf32, #tpu.memory_space<vmem>>, vector<1x8x24xf32>
    %64 = vector.shape_cast %63 : vector<1x8x24xf32> to vector<8x24xf32>
    %c7_64 = arith.constant 7 : index
    %c0_65 = arith.constant 0 : index
    %c0_66 = arith.constant 0 : index
    %65 = vector.load %arg3[%c7_64, %c0_65, %c0_66] : memref<8x24x128xf32, #tpu.memory_space<vmem>>, vector<1x24x128xf32>
    %66 = vector.shape_cast %65 : vector<1x24x128xf32> to vector<24x128xf32>
    %cst_67 = arith.constant dense<0.000000e+00> : vector<8x128xf32>
    %67 = tpu.matmul %64, %66, %cst_67 {dimension_numbers = #tpu.dot_dimension_numbers<[1], [0], [0], [1], [0, 0, 1, 1], [], []>} : vector<8x24xf32>, vector<24x128xf32>, vector<8x128xf32> -> vector<8x128xf32>
    %c7_68 = arith.constant 7 : index
    %c0_69 = arith.constant 0 : index
    %c0_70 = arith.constant 0 : index
    %68 = vector.load %arg4[%c7_68, %c0_69, %c0_70] : memref<8x1x128xf32, #tpu.memory_space<vmem>>, vector<1x1x128xf32>
    %69 = vector.shape_cast %68 : vector<1x1x128xf32> to vector<1x128xf32>
    %70 = vector.broadcast %69 : vector<1x128xf32> to vector<8x128xf32>
    %71 = arith.addf %67, %70 : vector<8x128xf32>
    %72 = vector.extract_strided_slice %8 {offsets = [0, 0], sizes = [8, 32], strides = [1, 1]} : vector<8x128xf32> to vector<8x32xf32>
    %73 = vector.extract_strided_slice %8 {offsets = [0, 32], sizes = [8, 32], strides = [1, 1]} : vector<8x128xf32> to vector<8x32xf32>
    %74 = vector.extract_strided_slice %8 {offsets = [0, 64], sizes = [8, 32], strides = [1, 1]} : vector<8x128xf32> to vector<8x32xf32>
    %75 = vector.extract_strided_slice %8 {offsets = [0, 96], sizes = [8, 32], strides = [1, 1]} : vector<8x128xf32> to vector<8x32xf32>
    %76 = vector.shape_cast %72 : vector<8x32xf32> to vector<1x8x32xf32>
    %77 = vector.shape_cast %73 : vector<8x32xf32> to vector<1x8x32xf32>
    %78 = vector.shape_cast %74 : vector<8x32xf32> to vector<1x8x32xf32>
    %79 = vector.shape_cast %75 : vector<8x32xf32> to vector<1x8x32xf32>
    %80 = tpu.concatenate %76, %77, %78, %79 in 0 : vector<1x8x32xf32>, vector<1x8x32xf32>, vector<1x8x32xf32>, vector<1x8x32xf32> -> vector<4x8x32xf32>
    %81 = vector.extract_strided_slice %17 {offsets = [0, 0], sizes = [8, 32], strides = [1, 1]} : vector<8x128xf32> to vector<8x32xf32>
    %82 = vector.extract_strided_slice %17 {offsets = [0, 32], sizes = [8, 32], strides = [1, 1]} : vector<8x128xf32> to vector<8x32xf32>
    %83 = vector.extract_strided_slice %17 {offsets = [0, 64], sizes = [8, 32], strides = [1, 1]} : vector<8x128xf32> to vector<8x32xf32>
    %84 = vector.extract_strided_slice %17 {offsets = [0, 96], sizes = [8, 32], strides = [1, 1]} : vector<8x128xf32> to vector<8x32xf32>
    %85 = vector.shape_cast %81 : vector<8x32xf32> to vector<1x8x32xf32>
    %86 = vector.shape_cast %82 : vector<8x32xf32> to vector<1x8x32xf32>
    %87 = vector.shape_cast %83 : vector<8x32xf32> to vector<1x8x32xf32>
    %88 = vector.shape_cast %84 : vector<8x32xf32> to vector<1x8x32xf32>
    %89 = tpu.concatenate %85, %86, %87, %88 in 0 : vector<1x8x32xf32>, vector<1x8x32xf32>, vector<1x8x32xf32>, vector<1x8x32xf32> -> vector<4x8x32xf32>
    %90 = vector.extract_strided_slice %26 {offsets = [0, 0], sizes = [8, 32], strides = [1, 1]} : vector<8x128xf32> to vector<8x32xf32>
    %91 = vector.extract_strided_slice %26 {offsets = [0, 32], sizes = [8, 32], strides = [1, 1]} : vector<8x128xf32> to vector<8x32xf32>
    %92 = vector.extract_strided_slice %26 {offsets = [0, 64], sizes = [8, 32], strides = [1, 1]} : vector<8x128xf32> to vector<8x32xf32>
    %93 = vector.extract_strided_slice %26 {offsets = [0, 96], sizes = [8, 32], strides = [1, 1]} : vector<8x128xf32> to vector<8x32xf32>
    %94 = vector.shape_cast %90 : vector<8x32xf32> to vector<1x8x32xf32>
    %95 = vector.shape_cast %91 : vector<8x32xf32> to vector<1x8x32xf32>
    %96 = vector.shape_cast %92 : vector<8x32xf32> to vector<1x8x32xf32>
    %97 = vector.shape_cast %93 : vector<8x32xf32> to vector<1x8x32xf32>
    %98 = tpu.concatenate %94, %95, %96, %97 in 0 : vector<1x8x32xf32>, vector<1x8x32xf32>, vector<1x8x32xf32>, vector<1x8x32xf32> -> vector<4x8x32xf32>
    %99 = vector.extract_strided_slice %35 {offsets = [0, 0], sizes = [8, 32], strides = [1, 1]} : vector<8x128xf32> to vector<8x32xf32>
    %100 = vector.extract_strided_slice %35 {offsets = [0, 32], sizes = [8, 32], strides = [1, 1]} : vector<8x128xf32> to vector<8x32xf32>
    %101 = vector.extract_strided_slice %35 {offsets = [0, 64], sizes = [8, 32], strides = [1, 1]} : vector<8x128xf32> to vector<8x32xf32>
    %102 = vector.extract_strided_slice %35 {offsets = [0, 96], sizes = [8, 32], strides = [1, 1]} : vector<8x128xf32> to vector<8x32xf32>
    %103 = vector.shape_cast %99 : vector<8x32xf32> to vector<1x8x32xf32>
    %104 = vector.shape_cast %100 : vector<8x32xf32> to vector<1x8x32xf32>
    %105 = vector.shape_cast %101 : vector<8x32xf32> to vector<1x8x32xf32>
    %106 = vector.shape_cast %102 : vector<8x32xf32> to vector<1x8x32xf32>
    %107 = tpu.concatenate %103, %104, %105, %106 in 0 : vector<1x8x32xf32>, vector<1x8x32xf32>, vector<1x8x32xf32>, vector<1x8x32xf32> -> vector<4x8x32xf32>
    %108 = vector.extract_strided_slice %44 {offsets = [0, 0], sizes = [8, 32], strides = [1, 1]} : vector<8x128xf32> to vector<8x32xf32>
    %109 = vector.extract_strided_slice %44 {offsets = [0, 32], sizes = [8, 32], strides = [1, 1]} : vector<8x128xf32> to vector<8x32xf32>
    %110 = vector.extract_strided_slice %44 {offsets = [0, 64], sizes = [8, 32], strides = [1, 1]} : vector<8x128xf32> to vector<8x32xf32>
    %111 = vector.extract_strided_slice %44 {offsets = [0, 96], sizes = [8, 32], strides = [1, 1]} : vector<8x128xf32> to vector<8x32xf32>
    %112 = vector.shape_cast %108 : vector<8x32xf32> to vector<1x8x32xf32>
    %113 = vector.shape_cast %109 : vector<8x32xf32> to vector<1x8x32xf32>
    %114 = vector.shape_cast %110 : vector<8x32xf32> to vector<1x8x32xf32>
    %115 = vector.shape_cast %111 : vector<8x32xf32> to vector<1x8x32xf32>
    %116 = tpu.concatenate %112, %113, %114, %115 in 0 : vector<1x8x32xf32>, vector<1x8x32xf32>, vector<1x8x32xf32>, vector<1x8x32xf32> -> vector<4x8x32xf32>
    %117 = vector.extract_strided_slice %53 {offsets = [0, 0], sizes = [8, 32], strides = [1, 1]} : vector<8x128xf32> to vector<8x32xf32>
    %118 = vector.extract_strided_slice %53 {offsets = [0, 32], sizes = [8, 32], strides = [1, 1]} : vector<8x128xf32> to vector<8x32xf32>
    %119 = vector.extract_strided_slice %53 {offsets = [0, 64], sizes = [8, 32], strides = [1, 1]} : vector<8x128xf32> to vector<8x32xf32>
    %120 = vector.extract_strided_slice %53 {offsets = [0, 96], sizes = [8, 32], strides = [1, 1]} : vector<8x128xf32> to vector<8x32xf32>
    %121 = vector.shape_cast %117 : vector<8x32xf32> to vector<1x8x32xf32>
    %122 = vector.shape_cast %118 : vector<8x32xf32> to vector<1x8x32xf32>
    %123 = vector.shape_cast %119 : vector<8x32xf32> to vector<1x8x32xf32>
    %124 = vector.shape_cast %120 : vector<8x32xf32> to vector<1x8x32xf32>
    %125 = tpu.concatenate %121, %122, %123, %124 in 0 : vector<1x8x32xf32>, vector<1x8x32xf32>, vector<1x8x32xf32>, vector<1x8x32xf32> -> vector<4x8x32xf32>
    %126 = vector.extract_strided_slice %62 {offsets = [0, 0], sizes = [8, 32], strides = [1, 1]} : vector<8x128xf32> to vector<8x32xf32>
    %127 = vector.extract_strided_slice %62 {offsets = [0, 32], sizes = [8, 32], strides = [1, 1]} : vector<8x128xf32> to vector<8x32xf32>
    %128 = vector.extract_strided_slice %62 {offsets = [0, 64], sizes = [8, 32], strides = [1, 1]} : vector<8x128xf32> to vector<8x32xf32>
    %129 = vector.extract_strided_slice %62 {offsets = [0, 96], sizes = [8, 32], strides = [1, 1]} : vector<8x128xf32> to vector<8x32xf32>
    %130 = vector.shape_cast %126 : vector<8x32xf32> to vector<1x8x32xf32>
    %131 = vector.shape_cast %127 : vector<8x32xf32> to vector<1x8x32xf32>
    %132 = vector.shape_cast %128 : vector<8x32xf32> to vector<1x8x32xf32>
    %133 = vector.shape_cast %129 : vector<8x32xf32> to vector<1x8x32xf32>
    %134 = tpu.concatenate %130, %131, %132, %133 in 0 : vector<1x8x32xf32>, vector<1x8x32xf32>, vector<1x8x32xf32>, vector<1x8x32xf32> -> vector<4x8x32xf32>
    %135 = vector.extract_strided_slice %71 {offsets = [0, 0], sizes = [8, 32], strides = [1, 1]} : vector<8x128xf32> to vector<8x32xf32>
    %136 = vector.extract_strided_slice %71 {offsets = [0, 32], sizes = [8, 32], strides = [1, 1]} : vector<8x128xf32> to vector<8x32xf32>
    %137 = vector.extract_strided_slice %71 {offsets = [0, 64], sizes = [8, 32], strides = [1, 1]} : vector<8x128xf32> to vector<8x32xf32>
    %138 = vector.extract_strided_slice %71 {offsets = [0, 96], sizes = [8, 32], strides = [1, 1]} : vector<8x128xf32> to vector<8x32xf32>
    %139 = vector.shape_cast %135 : vector<8x32xf32> to vector<1x8x32xf32>
    %140 = vector.shape_cast %136 : vector<8x32xf32> to vector<1x8x32xf32>
    %141 = vector.shape_cast %137 : vector<8x32xf32> to vector<1x8x32xf32>
    %142 = vector.shape_cast %138 : vector<8x32xf32> to vector<1x8x32xf32>
    %143 = tpu.concatenate %139, %140, %141, %142 in 0 : vector<1x8x32xf32>, vector<1x8x32xf32>, vector<1x8x32xf32>, vector<1x8x32xf32> -> vector<4x8x32xf32>
    %144 = vector.shape_cast %80 : vector<4x8x32xf32> to vector<1x4x8x32xf32>
    %145 = vector.shape_cast %89 : vector<4x8x32xf32> to vector<1x4x8x32xf32>
    %146 = vector.shape_cast %98 : vector<4x8x32xf32> to vector<1x4x8x32xf32>
    %147 = vector.shape_cast %107 : vector<4x8x32xf32> to vector<1x4x8x32xf32>
    %148 = vector.shape_cast %116 : vector<4x8x32xf32> to vector<1x4x8x32xf32>
    %149 = vector.shape_cast %125 : vector<4x8x32xf32> to vector<1x4x8x32xf32>
    %150 = vector.shape_cast %134 : vector<4x8x32xf32> to vector<1x4x8x32xf32>
    %151 = vector.shape_cast %143 : vector<4x8x32xf32> to vector<1x4x8x32xf32>
    %152 = tpu.concatenate %144, %145, %146, %147, %148, %149, %150, %151 in 0 : vector<1x4x8x32xf32>, vector<1x4x8x32xf32>, vector<1x4x8x32xf32>, vector<1x4x8x32xf32>, vector<1x4x8x32xf32>, vector<1x4x8x32xf32>, vector<1x4x8x32xf32>, vector<1x4x8x32xf32> -> vector<8x4x8x32xf32>
    %c0_71 = arith.constant 0 : index
    %c0_72 = arith.constant 0 : index
    %c0_73 = arith.constant 0 : index
    %153 = vector.load %arg1[%c0_71, %c0_72, %c0_73] : memref<8x8x1xf32, #tpu.memory_space<vmem>>, vector<8x8x1xf32>
    %cst_74 = arith.constant 0.000000e+00 : f32
    %154 = vector.broadcast %cst_74 : f32 to vector<8x8x1xf32>
    %155 = arith.subf %154, %153 : vector<8x8x1xf32>
    %156 = math.exp %155 : vector<8x8x1xf32>
    %cst_75 = arith.constant 1.000000e+00 : f32
    %157 = vector.broadcast %cst_75 : f32 to vector<8x8x1xf32>
    %158 = arith.addf %157, %156 : vector<8x8x1xf32>
    %cst_76 = arith.constant 1.000000e+00 : f32
    %159 = vector.broadcast %cst_76 : f32 to vector<8x8x1xf32>
    %160 = arith.divf %159, %158 : vector<8x8x1xf32>
    %161 = vector.shape_cast %160 : vector<8x8x1xf32> to vector<8x1x8x1xf32>
    %c0_77 = arith.constant 0 : index
    %c0_78 = arith.constant 0 : index
    %c0_79 = arith.constant 0 : index
    %c0_80 = arith.constant 0 : index
    %162 = vector.load %arg5[%c0_77, %c0_78, %c0_79, %c0_80] : memref<8x4x1x1xf32, #tpu.memory_space<vmem>>, vector<8x4x1x1xf32>
    %c0_81 = arith.constant 0 : index
    %c0_82 = arith.constant 0 : index
    %c0_83 = arith.constant 0 : index
    %c0_84 = arith.constant 0 : index
    %163 = vector.load %arg6[%c0_81, %c0_82, %c0_83, %c0_84] : memref<8x4x1x1xf32, #tpu.memory_space<vmem>>, vector<8x4x1x1xf32>
    %cst_85 = arith.constant 2.500000e-01 : f32
    %164 = vector.broadcast %cst_85 : f32 to vector<8x4x8x1xf32>
    %165 = vector.broadcast %161 : vector<8x1x8x1xf32> to vector<8x4x8x1xf32>
    %166 = arith.mulf %165, %164 : vector<8x4x8x1xf32>
    %167 = vector.broadcast %161 : vector<8x1x8x1xf32> to vector<8x4x8x1xf32>
    %168 = arith.subf %167, %166 : vector<8x4x8x1xf32>
    %169 = vector.broadcast %162 : vector<8x4x1x1xf32> to vector<8x4x8x1xf32>
    %170 = arith.mulf %169, %166 : vector<8x4x8x1xf32>
    %171 = vector.broadcast %163 : vector<8x4x1x1xf32> to vector<8x4x8x1xf32>
    %172 = arith.mulf %171, %168 : vector<8x4x8x1xf32>
    %173 = arith.subf %170, %172 : vector<8x4x8x1xf32>
    %cst_86 = arith.constant dense<0.000000e+00> : vector<4x8x1xf32>
    %174 = vector.multi_reduction <add>, %173, %cst_86 [0] : vector<8x4x8x1xf32> to vector<4x8x1xf32>
    %cst_87 = arith.constant dense<0.000000e+00> : vector<4x8x1xf32>
    %175 = vector.multi_reduction <add>, %166, %cst_87 [0] : vector<8x4x8x1xf32> to vector<4x8x1xf32>
    %176 = vector.shape_cast %175 : vector<4x8x1xf32> to vector<1x4x8x1xf32>
    %cst_88 = arith.constant 9.99999974E-6 : f32
    %177 = vector.broadcast %cst_88 : f32 to vector<1x4x8x1xf32>
    %178 = arith.addf %176, %177 : vector<1x4x8x1xf32>
    %179 = vector.broadcast %178 : vector<1x4x8x1xf32> to vector<8x4x8x1xf32>
    %180 = arith.divf %166, %179 : vector<8x4x8x1xf32>
    %181 = vector.broadcast %180 : vector<8x4x8x1xf32> to vector<8x4x8x32xf32>
    %182 = arith.mulf %181, %152 : vector<8x4x8x32xf32>
    %cst_89 = arith.constant dense<0.000000e+00> : vector<4x8x32xf32>
    %183 = vector.multi_reduction <add>, %182, %cst_89 [0] : vector<8x4x8x32xf32> to vector<4x8x32xf32>
    %184 = vector.shape_cast %183 : vector<4x8x32xf32> to vector<1x4x8x32xf32>
    %185 = vector.broadcast %184 : vector<1x4x8x32xf32> to vector<8x4x8x32xf32>
    %186 = arith.subf %152, %185 : vector<8x4x8x32xf32>
    %187 = arith.mulf %186, %186 : vector<8x4x8x32xf32>
    %188 = vector.broadcast %180 : vector<8x4x8x1xf32> to vector<8x4x8x32xf32>
    %189 = arith.mulf %188, %187 : vector<8x4x8x32xf32>
    %cst_90 = arith.constant dense<0.000000e+00> : vector<4x8x32xf32>
    %190 = vector.multi_reduction <add>, %189, %cst_90 [0] : vector<8x4x8x32xf32> to vector<4x8x32xf32>
    %cst_91 = arith.constant 9.99999974E-6 : f32
    %191 = vector.broadcast %cst_91 : f32 to vector<4x8x32xf32>
    %192 = arith.addf %190, %191 : vector<4x8x32xf32>
    %193 = vector.shape_cast %183 : vector<4x8x32xf32> to vector<1x4x8x32xf32>
    %194 = vector.broadcast %193 : vector<1x4x8x32xf32> to vector<8x4x8x32xf32>
    %195 = arith.subf %152, %194 : vector<8x4x8x32xf32>
    %196 = arith.mulf %195, %195 : vector<8x4x8x32xf32>
    %cst_92 = arith.constant 0.000000e+00 : f32
    %197 = vector.broadcast %cst_92 : f32 to vector<4x8x1xf32>
    %198 = arith.minimumf %174, %197 : vector<4x8x1xf32>
    %199 = math.absf %174 : vector<4x8x1xf32>
    %cst_93 = arith.constant 0.000000e+00 : f32
    %200 = vector.broadcast %cst_93 : f32 to vector<4x8x1xf32>
    %201 = arith.subf %200, %199 : vector<4x8x1xf32>
    %202 = math.exp %201 : vector<4x8x1xf32>
    %cst_94 = arith.constant 1.000000e+00 : f32
    %203 = vector.broadcast %cst_94 : f32 to vector<4x8x1xf32>
    %204 = arith.addf %203, %202 : vector<4x8x1xf32>
    %205 = math.log %204 : vector<4x8x1xf32>
    %206 = arith.subf %198, %205 : vector<4x8x1xf32>
    %207 = vector.shape_cast %206 : vector<4x8x1xf32> to vector<1x4x8x1xf32>
    %cst_95 = arith.constant 5.000000e-01 : f32
    %208 = vector.broadcast %cst_95 : f32 to vector<4x8x32xf32>
    %209 = arith.divf %208, %192 : vector<4x8x32xf32>
    %210 = vector.shape_cast %209 : vector<4x8x32xf32> to vector<1x4x8x32xf32>
    %211 = vector.broadcast %210 : vector<1x4x8x32xf32> to vector<8x4x8x32xf32>
    %212 = arith.mulf %196, %211 : vector<8x4x8x32xf32>
    %cst_96 = arith.constant dense<0.000000e+00> : vector<8x4x8xf32>
    %213 = vector.multi_reduction <add>, %212, %cst_96 [3] : vector<8x4x8x32xf32> to vector<8x4x8xf32>
    %214 = vector.shape_cast %213 : vector<8x4x8xf32> to vector<8x4x8x1xf32>
    %215 = math.log %192 : vector<4x8x32xf32>
    %cst_97 = arith.constant dense<0.000000e+00> : vector<4x8xf32>
    %216 = vector.multi_reduction <add>, %215, %cst_97 [2] : vector<4x8x32xf32> to vector<4x8xf32>
    %217 = vector.shape_cast %216 : vector<4x8xf32> to vector<4x8x1xf32>
    %cst_98 = arith.constant 5.000000e-01 : f32
    %218 = vector.broadcast %cst_98 : f32 to vector<4x8x1xf32>
    %219 = arith.mulf %218, %217 : vector<4x8x1xf32>
    %220 = vector.broadcast %207 : vector<1x4x8x1xf32> to vector<8x4x8x1xf32>
    %221 = arith.subf %220, %214 : vector<8x4x8x1xf32>
    %222 = vector.shape_cast %219 : vector<4x8x1xf32> to vector<1x4x8x1xf32>
    %223 = vector.broadcast %222 : vector<1x4x8x1xf32> to vector<8x4x8x1xf32>
    %224 = arith.subf %221, %223 : vector<8x4x8x1xf32>
    %cst_99 = arith.constant dense<0xFF800000> : vector<8x8x1xf32>
    %225 = vector.multi_reduction <maximumf>, %224, %cst_99 [1] : vector<8x4x8x1xf32> to vector<8x8x1xf32>
    %226 = vector.shape_cast %225 : vector<8x8x1xf32> to vector<8x1x8x1xf32>
    %227 = vector.broadcast %226 : vector<8x1x8x1xf32> to vector<8x4x8x1xf32>
    %228 = arith.subf %224, %227 : vector<8x4x8x1xf32>
    %229 = math.exp %228 : vector<8x4x8x1xf32>
    %cst_100 = arith.constant dense<0.000000e+00> : vector<8x8x1xf32>
    %230 = vector.multi_reduction <add>, %229, %cst_100 [1] : vector<8x4x8x1xf32> to vector<8x8x1xf32>
    %231 = vector.shape_cast %230 : vector<8x8x1xf32> to vector<8x1x8x1xf32>
    %232 = vector.broadcast %231 : vector<8x1x8x1xf32> to vector<8x4x8x1xf32>
    %233 = arith.divf %229, %232 : vector<8x4x8x1xf32>
    %234 = vector.broadcast %161 : vector<8x1x8x1xf32> to vector<8x4x8x1xf32>
    %235 = arith.mulf %234, %233 : vector<8x4x8x1xf32>
    %236 = vector.broadcast %161 : vector<8x1x8x1xf32> to vector<8x4x8x1xf32>
    %237 = arith.subf %236, %235 : vector<8x4x8x1xf32>
    %238 = vector.broadcast %162 : vector<8x4x1x1xf32> to vector<8x4x8x1xf32>
    %239 = arith.mulf %238, %235 : vector<8x4x8x1xf32>
    %240 = vector.broadcast %163 : vector<8x4x1x1xf32> to vector<8x4x8x1xf32>
    %241 = arith.mulf %240, %237 : vector<8x4x8x1xf32>
    %242 = arith.subf %239, %241 : vector<8x4x8x1xf32>
    %cst_101 = arith.constant dense<0.000000e+00> : vector<4x8x1xf32>
    %243 = vector.multi_reduction <add>, %242, %cst_101 [0] : vector<8x4x8x1xf32> to vector<4x8x1xf32>
    %cst_102 = arith.constant dense<0.000000e+00> : vector<4x8x1xf32>
    %244 = vector.multi_reduction <add>, %235, %cst_102 [0] : vector<8x4x8x1xf32> to vector<4x8x1xf32>
    %245 = vector.shape_cast %244 : vector<4x8x1xf32> to vector<1x4x8x1xf32>
    %cst_103 = arith.constant 9.99999974E-6 : f32
    %246 = vector.broadcast %cst_103 : f32 to vector<1x4x8x1xf32>
    %247 = arith.addf %245, %246 : vector<1x4x8x1xf32>
    %248 = vector.broadcast %247 : vector<1x4x8x1xf32> to vector<8x4x8x1xf32>
    %249 = arith.divf %235, %248 : vector<8x4x8x1xf32>
    %250 = vector.broadcast %249 : vector<8x4x8x1xf32> to vector<8x4x8x32xf32>
    %251 = arith.mulf %250, %152 : vector<8x4x8x32xf32>
    %cst_104 = arith.constant dense<0.000000e+00> : vector<4x8x32xf32>
    %252 = vector.multi_reduction <add>, %251, %cst_104 [0] : vector<8x4x8x32xf32> to vector<4x8x32xf32>
    %253 = vector.shape_cast %252 : vector<4x8x32xf32> to vector<1x4x8x32xf32>
    %254 = vector.broadcast %253 : vector<1x4x8x32xf32> to vector<8x4x8x32xf32>
    %255 = arith.subf %152, %254 : vector<8x4x8x32xf32>
    %256 = arith.mulf %255, %255 : vector<8x4x8x32xf32>
    %257 = vector.broadcast %249 : vector<8x4x8x1xf32> to vector<8x4x8x32xf32>
    %258 = arith.mulf %257, %256 : vector<8x4x8x32xf32>
    %cst_105 = arith.constant dense<0.000000e+00> : vector<4x8x32xf32>
    %259 = vector.multi_reduction <add>, %258, %cst_105 [0] : vector<8x4x8x32xf32> to vector<4x8x32xf32>
    %cst_106 = arith.constant 9.99999974E-6 : f32
    %260 = vector.broadcast %cst_106 : f32 to vector<4x8x32xf32>
    %261 = arith.addf %259, %260 : vector<4x8x32xf32>
    %262 = vector.shape_cast %252 : vector<4x8x32xf32> to vector<1x4x8x32xf32>
    %263 = vector.broadcast %262 : vector<1x4x8x32xf32> to vector<8x4x8x32xf32>
    %264 = arith.subf %152, %263 : vector<8x4x8x32xf32>
    %265 = arith.mulf %264, %264 : vector<8x4x8x32xf32>
    %cst_107 = arith.constant 0.000000e+00 : f32
    %266 = vector.broadcast %cst_107 : f32 to vector<4x8x1xf32>
    %267 = arith.minimumf %243, %266 : vector<4x8x1xf32>
    %268 = math.absf %243 : vector<4x8x1xf32>
    %cst_108 = arith.constant 0.000000e+00 : f32
    %269 = vector.broadcast %cst_108 : f32 to vector<4x8x1xf32>
    %270 = arith.subf %269, %268 : vector<4x8x1xf32>
    %271 = math.exp %270 : vector<4x8x1xf32>
    %cst_109 = arith.constant 1.000000e+00 : f32
    %272 = vector.broadcast %cst_109 : f32 to vector<4x8x1xf32>
    %273 = arith.addf %272, %271 : vector<4x8x1xf32>
    %274 = math.log %273 : vector<4x8x1xf32>
    %275 = arith.subf %267, %274 : vector<4x8x1xf32>
    %276 = vector.shape_cast %275 : vector<4x8x1xf32> to vector<1x4x8x1xf32>
    %cst_110 = arith.constant 5.000000e-01 : f32
    %277 = vector.broadcast %cst_110 : f32 to vector<4x8x32xf32>
    %278 = arith.divf %277, %261 : vector<4x8x32xf32>
    %279 = vector.shape_cast %278 : vector<4x8x32xf32> to vector<1x4x8x32xf32>
    %280 = vector.broadcast %279 : vector<1x4x8x32xf32> to vector<8x4x8x32xf32>
    %281 = arith.mulf %265, %280 : vector<8x4x8x32xf32>
    %cst_111 = arith.constant dense<0.000000e+00> : vector<8x4x8xf32>
    %282 = vector.multi_reduction <add>, %281, %cst_111 [3] : vector<8x4x8x32xf32> to vector<8x4x8xf32>
    %283 = vector.shape_cast %282 : vector<8x4x8xf32> to vector<8x4x8x1xf32>
    %284 = math.log %261 : vector<4x8x32xf32>
    %cst_112 = arith.constant dense<0.000000e+00> : vector<4x8xf32>
    %285 = vector.multi_reduction <add>, %284, %cst_112 [2] : vector<4x8x32xf32> to vector<4x8xf32>
    %286 = vector.shape_cast %285 : vector<4x8xf32> to vector<4x8x1xf32>
    %cst_113 = arith.constant 5.000000e-01 : f32
    %287 = vector.broadcast %cst_113 : f32 to vector<4x8x1xf32>
    %288 = arith.mulf %287, %286 : vector<4x8x1xf32>
    %289 = vector.broadcast %276 : vector<1x4x8x1xf32> to vector<8x4x8x1xf32>
    %290 = arith.subf %289, %283 : vector<8x4x8x1xf32>
    %291 = vector.shape_cast %288 : vector<4x8x1xf32> to vector<1x4x8x1xf32>
    %292 = vector.broadcast %291 : vector<1x4x8x1xf32> to vector<8x4x8x1xf32>
    %293 = arith.subf %290, %292 : vector<8x4x8x1xf32>
    %cst_114 = arith.constant dense<0xFF800000> : vector<8x8x1xf32>
    %294 = vector.multi_reduction <maximumf>, %293, %cst_114 [1] : vector<8x4x8x1xf32> to vector<8x8x1xf32>
    %295 = vector.shape_cast %294 : vector<8x8x1xf32> to vector<8x1x8x1xf32>
    %296 = vector.broadcast %295 : vector<8x1x8x1xf32> to vector<8x4x8x1xf32>
    %297 = arith.subf %293, %296 : vector<8x4x8x1xf32>
    %298 = math.exp %297 : vector<8x4x8x1xf32>
    %cst_115 = arith.constant dense<0.000000e+00> : vector<8x8x1xf32>
    %299 = vector.multi_reduction <add>, %298, %cst_115 [1] : vector<8x4x8x1xf32> to vector<8x8x1xf32>
    %300 = vector.shape_cast %299 : vector<8x8x1xf32> to vector<8x1x8x1xf32>
    %301 = vector.broadcast %300 : vector<8x1x8x1xf32> to vector<8x4x8x1xf32>
    %302 = arith.divf %298, %301 : vector<8x4x8x1xf32>
    %303 = vector.broadcast %161 : vector<8x1x8x1xf32> to vector<8x4x8x1xf32>
    %304 = arith.mulf %303, %302 : vector<8x4x8x1xf32>
    %305 = vector.broadcast %161 : vector<8x1x8x1xf32> to vector<8x4x8x1xf32>
    %306 = arith.subf %305, %304 : vector<8x4x8x1xf32>
    %307 = vector.broadcast %162 : vector<8x4x1x1xf32> to vector<8x4x8x1xf32>
    %308 = arith.mulf %307, %304 : vector<8x4x8x1xf32>
    %309 = vector.broadcast %163 : vector<8x4x1x1xf32> to vector<8x4x8x1xf32>
    %310 = arith.mulf %309, %306 : vector<8x4x8x1xf32>
    %311 = arith.subf %308, %310 : vector<8x4x8x1xf32>
    %cst_116 = arith.constant dense<0.000000e+00> : vector<4x8x1xf32>
    %312 = vector.multi_reduction <add>, %311, %cst_116 [0] : vector<8x4x8x1xf32> to vector<4x8x1xf32>
    %cst_117 = arith.constant dense<0.000000e+00> : vector<4x8x1xf32>
    %313 = vector.multi_reduction <add>, %304, %cst_117 [0] : vector<8x4x8x1xf32> to vector<4x8x1xf32>
    %314 = vector.shape_cast %313 : vector<4x8x1xf32> to vector<1x4x8x1xf32>
    %cst_118 = arith.constant 9.99999974E-6 : f32
    %315 = vector.broadcast %cst_118 : f32 to vector<1x4x8x1xf32>
    %316 = arith.addf %314, %315 : vector<1x4x8x1xf32>
    %317 = vector.broadcast %316 : vector<1x4x8x1xf32> to vector<8x4x8x1xf32>
    %318 = arith.divf %304, %317 : vector<8x4x8x1xf32>
    %319 = vector.broadcast %318 : vector<8x4x8x1xf32> to vector<8x4x8x32xf32>
    %320 = arith.mulf %319, %152 : vector<8x4x8x32xf32>
    %cst_119 = arith.constant dense<0.000000e+00> : vector<4x8x32xf32>
    %321 = vector.multi_reduction <add>, %320, %cst_119 [0] : vector<8x4x8x32xf32> to vector<4x8x32xf32>
    %322 = vector.shape_cast %321 : vector<4x8x32xf32> to vector<1x4x8x32xf32>
    %323 = vector.broadcast %322 : vector<1x4x8x32xf32> to vector<8x4x8x32xf32>
    %324 = arith.subf %152, %323 : vector<8x4x8x32xf32>
    %325 = arith.mulf %324, %324 : vector<8x4x8x32xf32>
    %326 = vector.broadcast %318 : vector<8x4x8x1xf32> to vector<8x4x8x32xf32>
    %327 = arith.mulf %326, %325 : vector<8x4x8x32xf32>
    %cst_120 = arith.constant dense<0.000000e+00> : vector<4x8x32xf32>
    %328 = vector.multi_reduction <add>, %327, %cst_120 [0] : vector<8x4x8x32xf32> to vector<4x8x32xf32>
    %cst_121 = arith.constant 9.99999974E-6 : f32
    %329 = vector.broadcast %cst_121 : f32 to vector<4x8x32xf32>
    %330 = arith.addf %328, %329 : vector<4x8x32xf32>
    %331 = vector.extract_strided_slice %312 {offsets = [0, 0, 0], sizes = [1, 8, 1], strides = [1, 1, 1]} : vector<4x8x1xf32> to vector<1x8x1xf32>
    %332 = vector.shape_cast %331 : vector<1x8x1xf32> to vector<8x1xf32>
    %333 = vector.extract_strided_slice %312 {offsets = [1, 0, 0], sizes = [1, 8, 1], strides = [1, 1, 1]} : vector<4x8x1xf32> to vector<1x8x1xf32>
    %334 = vector.shape_cast %333 : vector<1x8x1xf32> to vector<8x1xf32>
    %335 = vector.extract_strided_slice %312 {offsets = [2, 0, 0], sizes = [1, 8, 1], strides = [1, 1, 1]} : vector<4x8x1xf32> to vector<1x8x1xf32>
    %336 = vector.shape_cast %335 : vector<1x8x1xf32> to vector<8x1xf32>
    %337 = vector.extract_strided_slice %312 {offsets = [3, 0, 0], sizes = [1, 8, 1], strides = [1, 1, 1]} : vector<4x8x1xf32> to vector<1x8x1xf32>
    %338 = vector.shape_cast %337 : vector<1x8x1xf32> to vector<8x1xf32>
    %339 = tpu.concatenate %332, %334, %336, %338 in 1 : vector<8x1xf32>, vector<8x1xf32>, vector<8x1xf32>, vector<8x1xf32> -> vector<8x4xf32>
    %c0_122 = arith.constant 0 : index
    %c0_123 = arith.constant 0 : index
    %340 = vector.load %arg7[%c0_122, %c0_123] : memref<8x4xf32, #tpu.memory_space<vmem>>, vector<8x4xf32>
    tpu.vector_store %arg7[%c0_122, %c0_123], %339 {strides = array<i32>} : memref<8x4xf32, #tpu.memory_space<vmem>>, vector<8x4xf32>,
    %341 = vector.extract_strided_slice %321 {offsets = [0, 0, 0], sizes = [1, 8, 32], strides = [1, 1, 1]} : vector<4x8x32xf32> to vector<1x8x32xf32>
    %342 = vector.shape_cast %341 : vector<1x8x32xf32> to vector<8x32xf32>
    %343 = vector.extract_strided_slice %321 {offsets = [1, 0, 0], sizes = [1, 8, 32], strides = [1, 1, 1]} : vector<4x8x32xf32> to vector<1x8x32xf32>
    %344 = vector.shape_cast %343 : vector<1x8x32xf32> to vector<8x32xf32>
    %345 = vector.extract_strided_slice %321 {offsets = [2, 0, 0], sizes = [1, 8, 32], strides = [1, 1, 1]} : vector<4x8x32xf32> to vector<1x8x32xf32>
    %346 = vector.shape_cast %345 : vector<1x8x32xf32> to vector<8x32xf32>
    %347 = vector.extract_strided_slice %321 {offsets = [3, 0, 0], sizes = [1, 8, 32], strides = [1, 1, 1]} : vector<4x8x32xf32> to vector<1x8x32xf32>
    %348 = vector.shape_cast %347 : vector<1x8x32xf32> to vector<8x32xf32>
    %349 = tpu.concatenate %342, %344, %346, %348 in 1 : vector<8x32xf32>, vector<8x32xf32>, vector<8x32xf32>, vector<8x32xf32> -> vector<8x128xf32>
    %c0_124 = arith.constant 0 : index
    %c0_125 = arith.constant 0 : index
    %350 = vector.load %arg8[%c0_124, %c0_125] : memref<8x128xf32, #tpu.memory_space<vmem>>, vector<8x128xf32>
    tpu.vector_store %arg8[%c0_124, %c0_125], %349 {strides = array<i32>} : memref<8x128xf32, #tpu.memory_space<vmem>>, vector<8x128xf32>,
    %351 = vector.extract_strided_slice %330 {offsets = [0, 0, 0], sizes = [1, 8, 32], strides = [1, 1, 1]} : vector<4x8x32xf32> to vector<1x8x32xf32>
    %352 = vector.shape_cast %351 : vector<1x8x32xf32> to vector<8x32xf32>
    %353 = vector.extract_strided_slice %330 {offsets = [1, 0, 0], sizes = [1, 8, 32], strides = [1, 1, 1]} : vector<4x8x32xf32> to vector<1x8x32xf32>
    %354 = vector.shape_cast %353 : vector<1x8x32xf32> to vector<8x32xf32>
    %355 = vector.extract_strided_slice %330 {offsets = [2, 0, 0], sizes = [1, 8, 32], strides = [1, 1, 1]} : vector<4x8x32xf32> to vector<1x8x32xf32>
    %356 = vector.shape_cast %355 : vector<1x8x32xf32> to vector<8x32xf32>
    %357 = vector.extract_strided_slice %330 {offsets = [3, 0, 0], sizes = [1, 8, 32], strides = [1, 1, 1]} : vector<4x8x32xf32> to vector<1x8x32xf32>
    %358 = vector.shape_cast %357 : vector<1x8x32xf32> to vector<8x32xf32>
    %359 = tpu.concatenate %352, %354, %356, %358 in 1 : vector<8x32xf32>, vector<8x32xf32>, vector<8x32xf32>, vector<8x32xf32> -> vector<8x128xf32>
    %c0_126 = arith.constant 0 : index
    %c0_127 = arith.constant 0 : index
    %360 = vector.load %arg9[%c0_126, %c0_127] : memref<8x128xf32, #tpu.memory_space<vmem>>, vector<8x128xf32>
    tpu.vector_store %arg9[%c0_126, %c0_127], %359 {strides = array<i32>} : memref<8x128xf32, #tpu.memory_space<vmem>>, vector<8x128xf32>,
    return
  }
  func.func @transform_0(%arg0: i32) -> (i32, i32, i32) {
    %c0_i32 = arith.constant 0 : i32
    %c0_i32_0 = arith.constant 0 : i32
    %c0_i32_1 = arith.constant 0 : i32
    return %c0_i32, %arg0, %c0_i32_0 : i32, i32, i32
  }
  func.func @transform_1(%arg0: i32) -> (i32, i32, i32) {
    %c0_i32 = arith.constant 0 : i32
    %c0_i32_0 = arith.constant 0 : i32
    %c0_i32_1 = arith.constant 0 : i32
    return %c0_i32, %arg0, %c0_i32_0 : i32, i32, i32
  }
  func.func @transform_2(%arg0: i32) -> (i32, i32, i32) {
    %c0_i32 = arith.constant 0 : i32
    %c0_i32_0 = arith.constant 0 : i32
    %c0_i32_1 = arith.constant 0 : i32
    %c0_i32_2 = arith.constant 0 : i32
    return %c0_i32, %c0_i32_0, %c0_i32_1 : i32, i32, i32
  }
  func.func @transform_3(%arg0: i32) -> (i32, i32, i32) {
    %c0_i32 = arith.constant 0 : i32
    %c0_i32_0 = arith.constant 0 : i32
    %c0_i32_1 = arith.constant 0 : i32
    %c0_i32_2 = arith.constant 0 : i32
    return %c0_i32, %c0_i32_0, %c0_i32_1 : i32, i32, i32
  }
  func.func @transform_4(%arg0: i32) -> (i32, i32, i32, i32) {
    %c0_i32 = arith.constant 0 : i32
    %c0_i32_0 = arith.constant 0 : i32
    %c0_i32_1 = arith.constant 0 : i32
    %c0_i32_2 = arith.constant 0 : i32
    %c0_i32_3 = arith.constant 0 : i32
    return %c0_i32, %c0_i32_0, %c0_i32_1, %c0_i32_2 : i32, i32, i32, i32
  }
  func.func @transform_5(%arg0: i32) -> (i32, i32, i32, i32) {
    %c0_i32 = arith.constant 0 : i32
    %c0_i32_0 = arith.constant 0 : i32
    %c0_i32_1 = arith.constant 0 : i32
    %c0_i32_2 = arith.constant 0 : i32
    %c0_i32_3 = arith.constant 0 : i32
    return %c0_i32, %c0_i32_0, %c0_i32_1, %c0_i32_2 : i32, i32, i32, i32
  }
  func.func @transform_6(%arg0: i32) -> (i32, i32) {
    %c0_i32 = arith.constant 0 : i32
    %c0_i32_0 = arith.constant 0 : i32
    return %arg0, %c0_i32 : i32, i32
  }
  func.func @transform_7(%arg0: i32) -> (i32, i32) {
    %c0_i32 = arith.constant 0 : i32
    %c0_i32_0 = arith.constant 0 : i32
    return %arg0, %c0_i32 : i32, i32
  }
  func.func @transform_8(%arg0: i32) -> (i32, i32) {
    %c0_i32 = arith.constant 0 : i32
    %c0_i32_0 = arith.constant 0 : i32
    return %arg0, %c0_i32 : i32, i32
  }
}

</mosaic_0001>

<bundles_post_ra>
// kernel: tpu_custom_call.1
= control target key start
LH: loop header
LB: loop body
LE: loop exit
PB: predicated region body
PF: predicated region fallthrough
CT: control target
= control target key end

     0   :  { %14 = vsyncpa [#allocation5], 0  ;;  %s9875_s0 = inlined_call_operand.vmem [shape: f32[8,24,1], index: 0, kind: input, shape index: {}]   ;;  %s9876_s1 = inlined_call_operand.vmem [shape: f32[8,24,24], index: 1, kind: input, shape index: {}]   ;;  %s9877_s2 = inlined_call_operand.hbm [shape: f32[8,24,128], index: 2, kind: input, shape index: {}]   ;;  %s9878_s3 = inlined_call_operand.vmem [shape: f32[8,1,128], index: 3, kind: input, shape index: {}]   ;;  %s9879_s4 = inlined_call_operand.vmem [shape: f32[8,4,1,1], index: 4, kind: input, shape index: {}]   ;;  %s9880_s5 = inlined_call_operand.vmem [shape: f32[8,4,1,1], index: 5, kind: input, shape index: {}]   ;;  %s9881_s6 = inlined_call_operand.vmem [shape: f32[24,4], index: 6, kind: output, shape index: {0}]   ;;  %s9882_s7 = inlined_call_operand.hbm [shape: f32[24,128], index: 7, kind: output, shape index: {1}]   ;;  %s9883_s8 = inlined_call_operand.hbm [shape: f32[24,128], index: 8, kind: output, shape index: {2}]  }
   0x1   :  { %15 = vsyncpa [#allocation6], 0 }
   0x2   :  { %17 = vsyncpa [#allocation6 + $0x1], 0 }
   0x3   :  { %18 = vsyncpa [#allocation9], 0 }
   0x4   :  { %20 = vsyncpa [#allocation9 + $0x1], 0  ;;  %s5878_s27 = smov 0   ;;  %s5880_s28 = smov 0  }
   0x5   :  { %s5882_s29 = smov 0   ;;  %s5884_s30 = smov 0  }
   0x6 LB: > { %s5899_s9 = sadd.s32 4294967295, %s5816_s30   ;;  %s4976_s10 = sadd.s32 4294967294, %s5816_s30   ;;  %s5816_s30 = sphi %s5884_s30, %s10323_s30   ;;  %s5812_s29 = sphi %s5882_s29, %s10322_s29   ;;  %s5808_s28 = sphi %s5880_s28, %s10321_s28   ;;  %s5804_s27 = sphi %s5878_s27, %s10320_s27  }
   0x7   : > { %s5903_s11 = sadd.s32 1, %s5816_s30   ;;  %s33_s12 = sadd.s32 1, %s5812_s29 }
   0x8   : > { %s30_s13 = ssub.s32 %s5816_s30, %s5903_s11  ;;  %p40_p0 = scmp.ne.s32.totalorder %s5812_s29, %s5808_s28 }
   0x9   : > { %p31_p1 = scmp.eq.s32.totalorder %s30_s13, 0  ;;  %p41_p2 = scmp.eq.s32.totalorder %s5816_s30, 0 }
   0xa   : > { %p206_p3 = scmp.eq.s32.totalorder %s5899_s9, 2  ;;  %p211_p4 = scmp.ne.s32.totalorder %s5808_s28, %s5804_s27 }
   0xb   : > { %s5915_s14 = scalar_select %p31_p1, %s5812_s29, %s33_s12  }
   0xc   : > { %p5917_p5 = por %p41_p2, %p40_p0  ;;  %p5921_p6 = por %p206_p3, %p40_p0 }
   0xd   : > { %10052 = sst [smem:[#allocation13_spill]] %s5915_s14  ;;  %p212_p7 = scmp.eq.s32.totalorder %s4976_s10, 2 }
   0xe   : > { %s10053_s15 = scalar_select %p5917_p5, 1, 0 }
   0xf   : > { %s10054_s16 = scalar_select %p5921_p6, 1, 0 }
  0x10   : > { %p4977_p8 = scmp.ge.s32.totalorder %s5816_s30, 1  ;;  %p245_p9 = scmp.lt.s32.totalorder %s5816_s30, 4 }
  0x11   : > { %p5927_p10 = por %p212_p7, %p211_p4  ;;  %p9884_p11 = scmp.eq.s32.totalorder %s5899_s9, 0 }
  0x12   : > { %p5932_p12 = pnand %p4977_p8, %p245_p9  ;;  %s5818_s19 = smov [#allocation4]  }
  0x13   : > { %s10055_s17 = scalar_select %p5927_p10, 1, 0 }
  0x14   : > { %s10056_s18 = scalar_select %p5932_p12, 1, 0 }
  0x15   : > { %s257_s20 = sshll.u32 %s5818_s19, 4  ;;  %p5227_p13 = pneg %p5932_p12  ;;  %s258_s20 = int_to_ptr.vmem [resolvable:$true] %s257_s20 }
  0x16   : > { %s5690_s24 = scalar_lea.hbm %s9877_s2, 3072 }
  0x17   : > { %p5940_p0 = pnand %p9884_p11, %p5227_p13  ;;  %p5691_p1 = scmp.ne.s32.totalorder %s9877_s2, %s5690_s24 }
  0x18   : > { %p5697_p7 = scmp.lt.u32.totalorder %s5690_s24, %s9877_s2 }
  0x19   : > { %p5692_p2 = pneg %p5940_p0 }
  0x1b   : > { %p5693_p3 = pnand %p5692_p2, %p5691_p1 }
  0x1d   : > { %p5694_p4 = pneg %p5693_p3 }
  0x1f   : > { %p5699_p8 = pnand %p5697_p7, %p5694_p4 }
  0x21   : > { %5702 = shalt.err (!%p5699_p8)
}
  0x22   : > { %s5703_s13 = scalar_lea.vmem %s258_s20, 3072  ;;  %p5711_p10 = scmp.lt.s32.totalorder %s258_s20, %s258_s20 }
  0x23   : > { %p5704_p9 = scmp.ne.s32.totalorder %s258_s20, %s5703_s13  ;;  %p5712_p6 = scmp.lt.s32.totalorder %s5703_s13, %s5703_s13 }
  0x25   : > { %p5706_p13 = pnand %p5704_p9, %p5692_p2  ;;  %p5713_p12 = por %p5712_p6, %p5711_p10 }
  0x27   : > { %p5707_p11 = pneg %p5706_p13 }
  0x29   : > { %p5714_p5 = pnand %p5713_p12, %p5707_p11 }
  0x2b   : > { %5717 = shalt.err (!%p5714_p5)
}
  0x2c   : > { %s5819_s19 = smov 128   ;;  %s5820_s22 = smov 8  }
  0x2d   : > { %5230 = dma.hbm_to_vmem [thread:$0]  (!%p5940_p0), %s9877_s2, 3072, %s258_s20, [#allocation5], %s5819_s19, %s5819_s19, %s5820_s22  }
  0x2e   : > { %p4979_p1 = scmp.ge.s32.totalorder %s5816_s30, 3 }
  0x2f   : > { %p10058_p3 = scmp.ne.s32.totalorder (!%p4979_p1), %s10053_s15, 0 }
  0x30   : > { %276 = sbr.rel (%p4979_p1) target bundleno = 72 (0x48), region = 32 }
  0x37   : > { %279 = sbr.rel (!%p10058_p3) target bundleno = 63 (0x3f), region = 36  ;;  %s281_s24 = sand.u32 (%p10058_p3), 1, %s5812_s29  }
  0x38   : > { %s4981_s26 = sshll.u32 (%p10058_p3), %s5816_s30, 3  ;;  %s4980_s10 = sshll.u32 (%p10058_p3), %s281_s24, 6 }
  0x39   : > { %s285_s14 = scalar_lea.vmem (%p10058_p3), %s9875_s0, %s4981_s26  ;;  %s283_s21 = scalar_lea.vmem (%p10058_p3), [#allocation2], %s4980_s10 }
  0x3a   : > { %v327_v0 = vld [vmem:[%s285_s14] sm:$0xff] (%p10058_p3)  ;;  %v329_v1 = vld [vmem:[%s285_s14 + $0x18] sm:$0xff] (%p10058_p3)  ;;  %v331_v2 = vld [vmem:[%s285_s14 + $0x30] sm:$0xff] (%p10058_p3) }
  0x3b   : > { %328 = vst [vmem:[%s283_s21] sm:$0xff] (%p10058_p3), %v327_v0  ;;  %330 = vst [vmem:[%s283_s21 + $0x8] sm:$0xff] (%p10058_p3), %v329_v1  ;;  %v333_v3 = vld [vmem:[%s285_s14 + $0x48] sm:$0xff] (%p10058_p3)  ;;  %v335_v4 = vld [vmem:[%s285_s14 + $0x60] sm:$0xff] (%p10058_p3) }
  0x3c   : > { %332 = vst [vmem:[%s283_s21 + $0x10] sm:$0xff] (%p10058_p3), %v331_v2  ;;  %v337_v5 = vld [vmem:[%s285_s14 + $0x78] sm:$0xff] (%p10058_p3)  ;;  %334 = vst [vmem:[%s283_s21 + $0x18] sm:$0xff] (%p10058_p3), %v333_v3  ;;  %v339_v6 = vld [vmem:[%s285_s14 + $0x90] sm:$0xff] (%p10058_p3) }
  0x3d   : > { %336 = vst [vmem:[%s283_s21 + $0x20] sm:$0xff] (%p10058_p3), %v335_v4  ;;  %338 = vst [vmem:[%s283_s21 + $0x28] sm:$0xff] (%p10058_p3), %v337_v5  ;;  %v341_v7 = vld [vmem:[%s285_s14 + $0xa8] sm:$0xff] (%p10058_p3) }
  0x3e   : > { %340 = vst [vmem:[%s283_s21 + $0x30] sm:$0xff] %v339_v6  ;;  %342 = vst [vmem:[%s283_s21 + $0x38] sm:$0xff] %v341_v7 }
  0x3f PF: > { %p10059_p5 = scmp.ne.s32.totalorder %s10053_s15, 0 }
  0x40   : > { %s350_s20 = sand.u32 (%p10059_p5), 1, %s5812_s29   ;;  %s4983_s19 = sshll.u32 (%p10059_p5), %s5816_s30, 3 }
  0x41   : > { %348 = sbr.rel (!%p10059_p5) target bundleno = 72 (0x48), region = 74  ;;  %s4982_s22 = sshll.u32 (%p10059_p5), %s350_s20, 6 }
  0x42   : > { %s354_s24 = scalar_lea.vmem (%p10059_p5), %s9876_s1, %s4983_s19  ;;  %s352_s26 = scalar_lea.vmem (%p10059_p5), [#allocation3], %s4982_s22 }
  0x43   : > { %v396_v8 = vld [vmem:[%s354_s24] sm:$0xff] (%p10059_p5)  ;;  %v398_v9 = vld [vmem:[%s354_s24 + $0x18] sm:$0xff] (%p10059_p5)  ;;  %v400_v10 = vld [vmem:[%s354_s24 + $0x30] sm:$0xff] (%p10059_p5) }
  0x44   : > { %397 = vst [vmem:[%s352_s26] sm:$0xff] (%p10059_p5), %v396_v8  ;;  %399 = vst [vmem:[%s352_s26 + $0x8] sm:$0xff] (%p10059_p5), %v398_v9  ;;  %v402_v11 = vld [vmem:[%s354_s24 + $0x48] sm:$0xff] (%p10059_p5)  ;;  %v404_v12 = vld [vmem:[%s354_s24 + $0x60] sm:$0xff] (%p10059_p5) }
  0x45   : > { %401 = vst [vmem:[%s352_s26 + $0x10] sm:$0xff] (%p10059_p5), %v400_v10  ;;  %v406_v13 = vld [vmem:[%s354_s24 + $0x78] sm:$0xff] (%p10059_p5)  ;;  %403 = vst [vmem:[%s352_s26 + $0x18] sm:$0xff] (%p10059_p5), %v402_v11  ;;  %v408_v14 = vld [vmem:[%s354_s24 + $0x90] sm:$0xff] (%p10059_p5) }
  0x46   : > { %405 = vst [vmem:[%s352_s26 + $0x20] sm:$0xff] (%p10059_p5), %v404_v12  ;;  %407 = vst [vmem:[%s352_s26 + $0x28] sm:$0xff] (%p10059_p5), %v406_v13  ;;  %v410_v15 = vld [vmem:[%s354_s24 + $0xa8] sm:$0xff] (%p10059_p5) }
  0x47   : > { %409 = vst [vmem:[%s352_s26 + $0x30] sm:$0xff] (%p10059_p5), %v408_v14  ;;  %411 = vst [vmem:[%s352_s26 + $0x38] sm:$0xff] (%p10059_p5), %v410_v15 }
  0x48 PF: > { %p10060_p6 = scmp.ne.s32.totalorder %s10056_s18, 0 }
  0x4a   : > { %420 = sbr.rel (%p10060_p6) target bundleno = 1707 (0x6ab), region = 112 }
  0x51   : > { %s5978_s14 = sand.u32 1, %s5808_s28   ;;  %p10061_p10 = scmp.eq.s32.totalorder %s5899_s9, 0 }
  0x52   : > { %s4985_s15 = sshll.u32 %s5978_s14, 6 }
  0x53   : > { %s5981_s10 = scalar_lea.vmem [#allocation2], %s4985_s15  ;;  %s5983_s12 = scalar_lea.vmem [#allocation3], %s4985_s15 }
  0x54   : > { %5791 = dma.done.wait (%p10061_p10), [#allocation5], 3072   ;;  %p10062_p11 = pmov %p10061_p10 }
  0x55   : > { %v5821_v16 = vmov 0.0|0.0   ;;  %vm5822_vm0 = vmmov 0   ;;  %v5823_v17 = vmov 0.0   ;;  %v5824_v18 = vmov 0   ;;  %v485_v19 = vld [vmem:[#allocation4] sm:$0xff]  ;;  %v486_v20 = vld [vmem:[#allocation4 + $0x8] sm:$0xff] }
  0x56   : > { %5793 = vsyncadd (%p10062_p11), [#allocation5], 4294964224  ;;  %5195 = vmatprep.subr.bf16.mxu0 %v5821_v16  ;;  %5198 = vmatprep.subr.bf16.mxu1 %v5821_v16  ;;  %v572_v21 = vld [vmem:[#allocation4 + $0x18] sm:$0xff]  ;;  %v5196_v22 = vpack.c.bf16 %v486_v20, %v485_v19  ;;  %v573_v23 = vld [vmem:[#allocation4 + $0x20] sm:$0xff]  ;;  %vm495_vm1 = vcmask 195584   ;;  %vm1874_vm2 = vcmask 7168  }
  0x57   : > { %5129 = vmatprep.mubr.msk.f32.mxu0 %vm5822_vm0, %v5823_v17  ;;  %5138 = vmatprep.mubr.msk.f32.mxu1 %vm5822_vm0, %v5823_v17  ;;  %v5199_v24 = vpack.c.bf16 %v573_v23, %v572_v21  ;;  %v659_v25 = vld [vmem:[#allocation4 + $0x30] sm:$0xff]  ;;  %v660_v26 = vld [vmem:[#allocation4 + $0x38] sm:$0xff]  ;;  %v746_v28 = vld [vmem:[#allocation4 + $0x48] sm:$0xff]  ;;  %s9949_s19 = smov 96   ;;  %vm2032_vm3 = vcmask 261120   ;;  %s5826_s25 = smov 64  }
  0x58   : > { %5286 = vset.pattern.permute.xlu0 %v5824_v18  ;;  %5287 = vset.pattern.permute.xlu1 %v5824_v18  ;;  %v487_v27 = vld [vmem:[#allocation4 + $0x10] sm:$0xff]  ;;  %v574_v30 = vld [vmem:[#allocation4 + $0x28] sm:$0xff]  ;;  %v484_v31 = vld [vmem:[%s5983_s12] sm:$0xff]  ;;  %v5202_v33 = vpack.c.bf16 %v660_v26, %v659_v25  ;;  %s9951_s15 = smov 32   ;;  %s5828_s18 = smov 1   ;;  %vm4765_vm4 = vcmask 523264  }
  0x59   : > { %5197 = vmatpush3.bf16.msra.mxu0 %v5196_v22  ;;  %5200 = vmatpush3.bf16.msra.mxu1 %v5199_v24  ;;  %v747_v29 = vld [vmem:[#allocation4 + $0x50] sm:$0xff]  ;;  %v4993_v32 = vld [vmem:[%s5983_s12 + $0x8] sm:$0xff]  ;;  %v661_v35 = vld [vmem:[#allocation4 + $0x40] sm:$0xff]  ;;  %s5829_s13 = smov 2   ;;  %s10301_s21 = smov 32   ;;  %vm4767_vm5 = vcmask 785408  }
  0x5a   : > { %5127 = vmatprep.subr.mxu0 %v5823_v17  ;;  %5136 = vmatprep.subr.mxu1 %v5823_v17  ;;  %v5205_v34 = vpack.c.bf16 %v747_v29, %v746_v28  ;;  %v833_v36 = vld [vmem:[#allocation4 + $0x60] sm:$0xff]  ;;  %v834_v37 = vld [vmem:[#allocation4 + $0x68] sm:$0xff]  ;;  %v4997_v38 = vld [vmem:[%s5983_s12 + $0x10] sm:$0xff]  ;;  %s10303_s20 = smov 96   ;;  %p480_p12 = scmp.lt.s32.totalorder %s5899_s9, 2 }
  0x5b   : > { %v920_v39 = vld [vmem:[#allocation4 + $0x78] sm:$0xff]  ;;  %v921_v40 = vld [vmem:[#allocation4 + $0x80] sm:$0xff]  ;;  %v1259_v43 = vld [vmem:[%s5981_s10 + $0x8] sm:$0xff]  ;;  %v5208_v47 = vpack.c.bf16 %v834_v37, %v833_v36  ;;  %p10315_p2 = scmp.ne.s32.totalorder %s10054_s16, 0 }
  0x5c   : > { %v1258_v41 = vld [vmem:[%s5981_s10] sm:$0xff]  ;;  %v748_v42 = vld [vmem:[#allocation4 + $0x58] sm:$0xff]  ;;  %v1260_v44 = vld [vmem:[%s5981_s10 + $0x10] sm:$0xff]  ;;  %v1267_v51 = vsub.f32 0.0, %v1259_v43  ;;  %v5211_v60 = vpack.c.bf16 %v921_v40, %v920_v39  ;;  %s9772_s24 = scalar_select %p480_p12, %s5899_s9, 2 }
  0x5d   : > { %5128 = vmatpush3.msra.mxu0 %v487_v27  ;;  %5137 = vmatpush3.msra.mxu1 %v574_v30  ;;  %v1261_v45 = vld [vmem:[%s5981_s10 + $0x18] sm:$0xff]  ;;  %v1266_v46 = vsub.f32 0.0, %v1258_v41  ;;  %v1262_v48 = vld [vmem:[%s5981_s10 + $0x20] sm:$0xff]  ;;  %v1263_v49 = vld [vmem:[%s5981_s10 + $0x28] sm:$0xff]  ;;  %v1268_v52 = vsub.f32 0.0, %v1260_v44 }
  0x5e   : > { %5130 = vmatmul.mubr.msk.f32.vlgmr.msra.gmra.mrb[0].mxu0 %vm495_vm1, %v484_v31  ;;  %5139 = vmatmul.mubr.msk.f32.vlgmr.msra.gmra.mrb[0].mxu1 %vm495_vm1, %v4993_v32  ;;  %v1264_v50 = vld [vmem:[%s5981_s10 + $0x30] sm:$0xff]  ;;  %v1269_v53 = vsub.f32 0.0, %v1261_v45  ;;  %v1265_v54 = vld [vmem:[%s5981_s10 + $0x38] sm:$0xff]  ;;  %v1270_v55 = vsub.f32 0.0, %v1262_v48  ;;  %v1271_v56 = vsub.f32 0.0, %v1263_v49  ;;  %v1094_v6 = vld [vmem:[#allocation4 + $0xa8] sm:$0xff] }
  0x5f   : > { %5201 = vmatprep.subr.bf16.mxu0 %v5821_v16  ;;  %5204 = vmatprep.subr.bf16.mxu1 %v5821_v16  ;;  %v1272_v57 = vsub.f32 0.0, %v1264_v50  ;;  %v1274_v58 = vmul.f32 1.442695, %v1266_v46  ;;  %v5001_v59 = vld [vmem:[%s5983_s12 + $0x18] sm:$0xff]  ;;  %v1273_v61 = vsub.f32 0.0, %v1265_v54  ;;  %v1007_v0 = vld [vmem:[#allocation4 + $0x90] sm:$0xff] }
  0x60   : > { %5203 = vmatpush3.bf16.msra.mxu0 %v5202_v33  ;;  %5206 = vmatpush3.bf16.msra.mxu1 %v5205_v34  ;;  %v1276_v62 = vmul.f32 1.442695, %v1267_v51  ;;  %v1278_v63 = vmul.f32 1.442695, %v1268_v52  ;;  %v1008_v1 = vld [vmem:[#allocation4 + $0x98] sm:$0xff]  ;;  %v835_v5 = vld [vmem:[#allocation4 + $0x70] sm:$0xff] }
  0x61   : > { %5145 = vmatprep.subr.mxu0 %v5823_v17  ;;  %5147 = vmatprep.mubr.msk.f32.mxu0 %vm5822_vm0, %v5823_v17  ;;  %5288 = vpow2.f32 %v1274_v58  ;;  %v1280_v2 = vmul.f32 1.442695, %v1269_v53  ;;  %v1282_v3 = vmul.f32 1.442695, %v1270_v55  ;;  %v1284_v4 = vmul.f32 1.442695, %v1271_v56 }
  0x62   : > { %5154 = vmatprep.subr.mxu1 %v5823_v17  ;;  %5156 = vmatprep.mubr.msk.f32.mxu1 %vm5822_vm0, %v5823_v17  ;;  %5290 = vpow2.f32 %v1276_v62  ;;  %v1095_v7 = vld [vmem:[#allocation4 + $0xb0] sm:$0xff]  ;;  %v1286_v8 = vmul.f32 1.442695, %v1272_v57  ;;  %v5005_v9 = vld [vmem:[%s5983_s12 + $0x20] sm:$0xff]  ;;  %v5214_v10 = vpack.c.bf16 %v1008_v1, %v1007_v0  ;;  %v1288_v11 = vmul.f32 1.442695, %v1273_v61 }
  0x63   : > { %5292 = vpow2.f32 %v1278_v63  ;;  %v922_v12 = vld [vmem:[#allocation4 + $0x88] sm:$0xff]  ;;  %v5217_v14 = vpack.c.bf16 %v1095_v7, %v1094_v6  ;;  %v1009_v15 = vld [vmem:[#allocation4 + $0xa0] sm:$0xff]  ;;  %v5013_v18 = vld [vmem:[%s5983_s12 + $0x30] sm:$0xff] }
  0x64   : > { %5146 = vmatpush3.msra.mxu0 %v661_v35  ;;  %5155 = vmatpush3.msra.mxu1 %v748_v42  ;;  %5294 = vpow2.f32 %v1280_v2  ;;  %v5009_v13 = vld [vmem:[%s5983_s12 + $0x28] sm:$0xff]  ;;  %v1096_v20 = vld [vmem:[#allocation4 + $0xb8] sm:$0xff] }
  0x65   : > { %5148 = vmatmul.mubr.msk.f32.vlgmr.msra.gmra.mrb[2].mxu0 %vm495_vm1, %v4997_v38  ;;  %5207 = vmatprep.subr.bf16.mxu0 %v5821_v16  ;;  %5296 = vpow2.f32 %v1282_v3  ;;  %v5017_v22 = vld [vmem:[%s5983_s12 + $0x38] sm:$0xff] }
  0x66   : > { %5209 = vmatpush3.bf16.msra.mxu0 %v5208_v47  ;;  %5157 = vmatmul.mubr.msk.f32.vlgmr.msra.gmra.mrb[2].mxu1 %vm495_vm1, %v5001_v59  ;;  %5298 = vpow2.f32 %v1284_v4 }
  0x67   : > { %5210 = vmatprep.subr.bf16.mxu1 %v5821_v16  ;;  %5163 = vmatprep.subr.mxu0 %v5823_v17  ;;  %5300 = vpow2.f32 %v1286_v8 }
  0x68   : > { %5212 = vmatpush3.bf16.msra.mxu1 %v5211_v60  ;;  %5165 = vmatprep.mubr.msk.f32.mxu0 %vm5822_vm0, %v5823_v17  ;;  %5302 = vpow2.f32 %v1288_v11 }
  0x69   : > { %5172 = vmatprep.subr.mxu1 %v5823_v17  ;;  %5174 = vmatprep.mubr.msk.f32.mxu1 %vm5822_vm0, %v5823_v17 }
  0x6a   : > { %5164 = vmatpush3.msra.mxu0 %v835_v5 }
  0x6b   : > { %5166 = vmatmul.mubr.msk.f32.vlgmr.msra.gmra.mrb[4].mxu0 %vm495_vm1, %v5005_v9  ;;  %5213 = vmatprep.subr.bf16.mxu0 %v5821_v16  ;;  %v5289_v19 = vpop.eup %5288 }
  0x6c   : > { %5173 = vmatpush3.msra.mxu1 %v922_v12  ;;  %5215 = vmatpush3.bf16.msra.mxu0 %v5214_v10  ;;  %v5291_v21 = vpop.eup %5290  ;;  %v1290_v23 = vadd.f32 1.0, %v5289_v19 }
  0x6d   : > { %5175 = vmatmul.mubr.msk.f32.vlgmr.msra.gmra.mrb[4].mxu1 %vm495_vm1, %v5009_v13  ;;  %5216 = vmatprep.subr.bf16.mxu1 %v5821_v16  ;;  %v5293_v16 = vpop.eup %5292  ;;  %v1291_v24 = vadd.f32 1.0, %v5291_v21  ;;  %v4991_v13 = vld [vmem:[%s9878_s3] ss:$0 sm:$0xff] }
  0x6e   : > { %5218 = vmatpush3.bf16.msra.mxu1 %v5217_v14  ;;  %5181 = vmatprep.subr.mxu0 %v5823_v17  ;;  %v5295_v25 = vpop.eup %5294  ;;  %v1292_v26 = vadd.f32 1.0, %v5293_v16  ;;  %5304 = vrcp.f32 %v1290_v23  ;;  %v4995_v14 = vld [vmem:[%s9878_s3 + $0x1] ss:$0 sm:$0xff] }
  0x6f   : > { %5183 = vmatprep.mubr.msk.f32.mxu0 %vm5822_vm0, %v5823_v17  ;;  %5190 = vmatprep.subr.mxu1 %v5823_v17  ;;  %v5297_v27 = vpop.eup %5296  ;;  %v1293_v28 = vadd.f32 1.0, %v5295_v25  ;;  %5306 = vrcp.f32 %v1291_v24 }
  0x70   : > { %5182 = vmatpush3.msra.mxu0 %v1009_v15  ;;  %5192 = vmatprep.mubr.msk.f32.mxu1 %vm5822_vm0, %v5823_v17  ;;  %v5299_v29 = vpop.eup %5298  ;;  %v1294_v30 = vadd.f32 1.0, %v5297_v27  ;;  %5308 = vrcp.f32 %v1292_v26  ;;  %v4999_v26 = vld [vmem:[%s9878_s3 + $0x2] ss:$0 sm:$0xff] }
  0x71   : > { %5184 = vmatmul.mubr.msk.f32.vlgmr.msra.gmra.mrb[6].mxu0 %vm495_vm1, %v5013_v18  ;;  %v5301_v31 = vpop.eup %5300  ;;  %v1295_v17 = vadd.f32 1.0, %v5299_v29  ;;  %5310 = vrcp.f32 %v1293_v28  ;;  %v5003_v28 = vld [vmem:[%s9878_s3 + $0x3] ss:$0 sm:$0xff] }
  0x72   : > { %5191 = vmatpush3.msra.mxu1 %v1096_v20  ;;  %v5303_v32 = vpop.eup %5302  ;;  %v1296_v33 = vadd.f32 1.0, %v5301_v31  ;;  %5312 = vrcp.f32 %v1294_v30 }
  0x73   : > { %5193 = vmatmul.mubr.msk.f32.vlgmr.msra.gmra.mrb[6].mxu1 %vm495_vm1, %v5017_v22  ;;  %v1297_v34 = vadd.f32 1.0, %v5303_v32  ;;  %5314 = vrcp.f32 %v1295_v17 }
  0x74   : > { %5316 = vrcp.f32 %v1296_v33 }
  0x75   : > { %5318 = vrcp.f32 %v1297_v34 }
  0x78   : > { %v6045_v35 = vpop.eup %5304 }
  0x79   : > { %10063 = vst [vmem:[#allocation14_spill] sm:$0xff] %v6045_v35  ;;  %v6047_v36 = vpop.eup %5306  ;;  %v6050_v37 = vmul.f32 0.25, %v6045_v35 }
  0x7a   : > { %10064 = vst [vmem:[#allocation15_spill] sm:$0xff] %v6047_v36  ;;  %v6052_v38 = vpop.eup %5308  ;;  %v6055_v39 = vmul.f32 0.25, %v6047_v36 }
  0x7b   : > { %10065 = vst [vmem:[#allocation16_spill] sm:$0xff] %v6052_v38  ;;  %v6057_v40 = vpop.eup %5310  ;;  %v6060_v41 = vmul.f32 0.25, %v6052_v38  ;;  %v1935_v42 = vsel %vm1874_vm2, %v6050_v37, 0.0 }
  0x7c   : > { %10066 = vst [vmem:[#allocation17_spill] sm:$0xff] %v6057_v40  ;;  %v6064_v43 = vpop.eup %5312  ;;  %v6067_v44 = vmul.f32 0.25, %v6057_v40  ;;  %v1936_v45 = vsel %vm1874_vm2, %v6055_v39, 0.0 }
  0x7d   : > { %10067 = vst [vmem:[#allocation18_spill] sm:$0xff] %v6064_v43  ;;  %v6071_v46 = vpop.eup %5314  ;;  %v6074_v47 = vmul.f32 0.25, %v6064_v43  ;;  %v1937_v48 = vadd.f32 %v1936_v45, %v1935_v42  ;;  %v1938_v49 = vsel %vm1874_vm2, %v6060_v41, 0.0 }
  0x7e   : > { %10068 = vst [vmem:[#allocation19_spill] sm:$0xff] %v6071_v46  ;;  %v6078_v50 = vpop.eup %5316  ;;  %v6081_v51 = vmul.f32 0.25, %v6071_v46  ;;  %v1940_v52 = vsel %vm1874_vm2, %v6067_v44, 0.0 }
  0x7f   : > { %10069 = vst [vmem:[#allocation20_spill] sm:$0xff] %v6078_v50  ;;  %v6085_v53 = vpop.eup %5318  ;;  %v1939_v54 = vadd.f32 %v1938_v49, %v1937_v48  ;;  %v6088_v55 = vmul.f32 0.25, %v6078_v50  ;;  %v1942_v56 = vsel %vm1874_vm2, %v6074_v47, 0.0  ;;  %v5007_v49 = vld [vmem:[%s9878_s3 + $0x4] ss:$0 sm:$0xff] }
  0x80   : > { %10070 = vst [vmem:[#allocation21_spill] sm:$0xff] %v6085_v53  ;;  %v6093_v58 = vmul.f32 0.25, %v6085_v53  ;;  %v1944_v59 = vsel %vm1874_vm2, %v6081_v51, 0.0 }
  0x81   : > { %10071 = vst [vmem:[#allocation22_spill] sm:$0xff] %v6088_v55  ;;  %v1941_v57 = vadd.f32 %v1940_v52, %v1939_v54  ;;  %v1946_v61 = vsel %vm1874_vm2, %v6088_v55, 0.0 }
  0x82   : > { %10072 = vst [vmem:[#allocation23_spill] sm:$0xff] %v6093_v58  ;;  %v1948_v63 = vsel %vm1874_vm2, %v6093_v58, 0.0 }
  0x83   : > { %v1943_v60 = vadd.f32 %v1942_v56, %v1941_v57 }
  0x85   : > { %v1945_v62 = vadd.f32 %v1944_v59, %v1943_v60  ;;  %v5011_v60 = vld [vmem:[%s9878_s3 + $0x5] ss:$0 sm:$0xff] }
  0x87   : > { %v1947_v0 = vadd.f32 %v1946_v61, %v1945_v62 }
  0x89   : > { %v1949_v1 = vadd.f32 %v1948_v63, %v1947_v0 }
  0x8b   : > { %v1950_v2 = vadd.f32 1e-05, %v1949_v1 }
  0x8d   : > { %5320 = vrcp.f32 %v1950_v2 }
  0x97   : > { %v5321_v3 = vpop.eup %5320 }
  0x98   : > { %v1952_v4 = vmul.f32 %v5321_v3, %v6050_v37  ;;  %v1954_v5 = vmul.f32 %v5321_v3, %v6060_v41  ;;  %v1953_v6 = vmul.f32 %v5321_v3, %v6055_v39  ;;  %v1955_v7 = vmul.f32 %v5321_v3, %v6067_v44 }
  0x99   : > { %v1956_v8 = vmul.f32 %v5321_v3, %v6074_v47  ;;  %v1957_v9 = vmul.f32 %v5321_v3, %v6081_v51  ;;  %v1958_v10 = vmul.f32 %v5321_v3, %v6088_v55  ;;  %v1959_v11 = vmul.f32 %v5321_v3, %v6093_v58 }
  0x9a   : > { %1962 = vperm.xlu0 %5286, %v1952_v4   ;;  %1972 = vperm.xlu1 %5287, %v1954_v5  }
  0x9e   : > { %1967 = vperm.xlu0 %5286, %v1953_v6   ;;  %1977 = vperm.xlu1 %5287, %v1955_v7   ;;  %v5015_v6 = vld [vmem:[%s9878_s3 + $0x6] ss:$0 sm:$0xff] }
  0xa2   : > { %1982 = vperm.xlu0 %5286, %v1956_v8   ;;  %1987 = vperm.xlu1 %5287, %v1957_v9  }
  0xa6   : > { %1992 = vperm.xlu1 %5287, %v1958_v10   ;;  %1997 = vperm.xlu0 %5286, %v1959_v11  }
 0x119   : > { %v6109_v12 = vpop.permute.xlu0 %1962  ;;  %v6125_v16 = vpop.permute.xlu1 %1972 }
 0x11d   : > { %v6117_v18 = vpop.permute.xlu0 %1967  ;;  %v6147_v33 = vpop.permute.xlu1 %1977 }
 0x121   : > { %v6163_v56 = vpop.permute.xlu0 %1982  ;;  %v6168_v61 = vpop.permute.xlu1 %1987 }
 0x125   : > { %v6189_v11 = vpop.permute.xlu1 %1992 }
 0x131   : > { %v565_v15 = vpop.f32.mrb[0].mxu0  ;;  %v652_v20 = vpop.f32.mrb[0].mxu1 }
 0x132   : > { %v6119_v19 = vadd.f32 %v4991_v13, %v565_v15  ;;  %v5131_v21 = vpop.f32.mrb[1].mxu0  ;;  %v6121_v22 = vadd.f32 %v4995_v14, %v652_v20  ;;  %v5140_v23 = vpop.f32.mrb[1].mxu1  ;;  %v5019_v13 = vld [vmem:[%s9878_s3 + $0x7] ss:$0 sm:$0xff] }
 0x133   : > { %v6199_v23 = vpop.permute.xlu0 %1997 }
 0x134   : > { %10073 = vst [vmem:[#allocation24_spill] sm:$0xff] %v6119_v19  ;;  %10074 = vst [vmem:[#allocation25_spill] sm:$0xff] %v6121_v22  ;;  %1179 = vrot.lane.b32.xlu1 %v6119_v19, %s9949_s19  ;;  %v2000_v24 = vmul.f32 %v6109_v12, %v6119_v19  ;;  %v2004_v25 = vmul.f32 %v6117_v18, %v6121_v22  ;;  %1189 = vrot.lane.b32.xlu0 %v6121_v22, %s9949_s19 }
 0x136   : > { %v2033_v29 = vsel %vm2032_vm3, %v2000_v24, 0.0  ;;  %v2034_v30 = vsel %vm2032_vm3, %v2004_v25, 0.0 }
 0x137   : > { %v2035_v48 = vadd.f32 %v2034_v30, %v2033_v29 }
 0x138   : > { %v739_v27 = vpop.f32.mrb[2].mxu0  ;;  %1192 = vrot.lane.b32.xlu1 %v6121_v22, %s5826_s25  ;;  %1182 = vrot.lane.b32.xlu0 %v6119_v19, %s5826_s25 }
 0x139   : > { %v6143_v31 = vadd.f32 %v4999_v26, %v739_v27  ;;  %v5149_v17 = vpop.f32.mrb[3].mxu0  ;;  %v826_v32 = vpop.f32.mrb[2].mxu1 }
 0x13a   : > { %v6149_v34 = vadd.f32 %v5003_v28, %v826_v32  ;;  %v5158_v45 = vpop.f32.mrb[3].mxu1 }
 0x13b   : > { %10075 = vst [vmem:[#allocation26_spill] sm:$0xff] %v6143_v31  ;;  %v2008_v42 = vmul.f32 %v6125_v16, %v6143_v31 }
 0x13c   : > { %10076 = vst [vmem:[#allocation27_spill] sm:$0xff] %v6149_v34  ;;  %1195 = vrot.lane.b32.xlu1 %v6121_v22, %s9951_s15  ;;  %v2012_v52 = vmul.f32 %v6147_v33, %v6149_v34  ;;  %1185 = vrot.lane.b32.xlu0 %v6119_v19, %s9951_s15 }
 0x13d   : > { %v2036_v54 = vsel %vm2032_vm3, %v2008_v42, 0.0 }
 0x13e   : > { %v2037_v57 = vadd.f32 %v2036_v54, %v2035_v48  ;;  %v913_v59 = vpop.f32.mrb[4].mxu0  ;;  %v2038_v62 = vsel %vm2032_vm3, %v2012_v52, 0.0 }
 0x13f   : > { %v6171_v63 = vadd.f32 %v5007_v49, %v913_v59  ;;  %v5167_v0 = vpop.f32.mrb[5].mxu0 }
 0x140   : > { %v1000_v1 = vpop.f32.mrb[4].mxu1  ;;  %1209 = vrot.lane.b32.xlu1 %v6149_v34, %s9949_s19  ;;  %1199 = vrot.lane.b32.xlu0 %v6143_v31, %s9949_s19  ;;  %v2039_v5 = vadd.f32 %v2038_v62, %v2037_v57 }
 0x141   : > { %10077 = vst [vmem:[#allocation28_spill] sm:$0xff] %v6171_v63  ;;  %v2016_v2 = vmul.f32 %v6163_v56, %v6171_v63  ;;  %v6177_v3 = vadd.f32 %v5011_v60, %v1000_v1  ;;  %v5176_v4 = vpop.f32.mrb[5].mxu1 }
 0x143   : > { %10078 = vst [vmem:[#allocation29_spill] sm:$0xff] %v6177_v3  ;;  %v2040_v7 = vsel %vm2032_vm3, %v2016_v2, 0.0  ;;  %v2020_v8 = vmul.f32 %v6168_v61, %v6177_v3 }
 0x144   : > { %v2041_v9 = vadd.f32 %v2040_v7, %v2039_v5  ;;  %v1087_v10 = vpop.f32.mrb[6].mxu0  ;;  %1205 = vrot.lane.b32.xlu1 %v6143_v31, %s9951_s15  ;;  %1202 = vrot.lane.b32.xlu0 %v6143_v31, %s5826_s25 }
 0x145   : > { %v2042_v14 = vsel %vm2032_vm3, %v2020_v8, 0.0  ;;  %v6195_v15 = vadd.f32 %v5015_v6, %v1087_v10  ;;  %v5185_v20 = vpop.f32.mrb[7].mxu0 }
 0x146   : > { %v1174_v21 = vpop.f32.mrb[6].mxu1  ;;  %v2043_v27 = vadd.f32 %v2042_v14, %v2041_v9 }
 0x147   : > { %10079 = vst [vmem:[#allocation30_spill] sm:$0xff] %v6195_v15  ;;  %v2024_v24 = vmul.f32 %v6189_v11, %v6195_v15  ;;  %v6203_v25 = vadd.f32 %v5019_v13, %v1174_v21  ;;  %v5194_v26 = vpop.f32.mrb[7].mxu1 }
 0x148   : > { %1219 = vrot.lane.b32.xlu1 %v6171_v63, %s9949_s19  ;;  %1212 = vrot.lane.b32.xlu0 %v6149_v34, %s5826_s25 }
 0x149   : > { %10080 = vst [vmem:[#allocation31_spill] sm:$0xff] %v6203_v25  ;;  %v2044_v28 = vsel %vm2032_vm3, %v2024_v24, 0.0  ;;  %v2028_v29 = vmul.f32 %v6199_v23, %v6203_v25 }
 0x14a   : > { %v2045_v30 = vadd.f32 %v2044_v28, %v2043_v27 }
 0x14b   : > { %v2046_v17 = vsel %vm2032_vm3, %v2028_v29, 0.0 }
 0x14c   : > { %v2047_v32 = vadd.f32 %v2046_v17, %v2045_v30  ;;  %1222 = vrot.lane.b32.xlu1 %v6171_v63, %s5826_s25  ;;  %1215 = vrot.lane.b32.xlu0 %v6149_v34, %s9951_s15 }
 0x14e   : > { %v2093_v42 = vsub.f32 %v6119_v19, %v2047_v32  ;;  %v2097_v45 = vsub.f32 %v6121_v22, %v2047_v32  ;;  %v2101_v48 = vsub.f32 %v6143_v31, %v2047_v32  ;;  %v2105_v49 = vsub.f32 %v6149_v34, %v2047_v32 }
 0x14f   : > { %v2109_v52 = vsub.f32 %v6171_v63, %v2047_v32  ;;  %v2113_v54 = vsub.f32 %v6177_v3, %v2047_v32  ;;  %v2117_v0 = vsub.f32 %v6195_v15, %v2047_v32  ;;  %v2121_v10 = vsub.f32 %v6203_v25, %v2047_v32 }
 0x150   : > { %1225 = vrot.lane.b32.xlu1 %v6171_v63, %s9951_s15  ;;  %v2125_v57 = vmul.f32 %v2093_v42, %v2093_v42  ;;  %v2129_v59 = vmul.f32 %v2097_v45, %v2097_v45  ;;  %v2133_v60 = vmul.f32 %v2101_v48, %v2101_v48  ;;  %v2137_v62 = vmul.f32 %v2105_v49, %v2105_v49 }
 0x151   : > { %1229 = vrot.lane.b32.xlu0 %v6177_v3, %s9949_s19  ;;  %v2141_v1 = vmul.f32 %v2109_v52, %v2109_v52  ;;  %v2145_v6 = vmul.f32 %v2113_v54, %v2113_v54  ;;  %v2149_v14 = vmul.f32 %v2117_v0, %v2117_v0  ;;  %v2153_v28 = vmul.f32 %v2121_v10, %v2121_v10 }
 0x152   : > { %v2157_v2 = vmul.f32 %v2125_v57, %v6109_v12  ;;  %v2161_v4 = vmul.f32 %v2129_v59, %v6117_v18  ;;  %v2165_v5 = vmul.f32 %v2133_v60, %v6125_v16  ;;  %v2169_v7 = vmul.f32 %v2137_v62, %v6147_v33 }
 0x153   : > { %v2173_v20 = vmul.f32 %v2141_v1, %v6163_v56  ;;  %v2177_v26 = vmul.f32 %v2145_v6, %v6168_v61  ;;  %v2181_v30 = vmul.f32 %v2149_v14, %v6189_v11  ;;  %v2185_v45 = vmul.f32 %v2153_v28, %v6199_v23 }
 0x154   : > { %1239 = vrot.lane.b32.xlu1 %v6195_v15, %s9949_s19  ;;  %v2189_v8 = vsel %vm2032_vm3, %v2157_v2, 0.0  ;;  %v2190_v9 = vsel %vm2032_vm3, %v2161_v4, 0.0  ;;  %v2192_v21 = vsel %vm2032_vm3, %v2165_v5, 0.0  ;;  %v2194_v27 = vsel %vm2032_vm3, %v2169_v7, 0.0 }
 0x155   : > { %1232 = vrot.lane.b32.xlu0 %v6177_v3, %s5826_s25  ;;  %v2191_v13 = vadd.f32 %v2190_v9, %v2189_v8  ;;  %v2196_v17 = vsel %vm2032_vm3, %v2173_v20, 0.0  ;;  %v2198_v42 = vsel %vm2032_vm3, %v2177_v26, 0.0  ;;  %v2200_v49 = vsel %vm2032_vm3, %v2181_v30, 0.0 }
 0x156   : > { %v2202_v54 = vsel %vm2032_vm3, %v2185_v45, 0.0 }
 0x157   : > { %v2193_v24 = vadd.f32 %v2192_v21, %v2191_v13 }
 0x158   : > { %1242 = vrot.lane.b32.xlu1 %v6195_v15, %s5826_s25 }
 0x159   : > { %1235 = vrot.lane.b32.xlu0 %v6177_v3, %s9951_s15  ;;  %v2195_v29 = vadd.f32 %v2194_v27, %v2193_v24 }
 0x15b   : > { %v2197_v32 = vadd.f32 %v2196_v17, %v2195_v29 }
 0x15c   : > { %1245 = vrot.lane.b32.xlu1 %v6195_v15, %s9951_s15 }
 0x15d   : > { %1249 = vrot.lane.b32.xlu0 %v6203_v25, %s9949_s19  ;;  %v2199_v48 = vadd.f32 %v2198_v42, %v2197_v32  ;;  %s4988_s19 = sshll.u32 %s5978_s14, 3 }
 0x15e   : > { %s472_s22 = scalar_lea.vmem [#allocation7], %s4988_s19 }
 0x15f   : > { %v2201_v52 = vadd.f32 %v2200_v49, %v2199_v48  ;;  %s4812_s23 = sshll.u32 %s472_s22, 4  ;;  %s9782_s23 = int_to_ptr.vmem [resolvable:$true] %s4812_s23 }
 0x160   : > { %1255 = vrot.lane.b32.xlu1 %v6203_v25, %s9951_s15  ;;  %s10051_s15 = sshll.u32 %s5899_s9, 7 }
 0x161   : > { %1252 = vrot.lane.b32.xlu0 %v6203_v25, %s5826_s25  ;;  %v2203_v0 = vadd.f32 %v2202_v54, %v2201_v52  ;;  %s9780_s12 = scalar_lea.hbm %s9882_s7, %s10051_s15 }
 0x163   : > { %v2249_v2 = vadd.f32 1e-05, %v2203_v0 }
 0x165   : > { %5322 = vrcp.f32 %v2249_v2 }
 0x166   : > { %5324 = vlog2.f32 %v2249_v2 }
 0x16f   : > { %v5323_v4 = vpop.eup %5322 }
 0x170   : > { %v2290_v5 = vmul.f32 0.5, %v5323_v4  ;;  %v5325_v8 = vpop.eup %5324 }
 0x171   : > { %v2426_v13 = vmul.f32 0.6931472, %v5325_v8 }
 0x172   : > { %v2297_v7 = vmul.f32 %v2290_v5, %v2125_v57  ;;  %v2301_v10 = vmul.f32 %v2290_v5, %v2129_v59  ;;  %v2313_v24 = vmul.f32 %v2290_v5, %v2141_v1  ;;  %v2305_v26 = vmul.f32 %v2290_v5, %v2133_v60 }
 0x173   : > { %v2433_v21 = vsel %vm2032_vm3, %v2426_v13, 0.0  ;;  %v2317_v30 = vmul.f32 %v2290_v5, %v2145_v6  ;;  %v2309_v57 = vmul.f32 %v2290_v5, %v2137_v62  ;;  %v2321_v32 = vmul.f32 %v2290_v5, %v2149_v14 }
 0x174   : > { %v2329_v9 = vsel %vm2032_vm3, %v2297_v7, 0.0  ;;  %v2341_v20 = vsel %vm2032_vm3, %v2301_v10, 0.0  ;;  %v2377_v27 = vsel %vm2032_vm3, %v2313_v24, 0.0  ;;  %v2353_v29 = vsel %vm2032_vm3, %v2305_v26, 0.0 }
 0x175   : > { %v2389_v59 = vsel %vm2032_vm3, %v2317_v30, 0.0  ;;  %v2365_v17 = vsel %vm2032_vm3, %v2309_v57, 0.0  ;;  %v2401_v1 = vsel %vm2032_vm3, %v2321_v32, 0.0  ;;  %v2325_v60 = vmul.f32 %v2290_v5, %v2153_v28 }
 0x177   : > { %v2413_v42 = vsel %vm2032_vm3, %v2325_v60, 0.0 }
 0x180   : > { %2330 = vadd.xlane.f32.xlu0 %v2329_v9 }
 0x184   : > { %2342 = vadd.xlane.f32.xlu0 %v2341_v20  ;;  %2434 = vadd.xlane.f32.xlu1 %v2433_v21 }
 0x188   : > { %2378 = vadd.xlane.f32.xlu0 %v2377_v27  ;;  %2354 = vadd.xlane.f32.xlu1 %v2353_v29 }
 0x18c   : > { %2390 = vadd.xlane.f32.xlu0 %v2389_v59  ;;  %2366 = vadd.xlane.f32.xlu1 %v2365_v17 }
 0x190   : > { %2402 = vadd.xlane.f32.xlu0 %v2401_v1 }
 0x194   : > { %2414 = vadd.xlane.f32.xlu0 %v2413_v42 }
 0x1a6   : > { %v6270_v45 = vpop.permute.xlu1 %1179  ;;  %v6272_v6 = vpop.permute.xlu0 %1189 }
 0x1a7   : > { %10081 = vst [vmem:[#allocation32_spill] sm:$0xff] %v6270_v45  ;;  %10082 = vst [vmem:[#allocation33_spill] sm:$0xff] %v6272_v6  ;;  %v2005_v5 = vmul.f32 %v6117_v18, %v6272_v6  ;;  %v2001_v7 = vmul.f32 %v6109_v12, %v6270_v45 }
 0x1a9   : > { %v2049_v20 = vsel %vm2032_vm3, %v2005_v5, 0.0  ;;  %v2048_v21 = vsel %vm2032_vm3, %v2001_v7, 0.0 }
 0x1aa   : > { %v6274_v62 = vpop.permute.xlu1 %1192  ;;  %v6276_v48 = vpop.permute.xlu0 %1182  ;;  %v2050_v29 = vadd.f32 %v2049_v20, %v2048_v21 }
 0x1ab   : > { %10083 = vst [vmem:[#allocation34_spill] sm:$0xff] %v6274_v62  ;;  %10084 = vst [vmem:[#allocation35_spill] sm:$0xff] %v6276_v48  ;;  %v2006_v10 = vmul.f32 %v6117_v18, %v6274_v62  ;;  %v2002_v24 = vmul.f32 %v6109_v12, %v6276_v48 }
 0x1ad   : > { %v2064_v30 = vsel %vm2032_vm3, %v2006_v10, 0.0  ;;  %v2063_v59 = vsel %vm2032_vm3, %v2002_v24, 0.0 }
 0x1ae   : > { %v6278_v49 = vpop.permute.xlu1 %1195  ;;  %v6280_v14 = vpop.permute.xlu0 %1185  ;;  %v2065_v20 = vadd.f32 %v2064_v30, %v2063_v59 }
 0x1af   : > { %10085 = vst [vmem:[#allocation36_spill] sm:$0xff] %v6278_v49  ;;  %10086 = vst [vmem:[#allocation37_spill] sm:$0xff] %v6280_v14  ;;  %v2003_v17 = vmul.f32 %v6109_v12, %v6280_v14  ;;  %v2007_v32 = vmul.f32 %v6117_v18, %v6278_v49 }
 0x1b1   : > { %v2078_v25 = vsel %vm2032_vm3, %v2003_v17, 0.0  ;;  %v2079_v15 = vsel %vm2032_vm3, %v2007_v32, 0.0 }
 0x1b2   : > { %v6282_v52 = vpop.permute.xlu1 %1209  ;;  %v6284_v54 = vpop.permute.xlu0 %1199  ;;  %v2080_v53 = vadd.f32 %v2079_v15, %v2078_v25 }
 0x1b3   : > { %10087 = vst [vmem:[#allocation38_spill] sm:$0xff] %v6282_v52  ;;  %10088 = vst [vmem:[#allocation39_spill] sm:$0xff] %v6284_v54  ;;  %v2009_v13 = vmul.f32 %v6125_v16, %v6284_v54  ;;  %v2013_v60 = vmul.f32 %v6147_v33, %v6282_v52 }
 0x1b5   : > { %v2051_v57 = vsel %vm2032_vm3, %v2009_v13, 0.0 }
 0x1b6   : > { %v6286_v28 = vpop.permute.xlu1 %1205  ;;  %v6288_v0 = vpop.permute.xlu0 %1202  ;;  %v2052_v7 = vadd.f32 %v2051_v57, %v2050_v29  ;;  %v2053_v57 = vsel %vm2032_vm3, %v2013_v60, 0.0 }
 0x1b7   : > { %10089 = vst [vmem:[#allocation40_spill] sm:$0xff] %v6286_v28  ;;  %10090 = vst [vmem:[#allocation41_spill] sm:$0xff] %v6288_v0  ;;  %v2010_v1 = vmul.f32 %v6125_v16, %v6288_v0  ;;  %v2011_v21 = vmul.f32 %v6125_v16, %v6286_v28 }
 0x1b8   : > { %v2054_v32 = vadd.f32 %v2053_v57, %v2052_v7 }
 0x1b9   : > { %v2066_v3 = vsel %vm2032_vm3, %v2010_v1, 0.0  ;;  %v2081_v60 = vsel %vm2032_vm3, %v2011_v21, 0.0 }
 0x1ba   : > { %v6290_v2 = vpop.permute.xlu1 %1219  ;;  %v6292_v4 = vpop.permute.xlu0 %1212  ;;  %v2067_v19 = vadd.f32 %v2066_v3, %v2065_v20  ;;  %v2082_v21 = vadd.f32 %v2081_v60, %v2080_v53 }
 0x1bb   : > { %10091 = vst [vmem:[#allocation42_spill] sm:$0xff] %v6290_v2  ;;  %10092 = vst [vmem:[#allocation43_spill] sm:$0xff] %v6292_v4  ;;  %v2017_v42 = vmul.f32 %v6163_v56, %v6290_v2  ;;  %v2014_v10 = vmul.f32 %v6147_v33, %v6292_v4 }
 0x1bd   : > { %v2055_v63 = vsel %vm2032_vm3, %v2017_v42, 0.0  ;;  %v2068_v17 = vsel %vm2032_vm3, %v2014_v10, 0.0 }
 0x1be   : > { %v6298_v8 = vpop.permute.xlu1 %1222  ;;  %v6300_v9 = vpop.permute.xlu0 %1215  ;;  %v2056_v58 = vadd.f32 %v2055_v63, %v2054_v32  ;;  %v2069_v10 = vadd.f32 %v2068_v17, %v2067_v19 }
 0x1bf   : > { %10093 = vst [vmem:[#allocation44_spill] sm:$0xff] %v6298_v8  ;;  %10094 = vst [vmem:[#allocation45_spill] sm:$0xff] %v6300_v9  ;;  %v2018_v29 = vmul.f32 %v6163_v56, %v6298_v8  ;;  %v2015_v30 = vmul.f32 %v6147_v33, %v6300_v9 }
 0x1c1   : > { %v2070_v50 = vsel %vm2032_vm3, %v2018_v29, 0.0  ;;  %v2083_v57 = vsel %vm2032_vm3, %v2015_v30, 0.0 }
 0x1c2   : > { %v6310_v26 = vpop.permute.xlu1 %1225  ;;  %v2071_v25 = vadd.f32 %v2070_v50, %v2069_v10  ;;  %v2084_v30 = vadd.f32 %v2083_v57, %v2082_v21 }
 0x1c3   : > { %10095 = vst [vmem:[#allocation46_spill] sm:$0xff] %v6310_v26  ;;  %v6312_v27 = vpop.permute.xlu0 %1229  ;;  %v2019_v22 = vmul.f32 %v6163_v56, %v6310_v26 }
 0x1c4   : > { %10096 = vst [vmem:[#allocation47_spill] sm:$0xff] %v6312_v27  ;;  %v2021_v24 = vmul.f32 %v6168_v61, %v6312_v27 }
 0x1c5   : > { %v2085_v29 = vsel %vm2032_vm3, %v2019_v22, 0.0 }
 0x1c6   : > { %v6327_v5 = vpop.permute.xlu1 %1239  ;;  %v2057_v42 = vsel %vm2032_vm3, %v2021_v24, 0.0  ;;  %v2086_v50 = vadd.f32 %v2085_v29, %v2084_v30 }
 0x1c7   : > { %10097 = vst [vmem:[#allocation48_spill] sm:$0xff] %v6327_v5  ;;  %v6331_v13 = vpop.permute.xlu0 %1232  ;;  %v2025_v59 = vmul.f32 %v6189_v11, %v6327_v5  ;;  %v2058_v24 = vadd.f32 %v2057_v42, %v2056_v58 }
 0x1c8   : > { %10098 = vst [vmem:[#allocation49_spill] sm:$0xff] %v6331_v13  ;;  %v2022_v1 = vmul.f32 %v6168_v61, %v6331_v13 }
 0x1c9   : > { %v2059_v55 = vsel %vm2032_vm3, %v2025_v59, 0.0 }
 0x1ca   : > { %v6348_v34 = vpop.permute.xlu1 %1242  ;;  %v2072_v15 = vsel %vm2032_vm3, %v2022_v1, 0.0  ;;  %v2060_v17 = vadd.f32 %v2059_v55, %v2058_v24 }
 0x1cb   : > { %10099 = vst [vmem:[#allocation50_spill] sm:$0xff] %v6348_v34  ;;  %v6353_v31 = vpop.permute.xlu0 %1235  ;;  %v2026_v7 = vmul.f32 %v6189_v11, %v6348_v34  ;;  %v2073_v32 = vadd.f32 %v2072_v15, %v2071_v25 }
 0x1cc   : > { %10100 = vst [vmem:[#allocation51_spill] sm:$0xff] %v6353_v31  ;;  %v2023_v3 = vmul.f32 %v6168_v61, %v6353_v31 }
 0x1cd   : > { %v2074_v59 = vsel %vm2032_vm3, %v2026_v7, 0.0 }
 0x1ce   : > { %v6366_v20 = vpop.permute.xlu1 %1245  ;;  %v2087_v46 = vsel %vm2032_vm3, %v2023_v3, 0.0  ;;  %v2075_v55 = vadd.f32 %v2074_v59, %v2073_v32 }
 0x1cf   : > { %10101 = vst [vmem:[#allocation52_spill] sm:$0xff] %v6366_v20  ;;  %v6369_v63 = vpop.permute.xlu0 %1249  ;;  %v2027_v58 = vmul.f32 %v6189_v11, %v6366_v20  ;;  %v2088_v10 = vadd.f32 %v2087_v46, %v2086_v50 }
 0x1d0   : > { %10102 = vst [vmem:[#allocation53_spill] sm:$0xff] %v6369_v63  ;;  %v2029_v19 = vmul.f32 %v6199_v23, %v6369_v63 }
 0x1d1   : > { %v2089_v24 = vsel %vm2032_vm3, %v2027_v58, 0.0 }
 0x1d2   : > { %v2061_v53 = vsel %vm2032_vm3, %v2029_v19, 0.0  ;;  %v6379_v1 = vpop.permute.xlu1 %1255  ;;  %v2090_v50 = vadd.f32 %v2089_v24, %v2088_v10 }
 0x1d3   : > { %10103 = vst [vmem:[#allocation54_spill] sm:$0xff] %v6379_v1  ;;  %v2062_v60 = vadd.f32 %v2061_v53, %v2060_v17  ;;  %v6381_v22 = vpop.permute.xlu0 %1252  ;;  %v2031_v42 = vmul.f32 %v6199_v23, %v6379_v1 }
 0x1d4   : > { %10104 = vst [vmem:[#allocation55_spill] sm:$0xff] %v6381_v22  ;;  %v2030_v7 = vmul.f32 %v6199_v23, %v6381_v22 }
 0x1d5   : > { %v2094_v57 = vsub.f32 %v6270_v45, %v2062_v60  ;;  %v2098_v3 = vsub.f32 %v6272_v6, %v2062_v60  ;;  %v2102_v21 = vsub.f32 %v6284_v54, %v2062_v60  ;;  %v2091_v15 = vsel %vm2032_vm3, %v2031_v42, 0.0 }
 0x1d6   : > { %v2106_v25 = vsub.f32 %v6282_v52, %v2062_v60  ;;  %v2110_v29 = vsub.f32 %v6290_v2, %v2062_v60  ;;  %v2076_v19 = vsel %vm2032_vm3, %v2030_v7, 0.0  ;;  %v2114_v30 = vsub.f32 %v6312_v27, %v2062_v60 }
 0x1d7   : > { %v2118_v46 = vsub.f32 %v6327_v5, %v2062_v60  ;;  %v2122_v17 = vsub.f32 %v6369_v63, %v2062_v60  ;;  %v6398_v59 = vmul.f32 %v2094_v57, %v2094_v57  ;;  %v6400_v32 = vmul.f32 %v2098_v3, %v2098_v3 }
 0x1d8   : > { %v6402_v53 = vmul.f32 %v2102_v21, %v2102_v21  ;;  %v6404_v58 = vmul.f32 %v2106_v25, %v2106_v25  ;;  %v6406_v42 = vmul.f32 %v2110_v29, %v2110_v29  ;;  %v6408_v2 = vmul.f32 %v2114_v30, %v2114_v30 }
 0x1d9   : > { %v6410_v7 = vmul.f32 %v2118_v46, %v2118_v46  ;;  %v2077_v27 = vadd.f32 %v2076_v19, %v2075_v55  ;;  %v2158_v5 = vmul.f32 %v6398_v59, %v6109_v12  ;;  %v2162_v60 = vmul.f32 %v6400_v32, %v6117_v18 }
 0x1da   : > { %v2166_v57 = vmul.f32 %v6402_v53, %v6125_v16  ;;  %v6418_v3 = vadd.f32 %v2091_v15, %v2090_v50  ;;  %v6420_v21 = vmul.f32 %v2122_v17, %v2122_v17  ;;  %v2170_v10 = vmul.f32 %v6404_v58, %v6147_v33 }
 0x1db   : > { %v2204_v24 = vsel %vm2032_vm3, %v2158_v5, 0.0  ;;  %v2205_v55 = vsel %vm2032_vm3, %v2162_v60, 0.0  ;;  %v2174_v25 = vmul.f32 %v6406_v42, %v6163_v56  ;;  %v2178_v29 = vmul.f32 %v6408_v2, %v6168_v61 }
 0x1dc   : > { %v2182_v19 = vmul.f32 %v6410_v7, %v6189_v11  ;;  %v2206_v15 = vadd.f32 %v2205_v55, %v2204_v24  ;;  %v2207_v30 = vsel %vm2032_vm3, %v2166_v57, 0.0  ;;  %v2095_v46 = vsub.f32 %v6276_v48, %v2077_v27 }
 0x1dd   : > { %v2099_v17 = vsub.f32 %v6274_v62, %v2077_v27  ;;  %v2103_v5 = vsub.f32 %v6288_v0, %v2077_v27  ;;  %v2107_v60 = vsub.f32 %v6292_v4, %v2077_v27  ;;  %v2111_v63 = vsub.f32 %v6298_v8, %v2077_v27 }
 0x1de   : > { %v2208_v50 = vadd.f32 %v2207_v30, %v2206_v15  ;;  %v2115_v52 = vsub.f32 %v6331_v13, %v2077_v27  ;;  %v2209_v54 = vsel %vm2032_vm3, %v2170_v10, 0.0  ;;  %v2119_v45 = vsub.f32 %v6348_v34, %v2077_v27 }
 0x1df   : > { %v6441_v24 = vmul.f32 %v2095_v46, %v2095_v46  ;;  %v6443_v57 = vmul.f32 %v2099_v17, %v2099_v17  ;;  %v2186_v55 = vmul.f32 %v6420_v21, %v6199_v23  ;;  %v6447_v0 = vmul.f32 %v2103_v5, %v2103_v5 }
 0x1e0   : > { %v2210_v48 = vadd.f32 %v2209_v54, %v2208_v50  ;;  %v6449_v15 = vmul.f32 %v2107_v60, %v2107_v60  ;;  %v2211_v30 = vsel %vm2032_vm3, %v2174_v25, 0.0  ;;  %v2123_v13 = vsub.f32 %v6381_v22, %v2077_v27 }
 0x1e1   : > { %v6453_v8 = vmul.f32 %v2111_v63, %v2111_v63  ;;  %v2159_v10 = vmul.f32 %v6441_v24, %v6109_v12  ;;  %v6457_v17 = vmul.f32 %v2115_v52, %v2115_v52  ;;  %v2163_v34 = vmul.f32 %v6443_v57, %v6117_v18 }
 0x1e2   : > { %v2212_v46 = vadd.f32 %v2211_v30, %v2210_v48  ;;  %v2167_v54 = vmul.f32 %v6447_v0, %v6125_v16  ;;  %v2213_v5 = vsel %vm2032_vm3, %v2178_v29, 0.0  ;;  %v2215_v25 = vsel %vm2032_vm3, %v2182_v19, 0.0 }
 0x1e3   : > { %v6465_v50 = vmul.f32 %v2119_v45, %v2119_v45  ;;  %v2171_v63 = vmul.f32 %v6449_v15, %v6147_v33  ;;  %v2219_v48 = vsel %vm2032_vm3, %v2159_v10, 0.0  ;;  %v2220_v52 = vsel %vm2032_vm3, %v2163_v34, 0.0 }
 0x1e4   : > { %v2214_v27 = vadd.f32 %v2213_v5, %v2212_v46  ;;  %v2217_v60 = vsel %vm2032_vm3, %v2186_v55, 0.0  ;;  %v6472_v30 = vmul.f32 %v2123_v13, %v2123_v13  ;;  %v2175_v22 = vmul.f32 %v6453_v8, %v6163_v56 }
 0x1e5   : > { %v2221_v29 = vadd.f32 %v2220_v52, %v2219_v48  ;;  %v2179_v45 = vmul.f32 %v6457_v17, %v6168_v61  ;;  %v2222_v19 = vsel %vm2032_vm3, %v2167_v54, 0.0  ;;  %v2096_v46 = vsub.f32 %v6280_v14, %v6418_v3 }
 0x1e6   : > { %v2216_v4 = vadd.f32 %v2215_v25, %v2214_v27  ;;  %v2100_v34 = vsub.f32 %v6278_v49, %v6418_v3  ;;  %v2104_v13 = vsub.f32 %v6286_v28, %v6418_v3  ;;  %v2108_v55 = vsub.f32 %v6300_v9, %v6418_v3 }
 0x1e7   : > { %v2223_v10 = vadd.f32 %v2222_v19, %v2221_v29  ;;  %v2183_v25 = vmul.f32 %v6465_v50, %v6189_v11  ;;  %v2224_v27 = vsel %vm2032_vm3, %v2171_v63, 0.0  ;;  %v2112_v48 = vsub.f32 %v6310_v26, %v6418_v3 }
 0x1e8   : > { %v2218_v5 = vadd.f32 %v2217_v60, %v2216_v4  ;;  %v6492_v52 = vmul.f32 %v2096_v46, %v2096_v46  ;;  %v6494_v29 = vmul.f32 %v2100_v34, %v2100_v34  ;;  %v2187_v28 = vmul.f32 %v6472_v30, %v6199_v23 }
 0x1e9   : > { %v2225_v54 = vadd.f32 %v2224_v27, %v2223_v10  ;;  %v2226_v9 = vsel %vm2032_vm3, %v2175_v22, 0.0  ;;  %v6499_v4 = vmul.f32 %v2104_v13, %v2104_v13  ;;  %v2228_v14 = vsel %vm2032_vm3, %v2179_v45, 0.0 }
 0x1ea   : > { %v2250_v19 = vadd.f32 1e-05, %v2218_v5  ;;  %v2116_v63 = vsub.f32 %v6353_v31, %v6418_v3  ;;  %v6504_v10 = vmul.f32 %v2108_v55, %v2108_v55  ;;  %v2120_v46 = vsub.f32 %v6366_v20, %v6418_v3 }
 0x1eb   : > { %v2227_v60 = vadd.f32 %v2226_v9, %v2225_v54  ;;  %v2160_v34 = vmul.f32 %v6492_v52, %v6109_v12  ;;  %v2164_v22 = vmul.f32 %v6494_v29, %v6117_v18  ;;  %v6512_v9 = vmul.f32 %v2112_v48, %v2112_v48 }
 0x1ec   : > { %5326 = vrcp.f32 %v2250_v19  ;;  %v2168_v45 = vmul.f32 %v6499_v4, %v6125_v16  ;;  %v2230_v55 = vsel %vm2032_vm3, %v2183_v25, 0.0  ;;  %v2124_v5 = vsub.f32 %v6379_v1, %v6418_v3  ;;  %v5031_v1 = vld [vmem:[%s9879_s4 + $0xa] ss:$0 sm:$0xff] }
 0x1ed   : > { %5328 = vlog2.f32 %v2250_v19  ;;  %v2229_v13 = vadd.f32 %v2228_v14, %v2227_v60  ;;  %v2234_v27 = vsel %vm2032_vm3, %v2160_v34, 0.0  ;;  %v6520_v20 = vmul.f32 %v2116_v63, %v2116_v63 }
 0x1ee   : > { %v2172_v12 = vmul.f32 %v6504_v10, %v6147_v33  ;;  %v2235_v18 = vsel %vm2032_vm3, %v2164_v22, 0.0  ;;  %v2232_v14 = vsel %vm2032_vm3, %v2187_v28, 0.0  ;;  %v6526_v16 = vmul.f32 %v2120_v46, %v2120_v46 }
 0x1ef   : > { %v2231_v54 = vadd.f32 %v2230_v55, %v2229_v13  ;;  %v2236_v48 = vadd.f32 %v2235_v18, %v2234_v27  ;;  %v2176_v25 = vmul.f32 %v6512_v9, %v6163_v56  ;;  %v2237_v3 = vsel %vm2032_vm3, %v2168_v45, 0.0 }
 0x1f0   : > { %v6531_v63 = vmul.f32 %v2124_v5, %v2124_v5  ;;  %v2180_v33 = vmul.f32 %v6520_v20, %v6168_v61  ;;  %v2239_v22 = vsel %vm2032_vm3, %v2172_v12, 0.0  ;;  %v2184_v28 = vmul.f32 %v6526_v16, %v6189_v11 }
 0x1f1   : > { %v2233_v19 = vadd.f32 %v2232_v14, %v2231_v54  ;;  %v2238_v60 = vadd.f32 %v2237_v3, %v2236_v48  ;;  %v2241_v46 = vsel %vm2032_vm3, %v2176_v25, 0.0 }
 0x1f2   : > { %v2188_v5 = vmul.f32 %v6531_v63, %v6199_v23  ;;  %v2243_v61 = vsel %vm2032_vm3, %v2180_v33, 0.0  ;;  %v2245_v18 = vsel %vm2032_vm3, %v2184_v28, 0.0 }
 0x1f3   : > { %v2251_v34 = vadd.f32 1e-05, %v2233_v19  ;;  %v2240_v13 = vadd.f32 %v2239_v22, %v2238_v60 }
 0x1f4   : > { %v2247_v19 = vsel %vm2032_vm3, %v2188_v5, 0.0 }
 0x1f5   : > { %5330 = vrcp.f32 %v2251_v34  ;;  %v2242_v56 = vadd.f32 %v2241_v46, %v2240_v13 }
 0x1f6   : > { %v5327_v55 = vpop.eup %5326  ;;  %5332 = vlog2.f32 %v2251_v34 }
 0x1f7   : > { %v5329_v45 = vpop.eup %5328  ;;  %v6539_v27 = vmul.f32 0.5, %v5327_v55  ;;  %v2244_v12 = vadd.f32 %v2243_v61, %v2242_v56 }
 0x1f8   : > { %v2428_v54 = vmul.f32 0.6931472, %v5329_v45 }
 0x1f9   : > { %v2302_v11 = vmul.f32 %v6539_v27, %v6400_v32  ;;  %v2246_v48 = vadd.f32 %v2245_v18, %v2244_v12  ;;  %v2306_v46 = vmul.f32 %v6539_v27, %v6402_v53  ;;  %v2298_v12 = vmul.f32 %v6539_v27, %v6398_v59 }
 0x1fa   : > { %v2436_v14 = vsel %vm2032_vm3, %v2428_v54, 0.0 }
 0x1fb   : > { %2437 = vadd.xlane.f32.xlu0 %v2436_v14  ;;  %v2248_v25 = vadd.f32 %v2247_v19, %v2246_v48  ;;  %v2344_v3 = vsel %vm2032_vm3, %v2302_v11, 0.0  ;;  %v2356_v55 = vsel %vm2032_vm3, %v2306_v46, 0.0  ;;  %v2332_v14 = vsel %vm2032_vm3, %v2298_v12, 0.0  ;;  %v5057_v12 = vld [vmem:[%s9880_s5 + $0x4] ss:$0 sm:$0xff] }
 0x1fc   : > { %v2310_v48 = vmul.f32 %v6539_v27, %v6404_v58 }
 0x1fd   : > { %v2252_v60 = vadd.f32 1e-05, %v2248_v25 }
 0x1ff   : > { %v5331_v23 = vpop.eup %5330  ;;  %2345 = vadd.xlane.f32.xlu0 %v2344_v3  ;;  %5334 = vrcp.f32 %v2252_v60 }
 0x200   : > { %v5333_v34 = vpop.eup %5332  ;;  %v6550_v33 = vmul.f32 0.5, %v5331_v23  ;;  %5336 = vlog2.f32 %v2252_v60 }
 0x201   : > { %v2430_v22 = vmul.f32 0.6931472, %v5333_v34 }
 0x202   : > { %v2303_v13 = vmul.f32 %v6550_v33, %v6443_v57  ;;  %v2307_v53 = vmul.f32 %v6550_v33, %v6447_v0  ;;  %v2299_v11 = vmul.f32 %v6550_v33, %v6441_v24  ;;  %v2368_v0 = vsel %vm2032_vm3, %v2310_v48, 0.0 }
 0x203   : > { %v2439_v32 = vsel %vm2032_vm3, %v2430_v22, 0.0  ;;  %v2311_v24 = vmul.f32 %v6550_v33, %v6449_v15  ;;  %v2315_v15 = vmul.f32 %v6550_v33, %v6453_v8  ;;  %v2319_v8 = vmul.f32 %v6550_v33, %v6457_v17 }
 0x204   : > { %2440 = vadd.xlane.f32.xlu1 %v2439_v32  ;;  %v2347_v28 = vsel %vm2032_vm3, %v2303_v13, 0.0  ;;  %v2335_v59 = vsel %vm2032_vm3, %v2299_v11, 0.0  ;;  %v2323_v17 = vmul.f32 %v6550_v33, %v6465_v50  ;;  %v6622_v50 = vsub.f32 %v6045_v35, %v6050_v37 }
 0x205   : > { %2348 = vadd.xlane.f32.xlu0 %v2347_v28  ;;  %v2371_v23 = vsel %vm2032_vm3, %v2311_v24, 0.0  ;;  %v2383_v32 = vsel %vm2032_vm3, %v2315_v15, 0.0 }
 0x209   : > { %2357 = vadd.xlane.f32.xlu0 %v2356_v55  ;;  %v5335_v56 = vpop.eup %5334 }
 0x20a   : > { %v5337_v45 = vpop.eup %5336  ;;  %v2296_v5 = vmul.f32 0.5, %v5335_v56  ;;  %v2395_v56 = vsel %vm2032_vm3, %v2319_v8, 0.0  ;;  %v5026_v8 = vld [vmem:[%s9879_s4 + $0x5] ss:$0 sm:$0xff] }
 0x20b   : > { %v2432_v61 = vmul.f32 0.6931472, %v5337_v45 }
 0x20c   : > { %v2300_v54 = vmul.f32 %v2296_v5, %v6492_v52  ;;  %v2359_v52 = vsel %vm2032_vm3, %v2307_v53, 0.0  ;;  %v2304_v19 = vmul.f32 %v2296_v5, %v6494_v29  ;;  %v2308_v25 = vmul.f32 %v2296_v5, %v6499_v4 }
 0x20d   : > { %v2442_v57 = vsel %vm2032_vm3, %v2432_v61, 0.0  ;;  %v2312_v58 = vmul.f32 %v2296_v5, %v6504_v10  ;;  %v2314_v29 = vmul.f32 %v6539_v27, %v6406_v42  ;;  %v2316_v34 = vmul.f32 %v2296_v5, %v6512_v9 }
 0x20e   : > { %2443 = vadd.xlane.f32.xlu1 %v2442_v57  ;;  %v2338_v18 = vsel %vm2032_vm3, %v2300_v54, 0.0  ;;  %v2350_v3 = vsel %vm2032_vm3, %v2304_v19, 0.0  ;;  %v2362_v60 = vsel %vm2032_vm3, %v2308_v25, 0.0  ;;  %v2320_v13 = vmul.f32 %v2296_v5, %v6520_v20  ;;  %v5053_v54 = vld [vmem:[%s9880_s5] ss:$0 sm:$0xff] }
 0x20f   : > { %2339 = vadd.xlane.f32.xlu0 %v2338_v18  ;;  %v2374_v4 = vsel %vm2032_vm3, %v2312_v58, 0.0  ;;  %v2380_v22 = vsel %vm2032_vm3, %v2314_v29, 0.0  ;;  %v2386_v10 = vsel %vm2032_vm3, %v2316_v34, 0.0  ;;  %v2318_v42 = vmul.f32 %v6539_v27, %v6408_v2  ;;  %v5061_v18 = vld [vmem:[%s9880_s5 + $0x8] ss:$0 sm:$0xff] }
 0x210   : > { %v2398_v9 = vsel %vm2032_vm3, %v2320_v13, 0.0  ;;  %v2324_v28 = vmul.f32 %v2296_v5, %v6526_v16  ;;  %v2328_v55 = vmul.f32 %v2296_v5, %v6531_v63  ;;  %v2322_v2 = vmul.f32 %v6539_v27, %v6410_v7  ;;  %v5021_v5 = vld [vmem:[%s9879_s4] ss:$0 sm:$0xff]  ;;  %v5025_v7 = vld [vmem:[%s9879_s4 + $0x4] ss:$0 sm:$0xff]  ;;  %v10105_v29 = vld [vmem:[#allocation19_spill] sm:$0xff] }
 0x211   : > { %v2392_v46 = vsel %vm2032_vm3, %v2318_v42, 0.0  ;;  %v2407_v61 = vsel %vm2032_vm3, %v2323_v17, 0.0  ;;  %v2326_v63 = vmul.f32 %v6539_v27, %v6420_v21  ;;  %v6626_v57 = vsub.f32 %v6047_v36, %v6055_v39  ;;  %v5029_v27 = vld [vmem:[%s9879_s4 + $0x8] ss:$0 sm:$0xff]  ;;  %v5041_v58 = vld [vmem:[%s9879_s4 + $0x14] ss:$0 sm:$0xff] }
 0x212   : > { %2333 = vadd.xlane.f32.xlu1 %v2332_v14  ;;  %v2410_v20 = vsel %vm2032_vm3, %v2324_v28, 0.0  ;;  %v2422_v16 = vsel %vm2032_vm3, %v2328_v55, 0.0  ;;  %v2404_v45 = vsel %vm2032_vm3, %v2322_v2, 0.0  ;;  %v6630_v21 = vsub.f32 %v6052_v38, %v6060_v41  ;;  %v5022_v13 = vld [vmem:[%s9879_s4 + $0x1] ss:$0 sm:$0xff]  ;;  %v10107_v42 = vld [vmem:[#allocation20_spill] sm:$0xff] }
 0x213   : > { %2360 = vadd.xlane.f32.xlu0 %v2359_v52  ;;  %v1586_v53 = vmul.f32 %v5021_v5, %v6050_v37  ;;  %v1590_v14 = vmul.f32 %v5025_v7, %v6055_v39  ;;  %v2416_v11 = vsel %vm2032_vm3, %v2326_v63, 0.0  ;;  %v2327_v52 = vmul.f32 %v6550_v33, %v6472_v30  ;;  %v5065_v30 = vld [vmem:[%s9880_s5 + $0xc] ss:$0 sm:$0xff]  ;;  %v5058_v55 = vld [vmem:[%s9880_s5 + $0x5] ss:$0 sm:$0xff]  ;;  %v10109_v17 = vld [vmem:[#allocation21_spill] sm:$0xff] }
 0x214   : > { %v1594_v48 = vmul.f32 %v5029_v27, %v6060_v41  ;;  %v1814_v19 = vmul.f32 %v5057_v12, %v6626_v57  ;;  %v6652_v25 = vsub.f32 %v6057_v40, %v6067_v44  ;;  %v6662_v33 = vsub.f32 %v6064_v43, %v6074_v47  ;;  %v5049_v2 = vld [vmem:[%s9879_s4 + $0x1c] ss:$0 sm:$0xff] }
 0x215   : > { %v2419_v24 = vsel %vm2032_vm3, %v2327_v52, 0.0  ;;  %v6714_v5 = vmul.f32 %v5041_v58, %v6081_v51  ;;  %v1591_v52 = vmul.f32 %v5026_v8, %v6055_v39 }
 0x216   : > { %2336 = vadd.xlane.f32.xlu1 %v2335_v59  ;;  %v1810_v59 = vmul.f32 %v5053_v54, %v6622_v50  ;;  %v5081_v54 = vld [vmem:[%s9880_s5 + $0x1c] ss:$0 sm:$0xff] }
 0x217   : > { %2369 = vadd.xlane.f32.xlu0 %v2368_v0  ;;  %v1818_v0 = vmul.f32 %v5061_v18, %v6630_v21 }
 0x218   : > { %v1842_v34 = vsub.f32 %v1586_v53, %v1810_v59  ;;  %v1815_v59 = vmul.f32 %v5058_v55, %v6626_v57  ;;  %v5056_v55 = vld [vmem:[%s9880_s5 + $0x3] ss:$0 sm:$0xff] }
 0x219   : > { %v1850_v15 = vsub.f32 %v1594_v48, %v1818_v0  ;;  %v5023_v0 = vld [vmem:[%s9879_s4 + $0x2] ss:$0 sm:$0xff] }
 0x21a   : > { %2351 = vadd.xlane.f32.xlu1 %v2350_v3  ;;  %v5033_v3 = vld [vmem:[%s9879_s4 + $0xc] ss:$0 sm:$0xff]  ;;  %v1875_v12 = vsel %vm1874_vm2, %v1842_v34, 0.0  ;;  %v5059_v34 = vld [vmem:[%s9880_s5 + $0x6] ss:$0 sm:$0xff] }
 0x21b   : > { %2363 = vadd.xlane.f32.xlu0 %v2362_v60  ;;  %v5037_v60 = vld [vmem:[%s9879_s4 + $0x10] ss:$0 sm:$0xff]  ;;  %v1598_v28 = vmul.f32 %v5033_v3, %v6067_v44  ;;  %v1878_v53 = vsel %vm1874_vm2, %v1850_v15, 0.0  ;;  %v5027_v3 = vld [vmem:[%s9879_s4 + $0x6] ss:$0 sm:$0xff] }
 0x21c   : > { %v1602_v63 = vmul.f32 %v5037_v60, %v6074_v47 }
 0x21e   : > { %2372 = vadd.xlane.f32.xlu1 %v2371_v23  ;;  %v5069_v23 = vld [vmem:[%s9880_s5 + $0x10] ss:$0 sm:$0xff] }
 0x21f   : > { %2375 = vadd.xlane.f32.xlu0 %v2374_v4  ;;  %v6676_v4 = vsub.f32 %v10105_v29, %v6081_v51  ;;  %v1826_v7 = vmul.f32 %v5069_v23, %v6662_v33  ;;  %v5055_v23 = vld [vmem:[%s9880_s5 + $0x2] ss:$0 sm:$0xff] }
 0x222   : > { %2381 = vadd.xlane.f32.xlu1 %v2380_v22  ;;  %v1846_v22 = vsub.f32 %v1590_v14, %v1814_v19  ;;  %v5030_v14 = vld [vmem:[%s9879_s4 + $0x9] ss:$0 sm:$0xff] }
 0x223   : > { %2387 = vadd.xlane.f32.xlu0 %v2386_v10  ;;  %v5073_v10 = vld [vmem:[%s9880_s5 + $0x14] ss:$0 sm:$0xff]  ;;  %v5062_v19 = vld [vmem:[%s9880_s5 + $0x9] ss:$0 sm:$0xff] }
 0x224   : > { %v6721_v27 = vmul.f32 %v5073_v10, %v6676_v4  ;;  %v1876_v18 = vsel %vm1874_vm2, %v1846_v22, 0.0  ;;  %v5024_v22 = vld [vmem:[%s9879_s4 + $0x3] ss:$0 sm:$0xff]  ;;  %v1858_v10 = vsub.f32 %v1602_v63, %v1826_v7  ;;  %v1847_v7 = vsub.f32 %v1591_v52, %v1815_v59 }
 0x225   : > { %v1877_v8 = vadd.f32 %v1876_v18, %v1875_v12  ;;  %v1592_v12 = vmul.f32 %v5027_v3, %v6055_v39  ;;  %v1812_v18 = vmul.f32 %v5055_v23, %v6622_v50  ;;  %v1813_v52 = vmul.f32 %v5056_v55, %v6622_v50  ;;  %v5067_v55 = vld [vmem:[%s9880_s5 + $0xe] ss:$0 sm:$0xff] }
 0x226   : > { %2384 = vadd.xlane.f32.xlu1 %v2383_v32  ;;  %v10106_v32 = vld [vmem:[#allocation22_spill] sm:$0xff] }
 0x227   : > { %2399 = vadd.xlane.f32.xlu0 %v2398_v9  ;;  %v6686_v9 = vsub.f32 %v10107_v42, %v10106_v32  ;;  %v1879_v26 = vadd.f32 %v1878_v53, %v1877_v8 }
 0x22a   : > { %2393 = vadd.xlane.f32.xlu1 %v2392_v46  ;;  %v1822_v46 = vmul.f32 %v5065_v30, %v6652_v25 }
 0x22b   : > { %2411 = vadd.xlane.f32.xlu0 %v2410_v20  ;;  %v5054_v20 = vld [vmem:[%s9880_s5 + $0x1] ss:$0 sm:$0xff] }
 0x22c   : > { %v1811_v48 = vmul.f32 %v5054_v20, %v6622_v50  ;;  %v1854_v15 = vsub.f32 %v1598_v28, %v1822_v46  ;;  %v5028_v20 = vld [vmem:[%s9879_s4 + $0x7] ss:$0 sm:$0xff]  ;;  %v5034_v28 = vld [vmem:[%s9879_s4 + $0xd] ss:$0 sm:$0xff] }
 0x22d   : > { %v5066_v46 = vld [vmem:[%s9880_s5 + $0xd] ss:$0 sm:$0xff]  ;;  %v1599_v3 = vmul.f32 %v5034_v28, %v6067_v44 }
 0x22e   : > { %2396 = vadd.xlane.f32.xlu1 %v2395_v56  ;;  %v5045_v56 = vld [vmem:[%s9879_s4 + $0x18] ss:$0 sm:$0xff]  ;;  %v6797_v59 = vsel %vm1874_vm2, %v1854_v15, 0.0  ;;  %v1823_v23 = vmul.f32 %v5066_v46, %v6652_v25 }
 0x22f   : > { %2423 = vadd.xlane.f32.xlu0 %v2422_v16  ;;  %v5077_v16 = vld [vmem:[%s9880_s5 + $0x18] ss:$0 sm:$0xff]  ;;  %v6743_v30 = vmul.f32 %v5045_v56, %v10106_v32  ;;  %v5060_v56 = vld [vmem:[%s9880_s5 + $0x7] ss:$0 sm:$0xff] }
 0x230   : > { %v6749_v60 = vmul.f32 %v5077_v16, %v6686_v9  ;;  %v1819_v16 = vmul.f32 %v5062_v19, %v6630_v21  ;;  %v1589_v19 = vmul.f32 %v5024_v22, %v6050_v37 }
 0x232   : > { %2405 = vadd.xlane.f32.xlu1 %v2404_v45  ;;  %v10108_v45 = vld [vmem:[#allocation23_spill] sm:$0xff] }
 0x236   : > { %2408 = vadd.xlane.f32.xlu1 %v2407_v61  ;;  %v6710_v61 = vsub.f32 %v10109_v17, %v10108_v45 }
 0x238   : > { %v6752_v58 = vmul.f32 %v5081_v54, %v6710_v61  ;;  %v1588_v54 = vmul.f32 %v5023_v0, %v6050_v37  ;;  %v6800_v0 = vsel %vm1874_vm2, %v1858_v10, 0.0  ;;  %v1891_v10 = vsel %vm1874_vm2, %v1847_v7, 0.0 }
 0x239   : > { %v1845_v7 = vsub.f32 %v1589_v19, %v1813_v52 }
 0x23a   : > { %2417 = vadd.xlane.f32.xlu1 %v2416_v11  ;;  %v1587_v11 = vmul.f32 %v5022_v13, %v6050_v37  ;;  %v1816_v13 = vmul.f32 %v5059_v34, %v6626_v57  ;;  %v5032_v37 = vld [vmem:[%s9879_s4 + $0xb] ss:$0 sm:$0xff]  ;;  %v5070_v34 = vld [vmem:[%s9880_s5 + $0x11] ss:$0 sm:$0xff]  ;;  %v1844_v46 = vsub.f32 %v1588_v54, %v1812_v18  ;;  %v5042_v54 = vld [vmem:[%s9879_s4 + $0x15] ss:$0 sm:$0xff] }
 0x23b   : > { %v1827_v62 = vmul.f32 %v5070_v34, %v6662_v33  ;;  %v5039_v18 = vld [vmem:[%s9879_s4 + $0x12] ss:$0 sm:$0xff] }
 0x23c   : > { %v1843_v63 = vsub.f32 %v1587_v11, %v1811_v48  ;;  %v1593_v11 = vmul.f32 %v5028_v20, %v6055_v39  ;;  %v1817_v48 = vmul.f32 %v5060_v56, %v6626_v57  ;;  %v5064_v39 = vld [vmem:[%s9880_s5 + $0xb] ss:$0 sm:$0xff]  ;;  %v5038_v57 = vld [vmem:[%s9879_s4 + $0x11] ss:$0 sm:$0xff]  ;;  %v5035_v20 = vld [vmem:[%s9879_s4 + $0xe] ss:$0 sm:$0xff]  ;;  %v1596_v56 = vmul.f32 %v5031_v1, %v6060_v41 }
 0x23d   : > { %v1848_v50 = vsub.f32 %v1592_v12, %v1816_v13  ;;  %v1603_v49 = vmul.f32 %v5038_v57, %v6074_v47  ;;  %v1855_v1 = vsub.f32 %v1599_v3, %v1823_v23  ;;  %v5068_v13 = vld [vmem:[%s9880_s5 + $0xf] ss:$0 sm:$0xff]  ;;  %v1600_v8 = vmul.f32 %v5035_v20, %v6067_v44  ;;  %v5043_v20 = vld [vmem:[%s9879_s4 + $0x16] ss:$0 sm:$0xff] }
 0x23e   : > { %2420 = vadd.xlane.f32.xlu1 %v2419_v24  ;;  %v6746_v24 = vmul.f32 %v5049_v2, %v10108_v45  ;;  %v1595_v2 = vmul.f32 %v5030_v14, %v6060_v41  ;;  %v5063_v14 = vld [vmem:[%s9880_s5 + $0xa] ss:$0 sm:$0xff]  ;;  %v1890_v15 = vsel %vm1874_vm2, %v1843_v63, 0.0  ;;  %v1821_v63 = vmul.f32 %v5064_v39, %v6630_v21 }
 0x23f   : > { %v1820_v28 = vmul.f32 %v5063_v14, %v6630_v21  ;;  %v1849_v31 = vsub.f32 %v1593_v11, %v1817_v48  ;;  %v1892_v21 = vadd.f32 %v1891_v10, %v1890_v15  ;;  %v1824_v12 = vmul.f32 %v5067_v55, %v6652_v25  ;;  %v5071_v48 = vld [vmem:[%s9880_s5 + $0x12] ss:$0 sm:$0xff]  ;;  %v5072_v15 = vld [vmem:[%s9880_s5 + $0x13] ss:$0 sm:$0xff] }
 0x240   : > { %v1851_v22 = vsub.f32 %v1595_v2, %v1819_v16  ;;  %v5036_v2 = vld [vmem:[%s9879_s4 + $0xf] ss:$0 sm:$0xff]  ;;  %v1597_v16 = vmul.f32 %v5032_v37, %v6060_v41  ;;  %v5074_v41 = vld [vmem:[%s9880_s5 + $0x15] ss:$0 sm:$0xff]  ;;  %v1905_v19 = vsel %vm1874_vm2, %v1844_v46, 0.0  ;;  %v1906_v11 = vsel %vm1874_vm2, %v1848_v50, 0.0 }
 0x241   : > { %v1852_v14 = vsub.f32 %v1596_v56, %v1820_v28  ;;  %v1601_v52 = vmul.f32 %v5036_v2, %v6067_v44  ;;  %v1825_v3 = vmul.f32 %v5068_v13, %v6652_v25  ;;  %v1920_v37 = vsel %vm1874_vm2, %v1845_v7, 0.0  ;;  %v5040_v25 = vld [vmem:[%s9879_s4 + $0x13] ss:$0 sm:$0xff]  ;;  %v5075_v2 = vld [vmem:[%s9880_s5 + $0x16] ss:$0 sm:$0xff] }
 0x242   : > { %v1893_v53 = vsel %vm1874_vm2, %v1851_v22, 0.0  ;;  %v1853_v23 = vsub.f32 %v1597_v16, %v1821_v63  ;;  %v1921_v39 = vsel %vm1874_vm2, %v1849_v31, 0.0  ;;  %v10110_v57 = vsub.f32 %v6714_v5, %v6721_v27  ;;  %v5046_v31 = vld [vmem:[%s9879_s4 + $0x19] ss:$0 sm:$0xff] }
 0x243   : > { %v1607_v50 = vmul.f32 %v5042_v54, %v6081_v51  ;;  %v1831_v44 = vmul.f32 %v5074_v41, %v6676_v4  ;;  %v1859_v22 = vsub.f32 %v1603_v49, %v1827_v62  ;;  %v5078_v5 = vld [vmem:[%s9880_s5 + $0x19] ss:$0 sm:$0xff]  ;;  %v1894_v27 = vadd.f32 %v1893_v53, %v1892_v21  ;;  %v5044_v53 = vld [vmem:[%s9879_s4 + $0x17] ss:$0 sm:$0xff] }
 0x244   : > { %v6863_v34 = vsel %vm1874_vm2, %v10110_v57, 0.0  ;;  %v1895_v10 = vsel %vm1874_vm2, %v1855_v1, 0.0  ;;  %v1604_v62 = vmul.f32 %v5039_v18, %v6074_v47  ;;  %v1907_v49 = vadd.f32 %v1906_v11, %v1905_v19 }
 0x245   : > { %v1828_v55 = vmul.f32 %v5071_v48, %v6662_v33  ;;  %v1856_v56 = vsub.f32 %v1600_v8, %v1824_v12  ;;  %v1908_v28 = vsel %vm1874_vm2, %v1852_v14, 0.0  ;;  %v1922_v46 = vadd.f32 %v1921_v39, %v1920_v37  ;;  %v5047_v14 = vld [vmem:[%s9879_s4 + $0x1a] ss:$0 sm:$0xff] }
 0x246   : > { %v1605_v16 = vmul.f32 %v5040_v25, %v6074_v47  ;;  %v1829_v63 = vmul.f32 %v5072_v15, %v6662_v33  ;;  %v1857_v7 = vsub.f32 %v1601_v52, %v1825_v3  ;;  %v1923_v1 = vsel %vm1874_vm2, %v1853_v23, 0.0  ;;  %v5076_v47 = vld [vmem:[%s9880_s5 + $0x17] ss:$0 sm:$0xff]  ;;  %v5050_v33 = vld [vmem:[%s9879_s4 + $0x1d] ss:$0 sm:$0xff] }
 0x247   : > { %v1881_v13 = vadd.f32 %v6797_v59, %v1879_v26  ;;  %v1611_v54 = vmul.f32 %v5046_v31, %v10106_v32  ;;  %v1835_v41 = vmul.f32 %v5078_v5, %v6686_v9  ;;  %v1863_v21 = vsub.f32 %v1607_v50, %v1831_v44  ;;  %v5082_v26 = vld [vmem:[%s9880_s5 + $0x1d] ss:$0 sm:$0xff]  ;;  %v5079_v3 = vld [vmem:[%s9880_s5 + $0x1a] ss:$0 sm:$0xff]  ;;  %v5048_v15 = vld [vmem:[%s9879_s4 + $0x1b] ss:$0 sm:$0xff] }
 0x248   : > { %v1896_v59 = vadd.f32 %v1895_v10, %v1894_v27  ;;  %v1897_v8 = vsel %vm1874_vm2, %v1859_v22, 0.0  ;;  %v1608_v12 = vmul.f32 %v5043_v20, %v6081_v51  ;;  %v1909_v18 = vadd.f32 %v1908_v28, %v1907_v49 }
 0x249   : > { %v1832_v19 = vmul.f32 %v5075_v2, %v6676_v4  ;;  %v1860_v11 = vsub.f32 %v1604_v62, %v1828_v55  ;;  %v1910_v52 = vsel %vm1874_vm2, %v1856_v56, 0.0  ;;  %v1924_v48 = vadd.f32 %v1923_v1, %v1922_v46  ;;  %v5083_v55 = vld [vmem:[%s9880_s5 + $0x1e] ss:$0 sm:$0xff] }
 0x24a   : > { %v1609_v23 = vmul.f32 %v5044_v53, %v6081_v51  ;;  %v1833_v37 = vmul.f32 %v5076_v47, %v6676_v4  ;;  %v1861_v39 = vsub.f32 %v1605_v16, %v1829_v63  ;;  %v1925_v57 = vsel %vm1874_vm2, %v1857_v7, 0.0  ;;  %v5080_v51 = vld [vmem:[%s9880_s5 + $0x1b] ss:$0 sm:$0xff] }
 0x24b   : > { %v1883_v50 = vadd.f32 %v6800_v0, %v1881_v13  ;;  %v1615_v44 = vmul.f32 %v5050_v33, %v10108_v45  ;;  %v1839_v22 = vmul.f32 %v5082_v26, %v6710_v61  ;;  %v1867_v25 = vsub.f32 %v1611_v54, %v1835_v41  ;;  %v5051_v0 = vld [vmem:[%s9879_s4 + $0x1e] ss:$0 sm:$0xff] }
 0x24c   : > { %v1898_v31 = vadd.f32 %v1897_v8, %v1896_v59  ;;  %v1899_v4 = vsel %vm1874_vm2, %v1863_v21, 0.0  ;;  %v1612_v5 = vmul.f32 %v5047_v14, %v10106_v32  ;;  %v1911_v27 = vadd.f32 %v1910_v52, %v1909_v18 }
 0x24d   : > { %v1836_v10 = vmul.f32 %v5079_v3, %v6686_v9  ;;  %v1864_v62 = vsub.f32 %v1608_v12, %v1832_v19  ;;  %v1912_v49 = vsel %vm1874_vm2, %v1860_v11, 0.0  ;;  %v1926_v20 = vadd.f32 %v1925_v57, %v1924_v48  ;;  %v6965_v48 = vpop.xlane.xlu0 %2330 }
 0x24e   : > { %v1613_v56 = vmul.f32 %v5048_v15, %v10106_v32  ;;  %v1837_v28 = vmul.f32 %v5080_v51, %v6686_v9  ;;  %v1865_v46 = vsub.f32 %v1609_v23, %v1833_v37  ;;  %v1927_v2 = vsel %vm1874_vm2, %v1861_v39, 0.0  ;;  %v5052_v32 = vld [vmem:[%s9879_s4 + $0x1f] ss:$0 sm:$0xff] }
 0x24f   : > { %v1870_v16 = vsub.f32 %v6746_v24, %v6752_v58  ;;  %v1885_v63 = vadd.f32 %v6863_v34, %v1883_v50  ;;  %v10111_v7 = vsub.f32 %v6743_v30, %v6749_v60  ;;  %v1871_v13 = vsub.f32 %v1615_v44, %v1839_v22  ;;  %v5084_v9 = vld [vmem:[%s9880_s5 + $0x1f] ss:$0 sm:$0xff] }
 0x250   : > { %v1900_v54 = vadd.f32 %v1899_v4, %v1898_v31  ;;  %v1901_v41 = vsel %vm1874_vm2, %v1867_v25, 0.0  ;;  %v1616_v24 = vmul.f32 %v5051_v0, %v10108_v45  ;;  %v1913_v58 = vadd.f32 %v1912_v49, %v1911_v27 }
 0x251   : > { %v1886_v1 = vsel %vm1874_vm2, %v10111_v7, 0.0  ;;  %v1840_v34 = vmul.f32 %v5083_v55, %v6710_v61  ;;  %v1868_v30 = vsub.f32 %v1612_v5, %v1836_v10  ;;  %v1914_v60 = vsel %vm1874_vm2, %v1864_v62, 0.0  ;;  %v6970_v22 = vpop.xlane.xlu0 %2342 }
 0x252   : > { %v1928_v21 = vadd.f32 %v1927_v2, %v1926_v20  ;;  %v1617_v53 = vmul.f32 %v5052_v32, %v10108_v45  ;;  %v1841_v47 = vmul.f32 %v5084_v9, %v6710_v61  ;;  %v1869_v33 = vsub.f32 %v1613_v56, %v1837_v28  ;;  %v2435_v32 = vpop.xlane.xlu1 %2434 }
 0x253   : > { %v1929_v26 = vsel %vm1874_vm2, %v1865_v46, 0.0  ;;  %v1887_v59 = vadd.f32 %v1886_v1, %v1885_v63  ;;  %v1888_v8 = vsel %vm1874_vm2, %v1870_v16, 0.0  ;;  %v1902_v12 = vadd.f32 %v1901_v41, %v1900_v54 }
 0x254   : > { %v1915_v18 = vadd.f32 %v1914_v60, %v1913_v58  ;;  %v1903_v14 = vsel %vm1874_vm2, %v1871_v13, 0.0  ;;  %v1872_v19 = vsub.f32 %v1616_v24, %v1840_v34  ;;  %v1916_v11 = vsel %vm1874_vm2, %v1868_v30, 0.0 }
 0x255   : > { %v1930_v52 = vadd.f32 %v1929_v26, %v1928_v21  ;;  %v1873_v3 = vsub.f32 %v1617_v53, %v1841_v47  ;;  %v1931_v45 = vsel %vm1874_vm2, %v1869_v33, 0.0  ;;  %v1889_v61 = vadd.f32 %v1888_v8, %v1887_v59  ;;  %v6972_v0 = vpop.xlane.xlu0 %2378 }
 0x256   : > { %v1904_v23 = vadd.f32 %v1903_v14, %v1902_v12  ;;  %v1917_v37 = vadd.f32 %v1916_v11, %v1915_v18  ;;  %v1918_v39 = vsel %vm1874_vm2, %v1872_v19, 0.0  ;;  %v2355_v58 = vpop.xlane.xlu1 %2354 }
 0x257   : > { %v1932_v57 = vadd.f32 %v1931_v45, %v1930_v52  ;;  %v1933_v50 = vsel %vm1874_vm2, %v1873_v3, 0.0  ;;  %v2257_v44 = vand.u32 2147483647, %v1889_v61  ;;  %v2253_v47 = vmin.f32 %v1889_v61, 0.0 }
 0x258   : > { %v2258_v25 = vand.u32 2147483647, %v1904_v23  ;;  %v1919_v15 = vadd.f32 %v1918_v39, %v1917_v37  ;;  %v2254_v59 = vmin.f32 %v1904_v23, 0.0 }
 0x259   : > { %v1934_v51 = vadd.f32 %v1933_v50, %v1932_v57  ;;  %v2261_v31 = vsub.f32 0.0, %v2257_v44  ;;  %v6974_v55 = vpop.xlane.xlu0 %2390  ;;  %v6988_v57 = vmul.f32 0.5, %v2435_v32 }
 0x25a   : > { %v2262_v4 = vsub.f32 0.0, %v2258_v25  ;;  %v2259_v5 = vand.u32 2147483647, %v1919_v15  ;;  %v6980_v60 = vpop.xlane.xlu1 %2366  ;;  %v2255_v52 = vmin.f32 %v1919_v15, 0.0 }
 0x25b   : > { %v2260_v27 = vand.u32 2147483647, %v1934_v51  ;;  %v2265_v10 = vmul.f32 1.442695, %v2261_v31  ;;  %v2256_v45 = vmin.f32 %v1934_v51, 0.0 }
 0x25c   : > { %v2267_v62 = vmul.f32 1.442695, %v2262_v4  ;;  %v2263_v49 = vsub.f32 0.0, %v2259_v5 }
 0x25d   : > { %v2264_v20 = vsub.f32 0.0, %v2260_v27  ;;  %5338 = vpow2.f32 %v2265_v10  ;;  %v6976_v46 = vpop.xlane.xlu0 %2402 }
 0x25e   : > { %5340 = vpow2.f32 %v2267_v62  ;;  %v2269_v56 = vmul.f32 1.442695, %v2263_v49 }
 0x25f   : > { %v2271_v28 = vmul.f32 1.442695, %v2264_v20 }
 0x260   : > { %5342 = vpow2.f32 %v2269_v56 }
 0x261   : > { %5344 = vpow2.f32 %v2271_v28  ;;  %v6978_v7 = vpop.xlane.xlu0 %2414 }
 0x267   : > { %v5339_v2 = vpop.eup %5338 }
 0x268   : > { %v5341_v16 = vpop.eup %5340  ;;  %v2273_v63 = vadd.f32 1.0, %v5339_v2 }
 0x269   : > { %v2274_v1 = vadd.f32 1.0, %v5341_v16 }
 0x26a   : > { %v5343_v13 = vpop.eup %5342  ;;  %5346 = vlog2.f32 %v2273_v63 }
 0x26b   : > { %v5345_v9 = vpop.eup %5344  ;;  %5348 = vlog2.f32 %v2274_v1  ;;  %v2275_v41 = vadd.f32 1.0, %v5343_v13 }
 0x26c   : > { %v2276_v24 = vadd.f32 1.0, %v5345_v9 }
 0x26d   : > { %5350 = vlog2.f32 %v2275_v41 }
 0x26e   : > { %5352 = vlog2.f32 %v2276_v24 }
 0x274   : > { %v5347_v30 = vpop.eup %5346 }
 0x275   : > { %v5349_v53 = vpop.eup %5348  ;;  %v2278_v33 = vmul.f32 0.6931472, %v5347_v30 }
 0x276   : > { %v2280_v8 = vmul.f32 0.6931472, %v5349_v53 }
 0x277   : > { %v5351_v12 = vpop.eup %5350  ;;  %v6982_v19 = vsub.f32 %v2253_v47, %v2278_v33 }
 0x278   : > { %v5353_v14 = vpop.eup %5352  ;;  %v6984_v11 = vsub.f32 %v2254_v59, %v2280_v8  ;;  %v2282_v3 = vmul.f32 0.6931472, %v5351_v12 }
 0x279   : > { %v2284_v37 = vmul.f32 0.6931472, %v5353_v14  ;;  %v2453_v39 = vsub.f32 %v6982_v19, %v6970_v22  ;;  %v2449_v31 = vsub.f32 %v6982_v19, %v6965_v48  ;;  %v2457_v15 = vsub.f32 %v6982_v19, %v2355_v58 }
 0x27a   : > { %v6991_v44 = vsub.f32 %v2255_v52, %v2282_v3  ;;  %v2465_v62 = vsub.f32 %v6982_v19, %v6972_v0  ;;  %v2469_v63 = vsub.f32 %v6982_v19, %v6974_v55  ;;  %v2461_v8 = vsub.f32 %v6982_v19, %v6980_v60 }
 0x27b   : > { %v6993_v25 = vsub.f32 %v2256_v45, %v2284_v37  ;;  %v7001_v4 = vsub.f32 %v2453_v39, %v6988_v57  ;;  %v2481_v20 = vsub.f32 %v2449_v31, %v6988_v57  ;;  %v7016_v16 = vsub.f32 %v2457_v15, %v6988_v57 }
 0x27c   : > { %v7032_v58 = vsub.f32 %v2465_v62, %v6988_v57  ;;  %v7051_v59 = vsub.f32 %v2469_v63, %v6988_v57  ;;  %v2473_v14 = vsub.f32 %v6982_v19, %v6976_v46 }
 0x27d   : > { %v2520_v1 = vsel %vm1874_vm2, %v7001_v4, -inf  ;;  %v2513_v30 = vsel %vm1874_vm2, %v2481_v20, -inf }
 0x288   : > { %v2438_v54 = vpop.xlane.xlu0 %2437 }
 0x289   : > { %v6998_v51 = vmul.f32 0.5, %v2438_v54 }
 0x28c   : > { %v2346_v34 = vpop.xlane.xlu0 %2345 }
 0x28d   : > { %v2454_v23 = vsub.f32 %v6984_v11, %v2346_v34 }
 0x28f   : > { %v7008_v49 = vsub.f32 %v2454_v23, %v6998_v51 }
 0x291   : > { %v2441_v26 = vpop.xlane.xlu1 %2440  ;;  %v2521_v55 = vsel %vm1874_vm2, %v7008_v49, -inf }
 0x292   : > { %v2349_v21 = vpop.xlane.xlu0 %2348  ;;  %v7020_v0 = vmul.f32 0.5, %v2441_v26  ;;  %v2527_v26 = vsel %vm1874_vm2, %v7016_v16, -inf  ;;  %v2522_v39 = vmax.f32 %v2520_v1, %v2521_v55 }
 0x293   : > { %v2455_v48 = vsub.f32 %v6991_v44, %v2349_v21 }
 0x295   : > { %v2487_v34 = vsub.f32 %v2455_v48, %v7020_v0  ;;  %v7080_v48 = vsel %vm1874_vm2, %v7032_v58, -inf }
 0x296   : > { %v2358_v18 = vpop.xlane.xlu0 %2357 }
 0x297   : > { %v2458_v27 = vsub.f32 %v6984_v11, %v2358_v18 }
 0x299   : > { %v7028_v54 = vsub.f32 %v2458_v27, %v6998_v51 }
 0x29b   : > { %v2444_v61 = vpop.xlane.xlu1 %2443  ;;  %v2528_v52 = vsel %vm1874_vm2, %v7028_v54, -inf }
 0x29c   : > { %v2340_v50 = vpop.xlane.xlu0 %2339  ;;  %v7024_v32 = vmul.f32 0.5, %v2444_v61  ;;  %v2523_v61 = vsel %vm1874_vm2, %v2487_v34, -inf }
 0x29d   : > { %v2452_v28 = vsub.f32 %v6993_v25, %v2340_v50 }
 0x29f   : > { %v2334_v22 = vpop.xlane.xlu1 %2333  ;;  %v7042_v53 = vsub.f32 %v2452_v28, %v7024_v32  ;;  %v7083_v28 = vsub.f32 %v2473_v14, %v6988_v57 }
 0x2a0   : > { %v2450_v5 = vsub.f32 %v6984_v11, %v2334_v22  ;;  %v2361_v10 = vpop.xlane.xlu0 %2360  ;;  %v7073_v22 = vsub.f32 %v2461_v8, %v6988_v57 }
 0x2a1   : > { %v2459_v2 = vsub.f32 %v6991_v44, %v2361_v10  ;;  %v2518_v23 = vsel %vm1874_vm2, %v7042_v53, -inf }
 0x2a2   : > { %v2482_v56 = vsub.f32 %v2450_v5, %v6998_v51  ;;  %v2529_v5 = vmax.f32 %v2527_v26, %v2528_v52  ;;  %v2534_v8 = vsel %vm1874_vm2, %v7073_v22, -inf }
 0x2a3   : > { %v2337_v13 = vpop.xlane.xlu1 %2336  ;;  %v7045_v47 = vsub.f32 %v2459_v2, %v7020_v0  ;;  %v2524_v2 = vmax.f32 %v2522_v39, %v2523_v61 }
 0x2a4   : > { %v2514_v9 = vsel %vm1874_vm2, %v2482_v56, -inf  ;;  %v2451_v41 = vsub.f32 %v6991_v44, %v2337_v13  ;;  %v2370_v24 = vpop.xlane.xlu0 %2369  ;;  %v7088_v13 = vsel %vm1874_vm2, %v7051_v59, -inf }
 0x2a5   : > { %v2462_v33 = vsub.f32 %v6984_v11, %v2370_v24  ;;  %v2515_v12 = vmax.f32 %v2513_v30, %v2514_v9  ;;  %v2530_v31 = vsel %vm1874_vm2, %v7045_v47, -inf }
 0x2a6   : > { %v7039_v21 = vsub.f32 %v2451_v41, %v7020_v0  ;;  %v2531_v24 = vmax.f32 %v2529_v5, %v2530_v31 }
 0x2a7   : > { %v2352_v18 = vpop.xlane.xlu1 %2351  ;;  %v7070_v15 = vsub.f32 %v2462_v33, %v6998_v51 }
 0x2a8   : > { %v2516_v3 = vsel %vm1874_vm2, %v7039_v21, -inf  ;;  %v2456_v45 = vsub.f32 %v6993_v25, %v2352_v18  ;;  %v2364_v37 = vpop.xlane.xlu0 %2363 }
 0x2a9   : > { %v2517_v50 = vmax.f32 %v2515_v12, %v2516_v3  ;;  %v2460_v60 = vsub.f32 %v6993_v25, %v2364_v37  ;;  %v2535_v33 = vsel %vm1874_vm2, %v7070_v15, -inf }
 0x2aa   : > { %v2488_v46 = vsub.f32 %v2456_v45, %v7024_v32  ;;  %v2536_v61 = vmax.f32 %v2534_v8, %v2535_v33 }
 0x2ab   : > { %v7075_v27 = vmax.f32 %v2517_v50, %v2518_v23  ;;  %v2373_v10 = vpop.xlane.xlu1 %2372  ;;  %v2492_v62 = vsub.f32 %v2460_v60, %v7024_v32 }
 0x2ac   : > { %v2525_v63 = vsel %vm1874_vm2, %v2488_v46, -inf  ;;  %v2376_v1 = vpop.xlane.xlu0 %2375  ;;  %v2463_v30 = vsub.f32 %v6991_v44, %v2373_v10 }
 0x2ad   : > { %v2569_v9 = vsub.f32 %v2481_v20, %v7075_v27  ;;  %v2570_v41 = vsub.f32 %v2482_v56, %v7075_v27  ;;  %v2526_v55 = vmax.f32 %v2524_v2, %v2525_v63  ;;  %v2532_v26 = vsel %vm1874_vm2, %v2492_v62, -inf }
 0x2ae   : > { %v2533_v52 = vmax.f32 %v2531_v24, %v2532_v26  ;;  %v7100_v20 = vsel %vm1874_vm2, %v7083_v28, -inf  ;;  %v2571_v37 = vsub.f32 %v7039_v21, %v7075_v27  ;;  %v7108_v31 = vsub.f32 %v2463_v30, %v7020_v0 }
 0x2af   : > { %v2601_v12 = vmul.f32 1.442695, %v2569_v9  ;;  %v2603_v18 = vmul.f32 1.442695, %v2570_v41  ;;  %v2382_v14 = vpop.xlane.xlu1 %2381  ;;  %v2573_v56 = vsub.f32 %v7001_v4, %v2526_v55  ;;  %v2574_v3 = vsub.f32 %v7008_v49, %v2526_v55 }
 0x2b0   : > { %v2575_v45 = vsub.f32 %v2487_v34, %v2526_v55  ;;  %v2576_v39 = vsub.f32 %v2488_v46, %v2526_v55  ;;  %v2466_v50 = vsub.f32 %v6984_v11, %v2382_v14  ;;  %v2388_v5 = vpop.xlane.xlu0 %2387  ;;  %v2577_v4 = vsub.f32 %v7016_v16, %v2533_v52 }
 0x2b1   : > { %5354 = vpow2.f32 %v2601_v12  ;;  %v2609_v60 = vmul.f32 1.442695, %v2573_v56  ;;  %v2611_v23 = vmul.f32 1.442695, %v2574_v3  ;;  %v2464_v34 = vsub.f32 %v6993_v25, %v2376_v1 }
 0x2b2   : > { %5356 = vpow2.f32 %v2603_v18  ;;  %v2613_v10 = vmul.f32 1.442695, %v2575_v45  ;;  %v2615_v2 = vmul.f32 1.442695, %v2576_v39  ;;  %v2578_v21 = vsub.f32 %v7028_v54, %v2533_v52 }
 0x2b3   : > { %v2385_v49 = vpop.xlane.xlu1 %2384  ;;  %v2579_v46 = vsub.f32 %v7045_v47, %v2533_v52  ;;  %v2580_v63 = vsub.f32 %v2492_v62, %v2533_v52  ;;  %5358 = vpow2.f32 %v2609_v60  ;;  %v7115_v9 = vsub.f32 %v2466_v50, %v6998_v51 }
 0x2b4   : > { %v2617_v41 = vmul.f32 1.442695, %v2577_v4  ;;  %v2467_v24 = vsub.f32 %v6991_v44, %v2385_v49  ;;  %v2572_v55 = vsub.f32 %v7042_v53, %v7075_v27  ;;  %5360 = vpow2.f32 %v2611_v23  ;;  %v2400_v53 = vpop.xlane.xlu0 %2399 }
 0x2b5   : > { %v2537_v16 = vsel %vm1874_vm2, %v7108_v31, -inf  ;;  %v2619_v1 = vmul.f32 1.442695, %v2578_v21  ;;  %5362 = vpow2.f32 %v2613_v10  ;;  %v2621_v54 = vmul.f32 1.442695, %v2579_v46 }
 0x2b6   : > { %v2623_v30 = vmul.f32 1.442695, %v2580_v63  ;;  %v7123_v47 = vsub.f32 %v2467_v24, %v7020_v0  ;;  %5364 = vpow2.f32 %v2615_v2  ;;  %v2496_v33 = vsub.f32 %v2464_v34, %v7024_v32 }
 0x2b7   : > { %v2394_v62 = vpop.xlane.xlu1 %2393  ;;  %v2468_v8 = vsub.f32 %v6993_v25, %v2388_v5  ;;  %v2605_v27 = vmul.f32 1.442695, %v2571_v37  ;;  %v2542_v12 = vsel %vm1874_vm2, %v7115_v9, -inf  ;;  %5366 = vpow2.f32 %v2617_v41 }
 0x2b8   : > { %v2470_v26 = vsub.f32 %v6984_v11, %v2394_v62  ;;  %v2538_v18 = vmax.f32 %v2536_v61, %v2537_v16  ;;  %v2607_v14 = vmul.f32 1.442695, %v2572_v55  ;;  %5368 = vpow2.f32 %v2619_v1 }
 0x2b9   : > { %v2544_v52 = vsel %vm1874_vm2, %v7123_v47, -inf  ;;  %v2539_v56 = vsel %vm1874_vm2, %v2496_v33, -inf  ;;  %5370 = vpow2.f32 %v2621_v54  ;;  %v2500_v45 = vsub.f32 %v2468_v8, %v7024_v32 }
 0x2ba   : > { %v2540_v3 = vmax.f32 %v2538_v18, %v2539_v56  ;;  %v2472_v50 = vsub.f32 %v6993_v25, %v2400_v53  ;;  %v2477_v60 = vsub.f32 %v6982_v19, %v6978_v7  ;;  %v2543_v61 = vmax.f32 %v7080_v48, %v2542_v12 }
 0x2bb   : > { %v2397_v39 = vpop.xlane.xlu1 %2396  ;;  %v7135_v37 = vpop.eup %5354  ;;  %5372 = vpow2.f32 %v2623_v30  ;;  %v7141_v23 = vsub.f32 %v2470_v26, %v6998_v51  ;;  %v2546_v41 = vsel %vm1874_vm2, %v2500_v45, -inf }
 0x2bc   : > { %v7143_v5 = vpop.eup %5356  ;;  %5374 = vpow2.f32 %v2605_v27  ;;  %v2581_v10 = vsub.f32 %v7073_v22, %v2540_v3  ;;  %v2582_v4 = vsub.f32 %v7070_v15, %v2540_v3  ;;  %v2583_v49 = vsub.f32 %v7108_v31, %v2540_v3 }
 0x2bd   : > { %5376 = vpow2.f32 %v2607_v14  ;;  %v2545_v34 = vmax.f32 %v2543_v61, %v2544_v52  ;;  %v2584_v2 = vsub.f32 %v2496_v33, %v2540_v3  ;;  %v2471_v21 = vsub.f32 %v6991_v44, %v2397_v39  ;;  %v7149_v46 = vpop.eup %5358 }
 0x2be   : > { %v2625_v48 = vmul.f32 1.442695, %v2581_v10  ;;  %v2627_v63 = vmul.f32 1.442695, %v2582_v4  ;;  %v7153_v24 = vsub.f32 %v2472_v50, %v7024_v32  ;;  %v7155_v55 = vpop.eup %5360  ;;  %v2665_v15 = vsel %vm1874_vm2, %v7135_v37, 0.0 }
 0x2bf   : > { %v2672_v22 = vsel %vm1874_vm2, %v7149_v46, 0.0  ;;  %v2629_v31 = vmul.f32 1.442695, %v2583_v49  ;;  %v2549_v16 = vsel %vm1874_vm2, %v7141_v23, -inf  ;;  %v7163_v1 = vpop.eup %5362  ;;  %v2673_v54 = vsel %vm1874_vm2, %v7155_v55, 0.0  ;;  %v2406_v33 = vpop.xlane.xlu1 %2405 }
 0x2c0   : > { %5378 = vpow2.f32 %v2625_v48  ;;  %v2631_v30 = vmul.f32 1.442695, %v2584_v2  ;;  %v2547_v62 = vmax.f32 %v2545_v34, %v2546_v41  ;;  %v7167_v26 = vpop.eup %5364  ;;  %v2666_v8 = vsel %vm1874_vm2, %v7143_v5, 0.0 }
 0x2c1   : > { %v2674_v53 = vadd.f32 %v2673_v54, %v2672_v22  ;;  %5380 = vpow2.f32 %v2627_v63  ;;  %v7172_v27 = vsub.f32 %v2471_v21, %v7020_v0  ;;  %v7174_v12 = vpop.eup %5366  ;;  %v2675_v18 = vsel %vm1874_vm2, %v7163_v1, 0.0 }
 0x2c2   : > { %5382 = vpow2.f32 %v2629_v31  ;;  %v2585_v14 = vsub.f32 %v7032_v58, %v2547_v62  ;;  %v2586_v52 = vsub.f32 %v7115_v9, %v2547_v62  ;;  %v7180_v56 = vpop.eup %5368  ;;  %v2677_v39 = vsel %vm1874_vm2, %v7167_v26, 0.0 }
 0x2c3   : > { %v2676_v3 = vadd.f32 %v2675_v18, %v2674_v53  ;;  %v2679_v50 = vsel %vm1874_vm2, %v7174_v12, 0.0  ;;  %v2587_v61 = vsub.f32 %v7123_v47, %v2547_v62  ;;  %v7187_v10 = vpop.eup %5370  ;;  %v2680_v4 = vsel %vm1874_vm2, %v7180_v56, 0.0  ;;  %v2409_v31 = vpop.xlane.xlu1 %2408 }
 0x2c4   : > { %5384 = vpow2.f32 %v2631_v30  ;;  %v2588_v58 = vsub.f32 %v2500_v45, %v2547_v62  ;;  %v2633_v49 = vmul.f32 1.442695, %v2585_v14  ;;  %v2681_v2 = vadd.f32 %v2680_v4, %v2679_v50  ;;  %v2412_v53 = vpop.xlane.xlu0 %2411 }
 0x2c5   : > { %v7191_v9 = vpop.eup %5372  ;;  %v2678_v34 = vadd.f32 %v2677_v39, %v2676_v3  ;;  %v2550_v21 = vmax.f32 %v7088_v13, %v2549_v16  ;;  %v2635_v48 = vmul.f32 1.442695, %v2586_v52  ;;  %v2682_v47 = vsel %vm1874_vm2, %v7187_v10, 0.0 }
 0x2c6   : > { %v7194_v63 = vpop.eup %5374  ;;  %5386 = vpow2.f32 %v2633_v49  ;;  %v2637_v41 = vmul.f32 1.442695, %v2587_v61  ;;  %v2639_v22 = vmul.f32 1.442695, %v2588_v58  ;;  %v2667_v45 = vadd.f32 %v2666_v8, %v2665_v15 }
 0x2c7   : > { %v7198_v54 = vpop.eup %5376  ;;  %5388 = vrcp.f32 %v2678_v34  ;;  %v2683_v30 = vadd.f32 %v2682_v47, %v2681_v2  ;;  %v2551_v62 = vsel %vm1874_vm2, %v7172_v27, -inf  ;;  %v2684_v13 = vsel %vm1874_vm2, %v7191_v9, 0.0 }
 0x2c8   : > { %5390 = vpow2.f32 %v2635_v48  ;;  %v2552_v16 = vmax.f32 %v2550_v21, %v2551_v62  ;;  %v2474_v18 = vsub.f32 %v6984_v11, %v2406_v33  ;;  %v2553_v52 = vsel %vm1874_vm2, %v7153_v24, -inf }
 0x2c9   : > { %v2685_v14 = vadd.f32 %v2684_v13, %v2683_v30  ;;  %5392 = vpow2.f32 %v2637_v41  ;;  %v2475_v15 = vsub.f32 %v6991_v44, %v2409_v31  ;;  %v2476_v50 = vsub.f32 %v6993_v25, %v2412_v53 }
 0x2ca   : > { %v7208_v8 = vpop.eup %5378  ;;  %5394 = vpow2.f32 %v2639_v22  ;;  %v2554_v3 = vmax.f32 %v2552_v16, %v2553_v52  ;;  %v7211_v39 = vsub.f32 %v2474_v18, %v6998_v51  ;;  %v2668_v33 = vsel %vm1874_vm2, %v7194_v63, 0.0  ;;  %v2424_v18 = vpop.xlane.xlu0 %2423 }
 0x2cb   : > { %v7214_v61 = vpop.eup %5380  ;;  %5396 = vrcp.f32 %v2685_v14  ;;  %v2686_v4 = vsel %vm1874_vm2, %v7208_v8, 0.0  ;;  %v7221_v58 = vsub.f32 %v2475_v15, %v7020_v0  ;;  %v2669_v34 = vadd.f32 %v2668_v33, %v2667_v45 }
 0x2cc   : > { %v7223_v49 = vpop.eup %5382  ;;  %v2687_v2 = vsel %vm1874_vm2, %v7214_v61, 0.0  ;;  %v2589_v21 = vsub.f32 %v7051_v59, %v2554_v3  ;;  %v2590_v48 = vsub.f32 %v7141_v23, %v2554_v3  ;;  %v2670_v47 = vsel %vm1874_vm2, %v7198_v54, 0.0 }
 0x2cd   : > { %v2688_v41 = vadd.f32 %v2687_v2, %v2686_v4  ;;  %v2591_v22 = vsub.f32 %v7172_v27, %v2554_v3  ;;  %v2556_v31 = vsel %vm1874_vm2, %v7211_v39, -inf  ;;  %v2689_v45 = vsel %vm1874_vm2, %v7223_v49, 0.0 }
 0x2ce   : > { %v7234_v30 = vpop.eup %5384  ;;  %v2641_v62 = vmul.f32 1.442695, %v2589_v21  ;;  %v2643_v53 = vmul.f32 1.442695, %v2590_v48  ;;  %v2557_v59 = vmax.f32 %v7100_v20, %v2556_v31  ;;  %v2592_v23 = vsub.f32 %v7153_v24, %v2554_v3  ;;  %v2418_v21 = vpop.xlane.xlu1 %2417 }
 0x2cf   : > { %v2690_v13 = vadd.f32 %v2689_v45, %v2688_v41  ;;  %v7241_v16 = vsub.f32 %v2476_v50, %v7024_v32  ;;  %v2558_v27 = vsel %vm1874_vm2, %v7221_v58, -inf  ;;  %v2671_v52 = vadd.f32 %v2670_v47, %v2669_v34 }
 0x2d0   : > { %v7245_v14 = vpop.eup %5386  ;;  %v2691_v15 = vsel %vm1874_vm2, %v7234_v30, 0.0  ;;  %5398 = vpow2.f32 %v2641_v62  ;;  %v2559_v33 = vmax.f32 %v2557_v59, %v2558_v27  ;;  %v2645_v2 = vmul.f32 1.442695, %v2591_v22 }
 0x2d1   : > { %v5389_v4 = vpop.eup %5388  ;;  %v2692_v20 = vadd.f32 %v2691_v15, %v2690_v13  ;;  %5400 = vpow2.f32 %v2643_v53  ;;  %v7255_v3 = vsub.f32 %v2477_v60, %v6988_v57  ;;  %v2693_v50 = vsel %vm1874_vm2, %v7245_v14, 0.0 }
 0x2d2   : > { %v7249_v24 = vpop.eup %5390  ;;  %v2480_v34 = vsub.f32 %v6993_v25, %v2424_v18  ;;  %v2647_v41 = vmul.f32 1.442695, %v2592_v23  ;;  %v2560_v22 = vsel %vm1874_vm2, %v7241_v16, -inf  ;;  %v2478_v25 = vsub.f32 %v6984_v11, %v2418_v21 }
 0x2d3   : > { %v7260_v48 = vpop.eup %5392  ;;  %5402 = vrcp.f32 %v2692_v20  ;;  %v2694_v47 = vsel %vm1874_vm2, %v7249_v24, 0.0  ;;  %v2561_v7 = vmax.f32 %v2559_v33, %v2560_v22  ;;  %v7271_v60 = vsel %vm1874_vm2, %v7255_v3, -inf }
 0x2d4   : > { %v7266_v31 = vpop.eup %5394  ;;  %5404 = vrcp.f32 %v2671_v52  ;;  %v2695_v57 = vadd.f32 %v2694_v47, %v2693_v50  ;;  %v2730_v45 = vmul.f32 %v5389_v4, %v7167_v26  ;;  %v2696_v62 = vsel %vm1874_vm2, %v7260_v48, 0.0  ;;  %v2421_v26 = vpop.xlane.xlu1 %2420 }
 0x2d5   : > { %v5397_v19 = vpop.eup %5396  ;;  %5406 = vpow2.f32 %v2645_v2  ;;  %v7278_v13 = vsub.f32 %v2480_v34, %v7024_v32  ;;  %v2727_v23 = vmul.f32 %v5389_v4, %v7149_v46  ;;  %v2728_v11 = vmul.f32 %v5389_v4, %v7155_v55 }
 0x2d6   : > { %v2735_v53 = vmul.f32 %v5397_v19, %v7191_v9  ;;  %v2697_v59 = vadd.f32 %v2696_v62, %v2695_v57  ;;  %5408 = vpow2.f32 %v2647_v41  ;;  %v2698_v27 = vsel %vm1874_vm2, %v7266_v31, 0.0 }
 0x2d7   : > { %v2593_v18 = vsub.f32 %v7083_v28, %v2561_v7  ;;  %v2729_v52 = vmul.f32 %v5389_v4, %v7163_v1  ;;  %v2594_v9 = vsub.f32 %v7211_v39, %v2561_v7  ;;  %v7288_v33 = vsub.f32 %v2478_v25, %v6998_v51 }
 0x2d8   : > { %v2699_v15 = vadd.f32 %v2698_v27, %v2697_v59  ;;  %v7293_v46 = vmul.f32 %v6047_v36, %v2730_v45  ;;  %v7296_v55 = vmul.f32 %v6052_v38, %v2735_v53  ;;  %v2595_v20 = vsub.f32 %v7221_v58, %v2561_v7 }
 0x2d9   : > { %v2649_v28 = vmul.f32 1.442695, %v2593_v18  ;;  %v2596_v51 = vsub.f32 %v7241_v16, %v2561_v7  ;;  %v2479_v39 = vsub.f32 %v6991_v44, %v2421_v26  ;;  %v2651_v50 = vmul.f32 1.442695, %v2594_v9  ;;  %v5563_v9 = vld [vmem:[%s9880_s5 + $0x7] ss:$0 sm:$0xff] }
 0x2da   : > { %v7290_v32 = vpop.eup %5398  ;;  %5410 = vrcp.f32 %v2699_v15  ;;  %v2567_v34 = vsel %vm1874_vm2, %v7278_v13, -inf  ;;  %v7310_v21 = vmul.f32 %v6047_v36, %v2727_v23  ;;  %v7313_v47 = vmul.f32 %v6047_v36, %v2728_v11  ;;  %v5562_v23 = vld [vmem:[%s9879_s4 + $0x7] ss:$0 sm:$0xff] }
 0x2db   : > { %v7299_v2 = vpop.eup %5400  ;;  %v2700_v1 = vsel %vm1874_vm2, %v7290_v32, 0.0  ;;  %5412 = vpow2.f32 %v2649_v28  ;;  %v7316_v41 = vmul.f32 %v6047_v36, %v2729_v52  ;;  %v2653_v16 = vmul.f32 1.442695, %v2595_v20 }
 0x2dc   : > { %v2701_v4 = vsel %vm1874_vm2, %v7299_v2, 0.0  ;;  %10112 = vst [vmem:[#allocation22_spill] sm:$0xff] %v7313_v47  ;;  %v2800_v22 = vsub.f32 %v6047_v36, %v7293_v46  ;;  %v2804_v7 = vsub.f32 %v6052_v38, %v7296_v55  ;;  %v2563_v25 = vsel %vm1874_vm2, %v7288_v33, -inf }
 0x2dd   : > { %v5403_v58 = vpop.eup %5402  ;;  %v2702_v57 = vadd.f32 %v2701_v4, %v2700_v1  ;;  %5414 = vpow2.f32 %v2651_v50  ;;  %v2655_v53 = vmul.f32 1.442695, %v2596_v51  ;;  %v7330_v59 = vsub.f32 %v2479_v39, %v7020_v0  ;;  %v5565_v51 = vld [vmem:[%s9879_s4 + $0xb] ss:$0 sm:$0xff] }
 0x2de   : > { %v7318_v44 = vpop.eup %5404  ;;  %v2740_v62 = vmul.f32 %v5403_v58, %v7234_v30  ;;  %v7336_v11 = vmul.f32 %v5562_v23, %v7293_v46  ;;  %v2732_v27 = vmul.f32 %v5397_v19, %v7174_v12  ;;  %v2733_v18 = vmul.f32 %v5397_v19, %v7180_v56  ;;  %v5564_v56 = vld [vmem:[%s9880_s5 + $0xb] ss:$0 sm:$0xff] }
 0x2df   : > { %v7326_v45 = vpop.eup %5406  ;;  %v2734_v26 = vmul.f32 %v5397_v19, %v7187_v10  ;;  %5416 = vpow2.f32 %v2653_v16  ;;  %v2564_v0 = vmax.f32 %v7271_v60, %v2563_v25  ;;  %v2565_v15 = vsel %vm1874_vm2, %v7330_v59, -inf }
 0x2e0   : > { %v7341_v52 = vpop.eup %5408  ;;  %v2703_v30 = vsel %vm1874_vm2, %v7326_v45, 0.0  ;;  %v7351_v12 = vmul.f32 %v5563_v9, %v2800_v22  ;;  %v7356_v10 = vmul.f32 %v5564_v56, %v2804_v7  ;;  %v2723_v20 = vmul.f32 %v7318_v44, %v7143_v5  ;;  %v5566_v9 = vld [vmem:[%s9879_s4 + $0xf] ss:$0 sm:$0xff] }
 0x2e1   : > { %v2704_v19 = vadd.f32 %v2703_v30, %v2702_v57  ;;  %v7361_v60 = vmul.f32 %v6057_v40, %v2740_v62  ;;  %v2705_v28 = vsel %vm1874_vm2, %v7341_v52, 0.0  ;;  %5418 = vpow2.f32 %v2655_v53 }
 0x2e2   : > { %10113 = vst [vmem:[#allocation23_spill] sm:$0xff] %v7356_v10  ;;  %v2566_v1 = vmax.f32 %v2564_v0, %v2565_v15  ;;  %v7369_v39 = vmul.f32 %v5565_v51, %v7296_v55  ;;  %v2737_v4 = vmul.f32 %v5403_v58, %v7208_v8  ;;  %v2738_v50 = vmul.f32 %v5403_v58, %v7214_v61 }
 0x2e3   : > { %10114 = vst [vmem:[#allocation56_spill] sm:$0xff] %v7361_v60  ;;  %v2706_v5 = vadd.f32 %v2705_v28, %v2704_v19  ;;  %v7374_v22 = vmul.f32 %v6052_v38, %v2732_v27  ;;  %v7377_v7 = vmul.f32 %v6052_v38, %v2733_v18  ;;  %v2739_v57 = vmul.f32 %v5403_v58, %v7223_v49 }
 0x2e4   : > { %10115 = vst [vmem:[#allocation57_spill] sm:$0xff] %v7369_v39  ;;  %v5411_v16 = vpop.eup %5410  ;;  %v2568_v25 = vmax.f32 %v2566_v1, %v2567_v34  ;;  %v7383_v53 = vmul.f32 %v6052_v38, %v2734_v26  ;;  %v7389_v23 = vmul.f32 %v6045_v35, %v2723_v20  ;;  %v2808_v27 = vsub.f32 %v6057_v40, %v7361_v60 }
 0x2e5   : > { %10116 = vst [vmem:[#allocation58_spill] sm:$0xff] %v7377_v7  ;;  %v7380_v62 = vpop.eup %5412  ;;  %v2743_v61 = vmul.f32 %v5411_v16, %v7249_v24  ;;  %v2745_v18 = vmul.f32 %v5411_v16, %v7266_v31  ;;  %5420 = vrcp.f32 %v2706_v5  ;;  %v7396_v34 = vmul.f32 %v6057_v40, %v2737_v4 }
 0x2e6   : > { %v2597_v49 = vsub.f32 %v7255_v3, %v2568_v25  ;;  %v7399_v58 = vmul.f32 %v6057_v40, %v2738_v50  ;;  %v2707_v24 = vsel %vm1874_vm2, %v7380_v62, 0.0  ;;  %v2598_v26 = vsub.f32 %v7288_v33, %v2568_v25 }
 0x2e7   : > { %v7404_v30 = vpop.eup %5414  ;;  %v7407_v0 = vmul.f32 %v6057_v40, %v2739_v57  ;;  %v2599_v31 = vsub.f32 %v7330_v59, %v2568_v25  ;;  %v2600_v3 = vsub.f32 %v7278_v13, %v2568_v25  ;;  %v7415_v56 = vmul.f32 %v5566_v9, %v7361_v60  ;;  %v5567_v13 = vld [vmem:[%s9880_s5 + $0xf] ss:$0 sm:$0xff] }
 0x2e8   : > { %10117 = vst [vmem:[#allocation59_spill] sm:$0xff] %v7399_v58  ;;  %v2657_v15 = vmul.f32 1.442695, %v2597_v49  ;;  %v7418_v19 = vmul.f32 %v6064_v43, %v2743_v61  ;;  %v2708_v33 = vsel %vm1874_vm2, %v7404_v30, 0.0  ;;  %v2794_v20 = vsub.f32 %v6045_v35, %v7389_v23 }
 0x2e9   : > { %10118 = vst [vmem:[#allocation60_spill] sm:$0xff] %v7415_v56  ;;  %v7424_v59 = vpop.eup %5416  ;;  %v7429_v28 = vmul.f32 %v5567_v13, %v2808_v27  ;;  %v7432_v1 = vmul.f32 %v6064_v43, %v2745_v18  ;;  %v2709_v51 = vadd.f32 %v2708_v33, %v2707_v24  ;;  %v2798_v4 = vsub.f32 %v6047_v36, %v7313_v47  ;;  %v5569_v13 = vld [vmem:[%s9879_s4 + $0x5] ss:$0 sm:$0xff] }
 0x2ea   : > { %10119 = vst [vmem:[#allocation61_spill] sm:$0xff] %v7418_v19  ;;  %v2710_v50 = vsel %vm1874_vm2, %v7424_v59, 0.0  ;;  %5422 = vpow2.f32 %v2657_v15  ;;  %v2659_v5 = vmul.f32 1.442695, %v2598_v26  ;;  %v2661_v57 = vmul.f32 1.442695, %v2599_v31 }
 0x2eb   : > { %10120 = vst [vmem:[#allocation62_spill] sm:$0xff] %v7429_v28  ;;  %10121 = vst [vmem:[#allocation63_spill] sm:$0xff] %v7432_v1  ;;  %v7438_v25 = vpop.eup %5418  ;;  %v2742_v61 = vmul.f32 %v5411_v16, %v7245_v14  ;;  %v2711_v49 = vadd.f32 %v2710_v50, %v2709_v51  ;;  %v2663_v27 = vmul.f32 1.442695, %v2600_v3  ;;  %v2802_v18 = vsub.f32 %v6052_v38, %v7377_v7  ;;  %v5568_v14 = vld [vmem:[%s9879_s4 + $0x1] ss:$0 sm:$0xff] }
 0x2ec   : > { %v2810_v24 = vsub.f32 %v6064_v43, %v7418_v19  ;;  %v2712_v9 = vsel %vm1874_vm2, %v7438_v25, 0.0  ;;  %5424 = vpow2.f32 %v2659_v5  ;;  %v2806_v26 = vsub.f32 %v6057_v40, %v7399_v58 }
 0x2ed   : > { %v2744_v31 = vmul.f32 %v5411_v16, %v7260_v48  ;;  %v2713_v15 = vadd.f32 %v2712_v9, %v2711_v49  ;;  %5426 = vpow2.f32 %v2661_v57  ;;  %v2826_v3 = vmul.f32 %v5568_v14, %v7389_v23  ;;  %v5570_v48 = vld [vmem:[%s9879_s4 + $0x9] ss:$0 sm:$0xff]  ;;  %v5571_v57 = vld [vmem:[%s9880_s5 + $0x1] ss:$0 sm:$0xff] }
 0x2ee   : > { %v2812_v33 = vsub.f32 %v6064_v43, %v7432_v1  ;;  %5428 = vpow2.f32 %v2663_v27  ;;  %v2830_v51 = vmul.f32 %v5569_v13, %v7313_v47  ;;  %v2834_v16 = vmul.f32 %v5570_v48, %v7377_v7  ;;  %v5572_v27 = vld [vmem:[%s9880_s5 + $0x5] ss:$0 sm:$0xff]  ;;  %v5573_v13 = vld [vmem:[%s9880_s5 + $0x9] ss:$0 sm:$0xff] }
 0x2ef   : > { %v5421_v50 = vpop.eup %5420  ;;  %v7465_v5 = vmul.f32 %v6064_v43, %v2742_v61  ;;  %5430 = vrcp.f32 %v2713_v15  ;;  %v2858_v49 = vmul.f32 %v5571_v57, %v2794_v20  ;;  %v2862_v9 = vmul.f32 %v5572_v27, %v2798_v4  ;;  %v5574_v61 = vld [vmem:[%s9880_s5 + $0xd] ss:$0 sm:$0xff]  ;;  %v5575_v20 = vld [vmem:[%s9880_s5 + $0x11] ss:$0 sm:$0xff] }
 0x2f0   : > { %v2748_v14 = vmul.f32 %v5421_v50, %v7299_v2  ;;  %v2866_v48 = vmul.f32 %v5573_v13, %v2802_v18  ;;  %v2870_v15 = vmul.f32 %v5574_v61, %v2806_v26  ;;  %v2874_v57 = vmul.f32 %v5575_v20, %v2810_v24  ;;  %v5576_v18 = vld [vmem:[%s9880_s5 + $0x13] ss:$0 sm:$0xff]  ;;  %v5577_v24 = vld [vmem:[%s9879_s4 + $0xd] ss:$0 sm:$0xff] }
 0x2f1   : > { %v7484_v8 = vmul.f32 %v6064_v43, %v2744_v31  ;;  %v2747_v2 = vmul.f32 %v5421_v50, %v7290_v32  ;;  %v2749_v4 = vmul.f32 %v5421_v50, %v7326_v45  ;;  %v2750_v27 = vmul.f32 %v5421_v50, %v7341_v52  ;;  %v5578_v32 = vld [vmem:[%s9879_s4 + $0x11] ss:$0 sm:$0xff] }
 0x2f2   : > { %v7492_v13 = vmul.f32 %v5576_v18, %v2812_v33  ;;  %v7495_v26 = vmul.f32 %v10105_v29, %v2748_v14  ;;  %v2838_v31 = vmul.f32 %v5577_v24, %v7399_v58  ;;  %v2842_v45 = vmul.f32 %v5578_v32, %v7418_v19  ;;  %v5579_v33 = vld [vmem:[%s9879_s4 + $0x13] ss:$0 sm:$0xff] }
 0x2f3   : > { %v7511_v50 = vmul.f32 %v5579_v33, %v7432_v1  ;;  %v2890_v14 = vsub.f32 %v2826_v3, %v2858_v49  ;;  %v2894_v61 = vsub.f32 %v2830_v51, %v2862_v9  ;;  %v2898_v24 = vsub.f32 %v2834_v16, %v2866_v48 }
 0x2f4   : > { %10122 = vst [vmem:[#allocation64_spill] sm:$0xff] %v7492_v13  ;;  %10123 = vst [vmem:[#allocation65_spill] sm:$0xff] %v7495_v26  ;;  %v7513_v20 = vpop.eup %5422  ;;  %v2814_v18 = vsub.f32 %v10105_v29, %v7495_v26  ;;  %v2902_v6 = vsub.f32 %v2838_v31, %v2870_v15  ;;  %v2906_v32 = vsub.f32 %v2842_v45, %v2874_v57  ;;  %v7536_v9 = vsel %vm1874_vm2, %v7432_v1, 0.0 }
 0x2f5   : > { %10124 = vst [vmem:[#allocation66_spill] sm:$0xff] %v7511_v50  ;;  %v7520_v28 = vmul.f32 %v10105_v29, %v2747_v2  ;;  %v7523_v56 = vmul.f32 %v10105_v29, %v2749_v4  ;;  %v7526_v3 = vmul.f32 %v10105_v29, %v2750_v27  ;;  %10126 = vst [vmem:[#allocation68_spill] sm:$0xff] %v7536_v9  ;;  %v2714_v48 = vsel %vm1874_vm2, %v7513_v20, 0.0  ;;  %v5580_v2 = vld [vmem:[%s9880_s5 + $0x15] ss:$0 sm:$0xff] }
 0x2f6   : > { %v7528_v51 = vpop.eup %5424  ;;  %v2878_v4 = vmul.f32 %v5580_v2, %v2814_v18  ;;  %v2936_v27 = vsel %vm1874_vm2, %v2890_v14, 0.0  ;;  %v2937_v31 = vsel %vm1874_vm2, %v2894_v61, 0.0  ;;  %v2939_v16 = vsel %vm1874_vm2, %v2898_v24, 0.0  ;;  %v5581_v61 = vld [vmem:[%s9879_s4 + $0x15] ss:$0 sm:$0xff] }
 0x2f7   : > { %10125 = vst [vmem:[#allocation67_spill] sm:$0xff] %v7526_v3  ;;  %v7540_v15 = vpop.eup %5426  ;;  %v2715_v57 = vsel %vm1874_vm2, %v7528_v51, 0.0  ;;  %v2941_v49 = vsel %vm1874_vm2, %v2902_v6, 0.0  ;;  %v2943_v52 = vsel %vm1874_vm2, %v2906_v32, 0.0  ;;  %v2816_v14 = vsub.f32 %v10105_v29, %v7526_v3  ;;  %v5582_v6 = vld [vmem:[%s9879_s4 + $0x14] ss:$0 sm:$0xff] }
 0x2f8   : > { %v7549_v45 = vpop.eup %5428  ;;  %v2716_v33 = vadd.f32 %v2715_v57, %v2714_v48  ;;  %v2846_v24 = vmul.f32 %v5581_v61, %v7495_v26  ;;  %v7568_v32 = vmul.f32 %v5582_v6, %v7520_v28  ;;  %v2717_v2 = vsel %vm1874_vm2, %v7540_v15, 0.0  ;;  %v5583_v18 = vld [vmem:[%s9879_s4 + $0x16] ss:$0 sm:$0xff] }
 0x2f9   : > { %v5431_v1 = vpop.eup %5430  ;;  %v7578_v61 = vmul.f32 %v5583_v18, %v7523_v56  ;;  %v2938_v9 = vadd.f32 %v2937_v31, %v2936_v27  ;;  %v5585_v27 = vld [vmem:[%s9880_s5 + $0x17] ss:$0 sm:$0xff] }
 0x2fa   : > { %v2753_v48 = vmul.f32 %v5431_v1, %v7404_v30  ;;  %v2754_v57 = vmul.f32 %v5431_v1, %v7424_v59  ;;  %v2718_v13 = vadd.f32 %v2717_v2, %v2716_v33  ;;  %v2910_v50 = vsub.f32 %v2846_v24, %v2878_v4 }
 0x2fb   : > { %v2752_v6 = vmul.f32 %v5431_v1, %v7380_v62  ;;  %v2719_v30 = vsel %vm1874_vm2, %v7549_v45, 0.0  ;;  %v2997_v59 = vsel %vm1874_vm2, %v7313_v47, 0.0  ;;  %v2755_v39 = vmul.f32 %v5431_v1, %v7438_v25  ;;  %v5584_v62 = vld [vmem:[%s9879_s4 + $0x17] ss:$0 sm:$0xff] }
 0x2fc   : > { %v7582_v10 = vmul.f32 %v10107_v42, %v2753_v48  ;;  %v7590_v60 = vmul.f32 %v10107_v42, %v2754_v57  ;;  %v2720_v18 = vadd.f32 %v2719_v30, %v2718_v13  ;;  %v2940_v33 = vadd.f32 %v2939_v16, %v2938_v9 }
 0x2fd   : > { %v7596_v4 = vmul.f32 %v5584_v62, %v7526_v3  ;;  %v7601_v31 = vmul.f32 %v5585_v27, %v2816_v14  ;;  %v2996_v25 = vsel %vm1874_vm2, %v7389_v23, 0.0  ;;  %v2945_v16 = vsel %vm1874_vm2, %v2910_v50, 0.0  ;;  %v5586_v14 = vld [vmem:[%s9879_s4 + $0x19] ss:$0 sm:$0xff] }
 0x2fe   : > { %v2818_v1 = vsub.f32 %v10107_v42, %v7582_v10  ;;  %v2942_v13 = vadd.f32 %v2941_v49, %v2940_v33  ;;  %v2998_v9 = vadd.f32 %v2997_v59, %v2996_v25  ;;  %v2999_v24 = vsel %vm1874_vm2, %v7377_v7, 0.0  ;;  %v5587_v49 = vld [vmem:[%s9880_s5 + $0x19] ss:$0 sm:$0xff] }
 0x2ff   : > { %10127 = vst [vmem:[#allocation69_spill] sm:$0xff] %v7596_v4  ;;  %10128 = vst [vmem:[#allocation70_spill] sm:$0xff] %v7601_v31  ;;  %v7611_v48 = vmul.f32 %v10107_v42, %v2752_v6  ;;  %v2850_v57 = vmul.f32 %v5586_v14, %v7582_v10  ;;  %5432 = vrcp.f32 %v2720_v18  ;;  %v7622_v50 = vsel %vm1874_vm2, %v7526_v3, 0.0 }
 0x300   : > { %v2882_v2 = vmul.f32 %v5587_v49, %v2818_v1  ;;  %10129 = vst [vmem:[#allocation71_spill] sm:$0xff] %v7622_v50  ;;  %v7625_v30 = vmul.f32 %v10107_v42, %v2755_v39  ;;  %v2819_v6 = vsub.f32 %v10107_v42, %v7590_v60  ;;  %v2944_v59 = vadd.f32 %v2943_v52, %v2942_v13  ;;  %v5589_v49 = vld [vmem:[%s9880_s5 + $0x1a] ss:$0 sm:$0xff] }
 0x301   : > { %v3000_v62 = vadd.f32 %v2999_v24, %v2998_v9  ;;  %v2722_v27 = vmul.f32 %v7318_v44, %v7135_v37  ;;  %v3001_v25 = vsel %vm1874_vm2, %v7399_v58, 0.0  ;;  %v2797_v39 = vsub.f32 %v6047_v36, %v7310_v21  ;;  %v5588_v24 = vld [vmem:[%s9879_s4 + $0x18] ss:$0 sm:$0xff] }
 0x302   : > { %10130 = vst [vmem:[#allocation72_spill] sm:$0xff] %v7625_v30  ;;  %v2914_v18 = vsub.f32 %v2850_v57, %v2882_v2  ;;  %v2946_v1 = vadd.f32 %v2945_v16, %v2944_v59  ;;  %v2801_v14 = vsub.f32 %v6052_v38, %v7374_v22  ;;  %v2817_v52 = vsub.f32 %v10107_v42, %v7611_v48 }
 0x303   : > { %v7643_v9 = vmul.f32 %v6045_v35, %v2722_v27  ;;  %v2805_v37 = vsub.f32 %v6057_v40, %v7396_v34  ;;  %v7653_v57 = vmul.f32 %v5588_v24, %v7611_v48  ;;  %v2883_v2 = vmul.f32 %v5589_v49, %v2819_v6  ;;  %v5591_v24 = vld [vmem:[%s9879_s4 + $0x4] ss:$0 sm:$0xff] }
 0x304   : > { %v2947_v13 = vsel %vm1874_vm2, %v2914_v18, 0.0  ;;  %v5590_v18 = vld [vmem:[%s9879_s4 + $0x1a] ss:$0 sm:$0xff]  ;;  %v2829_v16 = vmul.f32 %v5591_v24, %v7310_v21  ;;  %v5592_v6 = vld [vmem:[%s9880_s5 + $0x4] ss:$0 sm:$0xff]  ;;  %v3003_v3 = vsel %vm1874_vm2, %v7418_v19, 0.0 }
 0x305   : > { %v7658_v59 = vadd.f32 %v2947_v13, %v2946_v1  ;;  %v2851_v27 = vmul.f32 %v5590_v18, %v7590_v60  ;;  %v2793_v33 = vsub.f32 %v6045_v35, %v7643_v9  ;;  %v2861_v1 = vmul.f32 %v5592_v6, %v2797_v39  ;;  %v5593_v13 = vld [vmem:[%s9879_s4 + $0x1b] ss:$0 sm:$0xff]  ;;  %v5594_v24 = vld [vmem:[%s9880_s5 + $0x8] ss:$0 sm:$0xff]  ;;  %v5595_v39 = vld [vmem:[%s9879_s4] ss:$0 sm:$0xff] }
 0x306   : > { %v7677_v49 = vmul.f32 %v5593_v13, %v7625_v30  ;;  %v3002_v18 = vadd.f32 %v3001_v25, %v3000_v62  ;;  %v2865_v58 = vmul.f32 %v5594_v24, %v2801_v14  ;;  %v2825_v6 = vmul.f32 %v5595_v39, %v7643_v9  ;;  %v5596_v13 = vld [vmem:[%s9880_s5] ss:$0 sm:$0xff]  ;;  %v5597_v62 = vld [vmem:[%s9880_s5 + $0xc] ss:$0 sm:$0xff]  ;;  %v5598_v24 = vld [vmem:[%s9879_s4 + $0x8] ss:$0 sm:$0xff] }
 0x307   : > { %10131 = vst [vmem:[#allocation73_spill] sm:$0xff] %v7658_v59  ;;  %v2857_v7 = vmul.f32 %v5596_v13, %v2793_v33  ;;  %v2869_v25 = vmul.f32 %v5597_v62, %v2805_v37  ;;  %v2893_v19 = vsub.f32 %v2829_v16, %v2861_v1  ;;  %v2915_v47 = vsub.f32 %v2851_v27, %v2883_v2  ;;  %v5599_v33 = vld [vmem:[%s9880_s5 + $0x10] ss:$0 sm:$0xff]  ;;  %v5600_v16 = vld [vmem:[%s9879_s4 + $0xc] ss:$0 sm:$0xff] }
 0x308   : > { %10132 = vst [vmem:[#allocation74_spill] sm:$0xff] %v7677_v49  ;;  %v3005_v14 = vsel %vm1874_vm2, %v7495_v26, 0.0  ;;  %v2833_v39 = vmul.f32 %v5598_v24, %v7374_v22  ;;  %v10133_v13 = vsub.f32 %v6064_v43, %v7465_v5  ;;  %v2837_v2 = vmul.f32 %v5600_v16, %v7396_v34  ;;  %v5601_v27 = vld [vmem:[%s9879_s4 + $0x10] ss:$0 sm:$0xff]  ;;  %v5602_v62 = vld [vmem:[%s9880_s5 + $0x14] ss:$0 sm:$0xff] }
 0x309   : > { %v5433_v37 = vpop.eup %5432  ;;  %v2841_v1 = vmul.f32 %v5601_v27, %v7465_v5  ;;  %v10134_v24 = vsub.f32 %v10105_v29, %v7520_v28  ;;  %v5603_v16 = vld [vmem:[%s9880_s5 + $0x18] ss:$0 sm:$0xff]  ;;  %v2922_v50 = vsel %vm1874_vm2, %v2893_v19, 0.0  ;;  %v3004_v30 = vadd.f32 %v3003_v3, %v3002_v18 }
 0x30a   : > { %v2873_v31 = vmul.f32 %v5599_v33, %v10133_v13  ;;  %v2889_v13 = vsub.f32 %v2825_v6, %v2857_v7  ;;  %v2758_v4 = vmul.f32 %v5433_v37, %v7528_v51  ;;  %v2881_v49 = vmul.f32 %v5603_v16, %v2817_v52 }
 0x30b   : > { %v2877_v33 = vmul.f32 %v5602_v62, %v10134_v24  ;;  %v2897_v59 = vsub.f32 %v2833_v39, %v2865_v58  ;;  %v2757_v27 = vmul.f32 %v5433_v37, %v7513_v20  ;;  %v3007_v42 = vsel %vm1874_vm2, %v7582_v10, 0.0 }
 0x30c   : > { %v2901_v26 = vsub.f32 %v2837_v2, %v2869_v25  ;;  %v2759_v62 = vmul.f32 %v5433_v37, %v7540_v15  ;;  %v2760_v7 = vmul.f32 %v5433_v37, %v7549_v45  ;;  %v2905_v51 = vsub.f32 %v2841_v1, %v2873_v31 }
 0x30d   : > { %v2921_v6 = vsel %vm1874_vm2, %v2889_v13, 0.0  ;;  %v7732_v24 = vmul.f32 %v10109_v17, %v2758_v4  ;;  %v3006_v58 = vadd.f32 %v3005_v14, %v3004_v30  ;;  %v2909_v19 = vsub.f32 %v7568_v32, %v2877_v33 }
 0x30e   : > { %v2923_v52 = vadd.f32 %v2922_v50, %v2921_v6  ;;  %v7737_v20 = vsel %vm1874_vm2, %v7590_v60, 0.0  ;;  %v2913_v3 = vsub.f32 %v7653_v57, %v2881_v49  ;;  %v2924_v15 = vsel %vm1874_vm2, %v2897_v59, 0.0 }
 0x30f   : > { %v2982_v45 = vsel %vm1874_vm2, %v7310_v21, 0.0  ;;  %v7744_v31 = vsel %vm1874_vm2, %v2915_v47, 0.0  ;;  %v7747_v4 = vmul.f32 %v10109_v17, %v2757_v27  ;;  %v3008_v30 = vadd.f32 %v3007_v42, %v3006_v58 }
 0x310   : > { %v2981_v32 = vsel %vm1874_vm2, %v7643_v9, 0.0  ;;  %v7752_v50 = vmul.f32 %v10109_v17, %v2759_v62  ;;  %v7755_v57 = vmul.f32 %v10109_v17, %v2760_v7  ;;  %v2926_v59 = vsel %vm1874_vm2, %v2901_v26, 0.0 }
 0x311   : > { %v2928_v49 = vsel %vm1874_vm2, %v2905_v51, 0.0  ;;  %v3009_v47 = vsel %vm1874_vm2, %v7732_v24, 0.0  ;;  %v2925_v18 = vadd.f32 %v2924_v15, %v2923_v52  ;;  %v2930_v25 = vsel %vm1874_vm2, %v2909_v19, 0.0 }
 0x312   : > { %v2983_v42 = vadd.f32 %v2982_v45, %v2981_v32  ;;  %v3010_v14 = vadd.f32 %v3009_v47, %v3008_v30  ;;  %v2932_v39 = vsel %vm1874_vm2, %v2913_v3, 0.0  ;;  %v2984_v37 = vsel %vm1874_vm2, %v7374_v22, 0.0 }
 0x313   : > { %v2986_v2 = vsel %vm1874_vm2, %v7396_v34, 0.0  ;;  %v2821_v26 = vsub.f32 %v10109_v17, %v7747_v4  ;;  %v2822_v1 = vsub.f32 %v10109_v17, %v7732_v24  ;;  %v2927_v33 = vadd.f32 %v2926_v59, %v2925_v18  ;;  %v5605_v18 = vld [vmem:[%s9880_s5 + $0x6] ss:$0 sm:$0xff] }
 0x314   : > { %v2985_v13 = vadd.f32 %v2984_v37, %v2983_v42  ;;  %v2823_v16 = vsub.f32 %v10109_v17, %v7752_v50  ;;  %v2824_v27 = vsub.f32 %v10109_v17, %v7755_v57  ;;  %v3042_v62 = vadd.f32 1e-05, %v3010_v14  ;;  %v5606_v42 = vld [vmem:[%s9880_s5 + $0xa] ss:$0 sm:$0xff] }
 0x315   : > { %v2988_v7 = vsel %vm1874_vm2, %v7465_v5, 0.0  ;;  %v2929_v51 = vadd.f32 %v2928_v49, %v2927_v33  ;;  %v2724_v58 = vmul.f32 %v7318_v44, %v7194_v63  ;;  %v2799_v19 = vsub.f32 %v6047_v36, %v7316_v41  ;;  %v5604_v49 = vld [vmem:[%s9879_s4 + $0x6] ss:$0 sm:$0xff] }
 0x316   : > { %v2987_v6 = vadd.f32 %v2986_v2, %v2985_v13  ;;  %5434 = vrcp.f32 %v3042_v62  ;;  %v2990_v52 = vsel %vm1874_vm2, %v7520_v28, 0.0  ;;  %v2803_v3 = vsub.f32 %v6052_v38, %v7383_v53  ;;  %v5607_v13 = vld [vmem:[%s9879_s4 + $0xa] ss:$0 sm:$0xff]  ;;  %v10195_v38 = vld [vmem:[#allocation40_spill] sm:$0xff] }
 0x317   : > { %v2807_v15 = vsub.f32 %v6057_v40, %v7407_v0  ;;  %v2931_v45 = vadd.f32 %v2930_v25, %v2929_v51  ;;  %v2992_v32 = vsel %vm1874_vm2, %v7611_v48, 0.0  ;;  %v7790_v63 = vmul.f32 %v6045_v35, %v2724_v58  ;;  %v5610_v58 = vld [vmem:[%s9880_s5 + $0x12] ss:$0 sm:$0xff] }
 0x318   : > { %v2989_v30 = vadd.f32 %v2988_v7, %v2987_v6  ;;  %v2994_v59 = vsel %vm1874_vm2, %v7747_v4, 0.0  ;;  %v2831_v47 = vmul.f32 %v5604_v49, %v7316_v41  ;;  %v2863_v25 = vmul.f32 %v5605_v18, %v2799_v19  ;;  %v5608_v7 = vld [vmem:[%s9879_s4 + $0xe] ss:$0 sm:$0xff] }
 0x319   : > { %v2867_v14 = vmul.f32 %v5606_v42, %v2803_v3  ;;  %v7804_v37 = vadd.f32 %v2932_v39, %v2931_v45  ;;  %v2795_v33 = vsub.f32 %v6045_v35, %v7790_v63  ;;  %v2835_v62 = vmul.f32 %v5607_v13, %v7383_v53  ;;  %v5609_v39 = vld [vmem:[%s9880_s5 + $0xe] ss:$0 sm:$0xff]  ;;  %v5613_v13 = vld [vmem:[%s9879_s4 + $0x12] ss:$0 sm:$0xff] }
 0x31a   : > { %v2991_v2 = vadd.f32 %v2990_v52, %v2989_v30  ;;  %v2839_v51 = vmul.f32 %v5608_v7, %v7407_v0  ;;  %v2871_v6 = vmul.f32 %v5609_v39, %v2807_v15  ;;  %v10135_v19 = vsub.f32 %v6064_v43, %v7484_v8  ;;  %v5611_v30 = vld [vmem:[%s9879_s4 + $0x2] ss:$0 sm:$0xff] }
 0x31b   : > { %v2895_v3 = vsub.f32 %v2831_v47, %v2863_v25  ;;  %v2827_v49 = vmul.f32 %v5611_v30, %v7790_v63  ;;  %v5612_v15 = vld [vmem:[%s9880_s5 + $0x2] ss:$0 sm:$0xff]  ;;  %v2899_v42 = vsub.f32 %v2835_v62, %v2867_v14  ;;  %v2843_v7 = vmul.f32 %v5613_v13, %v7484_v8 }
 0x31c   : > { %v2875_v52 = vmul.f32 %v5610_v58, %v10135_v19  ;;  %v2993_v45 = vadd.f32 %v2992_v32, %v2991_v2  ;;  %v2859_v18 = vmul.f32 %v5612_v15, %v2795_v33  ;;  %v5614_v32 = vld [vmem:[%s9880_s5 + $0x16] ss:$0 sm:$0xff]  ;;  %v10136_v47 = vsub.f32 %v10105_v29, %v7523_v56  ;;  %v5615_v19 = vld [vmem:[%s9880_s5 + $0x1e] ss:$0 sm:$0xff] }
 0x31d   : > { %v2903_v2 = vsub.f32 %v2839_v51, %v2871_v6  ;;  %v3011_v39 = vsel %vm1874_vm2, %v7790_v63, 0.0  ;;  %v2952_v62 = vsel %vm1874_vm2, %v2895_v3, 0.0  ;;  %v3012_v58 = vsel %vm1874_vm2, %v7316_v41, 0.0 }
 0x31e   : > { %v2879_v25 = vmul.f32 %v5614_v32, %v10136_v47  ;;  %v2995_v33 = vadd.f32 %v2994_v59, %v2993_v45  ;;  %v2891_v14 = vsub.f32 %v2827_v49, %v2859_v18  ;;  %v2887_v30 = vmul.f32 %v5615_v19, %v2823_v16  ;;  %v5619_v19 = vld [vmem:[%s9880_s5 + $0x1c] ss:$0 sm:$0xff] }
 0x31f   : > { %v2907_v15 = vsub.f32 %v2843_v7, %v2875_v52  ;;  %v2954_v13 = vsel %vm1874_vm2, %v2899_v42, 0.0  ;;  %v3013_v32 = vadd.f32 %v3012_v58, %v3011_v39  ;;  %v3014_v59 = vsel %vm1874_vm2, %v7383_v53, 0.0  ;;  %v5616_v39 = vld [vmem:[%s9879_s4 + $0x1c] ss:$0 sm:$0xff] }
 0x320   : > { %v3041_v51 = vadd.f32 1e-05, %v2995_v33  ;;  %v2951_v6 = vsel %vm1874_vm2, %v2891_v14, 0.0  ;;  %v3016_v3 = vsel %vm1874_vm2, %v7407_v0, 0.0  ;;  %v7856_v45 = vpop.eup %5434  ;;  %v2911_v49 = vsub.f32 %v7578_v61, %v2879_v25  ;;  %v5617_v25 = vld [vmem:[%s9879_s4 + $0x1d] ss:$0 sm:$0xff] }
 0x321   : > { %v2953_v18 = vadd.f32 %v2952_v62, %v2951_v6  ;;  %v2956_v16 = vsel %vm1874_vm2, %v2903_v2, 0.0  ;;  %v3015_v52 = vadd.f32 %v3014_v59, %v3013_v32  ;;  %v3048_v42 = vmul.f32 %v7856_v45, %v7389_v23 }
 0x322   : > { %5436 = vrcp.f32 %v3041_v51  ;;  %v3018_v7 = vsel %vm1874_vm2, %v7484_v8, 0.0  ;;  %v2725_v47 = vmul.f32 %v7318_v44, %v7198_v54  ;;  %v7870_v61 = vmul.f32 %v5616_v39, %v7747_v4  ;;  %v5618_v54 = vld [vmem:[%s9879_s4 + $0x1e] ss:$0 sm:$0xff] }
 0x323   : > { %v7876_v23 = vmul.f32 %v5617_v25, %v7732_v24  ;;  %v2955_v2 = vadd.f32 %v2954_v13, %v2953_v18  ;;  %v3017_v33 = vadd.f32 %v3016_v3, %v3015_v52  ;;  %v2855_v44 = vmul.f32 %v5618_v54, %v7752_v50  ;;  %3088 = vperm.xlu0 %5286, %v3048_v42  }
 0x324   : > { %v2958_v14 = vsel %vm1874_vm2, %v2907_v15, 0.0  ;;  %v3020_v62 = vsel %vm1874_vm2, %v7523_v56, 0.0  ;;  %v7886_v58 = vmul.f32 %v6045_v35, %v2725_v47  ;;  %v2885_v13 = vmul.f32 %v5619_v19, %v2821_v26  ;;  %v5620_v15 = vld [vmem:[%s9880_s5 + $0x1d] ss:$0 sm:$0xff] }
 0x325   : > { %v2957_v32 = vadd.f32 %v2956_v16, %v2955_v2  ;;  %v3019_v51 = vadd.f32 %v3018_v7, %v3017_v33  ;;  %v3027_v6 = vsel %vm1874_vm2, %v7293_v46, 0.0  ;;  %v2886_v59 = vmul.f32 %v5620_v15, %v2822_v1  ;;  %v5621_v1 = vld [vmem:[%s9880_s5 + $0x3] ss:$0 sm:$0xff]  ;;  %v10138_v19 = vld [vmem:[#allocation65_spill] sm:$0xff] }
 0x326   : > { %v2919_v3 = vsub.f32 %v2855_v44, %v2887_v30  ;;  %v2960_v18 = vsel %vm1874_vm2, %v2911_v49, 0.0  ;;  %v2796_v52 = vsub.f32 %v6045_v35, %v7886_v58  ;;  %v3026_v42 = vsel %vm1874_vm2, %v7886_v58, 0.0  ;;  %v5622_v33 = vld [vmem:[%s9879_s4 + $0x3] ss:$0 sm:$0xff]  ;;  %v10137_v44 = vld [vmem:[#allocation56_spill] sm:$0xff] }
 0x327   : > { %v2959_v26 = vadd.f32 %v2958_v14, %v2957_v32  ;;  %v3021_v16 = vadd.f32 %v3020_v62, %v3019_v51  ;;  %v3029_v7 = vsel %vm1874_vm2, %v7296_v55, 0.0  ;;  %v3024_v47 = vsel %vm1874_vm2, %v7752_v50, 0.0  ;;  %v5623_v62 = vld [vmem:[%s9880_s5 + $0x1f] ss:$0 sm:$0xff] }
 0x328   : > { %v2860_v30 = vmul.f32 %v5621_v1, %v2796_v52  ;;  %v2896_v49 = vsub.f32 %v7336_v11, %v7351_v12  ;;  %v3028_v39 = vadd.f32 %v3027_v6, %v3026_v42  ;;  %v2828_v54 = vmul.f32 %v5622_v33, %v7886_v58  ;;  %v10148_v33 = vld [vmem:[#allocation68_spill] sm:$0xff] }
 0x329   : > { %v2961_v25 = vadd.f32 %v2960_v18, %v2959_v26  ;;  %v3023_v2 = vadd.f32 %v7737_v20, %v3021_v16  ;;  %v3031_v14 = vsel %vm1874_vm2, %v10137_v44, 0.0  ;;  %v2888_v11 = vmul.f32 %v5623_v62, %v2824_v27 }
 0x32a   : > { %v2964_v12 = vsel %vm1874_vm2, %v2919_v3, 0.0  ;;  %v3030_v20 = vadd.f32 %v3029_v7, %v3028_v39  ;;  %v7932_v32 = vmul.f32 %v7856_v45, %v10138_v19  ;;  %v2892_v15 = vsub.f32 %v2828_v54, %v2860_v30  ;;  %v10139_v7 = vld [vmem:[#allocation20_spill] sm:$0xff] }
 0x32b   : > { %v2963_v51 = vadd.f32 %v7744_v31, %v2961_v25  ;;  %v3025_v6 = vadd.f32 %v3024_v47, %v3023_v2  ;;  %v7937_v18 = vmul.f32 %v7856_v45, %v7582_v10  ;;  %v7943_v27 = vmul.f32 %v7856_v45, %v7732_v24  ;;  %v5624_v10 = vld [vmem:[%s9880_s5 + $0x1b] ss:$0 sm:$0xff]  ;;  %v10140_v47 = vld [vmem:[#allocation72_spill] sm:$0xff]  ;;  %v10143_v25 = vld [vmem:[#allocation23_spill] sm:$0xff] }
 0x32c   : > { %v7939_v52 = vpop.eup %5436  ;;  %v3032_v26 = vadd.f32 %v3031_v14, %v3030_v20  ;;  %v2917_v3 = vsub.f32 %v7870_v61, %v2885_v13  ;;  %v2918_v16 = vsub.f32 %v7876_v23, %v2886_v59  ;;  %v10141_v1 = vsub.f32 %v10139_v7, %v10140_v47  ;;  %v10142_v24 = vld [vmem:[#allocation57_spill] sm:$0xff]  ;;  %v10145_v23 = vld [vmem:[#allocation60_spill] sm:$0xff]  ;;  %v10146_v13 = vld [vmem:[#allocation62_spill] sm:$0xff] }
 0x32d   : > { %v3046_v31 = vmul.f32 %v7939_v52, %v7643_v9  ;;  %v3043_v42 = vadd.f32 1e-05, %v3025_v6  ;;  %v2967_v39 = vsel %vm1874_vm2, %v2896_v49, 0.0  ;;  %v10144_v2 = vsub.f32 %v10142_v24, %v10143_v25  ;;  %v10149_v6 = vld [vmem:[#allocation71_spill] sm:$0xff]  ;;  %v10192_v7 = vld [vmem:[#allocation28_spill] sm:$0xff] }
 0x32e   : > { %v2884_v30 = vmul.f32 %v5624_v10, %v10141_v1  ;;  %v10147_v59 = vsub.f32 %v10145_v23, %v10146_v13  ;;  %v3034_v54 = vadd.f32 %v10148_v33, %v3032_v26  ;;  %v3037_v14 = vsel %vm1874_vm2, %v10140_v47, 0.0  ;;  %v10155_v23 = vld [vmem:[#allocation64_spill] sm:$0xff] }
 0x32f   : > { %v2969_v61 = vsel %vm1874_vm2, %v10144_v2, 0.0  ;;  %3083 = vperm.xlu1 %5287, %v3046_v31   ;;  %5438 = vrcp.f32 %v3043_v42  ;;  %v2966_v62 = vsel %vm1874_vm2, %v2892_v15, 0.0  ;;  %v3039_v49 = vsel %vm1874_vm2, %v7755_v57, 0.0  ;;  %v10151_v15 = vld [vmem:[#allocation73_spill] sm:$0xff] }
 0x330   : > { %v2971_v9 = vsel %vm1874_vm2, %v10147_v59, 0.0  ;;  %v7972_v20 = vmul.f32 %v7939_v52, %v7747_v4  ;;  %v2968_v19 = vadd.f32 %v2967_v39, %v2966_v62  ;;  %v3036_v10 = vadd.f32 %v10149_v6, %v3034_v54  ;;  %v10154_v39 = vld [vmem:[#allocation66_spill] sm:$0xff] }
 0x331   : > { %v2934_v1 = vsel %vm1874_vm2, %v2917_v3, 0.0  ;;  %v2949_v26 = vsel %vm1874_vm2, %v2918_v16, 0.0  ;;  %v3053_v31 = vmul.f32 %v7939_v52, %v7310_v21  ;;  %v7985_v25 = vadd.f32 %v2964_v12, %v2963_v51  ;;  %v5625_v16 = vld [vmem:[%s9879_s4 + $0x1f] ss:$0 sm:$0xff]  ;;  %v10159_v51 = vld [vmem:[#allocation70_spill] sm:$0xff] }
 0x332   : > { %v7980_v42 = vadd.f32 %v2934_v1, %v7804_v37  ;;  %v7983_v24 = vadd.f32 %v2949_v26, %v10151_v15  ;;  %v2970_v4 = vadd.f32 %v2969_v61, %v2968_v19  ;;  %v3038_v2 = vadd.f32 %v3037_v14, %v3036_v10  ;;  %v10157_v37 = vld [vmem:[#allocation74_spill] sm:$0xff]  ;;  %v10158_v12 = vld [vmem:[#allocation69_spill] sm:$0xff] }
 0x333   : > { %10153 = vst [vmem:[#allocation72_spill] sm:$0xff] %v7985_v25  ;;  %v10156_v13 = vsub.f32 %v10154_v39, %v10155_v23  ;;  %v2856_v21 = vmul.f32 %v5625_v16, %v7755_v57  ;;  %3103 = vperm.xlu1 %5287, %v3053_v31   ;;  %v2916_v59 = vsub.f32 %v10157_v37, %v2884_v30  ;;  %v10161_v62 = vld [vmem:[#allocation22_spill] sm:$0xff] }
 0x334   : > { %10150 = vst [vmem:[#allocation56_spill] sm:$0xff] %v7980_v42  ;;  %10152 = vst [vmem:[#allocation65_spill] sm:$0xff] %v7983_v24  ;;  %v2972_v33 = vadd.f32 %v2971_v9, %v2970_v4  ;;  %v3040_v54 = vadd.f32 %v3039_v49, %v3038_v2  ;;  %v10160_v61 = vsub.f32 %v10158_v12, %v10159_v51  ;;  %v10163_v39 = vld [vmem:[#allocation58_spill] sm:$0xff] }
 0x335   : > { %v2973_v3 = vsel %vm1874_vm2, %v10156_v13, 0.0  ;;  %v3054_v19 = vmul.f32 %v7856_v45, %v10161_v62  ;;  %v2920_v6 = vsub.f32 %v2856_v21, %v2888_v11  ;;  %v2977_v26 = vsel %vm1874_vm2, %v2916_v59, 0.0 }
 0x336   : > { %v2975_v14 = vsel %vm1874_vm2, %v10160_v61, 0.0  ;;  %v2974_v10 = vadd.f32 %v2973_v3, %v2972_v33  ;;  %v3044_v1 = vadd.f32 1e-05, %v3040_v54  ;;  %v3057_v11 = vmul.f32 %v7939_v52, %v7374_v22  ;;  %v10164_v22 = vld [vmem:[#allocation59_spill] sm:$0xff] }
 0x337   : > { %3108 = vperm.xlu1 %5287, %v3054_v19   ;;  %v2979_v30 = vsel %vm1874_vm2, %v2920_v6, 0.0  ;;  %v3058_v23 = vmul.f32 %v7856_v45, %v10163_v39  ;;  %v3061_v16 = vmul.f32 %v7939_v52, %v7396_v34  ;;  %v3062_v21 = vmul.f32 %v7856_v45, %v10164_v22  ;;  %v10184_v22 = vld [vmem:[#allocation35_spill] sm:$0xff] }
 0x338   : > { %v2976_v15 = vadd.f32 %v2975_v14, %v2974_v10  ;;  %5440 = vrcp.f32 %v3044_v1 }
 0x339   : > { %v5439_v31 = vpop.eup %5438 }
 0x33a   : > { %v3050_v9 = vmul.f32 %v5439_v31, %v7790_v63  ;;  %v2978_v49 = vadd.f32 %v2977_v26, %v2976_v15  ;;  %v3055_v4 = vmul.f32 %v5439_v31, %v7316_v41  ;;  %v3059_v41 = vmul.f32 %v5439_v31, %v7383_v53  ;;  %v10165_v53 = vld [vmem:[#allocation61_spill] sm:$0xff] }
 0x33b   : > { %v3066_v59 = vmul.f32 %v7856_v45, %v10165_v53  ;;  %v3067_v33 = vmul.f32 %v5439_v31, %v7484_v8  ;;  %v3073_v45 = vmul.f32 %v7939_v52, %v7611_v48  ;;  %v3075_v8 = vmul.f32 %v5439_v31, %v7590_v60  ;;  %v10176_v15 = vld [vmem:[#allocation25_spill] sm:$0xff] }
 0x33c   : > { %3093 = vperm.xlu0 %5286, %v3050_v9   ;;  %3113 = vperm.xlu1 %5287, %v3055_v4   ;;  %v8006_v2 = vadd.f32 %v2979_v30, %v2978_v49  ;;  %v10179_v49 = vld [vmem:[#allocation24_spill] sm:$0xff] }
 0x33e   : > { %10162 = vst [vmem:[#allocation57_spill] sm:$0xff] %v8006_v2 }
 0x340   : > { %3123 = vperm.xlu0 %5286, %v3057_v11   ;;  %3128 = vperm.xlu1 %5287, %v3058_v23   ;;  %v10180_v11 = vld [vmem:[#allocation33_spill] sm:$0xff]  ;;  %v10181_v23 = vld [vmem:[#allocation26_spill] sm:$0xff] }
 0x342   : > { %v5441_v13 = vpop.eup %5440 }
 0x343   : > { %v3052_v3 = vmul.f32 %v5441_v13, %v7886_v58  ;;  %v3056_v63 = vmul.f32 %v5441_v13, %v7293_v46  ;;  %v3060_v37 = vmul.f32 %v5441_v13, %v7296_v55  ;;  %v3063_v58 = vmul.f32 %v5439_v31, %v7407_v0  ;;  %v10166_v0 = vld [vmem:[#allocation63_spill] sm:$0xff] }
 0x344   : > { %v3065_v46 = vmul.f32 %v7939_v52, %v7465_v5  ;;  %v3064_v34 = vmul.f32 %v5441_v13, %v10137_v44  ;;  %v3069_v55 = vmul.f32 %v7939_v52, %v7520_v28  ;;  %v3068_v54 = vmul.f32 %v5441_v13, %v10166_v0  ;;  %v10167_v44 = vld [vmem:[#allocation67_spill] sm:$0xff] }
 0x345   : > { %3098 = vperm.xlu0 %5286, %v3052_v3   ;;  %3118 = vperm.xlu1 %5287, %v3056_v63   ;;  %v3071_v5 = vmul.f32 %v5439_v31, %v7523_v56  ;;  %v3072_v12 = vmul.f32 %v5441_v13, %v10167_v44  ;;  %v3076_v28 = vmul.f32 %v5441_v13, %v10140_v47  ;;  %v10182_v3 = vld [vmem:[#allocation34_spill] sm:$0xff] }
 0x346   : > { %v3079_v56 = vmul.f32 %v5439_v31, %v7752_v50  ;;  %v3080_v48 = vmul.f32 %v5441_v13, %v7755_v57 }
 0x349   : > { %3133 = vperm.xlu0 %5286, %v3059_v41   ;;  %3143 = vperm.xlu1 %5287, %v3061_v16   ;;  %v10183_v41 = vld [vmem:[#allocation32_spill] sm:$0xff] }
 0x34d   : > { %3148 = vperm.xlu0 %5286, %v3062_v21   ;;  %3138 = vperm.xlu1 %5287, %v3060_v37  }
 0x351   : > { %3153 = vperm.xlu0 %5286, %v3063_v58   ;;  %3163 = vperm.xlu1 %5287, %v3065_v46   ;;  %v10185_v58 = vld [vmem:[#allocation39_spill] sm:$0xff] }
 0x355   : > { %3168 = vperm.xlu0 %5286, %v3066_v59   ;;  %3158 = vperm.xlu1 %5287, %v3064_v34  }
 0x359   : > { %3173 = vperm.xlu0 %5286, %v3067_v33   ;;  %3183 = vperm.xlu1 %5287, %v3069_v55   ;;  %v10187_v55 = vld [vmem:[#allocation36_spill] sm:$0xff] }
 0x35d   : > { %3188 = vperm.xlu0 %5286, %v7932_v32   ;;  %3178 = vperm.xlu1 %5287, %v3068_v54  }
 0x361   : > { %3193 = vperm.xlu0 %5286, %v3071_v5   ;;  %3203 = vperm.xlu1 %5287, %v3073_v45   ;;  %v10188_v45 = vld [vmem:[#allocation41_spill] sm:$0xff] }
 0x365   : > { %3208 = vperm.xlu0 %5286, %v7937_v18   ;;  %3198 = vperm.xlu1 %5287, %v3072_v12   ;;  %v10189_v12 = vld [vmem:[#allocation27_spill] sm:$0xff] }
 0x369   : > { %3213 = vperm.xlu0 %5286, %v3075_v8   ;;  %3223 = vperm.xlu1 %5287, %v7972_v20  }
 0x36d   : > { %3228 = vperm.xlu0 %5286, %v7943_v27   ;;  %3218 = vperm.xlu1 %5287, %v3076_v28  }
 0x371   : > { %3233 = vperm.xlu0 %5286, %v3079_v56   ;;  %3238 = vperm.xlu1 %5287, %v3080_v48   ;;  %v10190_v48 = vld [vmem:[#allocation37_spill] sm:$0xff] }
 0x3a2   : > { %v8046_v52 = vpop.permute.xlu0 %3088 }
 0x3a3   : > { %v3242_v16 = vmul.f32 %v8046_v52, %v10183_v41 }
 0x3a5   : > { %v3288_v28 = vsel %vm2032_vm3, %v3242_v16, 0.0 }
 0x3ae   : > { %v8042_v32 = vpop.permute.xlu1 %3083 }
 0x3af   : > { %v3241_v4 = vmul.f32 %v8042_v32, %v10179_v49 }
 0x3b1   : > { %v3273_v34 = vsel %vm2032_vm3, %v3241_v4, 0.0  ;;  %v10191_v4 = vld [vmem:[#allocation38_spill] sm:$0xff] }
 0x3b2   : > { %v8044_v18 = vpop.permute.xlu1 %3103 }
 0x3b3   : > { %v3245_v31 = vmul.f32 %v8044_v18, %v10176_v15 }
 0x3b5   : > { %v3274_v37 = vsel %vm2032_vm3, %v3245_v31, 0.0 }
 0x3b6   : > { %v8048_v60 = vpop.permute.xlu1 %3108  ;;  %v3275_v56 = vadd.f32 %v3274_v37, %v3273_v34 }
 0x3b7   : > { %v3246_v39 = vmul.f32 %v8048_v60, %v10180_v11 }
 0x3b9   : > { %v3289_v33 = vsel %vm2032_vm3, %v3246_v39, 0.0 }
 0x3bb   : > { %v8050_v20 = vpop.permute.xlu0 %3093  ;;  %v8052_v47 = vpop.permute.xlu1 %3113 }
 0x3bc   : > { %v3247_v63 = vmul.f32 %v8052_v47, %v10182_v3  ;;  %v3243_v21 = vmul.f32 %v8050_v20, %v10184_v22 }
 0x3be   : > { %v3304_v5 = vsel %vm2032_vm3, %v3247_v63, 0.0  ;;  %v3303_v17 = vsel %vm2032_vm3, %v3243_v21, 0.0  ;;  %v10196_v21 = vld [vmem:[#allocation43_spill] sm:$0xff] }
 0x3bf   : > { %v8054_v27 = vpop.permute.xlu0 %3123  ;;  %v8056_v51 = vpop.permute.xlu1 %3128  ;;  %v3305_v37 = vadd.f32 %v3304_v5, %v3303_v17 }
 0x3c0   : > { %10168 = vst [vmem:[#allocation23_spill] sm:$0xff] %v8054_v27  ;;  %v3249_v13 = vmul.f32 %v8054_v27, %v10181_v23  ;;  %v3250_v46 = vmul.f32 %v8056_v51, %v10185_v58 }
 0x3c2   : > { %v3276_v54 = vsel %vm2032_vm3, %v3249_v13, 0.0  ;;  %v3290_v13 = vadd.f32 %v3289_v33, %v3288_v28  ;;  %v3291_v63 = vsel %vm2032_vm3, %v3250_v46, 0.0  ;;  %v10197_v28 = vld [vmem:[#allocation29_spill] sm:$0xff] }
 0x3c3   : > { %v3277_v16 = vadd.f32 %v3276_v54, %v3275_v56  ;;  %v10198_v54 = vld [vmem:[#allocation42_spill] sm:$0xff] }
 0x3c4   : > { %v8058_v50 = vpop.permute.xlu0 %3098  ;;  %v8060_v57 = vpop.permute.xlu1 %3118  ;;  %v3292_v24 = vadd.f32 %v3291_v63, %v3290_v13  ;;  %v10202_v63 = vld [vmem:[#allocation47_spill] sm:$0xff] }
 0x3c5   : > { %10169 = vst [vmem:[#allocation60_spill] sm:$0xff] %v8058_v50  ;;  %10170 = vst [vmem:[#allocation62_spill] sm:$0xff] %v8060_v57  ;;  %v3248_v0 = vmul.f32 %v8060_v57, %v10187_v55  ;;  %v3244_v31 = vmul.f32 %v8058_v50, %v10190_v48 }
 0x3c7   : > { %v3319_v34 = vsel %vm2032_vm3, %v3248_v0, 0.0  ;;  %v3318_v25 = vsel %vm2032_vm3, %v3244_v31, 0.0 }
 0x3c8   : > { %v8062_v61 = vpop.permute.xlu0 %3133  ;;  %v8064_v14 = vpop.permute.xlu1 %3143  ;;  %v3320_v5 = vadd.f32 %v3319_v34, %v3318_v25  ;;  %v10203_v34 = vld [vmem:[#allocation44_spill] sm:$0xff] }
 0x3c9   : > { %10171 = vst [vmem:[#allocation68_spill] sm:$0xff] %v8064_v14  ;;  %v3251_v44 = vmul.f32 %v8062_v61, %v10188_v45  ;;  %v3253_v8 = vmul.f32 %v8064_v14, %v10189_v12  ;;  %v10210_v14 = vld [vmem:[#allocation31_spill] sm:$0xff] }
 0x3cb   : > { %v3306_v35 = vsel %vm2032_vm3, %v3251_v44, 0.0  ;;  %v3278_v46 = vsel %vm2032_vm3, %v3253_v8, 0.0  ;;  %v10199_v44 = vld [vmem:[#allocation45_spill] sm:$0xff]  ;;  %v10200_v8 = vld [vmem:[#allocation30_spill] sm:$0xff] }
 0x3cc   : > { %v8066_v62 = vpop.permute.xlu0 %3148  ;;  %v8068_v19 = vpop.permute.xlu1 %3138  ;;  %v3307_v31 = vadd.f32 %v3306_v35, %v3305_v37  ;;  %v3279_v13 = vadd.f32 %v3278_v46, %v3277_v16  ;;  %v10205_v16 = vld [vmem:[#allocation46_spill] sm:$0xff] }
 0x3cd   : > { %10172 = vst [vmem:[#allocation71_spill] sm:$0xff] %v8068_v19  ;;  %v3254_v39 = vmul.f32 %v8066_v62, %v10191_v4  ;;  %v3252_v36 = vmul.f32 %v8068_v19, %v10195_v38 }
 0x3cf   : > { %v3293_v17 = vsel %vm2032_vm3, %v3254_v39, 0.0  ;;  %v3321_v39 = vsel %vm2032_vm3, %v3252_v36, 0.0 }
 0x3d0   : > { %v8070_v6 = vpop.permute.xlu0 %3153  ;;  %v8072_v10 = vpop.permute.xlu1 %3163  ;;  %v3294_v25 = vadd.f32 %v3293_v17, %v3292_v24  ;;  %v3322_v37 = vadd.f32 %v3321_v39, %v3320_v5  ;;  %v10206_v24 = vld [vmem:[#allocation49_spill] sm:$0xff] }
 0x3d1   : > { %10173 = vst [vmem:[#allocation73_spill] sm:$0xff] %v8070_v6  ;;  %10174 = vst [vmem:[#allocation66_spill] sm:$0xff] %v8072_v10  ;;  %v3257_v29 = vmul.f32 %v8072_v10, %v10192_v7  ;;  %v3255_v33 = vmul.f32 %v8070_v6, %v10196_v21 }
 0x3d3   : > { %v3280_v56 = vsel %vm2032_vm3, %v3257_v29, 0.0  ;;  %v3308_v29 = vsel %vm2032_vm3, %v3255_v33, 0.0 }
 0x3d4   : > { %v8074_v1 = vpop.permute.xlu0 %3168  ;;  %v8076_v26 = vpop.permute.xlu1 %3158  ;;  %v3281_v48 = vadd.f32 %v3280_v56, %v3279_v13  ;;  %v10209_v13 = vld [vmem:[#allocation51_spill] sm:$0xff]  ;;  %v3309_v39 = vadd.f32 %v3308_v29, %v3307_v31  ;;  %v10212_v31 = vld [vmem:[#allocation53_spill] sm:$0xff] }
 0x3d5   : > { %10175 = vst [vmem:[#allocation64_spill] sm:$0xff] %v8076_v26  ;;  %v3258_v0 = vmul.f32 %v8074_v1, %v10198_v54  ;;  %v3256_v42 = vmul.f32 %v8076_v26, %v10199_v44 }
 0x3d7   : > { %v3295_v55 = vsel %vm2032_vm3, %v3258_v0, 0.0  ;;  %v3323_v46 = vsel %vm2032_vm3, %v3256_v42, 0.0 }
 0x3d8   : > { %v8080_v30 = vpop.permute.xlu0 %3173  ;;  %v8082_v9 = vpop.permute.xlu1 %3183  ;;  %v3296_v42 = vadd.f32 %v3295_v55, %v3294_v25 }
 0x3d9   : > { %10177 = vst [vmem:[#allocation74_spill] sm:$0xff] %v8080_v30  ;;  %10178 = vst [vmem:[#allocation69_spill] sm:$0xff] %v8082_v9  ;;  %v3261_v2 = vmul.f32 %v8082_v9, %v10197_v28  ;;  %v3259_v26 = vmul.f32 %v8080_v30, %v10203_v34 }
 0x3db   : > { %v3282_v44 = vsel %vm2032_vm3, %v3261_v2, 0.0 }
 0x3dc   : > { %v8099_v53 = vpop.permute.xlu0 %3188  ;;  %v8101_v59 = vpop.permute.xlu1 %3178  ;;  %v3283_v56 = vadd.f32 %v3282_v44, %v3281_v48  ;;  %v3324_v44 = vadd.f32 %v3323_v46, %v3322_v37 }
 0x3dd   : > { %10186 = vst [vmem:[#allocation70_spill] sm:$0xff] %v8101_v59  ;;  %v3262_v38 = vmul.f32 %v8099_v53, %v10202_v63  ;;  %v3260_v36 = vmul.f32 %v8101_v59, %v10205_v16  ;;  %v3310_v59 = vsel %vm2032_vm3, %v3259_v26, 0.0  ;;  %v10211_v16 = vld [vmem:[#allocation50_spill] sm:$0xff] }
 0x3df   : > { %v3297_v0 = vsel %vm2032_vm3, %v3262_v38, 0.0  ;;  %v3325_v27 = vsel %vm2032_vm3, %v3260_v36, 0.0 }
 0x3e0   : > { %v8122_v43 = vpop.permute.xlu0 %3193  ;;  %v8124_v40 = vpop.permute.xlu1 %3203  ;;  %v3298_v48 = vadd.f32 %v3297_v0, %v3296_v42 }
 0x3e1   : > { %10193 = vst [vmem:[#allocation22_spill] sm:$0xff] %v8122_v43  ;;  %10194 = vst [vmem:[#allocation58_spill] sm:$0xff] %v8124_v40  ;;  %v3265_v57 = vmul.f32 %v8124_v40, %v10200_v8  ;;  %v10204_v40 = vld [vmem:[#allocation48_spill] sm:$0xff]  ;;  %v3263_v33 = vmul.f32 %v8122_v43, %v10206_v24 }
 0x3e3   : > { %v3284_v9 = vsel %vm2032_vm3, %v3265_v57, 0.0 }
 0x3e4   : > { %v8142_v19 = vpop.permute.xlu0 %3208  ;;  %v8146_v50 = vpop.permute.xlu1 %3198  ;;  %v3285_v30 = vadd.f32 %v3284_v9, %v3283_v56  ;;  %v10213_v56 = vld [vmem:[#allocation52_spill] sm:$0xff] }
 0x3e5   : > { %10201 = vst [vmem:[#allocation59_spill] sm:$0xff] %v8146_v50  ;;  %v3266_v35 = vmul.f32 %v8142_v19, %v10204_v40  ;;  %v3264_v10 = vmul.f32 %v8146_v50, %v10209_v13  ;;  %v3312_v50 = vsel %vm2032_vm3, %v3263_v33, 0.0 }
 0x3e7   : > { %v3299_v57 = vsel %vm2032_vm3, %v3266_v35, 0.0  ;;  %v3327_v26 = vsel %vm2032_vm3, %v3264_v10, 0.0 }
 0x3e8   : > { %v8163_v17 = vpop.permute.xlu0 %3213  ;;  %v8166_v2 = vpop.permute.xlu1 %3223  ;;  %v3300_v29 = vadd.f32 %v3299_v57, %v3298_v48 }
 0x3e9   : > { %10207 = vst [vmem:[#allocation61_spill] sm:$0xff] %v8163_v17  ;;  %10208 = vst [vmem:[#allocation63_spill] sm:$0xff] %v8166_v2  ;;  %v3269_v5 = vmul.f32 %v8166_v2, %v10210_v14  ;;  %v3267_v43 = vmul.f32 %v8163_v17, %v10211_v16  ;;  %v3311_v2 = vadd.f32 %v3310_v59, %v3309_v39 }
 0x3ea   : > { %v3326_v17 = vadd.f32 %v3325_v27, %v3324_v44 }
 0x3eb   : > { %v3286_v38 = vsel %vm2032_vm3, %v3269_v5, 0.0  ;;  %v3314_v35 = vsel %vm2032_vm3, %v3267_v43, 0.0  ;;  %v3313_v9 = vadd.f32 %v3312_v50, %v3311_v2 }
 0x3ec   : > { %v3229_v13 = vpop.permute.xlu0 %3228  ;;  %v3287_v25 = vadd.f32 %v3286_v38, %v3285_v30  ;;  %v8183_v6 = vpop.permute.xlu1 %3218  ;;  %v8186_v37 = vadd.f32 %v3327_v26, %v3326_v17  ;;  %v10214_v26 = vld [vmem:[#allocation55_spill] sm:$0xff] }
 0x3ed   : > { %v3270_v55 = vmul.f32 %v3229_v13, %v10212_v31  ;;  %v3315_v46 = vadd.f32 %v3314_v35, %v3313_v9  ;;  %v8192_v10 = vmul.f32 %v8183_v6, %v10213_v56 }
 0x3ee   : > { %v3333_v59 = vsub.f32 %v10179_v49, %v3287_v25  ;;  %v3337_v33 = vsub.f32 %v10176_v15, %v3287_v25  ;;  %v3341_v35 = vsub.f32 %v10181_v23, %v3287_v25  ;;  %v3345_v9 = vsub.f32 %v10189_v12, %v3287_v25 }
 0x3ef   : > { %v3301_v36 = vsel %vm2032_vm3, %v3270_v55, 0.0  ;;  %v3357_v23 = vsub.f32 %v10200_v8, %v3287_v25 }
 0x3f0   : > { %v3302_v0 = vadd.f32 %v3301_v36, %v3300_v29  ;;  %v8198_v2 = vpop.permute.xlu0 %3233  ;;  %v8240_v15 = vmul.f32 %v3337_v33, %v3337_v33 }
 0x3f1   : > { %v3271_v29 = vmul.f32 %v8198_v2, %v10214_v26 }
 0x3f2   : > { %v3334_v27 = vsub.f32 %v10183_v41, %v3302_v0  ;;  %v3338_v43 = vsub.f32 %v10180_v11, %v3302_v0  ;;  %v3342_v50 = vsub.f32 %v10185_v58, %v3302_v0  ;;  %v3346_v30 = vsub.f32 %v10191_v4, %v3302_v0 }
 0x3f3   : > { %v3350_v17 = vsub.f32 %v10198_v54, %v3302_v0  ;;  %v3354_v5 = vsub.f32 %v10202_v63, %v3302_v0  ;;  %v3358_v39 = vsub.f32 %v10204_v40, %v3302_v0  ;;  %v3362_v42 = vsub.f32 %v10212_v31, %v3302_v0  ;;  %v10217_v31 = vld [vmem:[#allocation23_spill] sm:$0xff]  ;;  %v10218_v40 = vld [vmem:[#allocation22_spill] sm:$0xff] }
 0x3f4   : > { %v8204_v57 = vmul.f32 %v3334_v27, %v3334_v27  ;;  %v8206_v38 = vmul.f32 %v3338_v43, %v3338_v43  ;;  %v8208_v48 = vmul.f32 %v3342_v50, %v3342_v50  ;;  %v8210_v44 = vmul.f32 %v3346_v30, %v3346_v30  ;;  %v10222_v54 = vld [vmem:[#allocation54_spill] sm:$0xff] }
 0x3f5   : > { %v8212_v55 = vmul.f32 %v3350_v17, %v3350_v17  ;;  %v8218_v36 = vmul.f32 %v3354_v5, %v3354_v5  ;;  %v8226_v50 = vmul.f32 %v3358_v39, %v3358_v39  ;;  %v3349_v30 = vsub.f32 %v10192_v7, %v3287_v25 }
 0x3f6   : > { %v3398_v0 = vmul.f32 %v8204_v57, %v8046_v52  ;;  %v3402_v27 = vmul.f32 %v8206_v38, %v8048_v60  ;;  %v3406_v43 = vmul.f32 %v8208_v48, %v8056_v51  ;;  %v3353_v17 = vsub.f32 %v10197_v28, %v3287_v25 }
 0x3f7   : > { %v8231_v12 = vmul.f32 %v3362_v42, %v3362_v42  ;;  %v3410_v5 = vmul.f32 %v8210_v44, %v8066_v62  ;;  %v3361_v51 = vsub.f32 %v10210_v14, %v3287_v25  ;;  %v8238_v39 = vmul.f32 %v3333_v59, %v3333_v59 }
 0x3f8   : > { %v3444_v52 = vsel %vm2032_vm3, %v3398_v0, 0.0  ;;  %v3445_v60 = vsel %vm2032_vm3, %v3402_v27, 0.0  ;;  %v3414_v28 = vmul.f32 %v8212_v55, %v8074_v1  ;;  %v3418_v42 = vmul.f32 %v8218_v36, %v8099_v53 }
 0x3f9   : > { %v3446_v49 = vadd.f32 %v3445_v60, %v3444_v52  ;;  %v3447_v8 = vsel %vm2032_vm3, %v3406_v43, 0.0  ;;  %v3316_v62 = vsel %vm2032_vm3, %v3271_v29, 0.0  ;;  %v8248_v27 = vmul.f32 %v3341_v35, %v3341_v35 }
 0x3fa   : > { %v3317_v7 = vadd.f32 %v3316_v62, %v3315_v46  ;;  %v8250_v52 = vmul.f32 %v3345_v9, %v3345_v9  ;;  %v3422_v25 = vmul.f32 %v8226_v50, %v8142_v19  ;;  %v3426_v59 = vmul.f32 %v8231_v12, %v3229_v13 }
 0x3fb   : > { %v3448_v0 = vadd.f32 %v3447_v8, %v3446_v49  ;;  %v3449_v1 = vsel %vm2032_vm3, %v3410_v5, 0.0  ;;  %v8256_v33 = vmul.f32 %v3349_v30, %v3349_v30  ;;  %v3451_v8 = vsel %vm2032_vm3, %v3414_v28, 0.0 }
 0x3fc   : > { %v3335_v43 = vsub.f32 %v10184_v22, %v3317_v7  ;;  %v3339_v29 = vsub.f32 %v10182_v3, %v3317_v7  ;;  %v3343_v49 = vsub.f32 %v10188_v45, %v3317_v7  ;;  %v3453_v46 = vsel %vm2032_vm3, %v3418_v42, 0.0 }
 0x3fd   : > { %v3450_v53 = vadd.f32 %v3449_v1, %v3448_v0  ;;  %v3347_v35 = vsub.f32 %v10196_v21, %v3317_v7  ;;  %v3351_v19 = vsub.f32 %v10203_v34, %v3317_v7  ;;  %v3355_v9 = vsub.f32 %v10206_v24, %v3317_v7  ;;  %v10227_v24 = vld [vmem:[#allocation63_spill] sm:$0xff] }
 0x3fe   : > { %v8266_v30 = vmul.f32 %v3335_v43, %v3335_v43  ;;  %v8268_v5 = vmul.f32 %v3339_v29, %v3339_v29  ;;  %v3455_v60 = vsel %vm2032_vm3, %v3422_v25, 0.0  ;;  %v3359_v62 = vsub.f32 %v10211_v16, %v3317_v7 }
 0x3ff   : > { %v3452_v13 = vadd.f32 %v3451_v8, %v3450_v53  ;;  %v8272_v0 = vmul.f32 %v3343_v49, %v3343_v49  ;;  %v8274_v28 = vmul.f32 %v3347_v35, %v3347_v35  ;;  %v3457_v1 = vsel %vm2032_vm3, %v3426_v59, 0.0 }
 0x400   : > { %v3363_v14 = vsub.f32 %v10214_v26, %v3317_v7  ;;  %v3399_v53 = vmul.f32 %v8266_v30, %v8050_v20  ;;  %v8280_v43 = vmul.f32 %v3351_v19, %v3351_v19  ;;  %v3403_v29 = vmul.f32 %v8268_v5, %v8052_v47  ;;  %v10223_v26 = vld [vmem:[#allocation69_spill] sm:$0xff] }
 0x401   : > { %v3454_v42 = vadd.f32 %v3453_v46, %v3452_v13  ;;  %v3407_v25 = vmul.f32 %v8272_v0, %v8062_v61  ;;  %v8286_v49 = vmul.f32 %v3353_v17, %v3353_v17  ;;  %v8288_v35 = vmul.f32 %v3355_v9, %v3355_v9  ;;  %v10215_v46 = vld [vmem:[#allocation73_spill] sm:$0xff] }
 0x402   : > { %v3397_v59 = vmul.f32 %v8238_v39, %v8042_v32  ;;  %v3401_v7 = vmul.f32 %v8240_v15, %v8044_v18  ;;  %v8294_v20 = vmul.f32 %v3359_v62, %v3359_v62  ;;  %v3411_v19 = vmul.f32 %v8274_v28, %v10215_v46 }
 0x403   : > { %v3456_v8 = vadd.f32 %v3455_v60, %v3454_v42  ;;  %v3459_v47 = vsel %vm2032_vm3, %v3399_v53, 0.0  ;;  %v3460_v61 = vsel %vm2032_vm3, %v3403_v29, 0.0  ;;  %v8300_v13 = vmul.f32 %v3363_v14, %v3363_v14  ;;  %v10216_v42 = vld [vmem:[#allocation74_spill] sm:$0xff] }
 0x404   : > { %v3461_v9 = vadd.f32 %v3460_v61, %v3459_v47  ;;  %v8302_v60 = vmul.f32 %v3357_v23, %v3357_v23  ;;  %v3415_v32 = vmul.f32 %v8280_v43, %v10216_v42  ;;  %v3462_v18 = vsel %vm2032_vm3, %v3407_v25, 0.0  ;;  %v10220_v47 = vld [vmem:[#allocation61_spill] sm:$0xff]  ;;  %v10221_v25 = vld [vmem:[#allocation66_spill] sm:$0xff] }
 0x405   : > { %v3458_v17 = vadd.f32 %v3457_v1, %v3456_v8  ;;  %v8307_v62 = vmul.f32 %v3361_v51, %v3361_v51  ;;  %v3405_v46 = vmul.f32 %v8248_v27, %v10217_v31  ;;  %v3419_v53 = vmul.f32 %v8288_v35, %v10218_v40  ;;  %v10219_v1 = vld [vmem:[#allocation68_spill] sm:$0xff]  ;;  %v8316_v8 = vpop.permute.xlu1 %3238 }
 0x406   : > { %v3463_v29 = vadd.f32 %v3462_v18, %v3461_v9  ;;  %v3409_v14 = vmul.f32 %v8250_v52, %v10219_v1  ;;  %v3429_v23 = vsel %vm2032_vm3, %v3397_v59, 0.0  ;;  %v3423_v61 = vmul.f32 %v8294_v20, %v10220_v47 }
 0x407   : > { %v3464_v51 = vsel %vm2032_vm3, %v3411_v19, 0.0  ;;  %v3413_v42 = vmul.f32 %v8256_v33, %v10221_v25  ;;  %v3430_v31 = vsel %vm2032_vm3, %v3401_v7, 0.0  ;;  %v3490_v63 = vadd.f32 1e-05, %v3458_v17 }
 0x408   : > { %v3427_v40 = vmul.f32 %v8300_v13, %v8198_v2  ;;  %v3465_v9 = vadd.f32 %v3464_v51, %v3463_v29  ;;  %v3431_v18 = vadd.f32 %v3430_v31, %v3429_v23  ;;  %v3466_v59 = vsel %vm2032_vm3, %v3415_v32, 0.0  ;;  %v10224_v29 = vld [vmem:[#allocation58_spill] sm:$0xff] }
 0x409   : > { %v3432_v1 = vsel %vm2032_vm3, %v3405_v46, 0.0  ;;  %v3329_v47 = vsel %vm2032_vm3, %v8192_v10, 0.0  ;;  %v3272_v19 = vmul.f32 %v8316_v8, %v10222_v54  ;;  %v3468_v25 = vsel %vm2032_vm3, %v3419_v53, 0.0 }
 0x40a   : > { %v3467_v16 = vadd.f32 %v3466_v59, %v3465_v9  ;;  %v3433_v7 = vadd.f32 %v3432_v1, %v3431_v18  ;;  %v3330_v17 = vadd.f32 %v3329_v47, %v8186_v37  ;;  %v3417_v2 = vmul.f32 %v8286_v49, %v10223_v26  ;;  %v10225_v26 = vld [vmem:[#allocation37_spill] sm:$0xff]  ;;  %v10226_v47 = vld [vmem:[#allocation36_spill] sm:$0xff] }
 0x40b   : > { %v3421_v32 = vmul.f32 %v8302_v60, %v10224_v29  ;;  %v3434_v46 = vsel %vm2032_vm3, %v3409_v14, 0.0  ;;  %v3331_v23 = vsel %vm2032_vm3, %v3272_v19, 0.0  ;;  %5442 = vlog2.f32 %v3490_v63  ;;  %v10228_v19 = vld [vmem:[#allocation40_spill] sm:$0xff] }
 0x40c   : > { %v3469_v10 = vadd.f32 %v3468_v25, %v3467_v16  ;;  %v3435_v51 = vadd.f32 %v3434_v46, %v3433_v7  ;;  %v3332_v31 = vadd.f32 %v3331_v23, %v3330_v17  ;;  %v3470_v9 = vsel %vm2032_vm3, %v3423_v61, 0.0  ;;  %v10229_v7 = vld [vmem:[#allocation45_spill] sm:$0xff]  ;;  %v10230_v46 = vld [vmem:[#allocation46_spill] sm:$0xff]  ;;  %v10231_v23 = vld [vmem:[#allocation51_spill] sm:$0xff] }
 0x40d   : > { %v3472_v53 = vsel %vm2032_vm3, %v3427_v40, 0.0  ;;  %v3436_v37 = vsel %vm2032_vm3, %v3413_v42, 0.0  ;;  %v3425_v14 = vmul.f32 %v8307_v62, %v10227_v24  ;;  %v3438_v16 = vsel %vm2032_vm3, %v3417_v2, 0.0 }
 0x40e   : > { %v3471_v18 = vadd.f32 %v3470_v9, %v3469_v10  ;;  %v3437_v59 = vadd.f32 %v3436_v37, %v3435_v51  ;;  %v3336_v1 = vsub.f32 %v10225_v26, %v3332_v31  ;;  %v3340_v29 = vsub.f32 %v10226_v47, %v3332_v31  ;;  %v10250_v26 = vld [vmem:[#allocation19_spill] sm:$0xff] }
 0x40f   : > { %v3344_v25 = vsub.f32 %v10228_v19, %v3332_v31  ;;  %v3348_v17 = vsub.f32 %v10229_v7, %v3332_v31  ;;  %v3440_v40 = vsel %vm2032_vm3, %v3421_v32, 0.0  ;;  %v3352_v42 = vsub.f32 %v10230_v46, %v3332_v31 }
 0x410   : > { %v3439_v61 = vadd.f32 %v3438_v16, %v3437_v59  ;;  %v3356_v10 = vsub.f32 %v10231_v23, %v3332_v31  ;;  %v3473_v51 = vadd.f32 %v3472_v53, %v3471_v18  ;;  %v8353_v9 = vmul.f32 %v3336_v1, %v3336_v1  ;;  %v10232_v16 = vld [vmem:[#allocation60_spill] sm:$0xff]  ;;  %v10233_v53 = vld [vmem:[#allocation62_spill] sm:$0xff]  ;;  %v10234_v1 = vld [vmem:[#allocation71_spill] sm:$0xff] }
 0x411   : > { %v8355_v37 = vmul.f32 %v3340_v29, %v3340_v29  ;;  %v8357_v4 = vmul.f32 %v3344_v25, %v3344_v25  ;;  %v8359_v2 = vmul.f32 %v3348_v17, %v3348_v17  ;;  %v3442_v19 = vsel %vm2032_vm3, %v3425_v14, 0.0  ;;  %v10235_v23 = vld [vmem:[#allocation64_spill] sm:$0xff] }
 0x412   : > { %v3441_v24 = vadd.f32 %v3440_v40, %v3439_v61  ;;  %v3360_v59 = vsub.f32 %v10213_v56, %v3332_v31  ;;  %v3400_v32 = vmul.f32 %v8353_v9, %v10232_v16  ;;  %v8365_v7 = vmul.f32 %v3352_v42, %v3352_v42 }
 0x413   : > { %v3404_v18 = vmul.f32 %v8355_v37, %v10233_v53  ;;  %v3408_v29 = vmul.f32 %v8357_v4, %v10234_v1  ;;  %v3491_v25 = vadd.f32 1e-05, %v3473_v51  ;;  %v3364_v17 = vsub.f32 %v10222_v54, %v3332_v31  ;;  %v10236_v53 = vld [vmem:[#allocation70_spill] sm:$0xff] }
 0x414   : > { %v3443_v46 = vadd.f32 %v3442_v19, %v3441_v24  ;;  %v8372_v61 = vmul.f32 %v3356_v10, %v3356_v10  ;;  %v3412_v56 = vmul.f32 %v8359_v2, %v10235_v23  ;;  %v3474_v19 = vsel %vm2032_vm3, %v3400_v32, 0.0  ;;  %v10237_v23 = vld [vmem:[#allocation59_spill] sm:$0xff] }
 0x415   : > { %v5443_v14 = vpop.eup %5442  ;;  %v3475_v42 = vsel %vm2032_vm3, %v3404_v18, 0.0  ;;  %5444 = vrcp.f32 %v3490_v63  ;;  %v8378_v16 = vmul.f32 %v3360_v59, %v3360_v59  ;;  %v3416_v51 = vmul.f32 %v8365_v7, %v10236_v53 }
 0x416   : > { %v3489_v40 = vadd.f32 1e-05, %v3443_v46  ;;  %v3476_v24 = vadd.f32 %v3475_v42, %v3474_v19  ;;  %v3477_v31 = vsel %vm2032_vm3, %v3408_v29, 0.0  ;;  %v3668_v1 = vmul.f32 0.6931472, %v5443_v14 }
 0x417   : > { %v8383_v46 = vmul.f32 %v3364_v17, %v3364_v17  ;;  %v3420_v32 = vmul.f32 %v8372_v61, %v10237_v23  ;;  %v3479_v18 = vsel %vm2032_vm3, %v3412_v56, 0.0  ;;  %v3424_v19 = vmul.f32 %v8378_v16, %v8183_v6 }
 0x418   : > { %5446 = vrcp.f32 %v3489_v40  ;;  %v3478_v10 = vadd.f32 %v3477_v31, %v3476_v24  ;;  %v3676_v59 = vsel %vm2032_vm3, %v3668_v1, 0.0  ;;  %v3481_v42 = vsel %vm2032_vm3, %v3416_v51, 0.0 }
 0x419   : > { %5448 = vlog2.f32 %v3489_v40  ;;  %3677 = vadd.xlane.f32.xlu0 %v3676_v59  ;;  %v3428_v17 = vmul.f32 %v8383_v46, %v8316_v8  ;;  %v3483_v14 = vsel %vm2032_vm3, %v3420_v32, 0.0  ;;  %v3485_v56 = vsel %vm2032_vm3, %v3424_v19, 0.0 }
 0x41a   : > { %5450 = vlog2.f32 %v3491_v25  ;;  %v3480_v63 = vadd.f32 %v3479_v18, %v3478_v10 }
 0x41b   : > { %5452 = vrcp.f32 %v3491_v25  ;;  %v3487_v10 = vsel %vm2032_vm3, %v3428_v17, 0.0 }
 0x41c   : > { %v3482_v29 = vadd.f32 %v3481_v42, %v3480_v63 }
 0x41e   : > { %v3484_v40 = vadd.f32 %v3483_v14, %v3482_v29 }
 0x41f   : > { %v5445_v24 = vpop.eup %5444 }
 0x420   : > { %v3486_v53 = vadd.f32 %v3485_v56, %v3484_v40  ;;  %v8402_v59 = vmul.f32 0.5, %v5445_v24 }
 0x422   : > { %v5447_v31 = vpop.eup %5446  ;;  %v3488_v51 = vadd.f32 %v3487_v10, %v3486_v53  ;;  %v3542_v40 = vmul.f32 %v8402_v59, %v8206_v38 }
 0x423   : > { %v5449_v1 = vpop.eup %5448  ;;  %v8397_v6 = vmul.f32 0.5, %v5447_v31 }
 0x424   : > { %v5451_v23 = vpop.eup %5450  ;;  %v3666_v18 = vmul.f32 0.6931472, %v5449_v1  ;;  %v3492_v25 = vadd.f32 1e-05, %v3488_v51  ;;  %v3584_v56 = vsel %vm2032_vm3, %v3542_v40, 0.0  ;;  %v3546_v51 = vmul.f32 %v8402_v59, %v8208_v48 }
 0x425   : > { %v3537_v8 = vmul.f32 %v8397_v6, %v8238_v39  ;;  %v3670_v63 = vmul.f32 0.6931472, %v5451_v23  ;;  %v3541_v42 = vmul.f32 %v8397_v6, %v8240_v15  ;;  %v5453_v29 = vpop.eup %5452  ;;  %v3538_v23 = vmul.f32 %v8402_v59, %v8204_v57 }
 0x426   : > { %v3673_v32 = vsel %vm2032_vm3, %v3666_v18, 0.0  ;;  %5454 = vrcp.f32 %v3492_v25  ;;  %v8408_v14 = vmul.f32 0.5, %v5453_v29 }
 0x427   : > { %3674 = vadd.xlane.f32.xlu1 %v3673_v32  ;;  %v3569_v19 = vsel %vm2032_vm3, %v3537_v8, 0.0  ;;  %5456 = vlog2.f32 %v3492_v25  ;;  %v3679_v17 = vsel %vm2032_vm3, %v3670_v63, 0.0  ;;  %v3581_v39 = vsel %vm2032_vm3, %v3541_v42, 0.0 }
 0x428   : > { %3570 = vadd.xlane.f32.xlu0 %v3569_v19  ;;  %v3543_v24 = vmul.f32 %v8408_v14, %v8268_v5  ;;  %v3596_v5 = vsel %vm2032_vm3, %v3546_v51, 0.0  ;;  %v3572_v25 = vsel %vm2032_vm3, %v3538_v23, 0.0  ;;  %v3539_v8 = vmul.f32 %v8408_v14, %v8266_v30 }
 0x429   : > { %v3547_v32 = vmul.f32 %v8408_v14, %v8272_v0  ;;  %v3545_v63 = vmul.f32 %v8397_v6, %v8248_v27  ;;  %v3550_v19 = vmul.f32 %v8402_v59, %v8210_v44  ;;  %v3551_v40 = vmul.f32 %v8408_v14, %v8274_v28 }
 0x42a   : > { %v3587_v1 = vsel %vm2032_vm3, %v3543_v24, 0.0  ;;  %v3575_v57 = vsel %vm2032_vm3, %v3539_v8, 0.0  ;;  %v3554_v24 = vmul.f32 %v8402_v59, %v8212_v55  ;;  %v3561_v51 = vmul.f32 %v8397_v6, %v8302_v60 }
 0x42b   : > { %3680 = vadd.xlane.f32.xlu1 %v3679_v17  ;;  %v3593_v30 = vsel %vm2032_vm3, %v3545_v63, 0.0  ;;  %v3608_v0 = vsel %vm2032_vm3, %v3550_v19, 0.0  ;;  %v3549_v17 = vmul.f32 %v8397_v6, %v8250_v52  ;;  %v3611_v52 = vsel %vm2032_vm3, %v3551_v40, 0.0 }
 0x42c   : > { %3582 = vadd.xlane.f32.xlu0 %v3581_v39  ;;  %v3553_v39 = vmul.f32 %v8397_v6, %v8256_v33  ;;  %v3620_v28 = vsel %vm2032_vm3, %v3554_v24, 0.0 }
 0x430   : > { %3585 = vadd.xlane.f32.xlu0 %v3584_v56  ;;  %v5455_v15 = vpop.eup %5454 }
 0x431   : > { %v5457_v53 = vpop.eup %5456  ;;  %v8416_v31 = vmul.f32 0.5, %v5455_v15  ;;  %v3557_v15 = vmul.f32 %v8397_v6, %v8286_v49 }
 0x432   : > { %v3672_v10 = vmul.f32 0.6931472, %v5457_v53  ;;  %v3555_v53 = vmul.f32 %v8408_v14, %v8280_v43 }
 0x433   : > { %v3540_v18 = vmul.f32 %v8416_v31, %v8353_v9  ;;  %v3599_v9 = vsel %vm2032_vm3, %v3547_v32, 0.0  ;;  %v3544_v42 = vmul.f32 %v8416_v31, %v8355_v37  ;;  %v3548_v29 = vmul.f32 %v8416_v31, %v8357_v4 }
 0x434   : > { %3588 = vadd.xlane.f32.xlu0 %v3587_v1  ;;  %v3682_v38 = vsel %vm2032_vm3, %v3672_v10, 0.0  ;;  %v3605_v37 = vsel %vm2032_vm3, %v3549_v17, 0.0  ;;  %v3617_v4 = vsel %vm2032_vm3, %v3553_v39, 0.0  ;;  %v3552_v56 = vmul.f32 %v8416_v31, %v8359_v2 }
 0x435   : > { %3683 = vadd.xlane.f32.xlu1 %v3682_v38  ;;  %v3578_v48 = vsel %vm2032_vm3, %v3540_v18, 0.0  ;;  %v3590_v27 = vsel %vm2032_vm3, %v3544_v42, 0.0  ;;  %v3602_v44 = vsel %vm2032_vm3, %v3548_v29, 0.0  ;;  %v3629_v2 = vsel %vm2032_vm3, %v3557_v15, 0.0 }
 0x436   : > { %v3614_v33 = vsel %vm2032_vm3, %v3552_v56, 0.0  ;;  %v3556_v10 = vmul.f32 %v8416_v31, %v8365_v7  ;;  %v3623_v55 = vsel %vm2032_vm3, %v3555_v53, 0.0  ;;  %v3558_v1 = vmul.f32 %v8402_v59, %v8218_v36 }
 0x437   : > { %v3559_v38 = vmul.f32 %v8408_v14, %v8288_v35  ;;  %v3641_v7 = vsel %vm2032_vm3, %v3561_v51, 0.0  ;;  %v3560_v23 = vmul.f32 %v8416_v31, %v8372_v61  ;;  %v3565_v18 = vmul.f32 %v8397_v6, %v8307_v62 }
 0x438   : > { %3597 = vadd.xlane.f32.xlu0 %v3596_v5  ;;  %v3626_v49 = vsel %vm2032_vm3, %v3556_v10, 0.0  ;;  %v3632_v43 = vsel %vm2032_vm3, %v3558_v1, 0.0  ;;  %v3562_v5 = vmul.f32 %v8402_v59, %v8226_v50  ;;  %v3564_v8 = vmul.f32 %v8416_v31, %v8378_v16 }
 0x439   : > { %3573 = vadd.xlane.f32.xlu1 %v3572_v25  ;;  %v3635_v36 = vsel %vm2032_vm3, %v3559_v38, 0.0  ;;  %v3638_v60 = vsel %vm2032_vm3, %v3560_v23, 0.0  ;;  %v3563_v25 = vmul.f32 %v8408_v14, %v8294_v20  ;;  %v3653_v61 = vsel %vm2032_vm3, %v3565_v18, 0.0 }
 0x43a   : > { %v3644_v35 = vsel %vm2032_vm3, %v3562_v5, 0.0  ;;  %v3650_v62 = vsel %vm2032_vm3, %v3564_v8, 0.0  ;;  %v3568_v6 = vmul.f32 %v8416_v31, %v8383_v46  ;;  %v3567_v32 = vmul.f32 %v8408_v14, %v8300_v13  ;;  %v10240_v31 = vld [vmem:[#allocation72_spill] sm:$0xff]  ;;  %v10241_v14 = vld [vmem:[#allocation57_spill] sm:$0xff] }
 0x43b   : > { %v3647_v50 = vsel %vm2032_vm3, %v3563_v25, 0.0  ;;  %v3499_v42 = vand.u32 2147483647, %v10240_v31 }
 0x43c   : > { %3579 = vadd.xlane.f32.xlu0 %v3578_v48  ;;  %v3566_v48 = vmul.f32 %v8402_v59, %v8231_v12  ;;  %v3662_v16 = vsel %vm2032_vm3, %v3568_v6, 0.0  ;;  %v10238_v12 = vld [vmem:[#allocation56_spill] sm:$0xff] }
 0x43d   : > { %3576 = vadd.xlane.f32.xlu1 %v3575_v57  ;;  %v3659_v57 = vsel %vm2032_vm3, %v3567_v32, 0.0  ;;  %v3497_v59 = vand.u32 2147483647, %v10238_v12  ;;  %v3503_v29 = vsub.f32 0.0, %v3499_v42  ;;  %v3496_v42 = vmin.f32 %v10241_v14, 0.0 }
 0x43e   : > { %v3656_v20 = vsel %vm2032_vm3, %v3566_v48, 0.0 }
 0x43f   : > { %v3501_v63 = vsub.f32 0.0, %v3497_v59  ;;  %v3509_v13 = vmul.f32 1.442695, %v3503_v29 }
 0x440   : > { %3600 = vadd.xlane.f32.xlu0 %v3599_v9  ;;  %v10239_v9 = vld [vmem:[#allocation65_spill] sm:$0xff] }
 0x441   : > { %3594 = vadd.xlane.f32.xlu1 %v3593_v30  ;;  %v3498_v19 = vand.u32 2147483647, %v10239_v9  ;;  %v3505_v30 = vmul.f32 1.442695, %v3501_v63  ;;  %v3494_v23 = vmin.f32 %v10239_v9, 0.0 }
 0x443   : > { %v3502_v46 = vsub.f32 0.0, %v3498_v19  ;;  %5458 = vpow2.f32 %v3505_v30 }
 0x444   : > { %3609 = vadd.xlane.f32.xlu0 %v3608_v0 }
 0x445   : > { %3591 = vadd.xlane.f32.xlu1 %v3590_v27  ;;  %v3507_v0 = vmul.f32 1.442695, %v3502_v46  ;;  %v3500_v27 = vand.u32 2147483647, %v10241_v14 }
 0x447   : > { %5460 = vpow2.f32 %v3507_v0  ;;  %v3504_v17 = vsub.f32 0.0, %v3500_v27 }
 0x448   : > { %3603 = vadd.xlane.f32.xlu0 %v3602_v44  ;;  %5462 = vpow2.f32 %v3509_v13 }
 0x449   : > { %3606 = vadd.xlane.f32.xlu1 %v3605_v37  ;;  %v3511_v39 = vmul.f32 1.442695, %v3504_v17 }
 0x44b   : > { %5464 = vpow2.f32 %v3511_v39 }
 0x44c   : > { %3618 = vadd.xlane.f32.xlu0 %v3617_v4 }
 0x44d   : > { %3612 = vadd.xlane.f32.xlu1 %v3611_v52  ;;  %v5459_v44 = vpop.eup %5458 }
 0x44e   : > { %v3513_v37 = vadd.f32 1.0, %v5459_v44 }
 0x450   : > { %3615 = vadd.xlane.f32.xlu0 %v3614_v33  ;;  %5466 = vlog2.f32 %v3513_v37 }
 0x451   : > { %3621 = vadd.xlane.f32.xlu1 %v3620_v28  ;;  %v5461_v40 = vpop.eup %5460 }
 0x452   : > { %v3514_v4 = vadd.f32 1.0, %v5461_v40  ;;  %v5463_v56 = vpop.eup %5462 }
 0x453   : > { %v3515_v52 = vadd.f32 1.0, %v5463_v56 }
 0x454   : > { %3630 = vadd.xlane.f32.xlu0 %v3629_v2  ;;  %5468 = vlog2.f32 %v3514_v4 }
 0x455   : > { %3624 = vadd.xlane.f32.xlu1 %v3623_v55  ;;  %5470 = vlog2.f32 %v3515_v52  ;;  %v5465_v24 = vpop.eup %5464  ;;  %v3493_v55 = vmin.f32 %v10238_v12, 0.0 }
 0x456   : > { %v3516_v28 = vadd.f32 1.0, %v5465_v24 }
 0x458   : > { %3627 = vadd.xlane.f32.xlu0 %v3626_v49  ;;  %5472 = vlog2.f32 %v3516_v28 }
 0x459   : > { %3633 = vadd.xlane.f32.xlu1 %v3632_v43 }
 0x45a   : > { %v5467_v33 = vpop.eup %5466 }
 0x45b   : > { %v3518_v53 = vmul.f32 0.6931472, %v5467_v33 }
 0x45c   : > { %3642 = vadd.xlane.f32.xlu0 %v3641_v7 }
 0x45d   : > { %3636 = vadd.xlane.f32.xlu1 %v3635_v36  ;;  %v8509_v49 = vsub.f32 %v3493_v55, %v3518_v53 }
 0x45e   : > { %v5469_v2 = vpop.eup %5468 }
 0x45f   : > { %v3520_v51 = vmul.f32 0.6931472, %v5469_v2  ;;  %v5471_v43 = vpop.eup %5470 }
 0x460   : > { %3639 = vadd.xlane.f32.xlu0 %v3638_v60  ;;  %v3522_v60 = vmul.f32 0.6931472, %v5471_v43 }
 0x461   : > { %3645 = vadd.xlane.f32.xlu1 %v3644_v35  ;;  %v8515_v5 = vsub.f32 %v3494_v23, %v3520_v51 }
 0x462   : > { %v5473_v6 = vpop.eup %5472 }
 0x463   : > { %v3524_v30 = vmul.f32 0.6931472, %v5473_v6 }
 0x464   : > { %3654 = vadd.xlane.f32.xlu0 %v3653_v61 }
 0x465   : > { %3648 = vadd.xlane.f32.xlu1 %v3647_v50  ;;  %v3495_v50 = vmin.f32 %v10240_v31, 0.0  ;;  %v8545_v17 = vsub.f32 %v3496_v42, %v3524_v30 }
 0x468   : > { %3651 = vadd.xlane.f32.xlu0 %v3650_v62  ;;  %v8527_v62 = vsub.f32 %v3495_v50, %v3522_v60 }
 0x469   : > { %3657 = vadd.xlane.f32.xlu1 %v3656_v20 }
 0x46c   : > { %3663 = vadd.xlane.f32.xlu0 %v3662_v16 }
 0x46d   : > { %3660 = vadd.xlane.f32.xlu1 %v3659_v57 }
 0x4a6   : > { %v3678_v15 = vpop.xlane.xlu0 %3677 }
 0x4a7   : > { %v8517_v25 = vmul.f32 0.5, %v3678_v15 }
 0x4b4   : > { %v3675_v1 = vpop.xlane.xlu1 %3674 }
 0x4b5   : > { %v3571_v10 = vpop.xlane.xlu0 %3570  ;;  %v8513_v36 = vmul.f32 0.5, %v3675_v1 }
 0x4b6   : > { %v3689_v9 = vsub.f32 %v8509_v49, %v3571_v10 }
 0x4b8   : > { %v3681_v18 = vpop.xlane.xlu1 %3680  ;;  %v3721_v13 = vsub.f32 %v3689_v9, %v8513_v36 }
 0x4b9   : > { %v3583_v38 = vpop.xlane.xlu0 %3582  ;;  %v8529_v32 = vmul.f32 0.5, %v3681_v18 }
 0x4ba   : > { %v3693_v7 = vsub.f32 %v8509_v49, %v3583_v38  ;;  %v3753_v14 = vsel %vm1874_vm2, %v3721_v13, -inf }
 0x4bc   : > { %v8520_v61 = vsub.f32 %v3693_v7, %v8513_v36 }
 0x4bd   : > { %v3586_v35 = vpop.xlane.xlu0 %3585 }
 0x4be   : > { %v3694_v8 = vsub.f32 %v8515_v5, %v3586_v35  ;;  %v3760_v16 = vsel %vm1874_vm2, %v8520_v61, -inf }
 0x4c0   : > { %v8525_v48 = vsub.f32 %v3694_v8, %v8517_v25 }
 0x4c1   : > { %v3589_v20 = vpop.xlane.xlu0 %3588 }
 0x4c2   : > { %v3761_v57 = vsel %vm1874_vm2, %v8525_v48, -inf  ;;  %v3695_v12 = vsub.f32 %v8527_v62, %v3589_v20  ;;  %v3684_v59 = vpop.xlane.xlu1 %3683 }
 0x4c3   : > { %v3762_v63 = vmax.f32 %v3760_v16, %v3761_v57  ;;  %v8547_v39 = vmul.f32 0.5, %v3684_v59 }
 0x4c4   : > { %v8538_v19 = vsub.f32 %v3695_v12, %v8529_v32 }
 0x4c5   : > { %v3598_v46 = vpop.xlane.xlu0 %3597 }
 0x4c6   : > { %v3763_v31 = vsel %vm1874_vm2, %v8538_v19, -inf  ;;  %v3574_v0 = vpop.xlane.xlu1 %3573  ;;  %v3698_v56 = vsub.f32 %v8515_v5, %v3598_v46 }
 0x4c7   : > { %v3764_v29 = vmax.f32 %v3762_v63, %v3763_v31  ;;  %v3690_v27 = vsub.f32 %v8515_v5, %v3574_v0 }
 0x4c8   : > { %v8559_v10 = vsub.f32 %v3698_v56, %v8517_v25 }
 0x4c9   : > { %v3580_v44 = vpop.xlane.xlu0 %3579  ;;  %v3722_v37 = vsub.f32 %v3690_v27, %v8517_v25 }
 0x4ca   : > { %v3692_v40 = vsub.f32 %v8545_v17, %v3580_v44  ;;  %v3577_v4 = vpop.xlane.xlu1 %3576  ;;  %v3768_v35 = vsel %vm1874_vm2, %v8559_v10, -inf }
 0x4cb   : > { %v3754_v52 = vsel %vm1874_vm2, %v3722_v37, -inf  ;;  %v3691_v24 = vsub.f32 %v8527_v62, %v3577_v4 }
 0x4cc   : > { %v3724_v33 = vsub.f32 %v3692_v40, %v8547_v39  ;;  %v3755_v15 = vmax.f32 %v3753_v14, %v3754_v52 }
 0x4cd   : > { %v3601_v28 = vpop.xlane.xlu0 %3600  ;;  %v3723_v53 = vsub.f32 %v3691_v24, %v8529_v32 }
 0x4ce   : > { %v3699_v2 = vsub.f32 %v8527_v62, %v3601_v28  ;;  %v3595_v55 = vpop.xlane.xlu1 %3594  ;;  %v3758_v43 = vsel %vm1874_vm2, %v3724_v33, -inf }
 0x4cf   : > { %v3756_v1 = vsel %vm1874_vm2, %v3723_v53, -inf  ;;  %v3697_v51 = vsub.f32 %v8509_v49, %v3595_v55 }
 0x4d0   : > { %v8565_v38 = vsub.f32 %v3699_v2, %v8529_v32  ;;  %v3757_v7 = vmax.f32 %v3755_v15, %v3756_v1 }
 0x4d1   : > { %v3610_v23 = vpop.xlane.xlu0 %3609  ;;  %v8568_v60 = vsub.f32 %v3697_v51, %v8513_v36 }
 0x4d2   : > { %v3702_v18 = vsub.f32 %v8515_v5, %v3610_v23  ;;  %v3759_v8 = vmax.f32 %v3757_v7, %v3758_v43  ;;  %v3592_v50 = vpop.xlane.xlu1 %3591  ;;  %v3770_v16 = vsel %vm1874_vm2, %v8565_v38, -inf }
 0x4d3   : > { %v3767_v6 = vsel %vm1874_vm2, %v8568_v60, -inf  ;;  %v3696_v20 = vsub.f32 %v8545_v17, %v3592_v50 }
 0x4d4   : > { %v8579_v57 = vsub.f32 %v3702_v18, %v8517_v25  ;;  %v3769_v12 = vmax.f32 %v3767_v6, %v3768_v35  ;;  %v3809_v59 = vsub.f32 %v3721_v13, %v3759_v8  ;;  %v3810_v63 = vsub.f32 %v3722_v37, %v3759_v8 }
 0x4d5   : > { %v3811_v9 = vsub.f32 %v3723_v53, %v3759_v8  ;;  %v3604_v30 = vpop.xlane.xlu0 %3603  ;;  %v3812_v46 = vsub.f32 %v3724_v33, %v3759_v8  ;;  %v3728_v31 = vsub.f32 %v3696_v20, %v8547_v39 }
 0x4d6   : > { %v3700_v42 = vsub.f32 %v8545_v17, %v3604_v30  ;;  %v3841_v0 = vmul.f32 1.442695, %v3809_v59  ;;  %v3843_v27 = vmul.f32 1.442695, %v3810_v63  ;;  %v3771_v40 = vmax.f32 %v3769_v12, %v3770_v16  ;;  %v3607_v4 = vpop.xlane.xlu1 %3606 }
 0x4d7   : > { %v3845_v44 = vmul.f32 1.442695, %v3811_v9  ;;  %v3847_v56 = vmul.f32 1.442695, %v3812_v46  ;;  %v3765_v14 = vsel %vm1874_vm2, %v3728_v31, -inf  ;;  %v3701_v52 = vsub.f32 %v8509_v49, %v3607_v4 }
 0x4d8   : > { %v3732_v13 = vsub.f32 %v3700_v42, %v8547_v39  ;;  %5474 = vpow2.f32 %v3841_v0  ;;  %v3766_v37 = vmax.f32 %v3764_v29, %v3765_v14  ;;  %v3775_v24 = vsel %vm1874_vm2, %v8579_v57, -inf }
 0x4d9   : > { %v3619_v33 = vpop.xlane.xlu0 %3618  ;;  %5476 = vpow2.f32 %v3843_v27  ;;  %v8589_v15 = vsub.f32 %v3701_v52, %v8513_v36 }
 0x4da   : > { %v3772_v28 = vsel %vm1874_vm2, %v3732_v13, -inf  ;;  %v3705_v53 = vsub.f32 %v8509_v49, %v3619_v33  ;;  %5478 = vpow2.f32 %v3845_v44  ;;  %v3813_v2 = vsub.f32 %v8520_v61, %v3766_v37  ;;  %v3613_v29 = vpop.xlane.xlu1 %3612 }
 0x4db   : > { %v3814_v55 = vsub.f32 %v8525_v48, %v3766_v37  ;;  %v3815_v1 = vsub.f32 %v8538_v19, %v3766_v37  ;;  %5480 = vpow2.f32 %v3847_v56  ;;  %v3816_v51 = vsub.f32 %v3728_v31, %v3766_v37 }
 0x4dc   : > { %v3774_v43 = vsel %vm1874_vm2, %v8589_v15, -inf  ;;  %v3703_v7 = vsub.f32 %v8527_v62, %v3613_v29  ;;  %v3849_v23 = vmul.f32 1.442695, %v3813_v2  ;;  %v3773_v48 = vmax.f32 %v3771_v40, %v3772_v28 }
 0x4dd   : > { %v3851_v18 = vmul.f32 1.442695, %v3814_v55  ;;  %v3853_v35 = vmul.f32 1.442695, %v3815_v1  ;;  %v3776_v8 = vmax.f32 %v3774_v43, %v3775_v24  ;;  %v3616_v50 = vpop.xlane.xlu0 %3615  ;;  %v3855_v6 = vmul.f32 1.442695, %v3816_v51 }
 0x4de   : > { %v8600_v61 = vsub.f32 %v3703_v7, %v8529_v32  ;;  %5482 = vpow2.f32 %v3849_v23  ;;  %v3622_v19 = vpop.xlane.xlu1 %3621  ;;  %v8603_v20 = vsub.f32 %v3705_v53, %v8513_v36  ;;  %v3704_v16 = vsub.f32 %v8545_v17, %v3616_v50 }
 0x4df   : > { %5484 = vpow2.f32 %v3851_v18  ;;  %v3817_v59 = vsub.f32 %v8568_v60, %v3773_v48  ;;  %v3818_v63 = vsub.f32 %v8559_v10, %v3773_v48  ;;  %v3819_v30 = vsub.f32 %v8565_v38, %v3773_v48 }
 0x4e0   : > { %v3777_v12 = vsel %vm1874_vm2, %v8600_v61, -inf  ;;  %5486 = vpow2.f32 %v3853_v35  ;;  %v3820_v46 = vsub.f32 %v3732_v13, %v3773_v48  ;;  %v3706_v27 = vsub.f32 %v8515_v5, %v3622_v19 }
 0x4e1   : > { %v3778_v9 = vmax.f32 %v3776_v8, %v3777_v12  ;;  %v3631_v31 = vpop.xlane.xlu0 %3630  ;;  %5488 = vpow2.f32 %v3855_v6  ;;  %v3857_v42 = vmul.f32 1.442695, %v3817_v59  ;;  %v3859_v0 = vmul.f32 1.442695, %v3818_v63 }
 0x4e2   : > { %v8612_v44 = vpop.eup %5474  ;;  %v3861_v40 = vmul.f32 1.442695, %v3819_v30  ;;  %v3863_v4 = vmul.f32 1.442695, %v3820_v46  ;;  %v3781_v60 = vsel %vm1874_vm2, %v8603_v20, -inf  ;;  %v3625_v56 = vpop.xlane.xlu1 %3624  ;;  %v3736_v10 = vsub.f32 %v3704_v16, %v8547_v39 }
 0x4e3   : > { %v8617_v14 = vpop.eup %5476  ;;  %v3905_v38 = vsel %vm1874_vm2, %v8612_v44, 0.0  ;;  %5490 = vpow2.f32 %v3857_v42  ;;  %v8622_v52 = vsub.f32 %v3706_v27, %v8517_v25  ;;  %v3707_v13 = vsub.f32 %v8527_v62, %v3625_v56 }
 0x4e4   : > { %v8625_v37 = vpop.eup %5478  ;;  %v3906_v24 = vsel %vm1874_vm2, %v8617_v14, 0.0  ;;  %5492 = vpow2.f32 %v3859_v0  ;;  %v3779_v33 = vsel %vm1874_vm2, %v3736_v10, -inf  ;;  %v3709_v28 = vsub.f32 %v8509_v49, %v3631_v31 }
 0x4e5   : > { %v8631_v53 = vpop.xlane.xlu0 %3627  ;;  %v8633_v2 = vpop.eup %5480  ;;  %v3907_v55 = vadd.f32 %v3906_v24, %v3905_v38  ;;  %5494 = vpow2.f32 %v3861_v40  ;;  %v3782_v1 = vsel %vm1874_vm2, %v8622_v52, -inf  ;;  %v3908_v29 = vsel %vm1874_vm2, %v8625_v37, 0.0 }
 0x4e6   : > { %5496 = vpow2.f32 %v3863_v4  ;;  %v3783_v51 = vmax.f32 %v3781_v60, %v3782_v1  ;;  %v8640_v43 = vsub.f32 %v3707_v13, %v8529_v32  ;;  %v3634_v7 = vpop.xlane.xlu1 %3633  ;;  %v3910_v18 = vsel %vm1874_vm2, %v8633_v2, 0.0 }
 0x4e7   : > { %v3909_v23 = vadd.f32 %v3908_v29, %v3907_v55  ;;  %v3780_v35 = vmax.f32 %v3778_v9, %v3779_v33  ;;  %v3710_v6 = vsub.f32 %v8515_v5, %v3634_v7  ;;  %v8650_v48 = vsub.f32 %v3709_v28, %v8513_v36 }
 0x4e8   : > { %v8644_v8 = vpop.eup %5482  ;;  %v3784_v50 = vsel %vm1874_vm2, %v8640_v43, -inf  ;;  %v3708_v19 = vsub.f32 %v8545_v17, %v8631_v53 }
 0x4e9   : > { %v8654_v16 = vpop.eup %5484  ;;  %v3911_v12 = vadd.f32 %v3910_v18, %v3909_v23  ;;  %v3912_v59 = vsel %vm1874_vm2, %v8644_v8, 0.0  ;;  %v3785_v63 = vmax.f32 %v3783_v51, %v3784_v50  ;;  %v3821_v9 = vsub.f32 %v8589_v15, %v3780_v35  ;;  %v3643_v30 = vpop.xlane.xlu0 %3642 }
 0x4ea   : > { %v8659_v46 = vpop.eup %5486  ;;  %v3913_v31 = vsel %vm1874_vm2, %v8654_v16, 0.0  ;;  %v3822_v42 = vsub.f32 %v8579_v57, %v3780_v35  ;;  %v3823_v0 = vsub.f32 %v8600_v61, %v3780_v35  ;;  %v3824_v27 = vsub.f32 %v3736_v10, %v3780_v35  ;;  %v3637_v40 = vpop.xlane.xlu1 %3636 }
 0x4eb   : > { %v8665_v4 = vpop.eup %5488  ;;  %5498 = vrcp.f32 %v3911_v12  ;;  %v3914_v60 = vadd.f32 %v3913_v31, %v3912_v59  ;;  %v3915_v56 = vsel %vm1874_vm2, %v8659_v46, 0.0  ;;  %v3865_v15 = vmul.f32 1.442695, %v3821_v9 }
 0x4ec   : > { %v3917_v38 = vsel %vm1874_vm2, %v8665_v4, 0.0  ;;  %v3867_v13 = vmul.f32 1.442695, %v3822_v42  ;;  %v3869_v24 = vmul.f32 1.442695, %v3823_v0  ;;  %v8672_v33 = vsub.f32 %v3710_v6, %v8517_v25 }
 0x4ed   : > { %v8674_v57 = vpop.eup %5490  ;;  %v3916_v61 = vadd.f32 %v3915_v56, %v3914_v60  ;;  %5500 = vpow2.f32 %v3865_v15  ;;  %v3871_v10 = vmul.f32 1.442695, %v3824_v27  ;;  %v3788_v28 = vsel %vm1874_vm2, %v8650_v48, -inf  ;;  %v3640_v50 = vpop.xlane.xlu0 %3639 }
 0x4ee   : > { %v8678_v53 = vpop.eup %5492  ;;  %v3919_v55 = vsel %vm1874_vm2, %v8674_v57, 0.0  ;;  %5502 = vpow2.f32 %v3867_v13  ;;  %v3789_v1 = vsel %vm1874_vm2, %v8672_v33, -inf  ;;  %v3711_v29 = vsub.f32 %v8527_v62, %v3637_v40  ;;  %v3646_v51 = vpop.xlane.xlu1 %3645 }
 0x4ef   : > { %v8685_v7 = vpop.eup %5494  ;;  %v3918_v23 = vadd.f32 %v3917_v38, %v3916_v61  ;;  %v3920_v18 = vsel %vm1874_vm2, %v8678_v53, 0.0  ;;  %5504 = vpow2.f32 %v3869_v24  ;;  %v3790_v35 = vmax.f32 %v3788_v28, %v3789_v1 }
 0x4f0   : > { %v8689_v6 = vpop.eup %5496  ;;  %v3921_v12 = vadd.f32 %v3920_v18, %v3919_v55  ;;  %v3922_v59 = vsel %vm1874_vm2, %v8685_v7, 0.0  ;;  %5506 = vpow2.f32 %v3871_v10  ;;  %v8694_v9 = vsub.f32 %v3711_v29, %v8529_v32 }
 0x4f1   : > { %5508 = vrcp.f32 %v3918_v23  ;;  %v3924_v31 = vsel %vm1874_vm2, %v8689_v6, 0.0  ;;  %v3740_v42 = vsub.f32 %v3708_v19, %v8547_v39  ;;  %v3714_v0 = vsub.f32 %v8515_v5, %v3646_v51  ;;  %v3655_v51 = vpop.xlane.xlu0 %3654 }
 0x4f2   : > { %v3923_v27 = vadd.f32 %v3922_v59, %v3921_v12  ;;  %v3791_v40 = vsel %vm1874_vm2, %v8694_v9, -inf  ;;  %v3713_v60 = vsub.f32 %v8509_v49, %v3643_v30  ;;  %v3649_v56 = vpop.xlane.xlu1 %3648  ;;  %v3712_v15 = vsub.f32 %v8545_v17, %v3640_v50 }
 0x4f3   : > { %v3792_v38 = vmax.f32 %v3790_v35, %v3791_v40  ;;  %v3786_v13 = vsel %vm1874_vm2, %v3740_v42, -inf  ;;  %v8706_v24 = vsub.f32 %v3714_v0, %v8517_v25  ;;  %v3715_v61 = vsub.f32 %v8527_v62, %v3649_v56 }
 0x4f4   : > { %v3925_v19 = vadd.f32 %v3924_v31, %v3923_v27  ;;  %v3787_v10 = vmax.f32 %v3785_v63, %v3786_v13  ;;  %v8710_v28 = vsub.f32 %v3713_v60, %v8513_v36  ;;  %v8720_v29 = vsub.f32 %v3712_v15, %v8547_v39 }
 0x4f5   : > { %v8712_v55 = vpop.eup %5498  ;;  %v3796_v30 = vsel %vm1874_vm2, %v8706_v24, -inf  ;;  %v8717_v1 = vsub.f32 %v3715_v61, %v8529_v32  ;;  %v3717_v40 = vsub.f32 %v8509_v49, %v3655_v51 }
 0x4f6   : > { %v3963_v23 = vmul.f32 %v8712_v55, %v8617_v14  ;;  %v8726_v63 = vmul.f32 %v8712_v55, %v8633_v2  ;;  %5510 = vrcp.f32 %v3925_v19  ;;  %v3825_v18 = vsub.f32 %v8603_v20, %v3787_v10  ;;  %v3658_v56 = vpop.xlane.xlu1 %3657 }
 0x4f7   : > { %v8729_v35 = vpop.eup %5500  ;;  %v3826_v50 = vsub.f32 %v8622_v52, %v3787_v10  ;;  %v3827_v12 = vsub.f32 %v8640_v43, %v3787_v10  ;;  %v3828_v59 = vsub.f32 %v3740_v42, %v3787_v10  ;;  %v3795_v31 = vsel %vm1874_vm2, %v8710_v28, -inf }
 0x4f8   : > { %v8735_v0 = vpop.eup %5502  ;;  %v3926_v14 = vsel %vm1874_vm2, %v8729_v35, 0.0  ;;  %v3873_v2 = vmul.f32 1.442695, %v3825_v18  ;;  %v3797_v27 = vmax.f32 %v3795_v31, %v3796_v30  ;;  %v3798_v42 = vsel %vm1874_vm2, %v8717_v1, -inf  ;;  %v3652_v18 = vpop.xlane.xlu0 %3651 }
 0x4f9   : > { %v8740_v20 = vpop.eup %5504  ;;  %v3927_v52 = vsel %vm1874_vm2, %v8735_v0, 0.0  ;;  %v3875_v60 = vmul.f32 1.442695, %v3826_v50  ;;  %v3877_v43 = vmul.f32 1.442695, %v3827_v12  ;;  %v3793_v51 = vsel %vm1874_vm2, %v8720_v29, -inf }
 0x4fa   : > { %v8746_v15 = vpop.eup %5506  ;;  %v3928_v13 = vadd.f32 %v3927_v52, %v3926_v14  ;;  %v3929_v61 = vsel %vm1874_vm2, %v8740_v20, 0.0  ;;  %5512 = vpow2.f32 %v3873_v2  ;;  %v3879_v19 = vmul.f32 1.442695, %v3828_v59  ;;  %v3661_v54 = vpop.xlane.xlu1 %3660 }
 0x4fb   : > { %v5509_v49 = vpop.eup %5508  ;;  %v3931_v10 = vsel %vm1874_vm2, %v8746_v15, 0.0  ;;  %5514 = vpow2.f32 %v3875_v60  ;;  %v3799_v30 = vmax.f32 %v3797_v27, %v3798_v42  ;;  %v3794_v2 = vmax.f32 %v3792_v38, %v3793_v51  ;;  %v10243_v51 = vld [vmem:[#allocation15_spill] sm:$0xff] }
 0x4fc   : > { %v3967_v50 = vmul.f32 %v5509_v49, %v8644_v8  ;;  %v3969_v12 = vmul.f32 %v5509_v49, %v8659_v46  ;;  %v3970_v31 = vmul.f32 %v5509_v49, %v8665_v4  ;;  %v3930_v14 = vadd.f32 %v3929_v61, %v3928_v13 }
 0x4fd   : > { %5516 = vpow2.f32 %v3877_v43  ;;  %v3718_v59 = vsub.f32 %v8515_v5, %v3658_v56  ;;  %v8759_v52 = vsub.f32 %v3717_v40, %v8513_v36  ;;  %v3716_v27 = vsub.f32 %v8545_v17, %v3652_v18 }
 0x4fe   : > { %v3932_v60 = vadd.f32 %v3931_v10, %v3930_v14  ;;  %5518 = vpow2.f32 %v3879_v19  ;;  %v3829_v42 = vsub.f32 %v8650_v48, %v3794_v2  ;;  %v3830_v8 = vsub.f32 %v8672_v33, %v3794_v2 }
 0x4ff   : > { %v3831_v46 = vsub.f32 %v8694_v9, %v3794_v2  ;;  %v3832_v38 = vsub.f32 %v8720_v29, %v3794_v2  ;;  %v8767_v5 = vsub.f32 %v3718_v59, %v8517_v25  ;;  %v3802_v36 = vsel %vm1874_vm2, %v8759_v52, -inf  ;;  %v10242_v29 = vld [vmem:[#allocation14_spill] sm:$0xff] }
 0x500   : > { %v5511_v4 = vpop.eup %5510  ;;  %5520 = vrcp.f32 %v3932_v60  ;;  %v3881_v9 = vmul.f32 1.442695, %v3829_v42  ;;  %v3883_v56 = vmul.f32 1.442695, %v3830_v8  ;;  %v3719_v61 = vsub.f32 %v8527_v62, %v3661_v54 }
 0x501   : > { %v3972_v40 = vmul.f32 %v5511_v4, %v8674_v57  ;;  %v3973_v43 = vmul.f32 %v5511_v4, %v8678_v53  ;;  %v3974_v48 = vmul.f32 %v5511_v4, %v8685_v7  ;;  %v3975_v33 = vmul.f32 %v5511_v4, %v8689_v6  ;;  %v3664_v7 = vpop.xlane.xlu0 %3663 }
 0x502   : > { %v3885_v13 = vmul.f32 1.442695, %v3831_v46  ;;  %v8777_v19 = vmul.f32 %v10242_v29, %v3963_v23  ;;  %5522 = vpow2.f32 %v3881_v9  ;;  %v3887_v10 = vmul.f32 1.442695, %v3832_v38 }
 0x503   : > { %v3803_v57 = vsel %vm1874_vm2, %v8767_v5, -inf  ;;  %v8784_v53 = vsub.f32 %v3719_v61, %v8529_v32  ;;  %v8789_v18 = vmul.f32 %v10243_v51, %v3967_v50  ;;  %5524 = vpow2.f32 %v3883_v56 }
 0x504   : > { %v8779_v25 = vpop.eup %5512  ;;  %v3804_v62 = vmax.f32 %v3802_v36, %v3803_v57  ;;  %5526 = vpow2.f32 %v3885_v13  ;;  %v3748_v32 = vsub.f32 %v3716_v27, %v8547_v39  ;;  %v3720_v60 = vsub.f32 %v8545_v17, %v3664_v7  ;;  %v10244_v27 = vld [vmem:[#allocation16_spill] sm:$0xff] }
 0x505   : > { %v8786_v6 = vpop.eup %5514  ;;  %v3933_v54 = vsel %vm1874_vm2, %v8779_v25, 0.0  ;;  %v3805_v14 = vsel %vm1874_vm2, %v8784_v53, -inf  ;;  %5528 = vpow2.f32 %v3887_v10  ;;  %v8802_v42 = vmul.f32 %v10243_v51, %v3969_v12 }
 0x506   : > { %v3934_v23 = vsel %vm1874_vm2, %v8786_v6, 0.0  ;;  %v3806_v50 = vmax.f32 %v3804_v62, %v3805_v14  ;;  %v3800_v46 = vsel %vm1874_vm2, %v3748_v32, -inf  ;;  %v3968_v4 = vmul.f32 %v5509_v49, %v8654_v16 }
 0x507   : > { %v8798_v2 = vpop.eup %5516  ;;  %v3935_v59 = vadd.f32 %v3934_v23, %v3933_v54  ;;  %v8811_v36 = vmul.f32 %v10244_v27, %v3973_v43  ;;  %v8814_v9 = vmul.f32 %v10244_v27, %v3975_v33  ;;  %v3801_v17 = vmax.f32 %v3799_v30, %v3800_v46 }
 0x508   : > { %v3936_v8 = vsel %vm1874_vm2, %v8798_v2, 0.0  ;;  %v8808_v38 = vpop.eup %5518  ;;  %v8817_v12 = vmul.f32 %v10243_v51, %v3970_v31  ;;  %v8820_v61 = vmul.f32 %v10244_v27, %v3972_v40  ;;  %v3752_v49 = vsub.f32 %v3720_v60, %v8547_v39 }
 0x509   : > { %v3937_v56 = vadd.f32 %v3936_v8, %v3935_v59  ;;  %v3938_v16 = vsel %vm1874_vm2, %v8808_v38, 0.0  ;;  %v3833_v31 = vsub.f32 %v8710_v28, %v3801_v17  ;;  %v3834_v7 = vsub.f32 %v8706_v24, %v3801_v17 }
 0x50a   : > { %v5521_v13 = vpop.eup %5520  ;;  %10245 = vst [vmem:[#allocation67_spill] sm:$0xff] %v8817_v12  ;;  %v3835_v40 = vsub.f32 %v8717_v1, %v3801_v17  ;;  %v8833_v54 = vmul.f32 %v10244_v27, %v3974_v48  ;;  %v8837_v39 = vsel %vm1874_vm2, %v8814_v9, 0.0  ;;  %v3836_v28 = vsub.f32 %v3748_v32, %v3801_v17 }
 0x50b   : > { %v3977_v43 = vmul.f32 %v5521_v13, %v8729_v35  ;;  %v3978_v10 = vmul.f32 %v5521_v13, %v8735_v0  ;;  %v3979_v33 = vmul.f32 %v5521_v13, %v8740_v20  ;;  %v3980_v30 = vmul.f32 %v5521_v13, %v8746_v15 }
 0x50c   : > { %v3939_v57 = vadd.f32 %v3938_v16, %v3937_v56  ;;  %v4236_v35 = vsel %vm1874_vm2, %v8777_v19, 0.0  ;;  %v4239_v0 = vsel %vm1874_vm2, %v8811_v36, 0.0  ;;  %v8843_v20 = vpop.eup %5522  ;;  %v3889_v24 = vmul.f32 1.442695, %v3833_v31  ;;  %v10246_v56 = vld [vmem:[#allocation17_spill] sm:$0xff] }
 0x50d   : > { %v3891_v15 = vmul.f32 1.442695, %v3834_v7  ;;  %v8845_v1 = vpop.eup %5524  ;;  %v3940_v48 = vsel %vm1874_vm2, %v8843_v20, 0.0  ;;  %v3893_v62 = vmul.f32 1.442695, %v3835_v40  ;;  %v3807_v23 = vsel %vm1874_vm2, %v3752_v49, -inf }
 0x50e   : > { %5530 = vrcp.f32 %v3939_v57  ;;  %v8851_v14 = vmul.f32 %v10243_v51, %v3968_v4  ;;  %v8853_v59 = vpop.eup %5526  ;;  %v3941_v60 = vsel %vm1874_vm2, %v8845_v1, 0.0  ;;  %v3895_v32 = vmul.f32 1.442695, %v3836_v28 }
 0x50f   : > { %5532 = vpow2.f32 %v3889_v24  ;;  %v3808_v8 = vmax.f32 %v3806_v50, %v3807_v23  ;;  %v8857_v46 = vpop.eup %5528  ;;  %v8860_v17 = vmul.f32 %v10246_v56, %v3978_v10  ;;  %v3942_v13 = vadd.f32 %v3941_v60, %v3940_v48 }
 0x510   : > { %5534 = vpow2.f32 %v3891_v15  ;;  %v8864_v16 = vmul.f32 %v10242_v29, %v8726_v63  ;;  %v3943_v4 = vsel %vm1874_vm2, %v8853_v59, 0.0  ;;  %v3945_v40 = vsel %vm1874_vm2, %v8857_v46, 0.0 }
 0x511   : > { %5536 = vpow2.f32 %v3893_v62  ;;  %v3837_v57 = vsub.f32 %v8759_v52, %v3808_v8  ;;  %v3838_v31 = vsub.f32 %v8767_v5, %v3808_v8  ;;  %v3944_v50 = vadd.f32 %v3943_v4, %v3942_v13 }
 0x512   : > { %5538 = vpow2.f32 %v3895_v32  ;;  %v3839_v7 = vsub.f32 %v8784_v53, %v3808_v8  ;;  %v3840_v10 = vsub.f32 %v3752_v49, %v3808_v8  ;;  %v4237_v63 = vsel %vm1874_vm2, %v8851_v14, 0.0 }
 0x513   : > { %v3897_v28 = vmul.f32 1.442695, %v3837_v57  ;;  %v3899_v24 = vmul.f32 1.442695, %v3838_v31  ;;  %v8876_v15 = vmul.f32 %v10246_v56, %v3977_v43  ;;  %v8879_v52 = vmul.f32 %v10246_v56, %v3979_v33 }
 0x514   : > { %v3946_v5 = vadd.f32 %v3945_v40, %v3944_v50  ;;  %v4267_v48 = vsel %vm1874_vm2, %v8817_v12, 0.0  ;;  %v8884_v53 = vmul.f32 %v10246_v56, %v3980_v30  ;;  %v3901_v49 = vmul.f32 1.442695, %v3839_v7 }
 0x515   : > { %5540 = vpow2.f32 %v3897_v28  ;;  %v4238_v62 = vadd.f32 %v4237_v63, %v4236_v35  ;;  %v4241_v23 = vsel %vm1874_vm2, %v8860_v17, 0.0  ;;  %v4266_v43 = vsel %vm1874_vm2, %v8864_v16, 0.0 }
 0x516   : > { %10247 = vst [vmem:[#allocation73_spill] sm:$0xff] %v8884_v53  ;;  %5542 = vrcp.f32 %v3946_v5  ;;  %v3964_v33 = vmul.f32 %v8712_v55, %v8625_v37  ;;  %v3903_v32 = vmul.f32 1.442695, %v3840_v10  ;;  %v4268_v13 = vadd.f32 %v4267_v48, %v4266_v43  ;;  %v10248_v10 = vld [vmem:[#allocation18_spill] sm:$0xff] }
 0x517   : > { %5544 = vpow2.f32 %v3899_v24  ;;  %v4240_v8 = vadd.f32 %v4239_v0, %v4238_v62  ;;  %v4271_v50 = vsel %vm1874_vm2, %v8884_v53, 0.0  ;;  %v4252_v7 = vsel %vm1874_vm2, %v8802_v42, 0.0 }
 0x518   : > { %v5531_v60 = vpop.eup %5530  ;;  %5546 = vpow2.f32 %v3901_v49 }
 0x519   : > { %v3982_v30 = vmul.f32 %v5531_v60, %v8779_v25  ;;  %v3983_v4 = vmul.f32 %v5531_v60, %v8786_v6  ;;  %v3984_v35 = vmul.f32 %v5531_v60, %v8798_v2  ;;  %v3985_v57 = vmul.f32 %v5531_v60, %v8808_v38  ;;  %v8896_v31 = vpop.eup %5532 }
 0x51a   : > { %v4242_v37 = vadd.f32 %v4241_v23, %v4240_v8  ;;  %v8902_v0 = vpop.eup %5534  ;;  %v4270_v2 = vadd.f32 %v8837_v39, %v4268_v13  ;;  %v8912_v38 = vmul.f32 %v10242_v29, %v3964_v33  ;;  %v3947_v24 = vsel %vm1874_vm2, %v8896_v31, 0.0 }
 0x51b   : > { %v8905_v25 = vmul.f32 %v10248_v10, %v3983_v4  ;;  %v8908_v6 = vmul.f32 %v10248_v10, %v3985_v57  ;;  %v8914_v40 = vpop.eup %5536  ;;  %v8917_v28 = vmul.f32 %v10248_v10, %v3984_v35  ;;  %v3948_v63 = vsel %vm1874_vm2, %v8902_v0, 0.0 }
 0x51c   : > { %5548 = vpow2.f32 %v3903_v32  ;;  %v8923_v5 = vpop.eup %5538  ;;  %v3949_v48 = vadd.f32 %v3948_v63, %v3947_v24  ;;  %v4272_v62 = vadd.f32 %v4271_v50, %v4270_v2  ;;  %v8930_v23 = vmul.f32 %v10248_v10, %v3982_v30 }
 0x51d   : > { %10249 = vst [vmem:[#allocation74_spill] sm:$0xff] %v8908_v6  ;;  %v4273_v39 = vsel %vm1874_vm2, %v8908_v6, 0.0  ;;  %v4243_v49 = vsel %vm1874_vm2, %v8905_v25, 0.0  ;;  %v3950_v43 = vsel %vm1874_vm2, %v8914_v40, 0.0  ;;  %v4254_v60 = vsel %vm1874_vm2, %v8833_v54, 0.0 }
 0x51e   : > { %v4244_v33 = vadd.f32 %v4243_v49, %v4242_v37  ;;  %v3951_v32 = vadd.f32 %v3950_v43, %v3949_v48  ;;  %v3952_v8 = vsel %vm1874_vm2, %v8923_v5, 0.0  ;;  %v4274_v13 = vadd.f32 %v4273_v39, %v4272_v62 }
 0x51f   : > { %v4251_v4 = vsel %vm1874_vm2, %v8912_v38, 0.0  ;;  %v8940_v35 = vpop.eup %5540  ;;  %v4256_v30 = vsel %vm1874_vm2, %v8879_v52, 0.0  ;;  %v4258_v50 = vsel %vm1874_vm2, %v8917_v28, 0.0  ;;  %v3962_v37 = vmul.f32 %v8712_v55, %v8612_v44 }
 0x520   : > { %v4253_v57 = vadd.f32 %v4252_v7, %v4251_v4  ;;  %v5543_v2 = vpop.eup %5542  ;;  %v3953_v24 = vadd.f32 %v3952_v8, %v3951_v32  ;;  %v3954_v63 = vsel %vm1874_vm2, %v8940_v35, 0.0  ;;  %v4222_v39 = vsel %vm1874_vm2, %v8789_v18, 0.0 }
 0x521   : > { %v4224_v7 = vsel %vm1874_vm2, %v8820_v61, 0.0  ;;  %v8954_v48 = vpop.eup %5544  ;;  %v3987_v49 = vmul.f32 %v5543_v2, %v8843_v20  ;;  %v3988_v62 = vmul.f32 %v5543_v2, %v8845_v1  ;;  %v3989_v43 = vmul.f32 %v5543_v2, %v8853_v59 }
 0x522   : > { %v3990_v44 = vmul.f32 %v5543_v2, %v8857_v46  ;;  %5550 = vrcp.f32 %v3953_v24  ;;  %v3955_v55 = vsel %vm1874_vm2, %v8954_v48, 0.0  ;;  %v4255_v32 = vadd.f32 %v4254_v60, %v4253_v57  ;;  %v8965_v4 = vpop.eup %5546 }
 0x523   : > { %v8963_v8 = vmul.f32 %v10242_v29, %v3962_v37  ;;  %v8968_v47 = vmul.f32 %v10250_v26, %v3988_v62  ;;  %v8971_v20 = vmul.f32 %v10250_v26, %v3989_v43  ;;  %v4226_v59 = vsel %vm1874_vm2, %v8876_v15, 0.0 }
 0x524   : > { %v8974_v1 = vmul.f32 %v10250_v26, %v3990_v44  ;;  %v8979_v46 = vmul.f32 %v10250_v26, %v3987_v49  ;;  %v3956_v60 = vadd.f32 %v3955_v55, %v3954_v63  ;;  %v4257_v57 = vadd.f32 %v4256_v30, %v4255_v32 }
 0x525   : > { %v4221_v37 = vsel %vm1874_vm2, %v8963_v8, 0.0  ;;  %v3957_v62 = vsel %vm1874_vm2, %v8965_v4, 0.0  ;;  %v4245_v43 = vsel %vm1874_vm2, %v8968_v47, 0.0  ;;  %v4260_v30 = vsel %vm1874_vm2, %v8971_v20, 0.0 }
 0x526   : > { %v8983_v2 = vpop.eup %5548  ;;  %v4275_v24 = vsel %vm1874_vm2, %v8974_v1, 0.0  ;;  %v4223_v44 = vadd.f32 %v4222_v39, %v4221_v37  ;;  %v3958_v58 = vadd.f32 %v3957_v62, %v3956_v60  ;;  %v4246_v49 = vadd.f32 %v4245_v43, %v4244_v33  ;;  %v5627_v43 = vld [vmem:[%s9879_s4 + $0x1] ss:$0 sm:$0xff] }
 0x527   : > { %v4276_v34 = vadd.f32 %v4275_v24, %v4274_v13  ;;  %v3959_v63 = vsel %vm1874_vm2, %v8983_v2, 0.0  ;;  %v4038_v55 = vsub.f32 %v10243_v51, %v8851_v14  ;;  %v4259_v32 = vadd.f32 %v4258_v50, %v4257_v57  ;;  %v5626_v13 = vld [vmem:[%s9879_s4 + $0x5] ss:$0 sm:$0xff] }
 0x528   : > { %v4225_v21 = vadd.f32 %v4224_v7, %v4223_v44  ;;  %v3960_v41 = vadd.f32 %v3959_v63, %v3958_v58  ;;  %v4228_v11 = vsel %vm1874_vm2, %v8930_v23, 0.0  ;;  %v4034_v39 = vsub.f32 %v10242_v29, %v8777_v19  ;;  %v5630_v63 = vld [vmem:[%s9880_s5 + $0x1] ss:$0 sm:$0xff] }
 0x529   : > { %v4042_v33 = vsub.f32 %v10244_v27, %v8811_v36  ;;  %v4070_v60 = vmul.f32 %v5626_v13, %v8851_v14  ;;  %v4261_v37 = vadd.f32 %v4260_v30, %v4259_v32  ;;  %v4230_v58 = vsel %vm1874_vm2, %v8979_v46, 0.0  ;;  %v5631_v13 = vld [vmem:[%s9880_s5 + $0x5] ss:$0 sm:$0xff] }
 0x52a   : > { %v4227_v24 = vadd.f32 %v4226_v59, %v4225_v21  ;;  %5552 = vrcp.f32 %v3960_v41  ;;  %v4046_v50 = vsub.f32 %v10246_v56, %v8860_v17  ;;  %v4050_v7 = vsub.f32 %v10248_v10, %v8905_v25  ;;  %v5628_v41 = vld [vmem:[%s9879_s4 + $0x9] ss:$0 sm:$0xff] }
 0x52b   : > { %v4054_v62 = vsub.f32 %v10250_v26, %v8968_v47  ;;  %v4066_v21 = vmul.f32 %v5627_v43, %v8777_v19  ;;  %v4074_v59 = vmul.f32 %v5628_v41, %v8811_v36  ;;  %v4098_v32 = vmul.f32 %v5630_v63, %v4034_v39  ;;  %v5632_v43 = vld [vmem:[%s9880_s5 + $0x9] ss:$0 sm:$0xff]  ;;  %v5633_v39 = vld [vmem:[%s9879_s4 + $0x11] ss:$0 sm:$0xff]  ;;  %v5634_v63 = vld [vmem:[%s9880_s5 + $0xd] ss:$0 sm:$0xff] }
 0x52c   : > { %v4229_v57 = vadd.f32 %v4228_v11, %v4227_v24  ;;  %v5551_v44 = vpop.eup %5550  ;;  %v5629_v11 = vld [vmem:[%s9879_s4 + $0xd] ss:$0 sm:$0xff]  ;;  %v4102_v24 = vmul.f32 %v5631_v13, %v4038_v55  ;;  %v4106_v41 = vmul.f32 %v5632_v43, %v4042_v33  ;;  %v4082_v55 = vmul.f32 %v5633_v39, %v8905_v25 }
 0x52d   : > { %v4078_v30 = vmul.f32 %v5629_v11, %v8860_v17  ;;  %v3992_v45 = vmul.f32 %v5551_v44, %v8896_v31  ;;  %v3993_v22 = vmul.f32 %v5551_v44, %v8902_v0  ;;  %v3994_v11 = vmul.f32 %v5551_v44, %v8914_v40  ;;  %v5635_v31 = vld [vmem:[%s9880_s5 + $0x11] ss:$0 sm:$0xff] }
 0x52e   : > { %v3995_v3 = vmul.f32 %v5551_v44, %v8923_v5  ;;  %v4231_v53 = vadd.f32 %v4230_v58, %v4229_v57  ;;  %v4110_v33 = vmul.f32 %v5634_v63, %v4046_v50  ;;  %v4114_v0 = vmul.f32 %v5635_v31, %v4050_v7  ;;  %v10251_v40 = vld [vmem:[#allocation20_spill] sm:$0xff] }
 0x52f   : > { %v9051_v13 = vmul.f32 %v10251_v40, %v3992_v45  ;;  %v9054_v5 = vmul.f32 %v10251_v40, %v3993_v22  ;;  %v9057_v58 = vmul.f32 %v10251_v40, %v3994_v11  ;;  %v5636_v50 = vld [vmem:[%s9880_s5 + $0x15] ss:$0 sm:$0xff]  ;;  %v4130_v43 = vsub.f32 %v4066_v21, %v4098_v32 }
 0x530   : > { %v9060_v57 = vmul.f32 %v10251_v40, %v3995_v3  ;;  %v4118_v44 = vmul.f32 %v5636_v50, %v4054_v62  ;;  %v4134_v39 = vsub.f32 %v4070_v60, %v4102_v24  ;;  %v4138_v7 = vsub.f32 %v4074_v59, %v4106_v41  ;;  %v5637_v62 = vld [vmem:[%s9879_s4 + $0x15] ss:$0 sm:$0xff] }
 0x531   : > { %v4247_v22 = vsel %vm1874_vm2, %v9054_v5, 0.0  ;;  %v4262_v11 = vsel %vm1874_vm2, %v9057_v58, 0.0  ;;  %v4232_v3 = vsel %vm1874_vm2, %v9051_v13, 0.0  ;;  %v4058_v60 = vsub.f32 %v10251_v40, %v9054_v5 }
 0x532   : > { %v4277_v45 = vsel %vm1874_vm2, %v9060_v57, 0.0  ;;  %v4248_v63 = vadd.f32 %v4247_v22, %v4246_v49  ;;  %v4263_v6 = vadd.f32 %v4262_v11, %v4261_v37  ;;  %v4233_v12 = vadd.f32 %v4232_v3, %v4231_v53 }
 0x533   : > { %v4278_v31 = vadd.f32 %v4277_v45, %v4276_v34  ;;  %v4086_v21 = vmul.f32 %v5637_v62, %v8968_v47  ;;  %v4142_v59 = vsub.f32 %v4078_v30, %v4110_v33  ;;  %v4146_v24 = vsub.f32 %v4082_v55, %v4114_v0  ;;  %v5638_v30 = vld [vmem:[%s9879_s4 + $0x19] ss:$0 sm:$0xff] }
 0x534   : > { %v5553_v32 = vpop.eup %5552  ;;  %v4176_v41 = vsel %vm1874_vm2, %v4130_v43, 0.0  ;;  %v4177_v50 = vsel %vm1874_vm2, %v4134_v39, 0.0  ;;  %v4179_v34 = vsel %vm1874_vm2, %v4138_v7, 0.0  ;;  %v4090_v55 = vmul.f32 %v5638_v30, %v9054_v5  ;;  %v5639_v33 = vld [vmem:[%s9880_s5 + $0x19] ss:$0 sm:$0xff] }
 0x535   : > { %v3997_v53 = vmul.f32 %v5553_v32, %v8940_v35  ;;  %v3998_v49 = vmul.f32 %v5553_v32, %v8954_v48  ;;  %v3999_v37 = vmul.f32 %v5553_v32, %v8965_v4  ;;  %v4000_v45 = vmul.f32 %v5553_v32, %v8983_v2  ;;  %v10252_v35 = vld [vmem:[#allocation21_spill] sm:$0xff] }
 0x536   : > { %v4122_v0 = vmul.f32 %v5639_v33, %v4058_v60  ;;  %v4150_v43 = vsub.f32 %v4086_v21, %v4118_v44  ;;  %v4178_v39 = vadd.f32 %v4177_v50, %v4176_v41  ;;  %v4181_v3 = vsel %vm1874_vm2, %v4142_v59, 0.0  ;;  %v5640_v33 = vld [vmem:[%s9879_s4 + $0x1d] ss:$0 sm:$0xff] }
 0x537   : > { %v9094_v7 = vmul.f32 %v10252_v35, %v3997_v53  ;;  %v9097_v48 = vmul.f32 %v10252_v35, %v3998_v49  ;;  %v9100_v4 = vmul.f32 %v10252_v35, %v3999_v37  ;;  %v9103_v2 = vmul.f32 %v10252_v35, %v4000_v45 }
 0x538   : > { %v4154_v22 = vsub.f32 %v4090_v55, %v4122_v0  ;;  %v4180_v11 = vadd.f32 %v4179_v34, %v4178_v39  ;;  %v4183_v60 = vsel %vm1874_vm2, %v4146_v24, 0.0  ;;  %v4185_v49 = vsel %vm1874_vm2, %v4150_v43, 0.0 }
 0x539   : > { %v4234_v44 = vsel %vm1874_vm2, %v9094_v7, 0.0  ;;  %v4249_v62 = vsel %vm1874_vm2, %v9097_v48, 0.0  ;;  %v4264_v21 = vsel %vm1874_vm2, %v9100_v4, 0.0  ;;  %v4279_v32 = vsel %vm1874_vm2, %v9103_v2, 0.0 }
 0x53a   : > { %v4250_v41 = vadd.f32 %v4249_v62, %v4248_v63  ;;  %v4280_v50 = vadd.f32 %v4279_v32, %v4278_v31  ;;  %v4265_v53 = vadd.f32 %v4264_v21, %v4263_v6  ;;  %v4235_v34 = vadd.f32 %v4234_v44, %v4233_v12  ;;  %v5641_v12 = vld [vmem:[%s9880_s5 + $0x1d] ss:$0 sm:$0xff]  ;;  %v5642_v44 = vld [vmem:[%s9879_s4 + $0x2] ss:$0 sm:$0xff] }
 0x53b   : > { %v4062_v59 = vsub.f32 %v10252_v35, %v9097_v48  ;;  %v4182_v24 = vadd.f32 %v4181_v3, %v4180_v11  ;;  %v4035_v55 = vsub.f32 %v10242_v29, %v8912_v38  ;;  %v4094_v63 = vmul.f32 %v5640_v33, %v9097_v48 }
 0x53c   : > { %v4282_v37 = vadd.f32 1e-05, %v4250_v41  ;;  %v4284_v45 = vadd.f32 1e-05, %v4280_v50  ;;  %v4283_v30 = vadd.f32 1e-05, %v4265_v53  ;;  %v4039_v39 = vsub.f32 %v10243_v51, %v8802_v42 }
 0x53d   : > { %v4126_v6 = vmul.f32 %v5641_v12, %v4062_v59  ;;  %v4184_v31 = vadd.f32 %v4183_v60, %v4182_v24  ;;  %v4281_v0 = vadd.f32 1e-05, %v4235_v34  ;;  %v4187_v43 = vsel %vm1874_vm2, %v4154_v22, 0.0  ;;  %v5643_v53 = vld [vmem:[%s9879_s4 + $0x6] ss:$0 sm:$0xff] }
 0x53e   : > { %5554 = vrcp.f32 %v4282_v37  ;;  %v4067_v62 = vmul.f32 %v5642_v44, %v8912_v38  ;;  %v4043_v60 = vsub.f32 %v10244_v27, %v8833_v54  ;;  %v4047_v21 = vsub.f32 %v10246_v56, %v8879_v52  ;;  %v5644_v59 = vld [vmem:[%s9880_s5 + $0x2] ss:$0 sm:$0xff] }
 0x53f   : > { %5556 = vrcp.f32 %v4284_v45  ;;  %v4158_v11 = vsub.f32 %v4094_v63, %v4126_v6  ;;  %v4186_v3 = vadd.f32 %v4185_v49, %v4184_v31  ;;  %v4051_v41 = vsub.f32 %v10248_v10, %v8917_v28  ;;  %v5645_v49 = vld [vmem:[%s9880_s5 + $0x6] ss:$0 sm:$0xff] }
 0x540   : > { %5558 = vrcp.f32 %v4283_v30  ;;  %v4055_v50 = vsub.f32 %v10250_v26, %v8971_v20  ;;  %v4071_v34 = vmul.f32 %v5643_v53, %v8802_v42  ;;  %v4099_v24 = vmul.f32 %v5644_v59, %v4035_v55  ;;  %v5646_v55 = vld [vmem:[%s9880_s5 + $0xa] ss:$0 sm:$0xff]  ;;  %v5652_v53 = vld [vmem:[%s9880_s5 + $0x16] ss:$0 sm:$0xff] }
 0x541   : > { %v4188_v22 = vadd.f32 %v4187_v43, %v4186_v3  ;;  %v4189_v32 = vsel %vm1874_vm2, %v4158_v11, 0.0  ;;  %5560 = vrcp.f32 %v4281_v0  ;;  %v4103_v37 = vmul.f32 %v5645_v49, %v4039_v39  ;;  %v5647_v0 = vld [vmem:[%s9879_s4 + $0x3] ss:$0 sm:$0xff]  ;;  %v5648_v39 = vld [vmem:[%s9879_s4 + $0xa] ss:$0 sm:$0xff] }
 0x542   : > { %v4059_v33 = vsub.f32 %v10251_v40, %v9057_v58  ;;  %v4063_v63 = vsub.f32 %v10252_v35, %v9100_v4  ;;  %v4107_v12 = vmul.f32 %v5646_v55, %v4043_v60  ;;  %v4131_v6 = vsub.f32 %v4067_v62, %v4099_v24  ;;  %v5649_v3 = vld [vmem:[%s9879_s4 + $0xe] ss:$0 sm:$0xff] }
 0x543   : > { %v9155_v30 = vadd.f32 %v4189_v32, %v4188_v22  ;;  %v4135_v31 = vsub.f32 %v4071_v34, %v4103_v37  ;;  %v9168_v43 = vmul.f32 %v5647_v0, %v8864_v16  ;;  %v4075_v11 = vmul.f32 %v5648_v39, %v8833_v54  ;;  %v5650_v62 = vld [vmem:[%s9880_s5 + $0xe] ss:$0 sm:$0xff]  ;;  %v5651_v22 = vld [vmem:[%s9880_s5 + $0x12] ss:$0 sm:$0xff]  ;;  %v5656_v0 = vld [vmem:[%s9879_s4 + $0x1e] ss:$0 sm:$0xff] }
 0x544   : > { %v4079_v44 = vmul.f32 %v5649_v3, %v8879_v52  ;;  %v4111_v60 = vmul.f32 %v5650_v62, %v4047_v21  ;;  %v9184_v32 = vmul.f32 %v5651_v22, %v4051_v41  ;;  %v9189_v34 = vmul.f32 %v5652_v53, %v4055_v50  ;;  %v5653_v21 = vld [vmem:[%s9879_s4 + $0x12] ss:$0 sm:$0xff]  ;;  %v5654_v41 = vld [vmem:[%s9879_s4 + $0x16] ss:$0 sm:$0xff]  ;;  %v5655_v50 = vld [vmem:[%s9879_s4 + $0x1a] ss:$0 sm:$0xff] }
 0x545   : > { %10253 = vst [vmem:[#allocation23_spill] sm:$0xff] %v9155_v30  ;;  %v4191_v59 = vsel %vm1874_vm2, %v4131_v6, 0.0  ;;  %v4192_v24 = vsel %vm1874_vm2, %v4135_v31, 0.0  ;;  %v4083_v49 = vmul.f32 %v5653_v21, %v8917_v28  ;;  %v9201_v37 = vmul.f32 %v5654_v41, %v8971_v20  ;;  %v5657_v3 = vld [vmem:[%s9880_s5 + $0x1a] ss:$0 sm:$0xff] }
 0x546   : > { %v9207_v55 = vmul.f32 %v5655_v50, %v9057_v58  ;;  %v4193_v6 = vadd.f32 %v4192_v24, %v4191_v59  ;;  %v9213_v39 = vmul.f32 %v5656_v0, %v9100_v4  ;;  %v4123_v62 = vmul.f32 %v5657_v3, %v4059_v33  ;;  %v5658_v22 = vld [vmem:[%s9880_s5 + $0x1e] ss:$0 sm:$0xff] }
 0x547   : > { %v9221_v53 = vmul.f32 %v5658_v22, %v4063_v63  ;;  %v4139_v59 = vsub.f32 %v4075_v11, %v4107_v12  ;;  %v4143_v0 = vsub.f32 %v4079_v44, %v4111_v60  ;;  %v4147_v3 = vsub.f32 %v4083_v49, %v9184_v32 }
 0x548   : > { %v5555_v31 = vpop.eup %5554  ;;  %v4151_v63 = vsub.f32 %v9201_v37, %v9189_v34  ;;  %v4155_v44 = vsub.f32 %v9207_v55, %v4123_v62 }
 0x549   : > { %v5557_v24 = vpop.eup %5556  ;;  %v4294_v21 = vmul.f32 %v5555_v31, %v8851_v14  ;;  %v4288_v41 = vmul.f32 %v5555_v31, %v8777_v19  ;;  %v9226_v50 = vmul.f32 %v5555_v31, %v8905_v25  ;;  %v9230_v33 = vmul.f32 %v5555_v31, %v8860_v17 }
 0x54a   : > { %v5559_v45 = vpop.eup %5558  ;;  %v4292_v30 = vmul.f32 %v5557_v24, %v8864_v16  ;;  %v4194_v60 = vsel %vm1874_vm2, %v4139_v59, 0.0  ;;  %v10263_v59 = vld [vmem:[#allocation73_spill] sm:$0xff] }
 0x54b   : > { %4348 = vperm.xlu0 %5286, %v4294_v21   ;;  %4328 = vperm.xlu1 %5287, %v4288_v41   ;;  %v4290_v14 = vmul.f32 %v5559_v45, %v8912_v38  ;;  %v4295_v19 = vmul.f32 %v5559_v45, %v8802_v42  ;;  %v9238_v25 = vmul.f32 %v5559_v45, %v8879_v52  ;;  %v5561_v12 = vpop.eup %5560  ;;  %v4198_v41 = vsel %vm1874_vm2, %v4147_v3, 0.0  ;;  %v10261_v3 = vld [vmem:[#allocation67_spill] sm:$0xff] }
 0x54c   : > { %v9241_v11 = vmul.f32 %v5559_v45, %v8833_v54  ;;  %v9244_v17 = vmul.f32 %v5559_v45, %v8971_v20  ;;  %v9249_v32 = vmul.f32 %v5559_v45, %v8917_v28  ;;  %v9252_v38 = vmul.f32 %v5555_v31, %v9054_v5 }
 0x54d   : > { %v9255_v42 = vmul.f32 %v5555_v31, %v8968_v47  ;;  %v9258_v52 = vmul.f32 %v5557_v24, %v9060_v57  ;;  %v9261_v54 = vmul.f32 %v5557_v24, %v8974_v1  ;;  %v9264_v20 = vmul.f32 %v5559_v45, %v9100_v4 }
 0x54e   : > { %v9267_v34 = vmul.f32 %v5559_v45, %v9057_v58  ;;  %v9270_v28 = vmul.f32 %v5555_v31, %v9097_v48  ;;  %v9273_v47 = vmul.f32 %v5561_v12, %v8963_v8  ;;  %v9276_v5 = vmul.f32 %v5557_v24, %v9103_v2 }
 0x54f   : > { %4338 = vperm.xlu0 %5286, %v4292_v30   ;;  %4333 = vperm.xlu1 %5287, %v4290_v14   ;;  %v9279_v49 = vmul.f32 %v5561_v12, %v8820_v61  ;;  %v4196_v4 = vsel %vm1874_vm2, %v4143_v0, 0.0  ;;  %v9283_v37 = vmul.f32 %v5561_v12, %v8789_v18  ;;  %v9286_v58 = vmul.f32 %v5561_v12, %v8930_v23 }
 0x550   : > { %v9289_v48 = vmul.f32 %v5561_v12, %v8876_v15  ;;  %v9292_v45 = vmul.f32 %v5561_v12, %v9051_v13  ;;  %v4298_v30 = vmul.f32 %v5555_v31, %v8811_v36  ;;  %v9296_v55 = vmul.f32 %v5561_v12, %v8979_v46 }
 0x551   : > { %10254 = vst [vmem:[#allocation22_spill] sm:$0xff] %v9279_v49  ;;  %10255 = vst [vmem:[#allocation68_spill] sm:$0xff] %v9283_v37  ;;  %v9299_v62 = vmul.f32 %v5561_v12, %v9094_v7  ;;  %v4195_v22 = vadd.f32 %v4194_v60, %v4193_v6  ;;  %v4159_v21 = vsub.f32 %v9213_v39, %v9221_v53  ;;  %v4200_v12 = vsel %vm1874_vm2, %v4151_v63, 0.0  ;;  %v5662_v49 = vld [vmem:[%s9879_s4 + $0x4] ss:$0 sm:$0xff] }
 0x552   : > { %10256 = vst [vmem:[#allocation61_spill] sm:$0xff] %v9286_v58  ;;  %10257 = vst [vmem:[#allocation66_spill] sm:$0xff] %v9289_v48  ;;  %v4037_v0 = vsub.f32 %v10243_v51, %v8789_v18  ;;  %v4041_v31 = vsub.f32 %v10244_v27, %v8820_v61  ;;  %v4045_v6 = vsub.f32 %v10246_v56, %v8876_v15  ;;  %v4202_v39 = vsel %vm1874_vm2, %v4155_v44, 0.0  ;;  %v5661_v58 = vld [vmem:[%s9880_s5 + $0xc] ss:$0 sm:$0xff] }
 0x553   : > { %10258 = vst [vmem:[#allocation69_spill] sm:$0xff] %v9292_v45  ;;  %10259 = vst [vmem:[#allocation58_spill] sm:$0xff] %v9296_v55  ;;  %4368 = vperm.xlu0 %5286, %v4298_v30   ;;  %4353 = vperm.xlu1 %5287, %v4295_v19   ;;  %v4197_v36 = vadd.f32 %v4196_v4, %v4195_v22  ;;  %v4300_v14 = vmul.f32 %v5557_v24, %v8814_v9  ;;  %v10262_v30 = vld [vmem:[#allocation74_spill] sm:$0xff] }
 0x554   : > { %10260 = vst [vmem:[#allocation63_spill] sm:$0xff] %v9299_v62  ;;  %v4049_v53 = vsub.f32 %v10248_v10, %v8930_v23  ;;  %v4296_v60 = vmul.f32 %v5557_v24, %v10261_v3  ;;  %v9319_v19 = vmul.f32 %v5557_v24, %v10262_v30  ;;  %v4053_v22 = vsub.f32 %v10250_v26, %v8979_v46  ;;  %v5659_v55 = vld [vmem:[%s9880_s5 + $0x4] ss:$0 sm:$0xff] }
 0x555   : > { %v4199_v4 = vadd.f32 %v4198_v41, %v4197_v36  ;;  %v9324_v62 = vmul.f32 %v5557_v24, %v10263_v59  ;;  %v4057_v63 = vsub.f32 %v10251_v40, %v9051_v13  ;;  %v4061_v44 = vsub.f32 %v10252_v35, %v9094_v7  ;;  %v5660_v24 = vld [vmem:[%s9880_s5 + $0x8] ss:$0 sm:$0xff] }
 0x556   : > { %v4101_v45 = vmul.f32 %v5659_v55, %v4037_v0  ;;  %v4204_v36 = vsel %vm1874_vm2, %v4159_v21, 0.0  ;;  %v4105_v48 = vmul.f32 %v5660_v24, %v4041_v31  ;;  %v4109_v37 = vmul.f32 %v5661_v58, %v4045_v6  ;;  %v5663_v21 = vld [vmem:[%s9879_s4 + $0x8] ss:$0 sm:$0xff]  ;;  %v5664_v31 = vld [vmem:[%s9879_s4 + $0xc] ss:$0 sm:$0xff] }
 0x557   : > { %4378 = vperm.xlu0 %5286, %v4300_v14   ;;  %4358 = vperm.xlu1 %5287, %v4296_v60   ;;  %v4201_v41 = vadd.f32 %v4200_v12, %v4199_v4  ;;  %v4069_v55 = vmul.f32 %v5662_v49, %v8789_v18  ;;  %v4073_v0 = vmul.f32 %v5663_v21, %v8820_v61  ;;  %v5665_v58 = vld [vmem:[%s9880_s5 + $0x10] ss:$0 sm:$0xff]  ;;  %v5667_v61 = vld [vmem:[%s9879_s4 + $0x14] ss:$0 sm:$0xff] }
 0x558   : > { %v4077_v14 = vmul.f32 %v5664_v31, %v8876_v15  ;;  %v9355_v6 = vmul.f32 %v5665_v58, %v4049_v53  ;;  %v5666_v18 = vld [vmem:[%s9879_s4 + $0x10] ss:$0 sm:$0xff]  ;;  %v9365_v60 = vmul.f32 %v5667_v61, %v8979_v46  ;;  %v5668_v15 = vld [vmem:[%s9880_s5 + $0x14] ss:$0 sm:$0xff]  ;;  %v5671_v46 = vld [vmem:[%s9880_s5 + $0x1c] ss:$0 sm:$0xff]  ;;  %v4060_v61 = vsub.f32 %v10251_v40, %v9060_v57 }
 0x559   : > { %v4203_v12 = vadd.f32 %v4202_v39, %v4201_v41  ;;  %v4081_v49 = vmul.f32 %v5666_v18, %v8930_v23  ;;  %v9370_v53 = vmul.f32 %v5668_v15, %v4053_v22  ;;  %v5669_v39 = vld [vmem:[%s9879_s4 + $0x18] ss:$0 sm:$0xff]  ;;  %v9386_v24 = vmul.f32 %v5671_v46, %v4061_v44  ;;  %v5681_v46 = vld [vmem:[%s9879_s4 + $0xf] ss:$0 sm:$0xff] }
 0x55a   : > { %v9376_v4 = vmul.f32 %v5669_v39, %v9051_v13  ;;  %v5670_v23 = vld [vmem:[%s9880_s5 + $0x18] ss:$0 sm:$0xff]  ;;  %v4133_v22 = vsub.f32 %v4069_v55, %v4101_v45  ;;  %v4137_v13 = vsub.f32 %v4073_v0, %v4105_v48  ;;  %v4141_v31 = vsub.f32 %v4077_v14, %v4109_v37  ;;  %v5673_v45 = vld [vmem:[%s9879_s4] ss:$0 sm:$0xff]  ;;  %v5678_v39 = vld [vmem:[%s9880_s5 + $0xb] ss:$0 sm:$0xff] }
 0x55b   : > { %v9381_v41 = vmul.f32 %v5670_v23, %v4057_v63  ;;  %4393 = vperm.xlu0 %5286, %v9238_v25   ;;  %4373 = vperm.xlu1 %5287, %v9241_v11   ;;  %v9390_v21 = vadd.f32 %v4204_v36, %v4203_v12  ;;  %v5672_v63 = vld [vmem:[%s9879_s4 + $0x1c] ss:$0 sm:$0xff]  ;;  %v4145_v18 = vsub.f32 %v4081_v49, %v9355_v6  ;;  %v5674_v11 = vld [vmem:[%s9880_s5] ss:$0 sm:$0xff] }
 0x55c   : > { %v9396_v58 = vmul.f32 %v5672_v63, %v9094_v7  ;;  %v4065_v25 = vmul.f32 %v5673_v45, %v8963_v8  ;;  %v10264_v37 = vsub.f32 %v10242_v29, %v8963_v8  ;;  %v4149_v7 = vsub.f32 %v9365_v60, %v9370_v53  ;;  %v5677_v53 = vld [vmem:[%s9880_s5 + $0x7] ss:$0 sm:$0xff]  ;;  %v5684_v45 = vld [vmem:[%s9880_s5 + $0x17] ss:$0 sm:$0xff] }
 0x55d   : > { %v4040_v44 = vsub.f32 %v10243_v51, %v10261_v3  ;;  %v4044_v36 = vsub.f32 %v10244_v27, %v8814_v9  ;;  %v4048_v55 = vsub.f32 %v10246_v56, %v10263_v59  ;;  %v4153_v0 = vsub.f32 %v9376_v4, %v9381_v41 }
 0x55e   : > { %v4097_v48 = vmul.f32 %v5674_v11, %v10264_v37  ;;  %v4162_v14 = vsel %vm1874_vm2, %v4133_v22, 0.0  ;;  %v4052_v8 = vsub.f32 %v10248_v10, %v10262_v30  ;;  %v4157_v51 = vsub.f32 %v9396_v58, %v9386_v24  ;;  %v5675_v10 = vld [vmem:[%s9879_s4 + $0x7] ss:$0 sm:$0xff]  ;;  %v5682_v22 = vld [vmem:[%s9880_s5 + $0x13] ss:$0 sm:$0xff] }
 0x55f   : > { %4408 = vperm.xlu0 %5286, %v9226_v50   ;;  %4388 = vperm.xlu1 %5287, %v9230_v33   ;;  %v4164_v27 = vsel %vm1874_vm2, %v4137_v13, 0.0  ;;  %v4166_v56 = vsel %vm1874_vm2, %v4141_v31, 0.0  ;;  %v4056_v12 = vsub.f32 %v10250_v26, %v8974_v1  ;;  %v4072_v50 = vmul.f32 %v5675_v10, %v10261_v3  ;;  %v5676_v33 = vld [vmem:[%s9880_s5 + $0x3] ss:$0 sm:$0xff]  ;;  %v5679_v3 = vld [vmem:[%s9880_s5 + $0xf] ss:$0 sm:$0xff] }
 0x560   : > { %v4129_v6 = vsub.f32 %v4065_v25, %v4097_v48  ;;  %v10265_v60 = vsub.f32 %v10242_v29, %v8864_v16  ;;  %v4104_v40 = vmul.f32 %v5677_v53, %v4040_v44  ;;  %v4108_v4 = vmul.f32 %v5678_v39, %v4044_v36  ;;  %v5680_v16 = vld [vmem:[%s9879_s4 + $0xb] ss:$0 sm:$0xff]  ;;  %v5683_v58 = vld [vmem:[%s9879_s4 + $0x13] ss:$0 sm:$0xff]  ;;  %v5689_v10 = vld [vmem:[%s9879_s4 + $0x1f] ss:$0 sm:$0xff] }
 0x561   : > { %v4112_v23 = vmul.f32 %v5679_v3, %v4048_v55  ;;  %v4064_v29 = vsub.f32 %v10252_v35, %v9103_v2  ;;  %v4076_v41 = vmul.f32 %v5680_v16, %v8814_v9  ;;  %v4080_v24 = vmul.f32 %v5681_v46, %v10263_v59  ;;  %v10268_v3 = vld [vmem:[#allocation22_spill] sm:$0xff] }
 0x562   : > { %v4161_v49 = vsel %vm1874_vm2, %v4129_v6, 0.0  ;;  %v4100_v15 = vmul.f32 %v5676_v33, %v10265_v60  ;;  %v4116_v13 = vmul.f32 %v5682_v22, %v4052_v8  ;;  %v4168_v35 = vsel %vm1874_vm2, %v4145_v18, 0.0  ;;  %v5687_v8 = vld [vmem:[%s9879_s4 + $0x1b] ss:$0 sm:$0xff] }
 0x563   : > { %v4163_v26 = vadd.f32 %v4162_v14, %v4161_v49  ;;  %4418 = vperm.xlu0 %5286, %v9319_v19   ;;  %4398 = vperm.xlu1 %5287, %v9324_v62   ;;  %v4136_v63 = vsub.f32 %v4072_v50, %v4104_v40  ;;  %v4084_v59 = vmul.f32 %v5683_v58, %v10262_v30  ;;  %v4170_v62 = vsel %vm1874_vm2, %v4149_v7, 0.0  ;;  %v5686_v30 = vld [vmem:[%s9880_s5 + $0x1b] ss:$0 sm:$0xff] }
 0x564   : > { %v4132_v9 = vsub.f32 %v9168_v43, %v4100_v15  ;;  %v4120_v25 = vmul.f32 %v5684_v45, %v4056_v12  ;;  %v4140_v19 = vsub.f32 %v4076_v41, %v4108_v4  ;;  %v4144_v11 = vsub.f32 %v4080_v24, %v4112_v23  ;;  %v5685_v43 = vld [vmem:[%s9879_s4 + $0x17] ss:$0 sm:$0xff]  ;;  %v10271_v23 = vld [vmem:[#allocation66_spill] sm:$0xff] }
 0x565   : > { %v4165_v31 = vadd.f32 %v4164_v27, %v4163_v26  ;;  %v4088_v37 = vmul.f32 %v5685_v43, %v8974_v1  ;;  %v4124_v48 = vmul.f32 %v5686_v30, %v4060_v61  ;;  %v4148_v44 = vsub.f32 %v4084_v59, %v4116_v13 }
 0x566   : > { %v4206_v36 = vsel %vm1874_vm2, %v4132_v9, 0.0  ;;  %v4207_v55 = vsel %vm1874_vm2, %v4136_v63, 0.0  ;;  %v4209_v14 = vsel %vm1874_vm2, %v4140_v19, 0.0  ;;  %v4172_v7 = vsel %vm1874_vm2, %v4153_v0, 0.0  ;;  %v10276_v63 = vld [vmem:[#allocation34_spill] sm:$0xff] }
 0x567   : > { %v4167_v18 = vadd.f32 %v4166_v56, %v4165_v31  ;;  %4433 = vperm.xlu0 %5286, %v9244_v17   ;;  %4413 = vperm.xlu1 %5287, %v9249_v32   ;;  %v4208_v1 = vadd.f32 %v4207_v55, %v4206_v36  ;;  %v4092_v27 = vmul.f32 %v5687_v8, %v9060_v57  ;;  %v5688_v56 = vld [vmem:[%s9880_s5 + $0x1f] ss:$0 sm:$0xff]  ;;  %v4211_v17 = vsel %vm1874_vm2, %v4144_v11, 0.0  ;;  %v10282_v8 = vld [vmem:[#allocation44_spill] sm:$0xff] }
 0x568   : > { %v4128_v12 = vmul.f32 %v5688_v56, %v4064_v29  ;;  %v4152_v49 = vsub.f32 %v4088_v37, %v4120_v25  ;;  %v4174_v0 = vsel %vm1874_vm2, %v4157_v51, 0.0  ;;  %v4096_v50 = vmul.f32 %v5689_v10, %v9103_v2  ;;  %v10272_v29 = vld [vmem:[#allocation69_spill] sm:$0xff]  ;;  %v10277_v25 = vld [vmem:[#allocation35_spill] sm:$0xff] }
 0x569   : > { %v4169_v6 = vadd.f32 %v4168_v35, %v4167_v18  ;;  %v4210_v32 = vadd.f32 %v4209_v14, %v4208_v1  ;;  %v4156_v33 = vsub.f32 %v4092_v27, %v4124_v48  ;;  %v4213_v57 = vsel %vm1874_vm2, %v4148_v44, 0.0  ;;  %v10278_v11 = vld [vmem:[#allocation41_spill] sm:$0xff]  ;;  %v10280_v14 = vld [vmem:[#allocation32_spill] sm:$0xff] }
 0x56a   : > { %v4160_v26 = vsub.f32 %v4096_v50, %v4128_v12  ;;  %v4215_v53 = vsel %vm1874_vm2, %v4152_v49, 0.0  ;;  %v10279_v44 = vld [vmem:[#allocation33_spill] sm:$0xff] }
 0x56b   : > { %v4171_v61 = vadd.f32 %v4170_v62, %v4169_v6  ;;  %4448 = vperm.xlu0 %5286, %v9252_v38   ;;  %4428 = vperm.xlu1 %5287, %v9255_v42   ;;  %v4212_v15 = vadd.f32 %v4211_v17, %v4210_v32  ;;  %v4217_v39 = vsel %vm1874_vm2, %v4156_v33, 0.0  ;;  %v10281_v6 = vld [vmem:[#allocation43_spill] sm:$0xff]  ;;  %v10285_v33 = vld [vmem:[#allocation37_spill] sm:$0xff] }
 0x56c   : > { %v4219_v4 = vsel %vm1874_vm2, %v4160_v26, 0.0  ;;  %v10283_v17 = vld [vmem:[#allocation39_spill] sm:$0xff]  ;;  %v10286_v26 = vld [vmem:[#allocation38_spill] sm:$0xff] }
 0x56d   : > { %v4173_v60 = vadd.f32 %v4172_v7, %v4171_v61  ;;  %v4214_v51 = vadd.f32 %v4213_v57, %v4212_v15 }
 0x56f   : > { %v9507_v40 = vadd.f32 %v4174_v0, %v4173_v60  ;;  %4458 = vperm.xlu0 %5286, %v9258_v52   ;;  %4438 = vperm.xlu1 %5287, %v9261_v54   ;;  %v4216_v2 = vadd.f32 %v4215_v53, %v4214_v51  ;;  %v10269_v52 = vld [vmem:[#allocation68_spill] sm:$0xff]  ;;  %v10270_v54 = vld [vmem:[#allocation61_spill] sm:$0xff] }
 0x570   : > { %v10284_v0 = vld [vmem:[#allocation36_spill] sm:$0xff] }
 0x571   : > { %10266 = vst [vmem:[#allocation60_spill] sm:$0xff] %v9507_v40  ;;  %v4218_v38 = vadd.f32 %v4217_v39, %v4216_v2 }
 0x573   : > { %4473 = vperm.xlu0 %5286, %v9264_v20   ;;  %4453 = vperm.xlu1 %5287, %v9267_v34   ;;  %v9515_v42 = vadd.f32 %v4219_v4, %v4218_v38  ;;  %v10273_v20 = vld [vmem:[#allocation58_spill] sm:$0xff]  ;;  %v10274_v34 = vld [vmem:[#allocation23_spill] sm:$0xff]  ;;  %v10289_v38 = vld [vmem:[#allocation49_spill] sm:$0xff] }
 0x575   : > { %10267 = vst [vmem:[#allocation62_spill] sm:$0xff] %v9515_v42  ;;  %v10296_v42 = vld [vmem:[#allocation46_spill] sm:$0xff] }
 0x577   : > { %4468 = vperm.xlu1 %5287, %v9270_v28   ;;  %4323 = vperm.xlu0 %5286, %v9273_v47   ;;  %v10275_v28 = vld [vmem:[#allocation63_spill] sm:$0xff] }
 0x57b   : > { %4478 = vperm.xlu1 %5287, %v9276_v5   ;;  %4363 = vperm.xlu0 %5286, %v10268_v3  }
 0x57f   : > { %4343 = vperm.xlu1 %5287, %v10269_v52   ;;  %4403 = vperm.xlu0 %5286, %v10270_v54  }
 0x583   : > { %4383 = vperm.xlu1 %5287, %v10271_v23   ;;  %4443 = vperm.xlu0 %5286, %v10272_v29  }
 0x587   : > { %4423 = vperm.xlu1 %5287, %v10273_v20   ;;  %4734 = vrot.lane.b32.xlu0 %v10274_v34, %s5828_s18  ;;  %v10290_v34 = vld [vmem:[#allocation40_spill] sm:$0xff]  ;;  %s4791_s18 = scalar_lea.sflag [#allocation6], %s5978_s14 }
 0x58b   : > { %4463 = vperm.xlu1 %5287, %v10275_v28  }
 0x58f   : > { %4738 = vrot.lane.b32.xlu1 %v9390_v21, %s5829_s13  ;;  %s5718_s13 = scalar_lea.vmem %s9782_s23, 128 }
 0x590   : > { %p5719_p0 = scmp.ne.s32.totalorder %s9782_s23, %s5718_s13 }
 0x592   : > { %p5720_p4 = pnand %p5719_p0, %p10315_p2 }
 0x594   : > { %p5721_p7 = pneg %p5720_p4 }
 0x5ca   : > { %v9529_v47 = vpop.permute.xlu0 %4348  ;;  %v9531_v5 = vpop.permute.xlu1 %4328 }
 0x5cb   : > { %v4486_v36 = vmul.f32 %v9529_v47, %v10279_v44  ;;  %v4482_v7 = vmul.f32 %v9531_v5, %v10280_v14 }
 0x5cd   : > { %v4529_v32 = vsel %vm2032_vm3, %v4486_v36, 0.0  ;;  %v4528_v50 = vsel %vm2032_vm3, %v4482_v7, 0.0 }
 0x5ce   : > { %v9533_v16 = vpop.permute.xlu0 %4338  ;;  %v9535_v41 = vpop.permute.xlu1 %4333  ;;  %v4530_v52 = vadd.f32 %v4529_v32, %v4528_v50  ;;  %v10295_v32 = vld [vmem:[#allocation47_spill] sm:$0xff] }
 0x5cf   : > { %v4483_v19 = vmul.f32 %v9535_v41, %v10277_v25  ;;  %v4484_v57 = vmul.f32 %v9533_v16, %v10285_v33 }
 0x5d1   : > { %v4543_v30 = vsel %vm2032_vm3, %v4483_v19, 0.0  ;;  %v4558_v29 = vsel %vm2032_vm3, %v4484_v57, 0.0  ;;  %v10291_v19 = vld [vmem:[#allocation45_spill] sm:$0xff] }
 0x5d2   : > { %v9537_v46 = vpop.permute.xlu0 %4368  ;;  %v9539_v24 = vpop.permute.xlu1 %4353 }
 0x5d3   : > { %v4487_v58 = vmul.f32 %v9539_v24, %v10276_v63  ;;  %v4490_v61 = vmul.f32 %v9537_v46, %v10283_v17 }
 0x5d5   : > { %v4544_v18 = vsel %vm2032_vm3, %v4487_v58, 0.0  ;;  %v4531_v4 = vsel %vm2032_vm3, %v4490_v61, 0.0 }
 0x5d6   : > { %v9541_v22 = vpop.permute.xlu0 %4378  ;;  %v9543_v13 = vpop.permute.xlu1 %4358  ;;  %v4545_v55 = vadd.f32 %v4544_v18, %v4543_v30  ;;  %v4532_v20 = vadd.f32 %v4531_v4, %v4530_v52 }
 0x5d7   : > { %v4488_v10 = vmul.f32 %v9543_v13, %v10284_v0  ;;  %v4492_v28 = vmul.f32 %v9541_v22, %v10290_v34 }
 0x5d9   : > { %v4559_v54 = vsel %vm2032_vm3, %v4488_v10, 0.0 }
 0x5da   : > { %v9545_v35 = vpop.permute.xlu0 %4393  ;;  %v9547_v31 = vpop.permute.xlu1 %4373 }
 0x5db   : > { %v4491_v62 = vmul.f32 %v9547_v31, %v10278_v11  ;;  %v4495_v1 = vmul.f32 %v9545_v35, %v10281_v6 }
 0x5dd   : > { %v4546_v48 = vsel %vm2032_vm3, %v4491_v62, 0.0  ;;  %v4548_v60 = vsel %vm2032_vm3, %v4495_v1, 0.0  ;;  %v10293_v1 = vld [vmem:[#allocation50_spill] sm:$0xff] }
 0x5de   : > { %v9549_v21 = vpop.permute.xlu0 %4408  ;;  %v9551_v9 = vpop.permute.xlu1 %4388  ;;  %v4547_v56 = vadd.f32 %v4546_v48, %v4545_v55  ;;  %v4560_v48 = vadd.f32 %v4559_v54, %v4558_v29  ;;  %v10292_v55 = vld [vmem:[#allocation55_spill] sm:$0xff] }
 0x5df   : > { %v4494_v53 = vmul.f32 %v9551_v9, %v10286_v26 }
 0x5e0   : > { %v4549_v51 = vadd.f32 %v4548_v60, %v4547_v56  ;;  %v10294_v56 = vld [vmem:[#allocation42_spill] sm:$0xff] }
 0x5e1   : > { %v4533_v58 = vsel %vm2032_vm3, %v4494_v53, 0.0  ;;  %v4498_v61 = vmul.f32 %v9549_v21, %v10294_v56 }
 0x5e2   : > { %v9555_v59 = vpop.permute.xlu0 %4418  ;;  %v9557_v45 = vpop.permute.xlu1 %4398  ;;  %v4534_v57 = vadd.f32 %v4533_v58, %v4532_v20  ;;  %v10297_v58 = vld [vmem:[#allocation48_spill] sm:$0xff] }
 0x5e3   : > { %v4496_v62 = vmul.f32 %v9557_v45, %v10291_v19  ;;  %v4535_v52 = vsel %vm2032_vm3, %v4498_v61, 0.0 }
 0x5e5   : > { %v4563_v53 = vsel %vm2032_vm3, %v4496_v62, 0.0 }
 0x5e6   : > { %v9564_v43 = vpop.permute.xlu0 %4433  ;;  %v9566_v37 = vpop.permute.xlu1 %4413 }
 0x5e7   : > { %v4499_v27 = vmul.f32 %v9566_v37, %v10282_v8  ;;  %v4503_v3 = vmul.f32 %v9564_v43, %v10289_v38 }
 0x5e9   : > { %v4550_v15 = vsel %vm2032_vm3, %v4499_v27, 0.0  ;;  %v4552_v36 = vsel %vm2032_vm3, %v4503_v3, 0.0 }
 0x5ea   : > { %v9578_v12 = vpop.permute.xlu0 %4448  ;;  %v9580_v49 = vpop.permute.xlu1 %4428  ;;  %v4551_v23 = vadd.f32 %v4550_v15, %v4549_v51  ;;  %v4561_v15 = vsel %vm2032_vm3, %v4492_v28, 0.0 }
 0x5eb   : > { %v4502_v10 = vmul.f32 %v9580_v49, %v10295_v32  ;;  %v4562_v4 = vadd.f32 %v4561_v15, %v4560_v48  ;;  %v4506_v28 = vmul.f32 %v9578_v12, %v10297_v58 }
 0x5ec   : > { %v4553_v50 = vadd.f32 %v4552_v36, %v4551_v23  ;;  %v4500_v23 = vmul.f32 %v9555_v59, %v10296_v42  ;;  %v4536_v36 = vadd.f32 %v4535_v52, %v4534_v57  ;;  %v10300_v52 = vld [vmem:[#allocation51_spill] sm:$0xff] }
 0x5ed   : > { %v4537_v54 = vsel %vm2032_vm3, %v4502_v10, 0.0  ;;  %v4564_v20 = vadd.f32 %v4563_v53, %v4562_v4  ;;  %v10299_v4 = vld [vmem:[#allocation52_spill] sm:$0xff] }
 0x5ee   : > { %v9594_v39 = vpop.permute.xlu0 %4458  ;;  %v9596_v2 = vpop.permute.xlu1 %4438  ;;  %v4538_v61 = vadd.f32 %v4537_v54, %v4536_v36 }
 0x5ef   : > { %10287 = vst [vmem:[#allocation71_spill] sm:$0xff] %v9594_v39  ;;  %10288 = vst [vmem:[#allocation64_spill] sm:$0xff] %v9596_v2 }
 0x5f2   : > { %v9608_v18 = vpop.permute.xlu0 %4473  ;;  %v9610_v30 = vpop.permute.xlu1 %4453 }
 0x5f3   : > { %v4511_v7 = vmul.f32 %v9608_v18, %v10292_v55  ;;  %v4507_v27 = vmul.f32 %v9610_v30, %v10293_v1 }
 0x5f5   : > { %v4554_v60 = vsel %vm2032_vm3, %v4507_v27, 0.0  ;;  %v4556_v3 = vsel %vm2032_vm3, %v4511_v7, 0.0 }
 0x5f6   : > { %v4555_v51 = vadd.f32 %v4554_v60, %v4553_v50  ;;  %v9627_v40 = vpop.permute.xlu1 %4468  ;;  %v10298_v60 = vld [vmem:[#allocation53_spill] sm:$0xff] }
 0x5f7   : > { %v4510_v15 = vmul.f32 %v9627_v40, %v10298_v60 }
 0x5f8   : > { %v4557_v29 = vadd.f32 %v4556_v3, %v4555_v51 }
 0x5fa   : > { %v4575_v62 = vsub.f32 %v10277_v25, %v4557_v29  ;;  %v4579_v48 = vsub.f32 %v10276_v63, %v4557_v29  ;;  %v4583_v7 = vsub.f32 %v10278_v11, %v4557_v29  ;;  %v4587_v27 = vsub.f32 %v10281_v6, %v4557_v29  ;;  %4757 = vrot.lane.b32.xlu1 %v4557_v29, %s5826_s25 }
 0x5fb   : > { %v4591_v10 = vsub.f32 %v10282_v8, %v4557_v29  ;;  %v4595_v50 = vsub.f32 %v10289_v38, %v4557_v29  ;;  %v4539_v63 = vsel %vm2032_vm3, %v4506_v28, 0.0  ;;  %v4508_v11 = vmul.f32 %v9594_v39, %v10299_v4 }
 0x5fc   : > { %v4607_v53 = vmul.f32 %v4575_v62, %v4575_v62  ;;  %v4611_v57 = vmul.f32 %v4579_v48, %v4579_v48  ;;  %v4615_v51 = vmul.f32 %v4583_v7, %v4583_v7  ;;  %v4619_v25 = vmul.f32 %v4587_v27, %v4587_v27 }
 0x5fd   : > { %v4599_v6 = vsub.f32 %v10293_v1, %v4557_v29  ;;  %v4623_v3 = vmul.f32 %v4591_v10, %v4591_v10  ;;  %v4504_v8 = vmul.f32 %v9596_v2, %v10300_v52  ;;  %v4603_v62 = vsub.f32 %v10292_v55, %v4557_v29 }
 0x5fe   : > { %v4639_v38 = vmul.f32 %v4607_v53, %v9535_v41  ;;  %v4643_v54 = vmul.f32 %v4611_v57, %v9539_v24  ;;  %v4647_v36 = vmul.f32 %v4615_v51, %v9547_v31  ;;  %v4627_v48 = vmul.f32 %v4595_v50, %v4595_v50 }
 0x5ff   : > { %v4651_v28 = vmul.f32 %v4619_v25, %v9545_v35  ;;  %v4541_v7 = vsel %vm2032_vm3, %v4510_v15, 0.0  ;;  %v4565_v27 = vsel %vm2032_vm3, %v4500_v23, 0.0  ;;  %v4540_v39 = vadd.f32 %v4539_v63, %v4538_v61 }
 0x600   : > { %v4699_v1 = vsel %vm2032_vm3, %v4639_v38, 0.0  ;;  %v4700_v10 = vsel %vm2032_vm3, %v4643_v54, 0.0  ;;  %v4566_v2 = vadd.f32 %v4565_v27, %v4564_v20  ;;  %v4631_v41 = vmul.f32 %v4599_v6, %v4599_v6 }
 0x601   : > { %v4655_v24 = vmul.f32 %v4623_v3, %v9566_v37  ;;  %v4701_v53 = vadd.f32 %v4700_v10, %v4699_v1  ;;  %v4569_v31 = vsel %vm2032_vm3, %v4508_v11, 0.0  ;;  %v4567_v55 = vsel %vm2032_vm3, %v4504_v8, 0.0  ;;  %v9672_v8 = vpop.permute.xlu1 %4478 }
 0x602   : > { %v4702_v35 = vsel %vm2032_vm3, %v4647_v36, 0.0  ;;  %v4542_v29 = vadd.f32 %v4541_v7, %v4540_v39  ;;  %v4635_v50 = vmul.f32 %v4603_v62, %v4603_v62  ;;  %v4659_v23 = vmul.f32 %v4627_v48, %v9564_v43 }
 0x603   : > { %v4703_v15 = vadd.f32 %v4702_v35, %v4701_v53  ;;  %v4704_v57 = vsel %vm2032_vm3, %v4651_v28, 0.0  ;;  %v4663_v25 = vmul.f32 %v4631_v41, %v9610_v30  ;;  %v4706_v39 = vsel %vm2032_vm3, %v4655_v24, 0.0  ;;  %v10302_v28 = vld [vmem:[#allocation54_spill] sm:$0xff] }
 0x604   : > { %v4574_v61 = vsub.f32 %v10280_v14, %v4542_v29  ;;  %v4578_v20 = vsub.f32 %v10279_v44, %v4542_v29  ;;  %v4582_v37 = vsub.f32 %v10283_v17, %v4542_v29  ;;  %v4586_v51 = vsub.f32 %v10286_v26, %v4542_v29  ;;  %4753 = vrot.lane.b32.xlu0 %v4542_v29, %s10301_s21 }
 0x605   : > { %v4705_v63 = vadd.f32 %v4704_v57, %v4703_v15  ;;  %v4590_v43 = vsub.f32 %v10294_v56, %v4542_v29  ;;  %v4594_v11 = vsub.f32 %v10295_v32, %v4542_v29  ;;  %v4568_v44 = vadd.f32 %v4567_v55, %v4566_v2 }
 0x606   : > { %v4606_v6 = vmul.f32 %v4574_v61, %v4574_v61  ;;  %v4610_v3 = vmul.f32 %v4578_v20, %v4578_v20  ;;  %v4614_v14 = vmul.f32 %v4582_v37, %v4582_v37  ;;  %v4598_v26 = vsub.f32 %v10297_v58, %v4542_v29 }
 0x607   : > { %v4707_v17 = vadd.f32 %v4706_v39, %v4705_v63  ;;  %v4618_v38 = vmul.f32 %v4586_v51, %v4586_v51  ;;  %v4667_v54 = vmul.f32 %v4635_v50, %v9608_v18  ;;  %v4708_v30 = vsel %vm2032_vm3, %v4659_v23, 0.0 }
 0x608   : > { %v4638_v36 = vmul.f32 %v4606_v6, %v9531_v5  ;;  %v4642_v56 = vmul.f32 %v4610_v3, %v9529_v47  ;;  %v4622_v32 = vmul.f32 %v4590_v43, %v4590_v43  ;;  %v4646_v48 = vmul.f32 %v4614_v14, %v9537_v46 }
 0x609   : > { %v4709_v62 = vadd.f32 %v4708_v30, %v4707_v17  ;;  %v4512_v7 = vmul.f32 %v9672_v8, %v10302_v28  ;;  %v4710_v2 = vsel %vm2032_vm3, %v4663_v25, 0.0  ;;  %v4602_v58 = vsub.f32 %v10298_v60, %v4542_v29 }
 0x60a   : > { %v4626_v27 = vmul.f32 %v4594_v11, %v4594_v11  ;;  %v4684_v18 = vsel %vm2032_vm3, %v4638_v36, 0.0  ;;  %v4630_v10 = vmul.f32 %v4598_v26, %v4598_v26  ;;  %v4650_v5 = vmul.f32 %v4618_v38, %v9551_v9 }
 0x60b   : > { %v4711_v1 = vadd.f32 %v4710_v2, %v4709_v62  ;;  %v4685_v47 = vsel %vm2032_vm3, %v4642_v56, 0.0  ;;  %v4712_v41 = vsel %vm2032_vm3, %v4667_v54, 0.0  ;;  %v4570_v46 = vadd.f32 %v4569_v31, %v4568_v44 }
 0x60c   : > { %v4686_v24 = vadd.f32 %v4685_v47, %v4684_v18  ;;  %v4654_v55 = vmul.f32 %v4622_v32, %v9549_v21  ;;  %v4687_v35 = vsel %vm2032_vm3, %v4646_v48, 0.0  ;;  %v4571_v60 = vsel %vm2032_vm3, %v4512_v7, 0.0  ;;  %v10305_v7 = vld [vmem:[#allocation64_spill] sm:$0xff] }
 0x60d   : > { %v4713_v53 = vadd.f32 %v4712_v41, %v4711_v1  ;;  %v4634_v29 = vmul.f32 %v4602_v58, %v4602_v58  ;;  %v4572_v23 = vadd.f32 %v4571_v60, %v4570_v46  ;;  %v4658_v57 = vmul.f32 %v4626_v27, %v9580_v49  ;;  %v10306_v27 = vld [vmem:[#allocation71_spill] sm:$0xff]  ;;  %v4344_v60 = vpop.permute.xlu1 %4343 }
 0x60e   : > { %v4688_v50 = vadd.f32 %v4687_v35, %v4686_v24  ;;  %v4662_v9 = vmul.f32 %v4630_v10, %v9578_v12  ;;  %v4689_v61 = vsel %vm2032_vm3, %v4650_v5, 0.0  ;;  %v4691_v51 = vsel %vm2032_vm3, %v4654_v55, 0.0  ;;  %v4324_v35 = vpop.permute.xlu0 %4323 }
 0x60f   : > { %v4731_v15 = vadd.f32 1e-05, %v4713_v53  ;;  %v4576_v31 = vsub.f32 %v10285_v33, %v4572_v23  ;;  %v4580_v37 = vsub.f32 %v10284_v0, %v4572_v23  ;;  %v4584_v21 = vsub.f32 %v10290_v34, %v4572_v23  ;;  %4761 = vrot.lane.b32.xlu0 %v4572_v23, %s10303_s20 }
 0x610   : > { %v4690_v20 = vadd.f32 %v4689_v61, %v4688_v50  ;;  %v4588_v25 = vsub.f32 %v10291_v19, %v4572_v23  ;;  %v4592_v63 = vsub.f32 %v10296_v42, %v4572_v23  ;;  %v4666_v49 = vmul.f32 %v4634_v29, %v9627_v40  ;;  %v10307_v29 = vld [vmem:[#allocation25_spill] sm:$0xff] }
 0x611   : > { %v4608_v39 = vmul.f32 %v4576_v31, %v4576_v31  ;;  %v4612_v43 = vmul.f32 %v4580_v37, %v4580_v37  ;;  %v4693_v11 = vsel %vm2032_vm3, %v4658_v57, 0.0  ;;  %v4596_v33 = vsub.f32 %v10300_v52, %v4572_v23 }
 0x612   : > { %v4692_v12 = vadd.f32 %v4691_v51, %v4690_v20  ;;  %v4616_v0 = vmul.f32 %v4584_v21, %v4584_v21  ;;  %v4620_v6 = vmul.f32 %v4588_v25, %v4588_v25  ;;  %v4695_v3 = vsel %vm2032_vm3, %v4662_v9, 0.0  ;;  %v4364_v57 = vpop.permute.xlu0 %4363  ;;  %v4384_v9 = vpop.permute.xlu1 %4383  ;;  %v10309_v20 = vld [vmem:[#allocation26_spill] sm:$0xff]  ;;  %v10310_v21 = vld [vmem:[#allocation27_spill] sm:$0xff] }
 0x613   : > { %v4640_v14 = vmul.f32 %v4608_v39, %v9533_v16  ;;  %4775 = vrot.lane.b32.xlu0 %v4731_v15, %s5826_s25  ;;  %v4600_v42 = vsub.f32 %v10299_v4, %v4572_v23  ;;  %v4624_v19 = vmul.f32 %v4592_v63, %v4592_v63  ;;  %v4644_v40 = vmul.f32 %v4612_v43, %v9543_v13  ;;  %s5830_s25 = smov 3   ;;  %v10304_v4 = vld [vmem:[#allocation62_spill] sm:$0xff]  ;;  %v10311_v43 = vld [vmem:[#allocation28_spill] sm:$0xff] }
 0x614   : > { %v4694_v34 = vadd.f32 %v4693_v11, %v4692_v12  ;;  %v4648_v44 = vmul.f32 %v4616_v0, %v9541_v22  ;;  %v4697_v26 = vsel %vm2032_vm3, %v4666_v49, 0.0  ;;  %v4604_v52 = vsub.f32 %v10302_v28, %v4572_v23  ;;  %v10308_v23 = vld [vmem:[#allocation24_spill] sm:$0xff]  ;;  %v10312_v0 = vld [vmem:[#allocation29_spill] sm:$0xff] }
 0x615   : > { %v4628_v38 = vmul.f32 %v4596_v33, %v4596_v33  ;;  %v4652_v54 = vmul.f32 %v4620_v6, %v9557_v45  ;;  %v4714_v30 = vsel %vm2032_vm3, %v4640_v14, 0.0  ;;  %v4715_v16 = vsel %vm2032_vm3, %v4644_v40, 0.0  ;;  %v10313_v40 = vld [vmem:[#allocation30_spill] sm:$0xff] }
 0x616   : > { %v4696_v17 = vadd.f32 %v4695_v3, %v4694_v34  ;;  %v4716_v56 = vadd.f32 %v4715_v16, %v4714_v30  ;;  %v4632_v13 = vmul.f32 %v4600_v42, %v4600_v42  ;;  %v4656_v22 = vmul.f32 %v4624_v19, %v9555_v59  ;;  %v4404_v63 = vpop.permute.xlu0 %4403  ;;  %v4424_v39 = vpop.permute.xlu1 %4423 }
 0x617   : > { %4742 = vrot.lane.b32.xlu0 %v10304_v4, %s5830_s25  ;;  %v4717_v62 = vsel %vm2032_vm3, %v4648_v44, 0.0  ;;  %v4636_v28 = vmul.f32 %v4604_v52, %v4604_v52  ;;  %v4660_v2 = vmul.f32 %v4628_v38, %v10305_v7  ;;  %v4719_v45 = vsel %vm2032_vm3, %v4652_v54, 0.0 }
 0x618   : > { %v4698_v36 = vadd.f32 %v4697_v26, %v4696_v17  ;;  %v4718_v48 = vadd.f32 %v4717_v62, %v4716_v56  ;;  %v4664_v18 = vmul.f32 %v4632_v13, %v10306_v27  ;;  %v4721_v1 = vsel %vm2032_vm3, %v4656_v22, 0.0  ;;  %v10314_v26 = vld [vmem:[#allocation31_spill] sm:$0xff] }
 0x619   : > { %v4668_v5 = vmul.f32 %v4636_v28, %v9672_v8  ;;  %v4723_v59 = vsel %vm2032_vm3, %v4660_v2, 0.0  ;;  %v4485_v50 = vmul.f32 %v4344_v60, %v10307_v29  ;;  %v4481_v15 = vmul.f32 %v4324_v35, %v10308_v23 }
 0x61a   : > { %v4730_v32 = vadd.f32 1e-05, %v4698_v36  ;;  %v4720_v58 = vadd.f32 %v4719_v45, %v4718_v48  ;;  %v4725_v41 = vsel %vm2032_vm3, %v4664_v18, 0.0  ;;  %v4489_v31 = vmul.f32 %v4364_v57, %v10309_v20  ;;  %v9739_v3 = vpop.permute.xlu0 %4443  ;;  %v9742_v19 = vpop.permute.xlu1 %4463 }
 0x61b   : > { %v4727_v46 = vsel %vm2032_vm3, %v4668_v5, 0.0  ;;  %v4514_v8 = vsel %vm2032_vm3, %v4485_v50, 0.0  ;;  %v4513_v61 = vsel %vm2032_vm3, %v4481_v15, 0.0  ;;  %v4493_v51 = vmul.f32 %v4384_v9, %v10310_v21 }
 0x61c   : > { %4771 = vrot.lane.b32.xlu1 %v4730_v32, %s10301_s21  ;;  %v4722_v10 = vadd.f32 %v4721_v1, %v4720_v58  ;;  %v4515_v37 = vadd.f32 %v4514_v8, %v4513_v61  ;;  %v4516_v25 = vsel %vm2032_vm3, %v4489_v31, 0.0  ;;  %v4497_v11 = vmul.f32 %v4404_v63, %v10311_v43  ;;  %s5831_s21 = smov [#allocation7]  }
 0x61d   : > { %v4518_v12 = vsel %vm2032_vm3, %v4493_v51, 0.0  ;;  %v4501_v6 = vmul.f32 %v4424_v39, %v10312_v0  ;;  %v4505_v44 = vmul.f32 %v9739_v3, %v10313_v40  ;;  %v4509_v52 = vmul.f32 %v9742_v19, %v10314_v26 }
 0x61e   : > { %v4724_v47 = vadd.f32 %v4723_v59, %v4722_v10  ;;  %v4517_v49 = vadd.f32 %v4516_v25, %v4515_v37  ;;  %v4520_v34 = vsel %vm2032_vm3, %v4497_v11, 0.0  ;;  %v9756_v45 = vpop.permute.xlu0 %4734 }
 0x61f   : > { %v4522_v42 = vsel %vm2032_vm3, %v4501_v6, 0.0  ;;  %v4524_v38 = vsel %vm2032_vm3, %v4505_v44, 0.0  ;;  %v4526_v30 = vsel %vm2032_vm3, %v4509_v52, 0.0 }
 0x620   : > { %v4726_v24 = vadd.f32 %v4725_v41, %v4724_v47  ;;  %v4519_v33 = vadd.f32 %v4518_v12, %v4517_v49 }
 0x622   : > { %v4728_v53 = vadd.f32 %v4727_v46, %v4726_v24  ;;  %v4521_v14 = vadd.f32 %v4520_v34, %v4519_v33  ;;  %v9763_v46 = vpop.permute.xlu1 %4738 }
 0x624   : > { %v4732_v55 = vadd.f32 1e-05, %v4728_v53  ;;  %v4523_v17 = vadd.f32 %v4522_v42, %v4521_v14 }
 0x626   : > { %4779 = vrot.lane.b32.xlu1 %v4732_v55, %s10303_s20  ;;  %v4525_v54 = vadd.f32 %v4524_v38, %v4523_v17  ;;  %s5722_s20 = sshll.u32 %s5831_s21, 4  ;;  %s5723_s20 = int_to_ptr.vmem [resolvable:$false] %s5722_s20 }
 0x627   : > { %s5724_s25 = scalar_lea.vmem %s5723_s20, 256  ;;  %p5725_p8 = scmp.lt.s32.totalorder %s9782_s23, %s5723_s20 }
 0x628   : > { %v4527_v16 = vadd.f32 %v4526_v30, %v4525_v54  ;;  %p5726_p9 = scmp.lt.s32.totalorder %s5724_s25, %s5718_s13 }
 0x62a   : > { %v4573_v36 = vsub.f32 %v10308_v23, %v4527_v16  ;;  %v4577_v56 = vsub.f32 %v10307_v29, %v4527_v16  ;;  %v4581_v22 = vsub.f32 %v10309_v20, %v4527_v16  ;;  %v4585_v48 = vsub.f32 %v10310_v21, %v4527_v16  ;;  %p5727_p13 = por %p5726_p9, %p5725_p8 }
 0x62b   : > { %v4589_v58 = vsub.f32 %v10311_v43, %v4527_v16  ;;  %v4593_v10 = vsub.f32 %v10312_v0, %v4527_v16  ;;  %v4597_v55 = vsub.f32 %v10313_v40, %v4527_v16 }
 0x62c   : > { %v4605_v4 = vmul.f32 %v4573_v36, %v4573_v36  ;;  %v4609_v13 = vmul.f32 %v4577_v56, %v4577_v56  ;;  %v4613_v28 = vmul.f32 %v4581_v22, %v4581_v22  ;;  %v4617_v27 = vmul.f32 %v4585_v48, %v4585_v48  ;;  %p5728_p1 = pnand %p5727_p13, %p5721_p7 }
 0x62d   : > { %v4621_v5 = vmul.f32 %v4589_v58, %v4589_v58  ;;  %v4629_v61 = vmul.f32 %v4597_v55, %v4597_v55 }
 0x62e   : > { %v4637_v62 = vmul.f32 %v4605_v4, %v4324_v35  ;;  %v4641_v32 = vmul.f32 %v4609_v13, %v4344_v60  ;;  %v4645_v18 = vmul.f32 %v4613_v28, %v4364_v57  ;;  %v4649_v59 = vmul.f32 %v4617_v27, %v4384_v9 }
 0x62f   : > { %v4625_v35 = vmul.f32 %v4593_v10, %v4593_v10  ;;  %v4653_v60 = vmul.f32 %v4621_v5, %v4404_v63  ;;  %v4601_v9 = vsub.f32 %v10314_v26, %v4527_v16 }
 0x630   : > { %v4669_v7 = vsel %vm2032_vm3, %v4637_v62, 0.0  ;;  %v4670_v2 = vsel %vm2032_vm3, %v4641_v32, 0.0  ;;  %v4672_v47 = vsel %vm2032_vm3, %v4645_v18, 0.0  ;;  %v4674_v29 = vsel %vm2032_vm3, %v4649_v59, 0.0 }
 0x631   : > { %v4671_v1 = vadd.f32 %v4670_v2, %v4669_v7  ;;  %v4657_v20 = vmul.f32 %v4625_v35, %v4424_v39  ;;  %v4676_v31 = vsel %vm2032_vm3, %v4653_v60, 0.0 }
 0x633   : > { %v4673_v24 = vadd.f32 %v4672_v47, %v4671_v1 }
 0x635   : > { %v4675_v50 = vadd.f32 %v4674_v29, %v4673_v24 }
 0x637   : > { %v4677_v37 = vadd.f32 %v4676_v31, %v4675_v50 }
 0x66c   : > { %v4758_v23 = vpop.permute.xlu1 %4757 }
 0x676   : > { %v4754_v41 = vpop.permute.xlu0 %4753 }
 0x677   : > { %v4764_v53 = vsel %vm2032_vm3, %v4527_v16, %v4754_v41 }
 0x678   : > { %v4766_v15 = vsel %vm4765_vm4, %v4764_v53, %v4758_v23 }
 0x681   : > { %v4762_v57 = vpop.permute.xlu0 %4761 }
 0x682   : > { %v4768_v8 = vsel %vm4767_vm5, %v4766_v15, %v4762_v57 }
 0x683   : > { %4769 = vst [vmem:[%s472_s22] sm:$0xff] %v4768_v8 }
 0x684   : > { %5731 = shalt.err (!%p5728_p1)
}
 0x685   : > { %s5732_s22 = scalar_lea.hbm %s9780_s12, 128  ;;  %s5736_s21 = scalar_lea.hbm %s9882_s7, 384 }
 0x686   : > { %p5733_p3 = scmp.ne.s32.totalorder %s9780_s12, %s5732_s22  ;;  %p5737_p10 = scmp.lt.u32.totalorder %s9780_s12, %s9882_s7 }
 0x687   : > { %p5738_p11 = scmp.lt.u32.totalorder %s5736_s21, %s5732_s22  ;;  %p5740_p0 = scmp.lt.u32.totalorder %s5732_s22, %s9780_s12 }
 0x688   : > { %p5734_p5 = pnand %p5733_p3, %p10315_p2 }
 0x689   : > { %p5739_p12 = por %p5738_p11, %p5737_p10 }
 0x68a   : > { %p5735_p6 = pneg %p5734_p5 }
 0x68b   : > { %p5741_p4 = por %p5740_p0, %p5739_p12 }
 0x68d   : > { %p5742_p7 = pnand %p5741_p4, %p5735_p6 }
 0x68f   : > { %5745 = shalt.err (!%p5742_p7)
}
 0x690   : > { %5223 = dma.vmem_to_hbm [thread:$0]  (%p10315_p2), %s9782_s23, 128, %s9780_s12, %s4791_s18   ;;  %v4776_v21 = vpop.permute.xlu0 %4775  ;;  %vm4746_vm6 = vcmask 15360   ;;  %v4633_v51 = vmul.f32 %v4601_v9, %v4601_v9  ;;  %v4661_v25 = vmul.f32 %v4629_v61, %v9739_v3  ;;  %v4678_v63 = vsel %vm2032_vm3, %v4657_v20, 0.0  ;;  %v10316_v49 = vld [vmem:[#allocation60_spill] sm:$0xff]  ;;  %v4772_v42 = vpop.permute.xlu1 %4771 }
 0x691   : > { %s4990_s13 = sshll.u32 %s9772_s24, 3  ;;  %vm4748_vm7 = vcmask 23552   ;;  %v4745_v12 = vsel %vm1874_vm2, %v10316_v49, %v9756_v45  ;;  %v4679_v39 = vadd.f32 %v4678_v63, %v4677_v37  ;;  %vm4750_vm8 = vcmask 31744   ;;  %s479_s23 = scalar_lea.vmem [#allocation8], %s4988_s19 }
 0x692   : > { %s483_s22 = scalar_lea.vmem %s9881_s6, %s4990_s13  ;;  %v4747_v43 = vsel %vm4746_vm6, %v4745_v12, %v9763_v46  ;;  %v4665_v0 = vmul.f32 %v4633_v51, %v9742_v19  ;;  %v4680_v6 = vsel %vm2032_vm3, %v4661_v25, 0.0  ;;  %s4825_s24 = sshll.u32 %s479_s23, 4  ;;  %s9833_s24 = int_to_ptr.vmem [resolvable:$true] %s4825_s24 }
 0x693   : > { %v4681_v34 = vadd.f32 %v4680_v6, %v4679_v39  ;;  %s10317_s12 = sshll.u32 %s5899_s9, 7  ;;  %s4796_s21 = scalar_lea.sflag [#allocation9], %s5978_s14 }
 0x694   : > { %v4743_v11 = vpop.permute.xlu0 %4742  ;;  %v4682_v3 = vsel %vm2032_vm3, %v4665_v0, 0.0  ;;  %s9831_s10 = scalar_lea.hbm %s9883_s8, %s10317_s12  ;;  %s5746_s19 = scalar_lea.vmem %s9833_s24, 128 }
 0x695   : > { %v4749_v33 = vsel %vm4748_vm7, %v4747_v43, %v4743_v11  ;;  %v4683_v14 = vadd.f32 %v4682_v3, %v4681_v34  ;;  %p5747_p8 = scmp.ne.s32.totalorder %s9833_s24, %s5746_s19  ;;  %s5832_s9 = smov [#allocation8]  }
 0x696   : > { %4751 = vst.msk [vmem:[%s483_s22] sm:$0xff] %vm4750_vm8, %v4749_v33  ;;  %s5750_s20 = sshll.u32 %s5832_s9, 4  ;;  %s5751_s20 = int_to_ptr.vmem [resolvable:$false] %s5750_s20 }
 0x697   : > { %v4729_v40 = vadd.f32 1e-05, %v4683_v14  ;;  %p5748_p9 = pnand %p5747_p8, %p10315_p2  ;;  %s5752_s13 = scalar_lea.vmem %s5751_s20, 256 }
 0x698   : > { %v4780_v17 = vpop.permute.xlu1 %4779  ;;  %p5753_p1 = scmp.lt.s32.totalorder %s9833_s24, %s5751_s20  ;;  %p5754_p3 = scmp.lt.s32.totalorder %s5752_s13, %s5746_s19 }
 0x699   : > { %v4782_v44 = vsel %vm2032_vm3, %v4729_v40, %v4772_v42  ;;  %p5749_p13 = pneg %p5748_p9 }
 0x69a   : > { %v4783_v26 = vsel %vm4765_vm4, %v4782_v44, %v4776_v21  ;;  %p5755_p5 = por %p5754_p3, %p5753_p1 }
 0x69b   : > { %v4784_v19 = vsel %vm4767_vm5, %v4783_v26, %v4780_v17 }
 0x69c   : > { %4785 = vst [vmem:[%s479_s23] sm:$0xff] %v4784_v19  ;;  %p5756_p6 = pnand %p5755_p5, %p5749_p13 }
 0x69e   : > { %5759 = shalt.err (!%p5756_p6)
}
 0x69f   : > { %s5760_s14 = scalar_lea.hbm %s9831_s10, 128  ;;  %s5764_s22 = scalar_lea.hbm %s9883_s8, 384 }
 0x6a0   : > { %p5761_p10 = scmp.ne.s32.totalorder %s9831_s10, %s5760_s14  ;;  %p5765_p0 = scmp.lt.u32.totalorder %s9831_s10, %s9883_s8 }
 0x6a1   : > { %p5766_p4 = scmp.lt.u32.totalorder %s5764_s22, %s5760_s14  ;;  %p5768_p8 = scmp.lt.u32.totalorder %s5760_s14, %s9831_s10 }
 0x6a2   : > { %p5762_p11 = pnand %p5761_p10, %p10315_p2 }
 0x6a3   : > { %p5767_p7 = por %p5766_p4, %p5765_p0 }
 0x6a4   : > { %p5763_p12 = pneg %p5762_p11 }
 0x6a5   : > { %p5769_p9 = por %p5768_p8, %p5767_p7 }
 0x6a7   : > { %p5770_p13 = pnand %p5769_p9, %p5763_p12 }
 0x6a9   : > { %5773 = shalt.err (!%p5770_p13)
}
 0x6aa   : > { %5224 = dma.vmem_to_hbm [thread:$0]  (%p10315_p2), %s9833_s24, 128, %s9831_s10, %s4796_s21  }
 0x6ab PF: > { %p5240_p1 = scmp.ge.s32.totalorder %s5816_s30, 2  ;;  %s4844_s18 = sand.u32 1, %s5804_s27  }
 0x6ac   : > { %p10318_p3 = scmp.ne.s32.totalorder %s10055_s17, 0  ;;  %s4845_s26 = scalar_lea.sflag [#allocation6], %s4844_s18 }
 0x6ae   : > { %p5232_p5 = pnand %p5240_p1, %p10318_p3 }
 0x6b0   : > { %5795 = dma.done.wait (!%p5232_p5), %s4845_s26, 128  }
 0x6b1   : > { %5797 = vsyncadd (!%p5232_p5), %s4845_s26, 4294967168  ;;  %s4854_s19 = scalar_lea.sflag [#allocation9], %s4844_s18 }
 0x6b2   : > { %5799 = dma.done.wait (!%p5232_p5), %s4854_s19, 128  }
 0x6b3   : > { %5801 = vsyncadd (!%p5232_p5), %s4854_s19, 4294967168  ;;  %s10319_s16 = sld [smem:[#allocation13_spill]]  ;;  %p23_p2 = scmp.ge.s32.totalorder %s5903_s11, 5  }
 0x6b4   : > { %s10320_s27 = smov %s5808_s28  ;;  %s10321_s28 = smov %s5812_s29 }
 0x6b5   : > { %s10323_s30 = smov %s5903_s11  ;;  %25 = sbr.rel (!%p23_p2) target bundleno = 6 (0x6), region = 223 }
 0x6b9   : > { %s10322_s29 = smov %s10319_s16 }
 0x6bc   :  { %4859 = vsyncpa [#allocation5], 1 }
 0x6bd   :  { %4861 = vsyncpa [#allocation5 + $0x1], 1 }
 0x6be   :  { %4862 = vsyncpa [#allocation6], 1 }
 0x6bf   :  { %4864 = vsyncpa [#allocation6 + $0x1], 1 }
 0x6c0   :  { %4865 = vsyncpa [#allocation9], 1 }
 0x6c1   :  { %4867 = vsyncpa [#allocation9 + $0x1], 1 }

</bundles_post_ra>
